<compile_context>
chip_gen: v6e
topology: v6e:2x2x1
jax: 0.10.0
libtpu: 0.0.40
codegen_flags: <defaults>
</compile_context>

<pallas_src>
import functools
import itertools

import jax
import jax.numpy as jnp
from jax.experimental import pallas as pl
from jax.experimental.pallas import tpu as pltpu


# ---------------------------------------------------------------------------
# Pallas GEMM + bias (the conv hot path)
# ---------------------------------------------------------------------------
TM_MAX = 512   # M tile (output pixels)
TN_MAX = 256   # N tile (output channels)


def _round_up(x, m):
    return (x + m - 1) // m * m


def _mm_bias_kernel(a_ref, b_ref, bias_ref, o_ref, *, relu):
    # Full-K block: single MXU dot per (i, j) tile, bias fused in the epilogue.
    acc = jnp.dot(a_ref[...], b_ref[...], preferred_element_type=jnp.float32)
    acc = acc + bias_ref[...]
    if relu:
        acc = jnp.maximum(acc, 0.0)
    o_ref[...] = acc.astype(o_ref.dtype)


def pallas_matmul_bias(a, b, bias, relu=False):
    """a: (M,K) bf16, b: (K,N) bf16, bias: (N,) f32 -> (M,N) f32."""
    M, K = a.shape
    N = b.shape[1]
    bias2 = bias.astype(jnp.float32).reshape(1, N)

    # Block == full dim is always legal; otherwise keep (8,128) alignment.
    TM = M if M <= TM_MAX else TM_MAX
    if N <= TN_MAX:
        TN = N                                   # no lane padding copy needed
    else:                                        # generic path (unused here)
        Np = _round_up(N, 128)
        if Np != N:
            b = jnp.pad(b, ((0, 0), (0, Np - N)))
            bias2 = jnp.pad(bias2, ((0, 0), (0, Np - N)))
        TN = 256 if Np % 256 == 0 else 128
    Ncols = b.shape[1]

    gm, gn = pl.cdiv(M, TM), pl.cdiv(Ncols, TN)
    cost = pl.CostEstimate(
        flops=2 * M * Ncols * K,
        transcendentals=0,
        bytes_accessed=int(a.size * a.dtype.itemsize
                           + b.size * b.dtype.itemsize
                           + 4 * (M * Ncols + Ncols)),
    )

    out = pl.pallas_call(
        functools.partial(_mm_bias_kernel, relu=relu),
        out_shape=jax.ShapeDtypeStruct((M, Ncols), jnp.float32),
        grid_spec=pltpu.PrefetchScalarGridSpec(
            num_scalar_prefetch=0,
            grid=(gm, gn),
            in_specs=[
                pl.BlockSpec((TM, K), lambda i, j: (i, 0)),
                pl.BlockSpec((K, TN), lambda i, j: (0, j)),
                pl.BlockSpec((1, TN), lambda i, j: (0, j)),
            ],
            out_specs=pl.BlockSpec((TM, TN), lambda i, j: (i, j)),
        ),
        compiler_params=pltpu.CompilerParams(
            dimension_semantics=("parallel", "parallel")),
        cost_estimate=cost,
    )(a, b, bias2)
    return out if Ncols == N else out[:, :N]


def conv2d(x, w, b, padding, relu=False):
    """PyTorch-semantics Conv2d (stride 1) on NHWC activations.

    x: (N,H,W,Cin) f32, w: (O,Cin,kh,kw) PyTorch layout, b: (O,).
    Returns (N,Ho,Wo,O) f32.  Uses the Pallas bf16 GEMM for O >= 8, otherwise
    a plain XLA GEMM (padding a 1-3 channel output to 128 lanes wastes MXU)."""
    N, H, W, C = x.shape
    O, _, kh, kw = w.shape
    ph, pw = padding
    Ho = H + 2 * ph - kh + 1
    Wo = W + 2 * pw - kw + 1
    # weight as (kh*kw*C, O) with C fastest, tap-major (matches patch layout)
    wmat = jnp.transpose(w, (2, 3, 1, 0)).reshape(kh * kw * C, O)

    use_pallas = O >= 8
    dt = jnp.bfloat16 if use_pallas else jnp.float32
    xp = jnp.pad(x.astype(dt), ((0, 0), (ph, ph), (pw, pw), (0, 0)))
    # TODO(synk): fuse im2col into the GEMM's index_map (tap grid axis with
    # element offsets) to avoid materializing the kh*kw-amplified patch matrix.
    cols = [xp[:, i:i + Ho, j:j + Wo, :] for i in range(kh) for j in range(kw)]
    patches = jnp.concatenate(cols, axis=-1).reshape(N * Ho * Wo, kh * kw * C)

    if use_pallas:
        out = pallas_matmul_bias(patches, wmat.astype(jnp.bfloat16), b, relu=relu)
    else:
        out = patches @ wmat + b[None, :]
        if relu:
            out = jnp.maximum(out, 0.0)
    return out.reshape(N, Ho, Wo, O)


# ---------------------------------------------------------------------------
# Plain-JAX glue ops (NHWC): BN, pooling, resizes, grid_sample
# ---------------------------------------------------------------------------
def batchnorm(x, p, eps=1e-5):
    # training-mode BatchNorm2d: biased batch stats over (N,H,W); NHWC layout
    mean = x.mean(axis=(0, 1, 2), keepdims=True)
    var = x.var(axis=(0, 1, 2), keepdims=True)
    xn = (x - mean) * jax.lax.rsqrt(var + eps)
    return xn * p['gamma'] + p['beta']


def avgpool2(x):
    N, H, W, C = x.shape
    return x.reshape(N, H // 2, 2, W // 2, 2, C).mean(axis=(2, 4))


def nearest_up2(x):
    return jnp.repeat(jnp.repeat(x, 2, axis=1), 2, axis=2)


def nearest_resize(x, Ho, Wo):
    N, H, W, C = x.shape
    hi = (jnp.arange(Ho) * H // Ho).astype(jnp.int32)
    wi = (jnp.arange(Wo) * W // Wo).astype(jnp.int32)
    return x[:, hi][:, :, wi]


def bilinear_resize(x, Ho, Wo):
    # matches F.interpolate(mode='bilinear', align_corners=False), NHWC
    N, H, W, C = x.shape

    def coords(out_size, in_size):
        scale = in_size / out_size
        src = (jnp.arange(out_size, dtype=jnp.float32) + 0.5) * scale - 0.5
        src = jnp.maximum(src, 0.0)
        i0 = jnp.minimum(jnp.floor(src).astype(jnp.int32), in_size - 1)
        i1 = jnp.minimum(i0 + 1, in_size - 1)
        lam = src - i0.astype(jnp.float32)
        return i0, i1, lam

    h0, h1, lh = coords(Ho, H)
    w0, w1, lw = coords(Wo, W)
    top = (x[:, h0] * (1 - lh)[None, :, None, None]
           + x[:, h1] * lh[None, :, None, None])
    out = (top[:, :, w0] * (1 - lw)[None, None, :, None]
           + top[:, :, w1] * lw[None, None, :, None])
    return out


def grid_sample(inp, grid):
    # matches F.grid_sample(mode='bilinear', padding_mode='zeros',
    #                       align_corners=False); inp NHWC, grid (N,Hg,Wg,2)
    N, H, W, C = inp.shape
    gx, gy = grid[..., 0], grid[..., 1]
    ix = ((gx + 1.0) * W - 1.0) * 0.5
    iy = ((gy + 1.0) * H - 1.0) * 0.5
    ix0, iy0 = jnp.floor(ix), jnp.floor(iy)
    ix1, iy1 = ix0 + 1, iy0 + 1
    wx1, wy1 = ix - ix0, iy - iy0
    wx0, wy0 = 1.0 - wx1, 1.0 - wy1
    flat = inp.reshape(N, H * W, C)
    Hg, Wg = grid.shape[1], grid.shape[2]

    def sample(xi, yi):
        valid = ((xi >= 0) & (xi <= W - 1) & (yi >= 0) & (yi <= H - 1))
        xc = jnp.clip(xi, 0, W - 1).astype(jnp.int32)
        yc = jnp.clip(yi, 0, H - 1).astype(jnp.int32)
        idx = (yc * W + xc).reshape(N, Hg * Wg, 1)
        g = jnp.take_along_axis(flat, jnp.broadcast_to(idx, (N, Hg * Wg, C)),
                                axis=1).reshape(N, Hg, Wg, C)
        return g * valid[..., None].astype(inp.dtype)

    out = (sample(ix0, iy0) * (wx0 * wy0)[..., None]
           + sample(ix1, iy0) * (wx1 * wy0)[..., None]
           + sample(ix0, iy1) * (wx0 * wy1)[..., None]
           + sample(ix1, iy1) * (wx1 * wy1)[..., None])
    return out


# ---------------------------------------------------------------------------
# Model pieces (activations NHWC)
# ---------------------------------------------------------------------------
def make_coordinate_grid(h, w):
    x = 2.0 * (jnp.arange(w, dtype=jnp.float32) / (w - 1)) - 1.0
    y = 2.0 * (jnp.arange(h, dtype=jnp.float32) / (h - 1)) - 1.0
    xx = jnp.tile(x[None, :], (h, 1))
    yy = jnp.tile(y[:, None], (1, w))
    return jnp.stack([xx, yy], axis=2)           # (h, w, 2)


def kp2gaussian(kp_value, grid, kp_variance):
    # grid (h,w,2), kp (bs,K,2) -> (bs,h,w,K)
    diff = grid[None, :, :, None, :] - kp_value[:, None, None, :, :]
    return jnp.exp(-0.5 * (diff ** 2).sum(-1) / kp_variance)


def anti_alias_down(x, scale):
    # separable depthwise gaussian blur (plain JAX) + nearest downsample, NHWC
    if scale == 1.0:
        return x
    sigma = (1.0 / scale - 1.0) / 2.0
    ks = 2 * round(sigma * 4) + 1
    ka = ks // 2
    coords = jnp.arange(ks, dtype=jnp.float32)
    g = jnp.exp(-(coords - (ks - 1) / 2.0) ** 2 / (2.0 * sigma ** 2))
    g = g / g.sum()
    N, H, W, C = x.shape
    xp = jnp.pad(x, ((0, 0), (ka, ka), (0, 0), (0, 0)))
    xh = sum(g[i] * xp[:, i:i + H, :, :] for i in range(ks))
    xp2 = jnp.pad(xh, ((0, 0), (0, 0), (ka, ka), (0, 0)))
    xw = sum(g[j] * xp2[:, :, j:j + W, :] for j in range(ks))
    Ho, Wo = int(H * scale), int(W * scale)
    return nearest_resize(xw, Ho, Wo)


def same_block(x, p, pad):
    out = conv2d(x, p['conv']['w'], p['conv']['b'], padding=(pad, pad))
    return jax.nn.relu(batchnorm(out, p['bn']))


def down_block(x, p):
    out = conv2d(x, p['conv']['w'], p['conv']['b'], padding=(1, 1))
    out = jax.nn.relu(batchnorm(out, p['bn']))
    return avgpool2(out)


def up_block(x, p):
    out = nearest_up2(x)
    out = conv2d(out, p['conv']['w'], p['conv']['b'], padding=(1, 1))
    return jax.nn.relu(batchnorm(out, p['bn']))


def res_block(x, p):
    out = jax.nn.relu(batchnorm(x, p['bn1']))
    out = conv2d(out, p['conv1']['w'], p['conv1']['b'], padding=(1, 1))
    out = jax.nn.relu(batchnorm(out, p['bn2']))
    out = conv2d(out, p['conv2']['w'], p['conv2']['b'], padding=(1, 1))
    return out + x


def hourglass_forward(x, hp):
    outs = [x]
    for bp in hp['encoder']:
        outs.append(down_block(outs[-1], bp))
    out = outs.pop()
    for bp in hp['decoder']:
        out = up_block(out, bp)
        skip = outs.pop()
        out = jnp.concatenate([out, skip], axis=-1)
    return out


def dense_motion_forward(params, cfg, source_nhwc, kp_driving, kp_source):
    x = anti_alias_down(source_nhwc, cfg['scale_factor'])
    bs, h, w, c = x.shape
    nk = cfg['num_kp']
    var = cfg['kp_variance']
    grid = make_coordinate_grid(h, w)

    # heatmap representation: (bs,h,w,K+1) with channel 0 = zeros
    gd = kp2gaussian(kp_driving, grid, var)
    gs = kp2gaussian(kp_source, grid, var)
    heatmap = jnp.concatenate(
        [jnp.zeros((bs, h, w, 1), x.dtype), gd - gs], axis=-1)

    # sparse motions (no jacobian in kp dicts): (bs,K+1,h,w,2)
    identity = grid[None, None]                               # (1,1,h,w,2)
    driving_to_source = (identity - kp_driving[:, :, None, None, :]
                         + kp_source[:, :, None, None, :])
    sparse_motion = jnp.concatenate(
        [jnp.broadcast_to(identity, (bs, 1, h, w, 2)), driving_to_source], axis=1)

    # deformed source: (bs,K+1,h,w,C)
    src_rep = jnp.broadcast_to(x[:, None], (bs, nk + 1, h, w, c)
                               ).reshape(bs * (nk + 1), h, w, c)
    sm = sparse_motion.reshape(bs * (nk + 1), h, w, 2)
    deformed = grid_sample(src_rep, sm).reshape(bs, nk + 1, h, w, c)

    # hourglass input; channel order matches PyTorch's (K+1, C+1) raveling
    heat5 = jnp.moveaxis(heatmap, -1, 1)[..., None]           # (bs,K+1,h,w,1)
    inp = jnp.concatenate([heat5, deformed], axis=-1)         # (bs,K+1,h,w,C+1)
    inp = jnp.moveaxis(inp, 1, 3).reshape(bs, h, w, (nk + 1) * (c + 1))
    prediction = hourglass_forward(inp, params['hourglass'])

    # mask (K+1 ch) + occlusion (1 ch): shared im2col, one tiny XLA GEMM
    w_cat = jnp.concatenate([params['mask']['w'], params['occlusion']['w']], axis=0)
    b_cat = jnp.concatenate([params['mask']['b'], params['occlusion']['b']], axis=0)
    mo = conv2d(prediction, w_cat, b_cat, padding=(3, 3))
    mask = jax.nn.softmax(mo[..., :nk + 1], axis=-1)          # (bs,h,w,K+1)
    occlusion = jax.nn.sigmoid(mo[..., nk + 1:])              # (bs,h,w,1)

    mask_k = jnp.moveaxis(mask, -1, 1)[..., None]             # (bs,K+1,h,w,1)
    deformation = (sparse_motion * mask_k).sum(axis=1)        # (bs,h,w,2)

    return {'sparse_deformed': jnp.transpose(deformed, (0, 1, 4, 2, 3)),
            'mask': jnp.moveaxis(mask, -1, 1),
            'deformation': deformation,
            'occlusion_map': occlusion}                        # NHWC internal


def deform_input(inp, deformation):
    _, h_old, w_old, _ = deformation.shape
    _, h, w, _ = inp.shape
    if h_old != h or w_old != w:
        deformation = bilinear_resize(deformation, h, w)
    return grid_sample(inp, deformation)


def generator_forward(params, cfg, source_image, kp_driving, kp_source):
    # PyTorch API is NCHW; convert once and stay NHWC internally.
    source_nhwc = jnp.transpose(source_image, (0, 2, 3, 1))

    out = same_block(source_nhwc, params['first'], pad=3)
    for p in params['down_blocks']:
        out = down_block(out, p)

    output = {}
    dm = dense_motion_forward(params['dense_motion'], cfg,
                              source_nhwc, kp_driving, kp_source)
    output['mask'] = dm['mask']
    output['sparse_deformed'] = dm['sparse_deformed']
    occ = dm['occlusion_map']                                  # (bs,h,w,1)
    output['occlusion_map'] = jnp.transpose(occ, (0, 3, 1, 2))
    deformation = dm['deformation']

    out = deform_input(out, deformation)
    if out.shape[1] != occ.shape[1] or out.shape[2] != occ.shape[2]:
        occ = bilinear_resize(occ, out.shape[1], out.shape[2])
    out = out * occ
    output['deformed'] = jnp.transpose(
        deform_input(source_nhwc, deformation), (0, 3, 1, 2))

    for p in params['bottleneck']:
        out = res_block(out, p)
    for p in params['up_blocks']:
        out = up_block(out, p)
    out = conv2d(out, params['final']['w'], params['final']['b'], padding=(3, 3))
    output['prediction'] = jnp.transpose(jax.nn.sigmoid(out), (0, 3, 1, 2))
    return output


# ---------------------------------------------------------------------------
# Deterministic parameter initialization (PyTorch weight layout (O,C,kh,kw))
# ---------------------------------------------------------------------------
def init_conv(key, out_c, in_c, kh, kw):
    wk, bk = jax.random.split(key)
    return {'w': jax.random.normal(wk, (out_c, in_c, kh, kw), jnp.float32) * 0.05,
            'b': jax.random.normal(bk, (out_c,), jnp.float32) * 0.05}


def init_bn(c):
    return {'gamma': jnp.ones((c,), jnp.float32),
            'beta': jnp.zeros((c,), jnp.float32)}


def init_dense_motion(key, cfg):
    nk, nc = cfg['num_kp'], cfg['num_channels']
    be, mf, nb = cfg['dm_block_expansion'], cfg['dm_max_features'], cfg['dm_num_blocks']
    in_feat = (nk + 1) * (nc + 1)
    cnt = itertools.count()
    sk = lambda: jax.random.fold_in(key, next(cnt))
    enc = []
    for i in range(nb):
        cin = in_feat if i == 0 else min(mf, be * 2 ** i)
        cout = min(mf, be * 2 ** (i + 1))
        enc.append({'conv': init_conv(sk(), cout, cin, 3, 3), 'bn': init_bn(cout)})
    dec = []
    for i in range(nb)[::-1]:
        cin = (1 if i == nb - 1 else 2) * min(mf, be * 2 ** (i + 1))
        cout = min(mf, be * 2 ** i)
        dec.append({'conv': init_conv(sk(), cout, cin, 3, 3), 'bn': init_bn(cout)})
    out_filters = be + in_feat
    return {'hourglass': {'encoder': enc, 'decoder': dec},
            'mask': init_conv(sk(), nk + 1, out_filters, 7, 7),
            'occlusion': init_conv(sk(), 1, out_filters, 7, 7)}


def init_generator(key, cfg):
    nc, be, mf = cfg['num_channels'], cfg['block_expansion'], cfg['max_features']
    ndb, nbb = cfg['num_down_blocks'], cfg['num_bottleneck_blocks']
    cnt = itertools.count()
    sk = lambda: jax.random.fold_in(key, next(cnt))
    params = {'dense_motion': init_dense_motion(jax.random.fold_in(key, 9999), cfg),
              'first': {'conv': init_conv(sk(), be, nc, 7, 7), 'bn': init_bn(be)}}
    params['down_blocks'] = []
    for i in range(ndb):
        cin, cout = min(mf, be * 2 ** i), min(mf, be * 2 ** (i + 1))
        params['down_blocks'].append(
            {'conv': init_conv(sk(), cout, cin, 3, 3), 'bn': init_bn(cout)})
    params['up_blocks'] = []
    for i in range(ndb):
        cin = min(mf, be * 2 ** (ndb - i))
        cout = min(mf, be * 2 ** (ndb - i - 1))
        params['up_blocks'].append(
            {'conv': init_conv(sk(), cout, cin, 3, 3), 'bn': init_bn(cout)})
    cbot = min(mf, be * 2 ** ndb)
    params['bottleneck'] = []
    for _ in range(nbb):
        params['bottleneck'].append(
            {'conv1': init_conv(sk(), cbot, cbot, 3, 3),
             'conv2': init_conv(sk(), cbot, cbot, 3, 3),
             'bn1': init_bn(cbot), 'bn2': init_bn(cbot)})
    params['final'] = init_conv(sk(), nc, be, 7, 7)
    return params


# ---------------------------------------------------------------------------
if __name__ == "__main__":
    # small but structurally faithful hyperparameters
    cfg = dict(num_channels=3, num_kp=2,
               block_expansion=16, max_features=64,
               num_down_blocks=2, num_bottleneck_blocks=2,
               dm_block_expansion=16, dm_max_features=64, dm_num_blocks=2,
               scale_factor=0.25, kp_variance=0.01)

    key = jax.random.PRNGKey(0)
    pkey, xkey, dkey, skey = jax.random.split(key, 4)
    params = init_generator(pkey, cfg)

    source_image = jax.random.uniform(xkey, (2, 3, 32, 32), jnp.float32)
    kp_driving = jax.random.uniform(dkey, (2, cfg['num_kp'], 2), jnp.float32, -1.0, 1.0)
    kp_source = jax.random.uniform(skey, (2, cfg['num_kp'], 2), jnp.float32, -1.0, 1.0)

    forward = jax.jit(lambda s, kd, ks: generator_forward(params, cfg, s, kd, ks))
    out = forward(source_image, kp_driving, kp_source)
    jax.block_until_ready(out['prediction'])
    assert out['prediction'].shape == (2, 3, 32, 32)
    print("KERNEL_OK")
</pallas_src>

<mosaic_0001>
module attributes {stable_mosaic.version = 11 : i64} {
  func.func @_mm_bias_kernel(%arg0: i32, %arg1: i32, %arg2: memref<512x147xbf16, #tpu.memory_space<vmem>>, %arg3: memref<147x16xbf16, #tpu.memory_space<vmem>>, %arg4: memref<1x16xf32, #tpu.memory_space<vmem>>, %arg5: memref<512x16xf32, #tpu.memory_space<vmem>>) attributes {dimension_semantics = [#tpu.dimension_semantics<parallel>, #tpu.dimension_semantics<parallel>], iteration_bounds = array<i64: 4, 1>, scalar_prefetch = 0 : i64, scratch_operands = 0 : i64, tpu.core_type = #tpu.core_type<tc>, window_params = [{transform_indices = @transform_0, window_bounds = array<i64: 512, 147>}, {transform_indices = @transform_1, window_bounds = array<i64: 147, 16>}, {transform_indices = @transform_2, window_bounds = array<i64: 1, 16>}, {transform_indices = @transform_3, window_bounds = array<i64: 512, 16>}]} {
    %c0 = arith.constant 0 : index
    %c0_0 = arith.constant 0 : index
    %0 = vector.load %arg2[%c0, %c0_0] : memref<512x147xbf16, #tpu.memory_space<vmem>>, vector<512x147xbf16>
    %c0_1 = arith.constant 0 : index
    %c0_2 = arith.constant 0 : index
    %1 = vector.load %arg3[%c0_1, %c0_2] : memref<147x16xbf16, #tpu.memory_space<vmem>>, vector<147x16xbf16>
    %cst = arith.constant dense<0.000000e+00> : vector<512x16xf32>
    %2 = tpu.matmul %0, %1, %cst {dimension_numbers = #tpu.dot_dimension_numbers<[1], [0], [0], [1], [0, 0, 1, 1], [], []>} : vector<512x147xbf16>, vector<147x16xbf16>, vector<512x16xf32> -> vector<512x16xf32>
    %c0_3 = arith.constant 0 : index
    %c0_4 = arith.constant 0 : index
    %3 = vector.load %arg4[%c0_3, %c0_4] : memref<1x16xf32, #tpu.memory_space<vmem>>, vector<1x16xf32>
    %4 = vector.broadcast %3 : vector<1x16xf32> to vector<512x16xf32>
    %5 = arith.addf %2, %4 : vector<512x16xf32>
    %c0_5 = arith.constant 0 : index
    %c0_6 = arith.constant 0 : index
    %6 = vector.load %arg5[%c0_5, %c0_6] : memref<512x16xf32, #tpu.memory_space<vmem>>, vector<512x16xf32>
    tpu.vector_store %arg5[%c0_5, %c0_6], %5 {strides = array<i32>} : memref<512x16xf32, #tpu.memory_space<vmem>>, vector<512x16xf32>,
    return
  }
  func.func @transform_0(%arg0: i32, %arg1: i32) -> (i32, i32) {
    %c0_i32 = arith.constant 0 : i32
    %c0_i32_0 = arith.constant 0 : i32
    return %arg0, %c0_i32 : i32, i32
  }
  func.func @transform_1(%arg0: i32, %arg1: i32) -> (i32, i32) {
    %c0_i32 = arith.constant 0 : i32
    %c0_i32_0 = arith.constant 0 : i32
    return %c0_i32, %arg1 : i32, i32
  }
  func.func @transform_2(%arg0: i32, %arg1: i32) -> (i32, i32) {
    %c0_i32 = arith.constant 0 : i32
    %c0_i32_0 = arith.constant 0 : i32
    return %c0_i32, %arg1 : i32, i32
  }
  func.func @transform_3(%arg0: i32, %arg1: i32) -> (i32, i32) {
    %c0_i32 = arith.constant 0 : i32
    return %arg0, %arg1 : i32, i32
  }
}

module attributes {stable_mosaic.version = 11 : i64} {
  func.func @_mm_bias_kernel(%arg0: i32, %arg1: i32, %arg2: memref<512x144xbf16, #tpu.memory_space<vmem>>, %arg3: memref<144x32xbf16, #tpu.memory_space<vmem>>, %arg4: memref<1x32xf32, #tpu.memory_space<vmem>>, %arg5: memref<512x32xf32, #tpu.memory_space<vmem>>) attributes {dimension_semantics = [#tpu.dimension_semantics<parallel>, #tpu.dimension_semantics<parallel>], iteration_bounds = array<i64: 4, 1>, scalar_prefetch = 0 : i64, scratch_operands = 0 : i64, tpu.core_type = #tpu.core_type<tc>, window_params = [{transform_indices = @transform_0, window_bounds = array<i64: 512, 144>}, {transform_indices = @transform_1, window_bounds = array<i64: 144, 32>}, {transform_indices = @transform_2, window_bounds = array<i64: 1, 32>}, {transform_indices = @transform_3, window_bounds = array<i64: 512, 32>}]} {
    %c0 = arith.constant 0 : index
    %c0_0 = arith.constant 0 : index
    %0 = vector.load %arg2[%c0, %c0_0] : memref<512x144xbf16, #tpu.memory_space<vmem>>, vector<512x144xbf16>
    %c0_1 = arith.constant 0 : index
    %c0_2 = arith.constant 0 : index
    %1 = vector.load %arg3[%c0_1, %c0_2] : memref<144x32xbf16, #tpu.memory_space<vmem>>, vector<144x32xbf16>
    %cst = arith.constant dense<0.000000e+00> : vector<512x32xf32>
    %2 = tpu.matmul %0, %1, %cst {dimension_numbers = #tpu.dot_dimension_numbers<[1], [0], [0], [1], [0, 0, 1, 1], [], []>} : vector<512x144xbf16>, vector<144x32xbf16>, vector<512x32xf32> -> vector<512x32xf32>
    %c0_3 = arith.constant 0 : index
    %c0_4 = arith.constant 0 : index
    %3 = vector.load %arg4[%c0_3, %c0_4] : memref<1x32xf32, #tpu.memory_space<vmem>>, vector<1x32xf32>
    %4 = vector.broadcast %3 : vector<1x32xf32> to vector<512x32xf32>
    %5 = arith.addf %2, %4 : vector<512x32xf32>
    %c0_5 = arith.constant 0 : index
    %c0_6 = arith.constant 0 : index
    %6 = vector.load %arg5[%c0_5, %c0_6] : memref<512x32xf32, #tpu.memory_space<vmem>>, vector<512x32xf32>
    tpu.vector_store %arg5[%c0_5, %c0_6], %5 {strides = array<i32>} : memref<512x32xf32, #tpu.memory_space<vmem>>, vector<512x32xf32>,
    return
  }
  func.func @transform_0(%arg0: i32, %arg1: i32) -> (i32, i32) {
    %c0_i32 = arith.constant 0 : i32
    %c0_i32_0 = arith.constant 0 : i32
    return %arg0, %c0_i32 : i32, i32
  }
  func.func @transform_1(%arg0: i32, %arg1: i32) -> (i32, i32) {
    %c0_i32 = arith.constant 0 : i32
    %c0_i32_0 = arith.constant 0 : i32
    return %c0_i32, %arg1 : i32, i32
  }
  func.func @transform_2(%arg0: i32, %arg1: i32) -> (i32, i32) {
    %c0_i32 = arith.constant 0 : i32
    %c0_i32_0 = arith.constant 0 : i32
    return %c0_i32, %arg1 : i32, i32
  }
  func.func @transform_3(%arg0: i32, %arg1: i32) -> (i32, i32) {
    %c0_i32 = arith.constant 0 : i32
    return %arg0, %arg1 : i32, i32
  }
}

module attributes {stable_mosaic.version = 11 : i64} {
  func.func @_mm_bias_kernel(%arg0: i32, %arg1: i32, %arg2: memref<512x288xbf16, #tpu.memory_space<vmem>>, %arg3: memref<288x64xbf16, #tpu.memory_space<vmem>>, %arg4: memref<1x64xf32, #tpu.memory_space<vmem>>, %arg5: memref<512x64xf32, #tpu.memory_space<vmem>>) attributes {dimension_semantics = [#tpu.dimension_semantics<parallel>, #tpu.dimension_semantics<parallel>], iteration_bounds = array<i64: 1, 1>, scalar_prefetch = 0 : i64, scratch_operands = 0 : i64, tpu.core_type = #tpu.core_type<tc>, window_params = [{transform_indices = @transform_0, window_bounds = array<i64: 512, 288>}, {transform_indices = @transform_1, window_bounds = array<i64: 288, 64>}, {transform_indices = @transform_2, window_bounds = array<i64: 1, 64>}, {transform_indices = @transform_3, window_bounds = array<i64: 512, 64>}]} {
    %c0 = arith.constant 0 : index
    %c0_0 = arith.constant 0 : index
    %0 = vector.load %arg2[%c0, %c0_0] : memref<512x288xbf16, #tpu.memory_space<vmem>>, vector<512x288xbf16>
    %c0_1 = arith.constant 0 : index
    %c0_2 = arith.constant 0 : index
    %1 = vector.load %arg3[%c0_1, %c0_2] : memref<288x64xbf16, #tpu.memory_space<vmem>>, vector<288x64xbf16>
    %cst = arith.constant dense<0.000000e+00> : vector<512x64xf32>
    %2 = tpu.matmul %0, %1, %cst {dimension_numbers = #tpu.dot_dimension_numbers<[1], [0], [0], [1], [0, 0, 1, 1], [], []>} : vector<512x288xbf16>, vector<288x64xbf16>, vector<512x64xf32> -> vector<512x64xf32>
    %c0_3 = arith.constant 0 : index
    %c0_4 = arith.constant 0 : index
    %3 = vector.load %arg4[%c0_3, %c0_4] : memref<1x64xf32, #tpu.memory_space<vmem>>, vector<1x64xf32>
    %4 = vector.broadcast %3 : vector<1x64xf32> to vector<512x64xf32>
    %5 = arith.addf %2, %4 : vector<512x64xf32>
    %c0_5 = arith.constant 0 : index
    %c0_6 = arith.constant 0 : index
    %6 = vector.load %arg5[%c0_5, %c0_6] : memref<512x64xf32, #tpu.memory_space<vmem>>, vector<512x64xf32>
    tpu.vector_store %arg5[%c0_5, %c0_6], %5 {strides = array<i32>} : memref<512x64xf32, #tpu.memory_space<vmem>>, vector<512x64xf32>,
    return
  }
  func.func @transform_0(%arg0: i32, %arg1: i32) -> (i32, i32) {
    %c0_i32 = arith.constant 0 : i32
    %c0_i32_0 = arith.constant 0 : i32
    return %arg0, %c0_i32 : i32, i32
  }
  func.func @transform_1(%arg0: i32, %arg1: i32) -> (i32, i32) {
    %c0_i32 = arith.constant 0 : i32
    %c0_i32_0 = arith.constant 0 : i32
    return %c0_i32, %arg1 : i32, i32
  }
  func.func @transform_2(%arg0: i32, %arg1: i32) -> (i32, i32) {
    %c0_i32 = arith.constant 0 : i32
    %c0_i32_0 = arith.constant 0 : i32
    return %c0_i32, %arg1 : i32, i32
  }
  func.func @transform_3(%arg0: i32, %arg1: i32) -> (i32, i32) {
    %c0_i32 = arith.constant 0 : i32
    return %arg0, %arg1 : i32, i32
  }
}

module attributes {stable_mosaic.version = 11 : i64} {
  func.func @_mm_bias_kernel(%arg0: i32, %arg1: i32, %arg2: memref<128x108xbf16, #tpu.memory_space<vmem>>, %arg3: memref<108x32xbf16, #tpu.memory_space<vmem>>, %arg4: memref<1x32xf32, #tpu.memory_space<vmem>>, %arg5: memref<128x32xf32, #tpu.memory_space<vmem>>) attributes {dimension_semantics = [#tpu.dimension_semantics<parallel>, #tpu.dimension_semantics<parallel>], iteration_bounds = array<i64: 1, 1>, scalar_prefetch = 0 : i64, scratch_operands = 0 : i64, tpu.core_type = #tpu.core_type<tc>, window_params = [{transform_indices = @transform_0, window_bounds = array<i64: 128, 108>}, {transform_indices = @transform_1, window_bounds = array<i64: 108, 32>}, {transform_indices = @transform_2, window_bounds = array<i64: 1, 32>}, {transform_indices = @transform_3, window_bounds = array<i64: 128, 32>}]} {
    %c0 = arith.constant 0 : index
    %c0_0 = arith.constant 0 : index
    %0 = vector.load %arg2[%c0, %c0_0] : memref<128x108xbf16, #tpu.memory_space<vmem>>, vector<128x108xbf16>
    %c0_1 = arith.constant 0 : index
    %c0_2 = arith.constant 0 : index
    %1 = vector.load %arg3[%c0_1, %c0_2] : memref<108x32xbf16, #tpu.memory_space<vmem>>, vector<108x32xbf16>
    %cst = arith.constant dense<0.000000e+00> : vector<128x32xf32>
    %2 = tpu.matmul %0, %1, %cst {dimension_numbers = #tpu.dot_dimension_numbers<[1], [0], [0], [1], [0, 0, 1, 1], [], []>} : vector<128x108xbf16>, vector<108x32xbf16>, vector<128x32xf32> -> vector<128x32xf32>
    %c0_3 = arith.constant 0 : index
    %c0_4 = arith.constant 0 : index
    %3 = vector.load %arg4[%c0_3, %c0_4] : memref<1x32xf32, #tpu.memory_space<vmem>>, vector<1x32xf32>
    %4 = vector.broadcast %3 : vector<1x32xf32> to vector<128x32xf32>
    %5 = arith.addf %2, %4 : vector<128x32xf32>
    %c0_5 = arith.constant 0 : index
    %c0_6 = arith.constant 0 : index
    %6 = vector.load %arg5[%c0_5, %c0_6] : memref<128x32xf32, #tpu.memory_space<vmem>>, vector<128x32xf32>
    tpu.vector_store %arg5[%c0_5, %c0_6], %5 {strides = array<i32>} : memref<128x32xf32, #tpu.memory_space<vmem>>, vector<128x32xf32>,
    return
  }
  func.func @transform_0(%arg0: i32, %arg1: i32) -> (i32, i32) {
    %c0_i32 = arith.constant 0 : i32
    %c0_i32_0 = arith.constant 0 : i32
    return %arg0, %c0_i32 : i32, i32
  }
  func.func @transform_1(%arg0: i32, %arg1: i32) -> (i32, i32) {
    %c0_i32 = arith.constant 0 : i32
    %c0_i32_0 = arith.constant 0 : i32
    return %c0_i32, %arg1 : i32, i32
  }
  func.func @transform_2(%arg0: i32, %arg1: i32) -> (i32, i32) {
    %c0_i32 = arith.constant 0 : i32
    %c0_i32_0 = arith.constant 0 : i32
    return %c0_i32, %arg1 : i32, i32
  }
  func.func @transform_3(%arg0: i32, %arg1: i32) -> (i32, i32) {
    %c0_i32 = arith.constant 0 : i32
    return %arg0, %arg1 : i32, i32
  }
}

module attributes {stable_mosaic.version = 11 : i64} {
  func.func @_mm_bias_kernel(%arg0: i32, %arg1: i32, %arg2: memref<32x288xbf16, #tpu.memory_space<vmem>>, %arg3: memref<288x64xbf16, #tpu.memory_space<vmem>>, %arg4: memref<1x64xf32, #tpu.memory_space<vmem>>, %arg5: memref<32x64xf32, #tpu.memory_space<vmem>>) attributes {dimension_semantics = [#tpu.dimension_semantics<parallel>, #tpu.dimension_semantics<parallel>], iteration_bounds = array<i64: 1, 1>, scalar_prefetch = 0 : i64, scratch_operands = 0 : i64, tpu.core_type = #tpu.core_type<tc>, window_params = [{transform_indices = @transform_0, window_bounds = array<i64: 32, 288>}, {transform_indices = @transform_1, window_bounds = array<i64: 288, 64>}, {transform_indices = @transform_2, window_bounds = array<i64: 1, 64>}, {transform_indices = @transform_3, window_bounds = array<i64: 32, 64>}]} {
    %c0 = arith.constant 0 : index
    %c0_0 = arith.constant 0 : index
    %0 = vector.load %arg2[%c0, %c0_0] : memref<32x288xbf16, #tpu.memory_space<vmem>>, vector<32x288xbf16>
    %c0_1 = arith.constant 0 : index
    %c0_2 = arith.constant 0 : index
    %1 = vector.load %arg3[%c0_1, %c0_2] : memref<288x64xbf16, #tpu.memory_space<vmem>>, vector<288x64xbf16>
    %cst = arith.constant dense<0.000000e+00> : vector<32x64xf32>
    %2 = tpu.matmul %0, %1, %cst {dimension_numbers = #tpu.dot_dimension_numbers<[1], [0], [0], [1], [0, 0, 1, 1], [], []>} : vector<32x288xbf16>, vector<288x64xbf16>, vector<32x64xf32> -> vector<32x64xf32>
    %c0_3 = arith.constant 0 : index
    %c0_4 = arith.constant 0 : index
    %3 = vector.load %arg4[%c0_3, %c0_4] : memref<1x64xf32, #tpu.memory_space<vmem>>, vector<1x64xf32>
    %4 = vector.broadcast %3 : vector<1x64xf32> to vector<32x64xf32>
    %5 = arith.addf %2, %4 : vector<32x64xf32>
    %c0_5 = arith.constant 0 : index
    %c0_6 = arith.constant 0 : index
    %6 = vector.load %arg5[%c0_5, %c0_6] : memref<32x64xf32, #tpu.memory_space<vmem>>, vector<32x64xf32>
    tpu.vector_store %arg5[%c0_5, %c0_6], %5 {strides = array<i32>} : memref<32x64xf32, #tpu.memory_space<vmem>>, vector<32x64xf32>,
    return
  }
  func.func @transform_0(%arg0: i32, %arg1: i32) -> (i32, i32) {
    %c0_i32 = arith.constant 0 : i32
    %c0_i32_0 = arith.constant 0 : i32
    return %arg0, %c0_i32 : i32, i32
  }
  func.func @transform_1(%arg0: i32, %arg1: i32) -> (i32, i32) {
    %c0_i32 = arith.constant 0 : i32
    %c0_i32_0 = arith.constant 0 : i32
    return %c0_i32, %arg1 : i32, i32
  }
  func.func @transform_2(%arg0: i32, %arg1: i32) -> (i32, i32) {
    %c0_i32 = arith.constant 0 : i32
    %c0_i32_0 = arith.constant 0 : i32
    return %c0_i32, %arg1 : i32, i32
  }
  func.func @transform_3(%arg0: i32, %arg1: i32) -> (i32, i32) {
    %c0_i32 = arith.constant 0 : i32
    return %arg0, %arg1 : i32, i32
  }
}

module attributes {stable_mosaic.version = 11 : i64} {
  func.func @_mm_bias_kernel(%arg0: i32, %arg1: i32, %arg2: memref<32x576xbf16, #tpu.memory_space<vmem>>, %arg3: memref<576x32xbf16, #tpu.memory_space<vmem>>, %arg4: memref<1x32xf32, #tpu.memory_space<vmem>>, %arg5: memref<32x32xf32, #tpu.memory_space<vmem>>) attributes {dimension_semantics = [#tpu.dimension_semantics<parallel>, #tpu.dimension_semantics<parallel>], iteration_bounds = array<i64: 1, 1>, scalar_prefetch = 0 : i64, scratch_operands = 0 : i64, tpu.core_type = #tpu.core_type<tc>, window_params = [{transform_indices = @transform_0, window_bounds = array<i64: 32, 576>}, {transform_indices = @transform_1, window_bounds = array<i64: 576, 32>}, {transform_indices = @transform_2, window_bounds = array<i64: 1, 32>}, {transform_indices = @transform_3, window_bounds = array<i64: 32, 32>}]} {
    %c0 = arith.constant 0 : index
    %c0_0 = arith.constant 0 : index
    %0 = vector.load %arg2[%c0, %c0_0] : memref<32x576xbf16, #tpu.memory_space<vmem>>, vector<32x576xbf16>
    %c0_1 = arith.constant 0 : index
    %c0_2 = arith.constant 0 : index
    %1 = vector.load %arg3[%c0_1, %c0_2] : memref<576x32xbf16, #tpu.memory_space<vmem>>, vector<576x32xbf16>
    %cst = arith.constant dense<0.000000e+00> : vector<32x32xf32>
    %2 = tpu.matmul %0, %1, %cst {dimension_numbers = #tpu.dot_dimension_numbers<[1], [0], [0], [1], [0, 0, 1, 1], [], []>} : vector<32x576xbf16>, vector<576x32xbf16>, vector<32x32xf32> -> vector<32x32xf32>
    %c0_3 = arith.constant 0 : index
    %c0_4 = arith.constant 0 : index
    %3 = vector.load %arg4[%c0_3, %c0_4] : memref<1x32xf32, #tpu.memory_space<vmem>>, vector<1x32xf32>
    %4 = vector.broadcast %3 : vector<1x32xf32> to vector<32x32xf32>
    %5 = arith.addf %2, %4 : vector<32x32xf32>
    %c0_5 = arith.constant 0 : index
    %c0_6 = arith.constant 0 : index
    %6 = vector.load %arg5[%c0_5, %c0_6] : memref<32x32xf32, #tpu.memory_space<vmem>>, vector<32x32xf32>
    tpu.vector_store %arg5[%c0_5, %c0_6], %5 {strides = array<i32>} : memref<32x32xf32, #tpu.memory_space<vmem>>, vector<32x32xf32>,
    return
  }
  func.func @transform_0(%arg0: i32, %arg1: i32) -> (i32, i32) {
    %c0_i32 = arith.constant 0 : i32
    %c0_i32_0 = arith.constant 0 : i32
    return %arg0, %c0_i32 : i32, i32
  }
  func.func @transform_1(%arg0: i32, %arg1: i32) -> (i32, i32) {
    %c0_i32 = arith.constant 0 : i32
    %c0_i32_0 = arith.constant 0 : i32
    return %c0_i32, %arg1 : i32, i32
  }
  func.func @transform_2(%arg0: i32, %arg1: i32) -> (i32, i32) {
    %c0_i32 = arith.constant 0 : i32
    %c0_i32_0 = arith.constant 0 : i32
    return %c0_i32, %arg1 : i32, i32
  }
  func.func @transform_3(%arg0: i32, %arg1: i32) -> (i32, i32) {
    %c0_i32 = arith.constant 0 : i32
    return %arg0, %arg1 : i32, i32
  }
}

module attributes {stable_mosaic.version = 11 : i64} {
  func.func @_mm_bias_kernel(%arg0: i32, %arg1: i32, %arg2: memref<128x576xbf16, #tpu.memory_space<vmem>>, %arg3: memref<576x16xbf16, #tpu.memory_space<vmem>>, %arg4: memref<1x16xf32, #tpu.memory_space<vmem>>, %arg5: memref<128x16xf32, #tpu.memory_space<vmem>>) attributes {dimension_semantics = [#tpu.dimension_semantics<parallel>, #tpu.dimension_semantics<parallel>], iteration_bounds = array<i64: 1, 1>, scalar_prefetch = 0 : i64, scratch_operands = 0 : i64, tpu.core_type = #tpu.core_type<tc>, window_params = [{transform_indices = @transform_0, window_bounds = array<i64: 128, 576>}, {transform_indices = @transform_1, window_bounds = array<i64: 576, 16>}, {transform_indices = @transform_2, window_bounds = array<i64: 1, 16>}, {transform_indices = @transform_3, window_bounds = array<i64: 128, 16>}]} {
    %c0 = arith.constant 0 : index
    %c0_0 = arith.constant 0 : index
    %0 = vector.load %arg2[%c0, %c0_0] : memref<128x576xbf16, #tpu.memory_space<vmem>>, vector<128x576xbf16>
    %c0_1 = arith.constant 0 : index
    %c0_2 = arith.constant 0 : index
    %1 = vector.load %arg3[%c0_1, %c0_2] : memref<576x16xbf16, #tpu.memory_space<vmem>>, vector<576x16xbf16>
    %cst = arith.constant dense<0.000000e+00> : vector<128x16xf32>
    %2 = tpu.matmul %0, %1, %cst {dimension_numbers = #tpu.dot_dimension_numbers<[1], [0], [0], [1], [0, 0, 1, 1], [], []>} : vector<128x576xbf16>, vector<576x16xbf16>, vector<128x16xf32> -> vector<128x16xf32>
    %c0_3 = arith.constant 0 : index
    %c0_4 = arith.constant 0 : index
    %3 = vector.load %arg4[%c0_3, %c0_4] : memref<1x16xf32, #tpu.memory_space<vmem>>, vector<1x16xf32>
    %4 = vector.broadcast %3 : vector<1x16xf32> to vector<128x16xf32>
    %5 = arith.addf %2, %4 : vector<128x16xf32>
    %c0_5 = arith.constant 0 : index
    %c0_6 = arith.constant 0 : index
    %6 = vector.load %arg5[%c0_5, %c0_6] : memref<128x16xf32, #tpu.memory_space<vmem>>, vector<128x16xf32>
    tpu.vector_store %arg5[%c0_5, %c0_6], %5 {strides = array<i32>} : memref<128x16xf32, #tpu.memory_space<vmem>>, vector<128x16xf32>,
    return
  }
  func.func @transform_0(%arg0: i32, %arg1: i32) -> (i32, i32) {
    %c0_i32 = arith.constant 0 : i32
    %c0_i32_0 = arith.constant 0 : i32
    return %arg0, %c0_i32 : i32, i32
  }
  func.func @transform_1(%arg0: i32, %arg1: i32) -> (i32, i32) {
    %c0_i32 = arith.constant 0 : i32
    %c0_i32_0 = arith.constant 0 : i32
    return %c0_i32, %arg1 : i32, i32
  }
  func.func @transform_2(%arg0: i32, %arg1: i32) -> (i32, i32) {
    %c0_i32 = arith.constant 0 : i32
    %c0_i32_0 = arith.constant 0 : i32
    return %c0_i32, %arg1 : i32, i32
  }
  func.func @transform_3(%arg0: i32, %arg1: i32) -> (i32, i32) {
    %c0_i32 = arith.constant 0 : i32
    return %arg0, %arg1 : i32, i32
  }
}

module attributes {stable_mosaic.version = 11 : i64} {
  func.func @_mm_bias_kernel(%arg0: i32, %arg1: i32, %arg2: memref<128x576xbf16, #tpu.memory_space<vmem>>, %arg3: memref<576x64xbf16, #tpu.memory_space<vmem>>, %arg4: memref<1x64xf32, #tpu.memory_space<vmem>>, %arg5: memref<128x64xf32, #tpu.memory_space<vmem>>) attributes {dimension_semantics = [#tpu.dimension_semantics<parallel>, #tpu.dimension_semantics<parallel>], iteration_bounds = array<i64: 1, 1>, scalar_prefetch = 0 : i64, scratch_operands = 0 : i64, tpu.core_type = #tpu.core_type<tc>, window_params = [{transform_indices = @transform_0, window_bounds = array<i64: 128, 576>}, {transform_indices = @transform_1, window_bounds = array<i64: 576, 64>}, {transform_indices = @transform_2, window_bounds = array<i64: 1, 64>}, {transform_indices = @transform_3, window_bounds = array<i64: 128, 64>}]} {
    %c0 = arith.constant 0 : index
    %c0_0 = arith.constant 0 : index
    %0 = vector.load %arg2[%c0, %c0_0] : memref<128x576xbf16, #tpu.memory_space<vmem>>, vector<128x576xbf16>
    %c0_1 = arith.constant 0 : index
    %c0_2 = arith.constant 0 : index
    %1 = vector.load %arg3[%c0_1, %c0_2] : memref<576x64xbf16, #tpu.memory_space<vmem>>, vector<576x64xbf16>
    %cst = arith.constant dense<0.000000e+00> : vector<128x64xf32>
    %2 = tpu.matmul %0, %1, %cst {dimension_numbers = #tpu.dot_dimension_numbers<[1], [0], [0], [1], [0, 0, 1, 1], [], []>} : vector<128x576xbf16>, vector<576x64xbf16>, vector<128x64xf32> -> vector<128x64xf32>
    %c0_3 = arith.constant 0 : index
    %c0_4 = arith.constant 0 : index
    %3 = vector.load %arg4[%c0_3, %c0_4] : memref<1x64xf32, #tpu.memory_space<vmem>>, vector<1x64xf32>
    %4 = vector.broadcast %3 : vector<1x64xf32> to vector<128x64xf32>
    %5 = arith.addf %2, %4 : vector<128x64xf32>
    %c0_5 = arith.constant 0 : index
    %c0_6 = arith.constant 0 : index
    %6 = vector.load %arg5[%c0_5, %c0_6] : memref<128x64xf32, #tpu.memory_space<vmem>>, vector<128x64xf32>
    tpu.vector_store %arg5[%c0_5, %c0_6], %5 {strides = array<i32>} : memref<128x64xf32, #tpu.memory_space<vmem>>, vector<128x64xf32>,
    return
  }
  func.func @transform_0(%arg0: i32, %arg1: i32) -> (i32, i32) {
    %c0_i32 = arith.constant 0 : i32
    %c0_i32_0 = arith.constant 0 : i32
    return %arg0, %c0_i32 : i32, i32
  }
  func.func @transform_1(%arg0: i32, %arg1: i32) -> (i32, i32) {
    %c0_i32 = arith.constant 0 : i32
    %c0_i32_0 = arith.constant 0 : i32
    return %c0_i32, %arg1 : i32, i32
  }
  func.func @transform_2(%arg0: i32, %arg1: i32) -> (i32, i32) {
    %c0_i32 = arith.constant 0 : i32
    %c0_i32_0 = arith.constant 0 : i32
    return %c0_i32, %arg1 : i32, i32
  }
  func.func @transform_3(%arg0: i32, %arg1: i32) -> (i32, i32) {
    %c0_i32 = arith.constant 0 : i32
    return %arg0, %arg1 : i32, i32
  }
}

module attributes {stable_mosaic.version = 11 : i64} {
  func.func @_mm_bias_kernel(%arg0: i32, %arg1: i32, %arg2: memref<512x576xbf16, #tpu.memory_space<vmem>>, %arg3: memref<576x32xbf16, #tpu.memory_space<vmem>>, %arg4: memref<1x32xf32, #tpu.memory_space<vmem>>, %arg5: memref<512x32xf32, #tpu.memory_space<vmem>>) attributes {dimension_semantics = [#tpu.dimension_semantics<parallel>, #tpu.dimension_semantics<parallel>], iteration_bounds = array<i64: 1, 1>, scalar_prefetch = 0 : i64, scratch_operands = 0 : i64, tpu.core_type = #tpu.core_type<tc>, window_params = [{transform_indices = @transform_0, window_bounds = array<i64: 512, 576>}, {transform_indices = @transform_1, window_bounds = array<i64: 576, 32>}, {transform_indices = @transform_2, window_bounds = array<i64: 1, 32>}, {transform_indices = @transform_3, window_bounds = array<i64: 512, 32>}]} {
    %c0 = arith.constant 0 : index
    %c0_0 = arith.constant 0 : index
    %0 = vector.load %arg2[%c0, %c0_0] : memref<512x576xbf16, #tpu.memory_space<vmem>>, vector<512x576xbf16>
    %c0_1 = arith.constant 0 : index
    %c0_2 = arith.constant 0 : index
    %1 = vector.load %arg3[%c0_1, %c0_2] : memref<576x32xbf16, #tpu.memory_space<vmem>>, vector<576x32xbf16>
    %cst = arith.constant dense<0.000000e+00> : vector<512x32xf32>
    %2 = tpu.matmul %0, %1, %cst {dimension_numbers = #tpu.dot_dimension_numbers<[1], [0], [0], [1], [0, 0, 1, 1], [], []>} : vector<512x576xbf16>, vector<576x32xbf16>, vector<512x32xf32> -> vector<512x32xf32>
    %c0_3 = arith.constant 0 : index
    %c0_4 = arith.constant 0 : index
    %3 = vector.load %arg4[%c0_3, %c0_4] : memref<1x32xf32, #tpu.memory_space<vmem>>, vector<1x32xf32>
    %4 = vector.broadcast %3 : vector<1x32xf32> to vector<512x32xf32>
    %5 = arith.addf %2, %4 : vector<512x32xf32>
    %c0_5 = arith.constant 0 : index
    %c0_6 = arith.constant 0 : index
    %6 = vector.load %arg5[%c0_5, %c0_6] : memref<512x32xf32, #tpu.memory_space<vmem>>, vector<512x32xf32>
    tpu.vector_store %arg5[%c0_5, %c0_6], %5 {strides = array<i32>} : memref<512x32xf32, #tpu.memory_space<vmem>>, vector<512x32xf32>,
    return
  }
  func.func @transform_0(%arg0: i32, %arg1: i32) -> (i32, i32) {
    %c0_i32 = arith.constant 0 : i32
    %c0_i32_0 = arith.constant 0 : i32
    return %arg0, %c0_i32 : i32, i32
  }
  func.func @transform_1(%arg0: i32, %arg1: i32) -> (i32, i32) {
    %c0_i32 = arith.constant 0 : i32
    %c0_i32_0 = arith.constant 0 : i32
    return %c0_i32, %arg1 : i32, i32
  }
  func.func @transform_2(%arg0: i32, %arg1: i32) -> (i32, i32) {
    %c0_i32 = arith.constant 0 : i32
    %c0_i32_0 = arith.constant 0 : i32
    return %c0_i32, %arg1 : i32, i32
  }
  func.func @transform_3(%arg0: i32, %arg1: i32) -> (i32, i32) {
    %c0_i32 = arith.constant 0 : i32
    return %arg0, %arg1 : i32, i32
  }
}

module attributes {stable_mosaic.version = 11 : i64} {
  func.func @_mm_bias_kernel(%arg0: i32, %arg1: i32, %arg2: memref<512x288xbf16, #tpu.memory_space<vmem>>, %arg3: memref<288x16xbf16, #tpu.memory_space<vmem>>, %arg4: memref<1x16xf32, #tpu.memory_space<vmem>>, %arg5: memref<512x16xf32, #tpu.memory_space<vmem>>) attributes {dimension_semantics = [#tpu.dimension_semantics<parallel>, #tpu.dimension_semantics<parallel>], iteration_bounds = array<i64: 4, 1>, scalar_prefetch = 0 : i64, scratch_operands = 0 : i64, tpu.core_type = #tpu.core_type<tc>, window_params = [{transform_indices = @transform_0, window_bounds = array<i64: 512, 288>}, {transform_indices = @transform_1, window_bounds = array<i64: 288, 16>}, {transform_indices = @transform_2, window_bounds = array<i64: 1, 16>}, {transform_indices = @transform_3, window_bounds = array<i64: 512, 16>}]} {
    %c0 = arith.constant 0 : index
    %c0_0 = arith.constant 0 : index
    %0 = vector.load %arg2[%c0, %c0_0] : memref<512x288xbf16, #tpu.memory_space<vmem>>, vector<512x288xbf16>
    %c0_1 = arith.constant 0 : index
    %c0_2 = arith.constant 0 : index
    %1 = vector.load %arg3[%c0_1, %c0_2] : memref<288x16xbf16, #tpu.memory_space<vmem>>, vector<288x16xbf16>
    %cst = arith.constant dense<0.000000e+00> : vector<512x16xf32>
    %2 = tpu.matmul %0, %1, %cst {dimension_numbers = #tpu.dot_dimension_numbers<[1], [0], [0], [1], [0, 0, 1, 1], [], []>} : vector<512x288xbf16>, vector<288x16xbf16>, vector<512x16xf32> -> vector<512x16xf32>
    %c0_3 = arith.constant 0 : index
    %c0_4 = arith.constant 0 : index
    %3 = vector.load %arg4[%c0_3, %c0_4] : memref<1x16xf32, #tpu.memory_space<vmem>>, vector<1x16xf32>
    %4 = vector.broadcast %3 : vector<1x16xf32> to vector<512x16xf32>
    %5 = arith.addf %2, %4 : vector<512x16xf32>
    %c0_5 = arith.constant 0 : index
    %c0_6 = arith.constant 0 : index
    %6 = vector.load %arg5[%c0_5, %c0_6] : memref<512x16xf32, #tpu.memory_space<vmem>>, vector<512x16xf32>
    tpu.vector_store %arg5[%c0_5, %c0_6], %5 {strides = array<i32>} : memref<512x16xf32, #tpu.memory_space<vmem>>, vector<512x16xf32>,
    return
  }
  func.func @transform_0(%arg0: i32, %arg1: i32) -> (i32, i32) {
    %c0_i32 = arith.constant 0 : i32
    %c0_i32_0 = arith.constant 0 : i32
    return %arg0, %c0_i32 : i32, i32
  }
  func.func @transform_1(%arg0: i32, %arg1: i32) -> (i32, i32) {
    %c0_i32 = arith.constant 0 : i32
    %c0_i32_0 = arith.constant 0 : i32
    return %c0_i32, %arg1 : i32, i32
  }
  func.func @transform_2(%arg0: i32, %arg1: i32) -> (i32, i32) {
    %c0_i32 = arith.constant 0 : i32
    %c0_i32_0 = arith.constant 0 : i32
    return %c0_i32, %arg1 : i32, i32
  }
  func.func @transform_3(%arg0: i32, %arg1: i32) -> (i32, i32) {
    %c0_i32 = arith.constant 0 : i32
    return %arg0, %arg1 : i32, i32
  }
}

</mosaic_0001>

<bundles_post_ra>
// kernel: _lambda_.13
= control target key start
LH: loop header
LB: loop body
LE: loop exit
PB: predicated region body
PF: predicated region fallthrough
CT: control target
= control target key end

     0   :  { %s1544_s12 = smov 0   ;;  %s1546_s13 = smov 0   ;;  %s1911_s0 = inlined_call_operand.vmem [shape: bf16[2048,147], index: 0, kind: input, shape index: {}]   ;;  %s1912_s1 = inlined_call_operand.vmem [shape: bf16[147,16], index: 1, kind: input, shape index: {}]   ;;  %s1913_s2 = inlined_call_operand.vmem [shape: f32[1,16], index: 2, kind: input, shape index: {}]   ;;  %s1914_s3 = inlined_call_operand.vmem [shape: f32[2048,16], index: 3, kind: output, shape index: {}]  }
   0x1   :  { %s1548_s14 = smov 0  }
   0x2 LB: > { %s25_s15 = sadd.s32 1, %s1516_s13  ;;  %p1230_p0 = scmp.ge.s32.totalorder %s1520_s14, 1  ;;  %s1520_s14 = sphi %s1548_s14, %s13_s14   ;;  %s1516_s13 = sphi %s1546_s13, %s1916_s13   ;;  %s1512_s12 = sphi %s1544_s12, %s1915_s12  }
   0x3   : > { %p27_p1 = scmp.ge.s32.totalorder %s25_s15, 4  ;;  %p170_p2 = scmp.lt.s32.totalorder %s1520_s14, 5 }
   0x5   : > { %s1918_s15 = smov (%p27_p1, %s25_s15), 0  ;;  %p171_p3 = pnand %p1230_p0, %p170_p2 }
   0x6   : > { %s1231_s22 = sshll.u32 (!%p171_p3), %s1512_s12, 6 }
   0x7   : > { %174 = sbr.rel (%p171_p3) target bundleno = 373 (0x175), region = 32  ;;  %p206_p4 = scmp.lt.s32.totalorder (!%p171_p3), %s1231_s22, 255 }
   0xc   : > { %v1392_v0 = vld [vmem:[%s1912_s1 + $0x38] sm:$0xff]   ;;  %v1522_v1 = vmov 0   ;;  %v1393_v2 = vld [vmem:[%s1912_s1 + $0x30] sm:$0xff]   ;;  %v1394_v3 = vld [vmem:[%s1912_s1 + $0x28] sm:$0xff]   ;;  %s1920_s22 = smov (!%p206_p4, %s1231_s22), 255  ;;  %vm664_vm0 = vcmask 154624  }
   0xd   : > { %768 = vmatprep.subr.bf16.mxu0 %v1522_v1  ;;  %1346 = vmatprep.subr.bf16.mxu1 %v1522_v1  ;;  %v1395_v4 = vld [vmem:[%s1912_s1 + $0x20] sm:$0xff]   ;;  %s1345_s25 = sshll.u32 %s1920_s22, 3  ;;  %v1396_v5 = vld [vmem:[%s1912_s1 + $0x18] sm:$0xff]   ;;  %v1397_v8 = vld [vmem:[%s1912_s1 + $0x10] sm:$0xff]   ;;  %vm761_vm1 = vcmask 1040384   ;;  %vm762_vm2 = vcmask 1041408  }
   0xe   : > { %769 = vmatpush1.bf16.msra.mxu0 %v1392_v0  ;;  %1356 = vmatpush1.bf16.msra.mxu1 %v1392_v0  ;;  %s1582_s28 = scalar_lea.vmem %s1911_s0, %s1345_s25  ;;  %v1398_v9 = vld [vmem:[%s1912_s1 + $0x8] sm:$0xff]   ;;  %v1523_v10 = vmov 65535   ;;  %v1399_v12 = vld [vmem:[%s1912_s1] sm:$0xff]   ;;  %s1708_s21 = scalar_lea.vmem %s1914_s3, %s1345_s25  ;;  %vm1057_vm3 = vcmask 130048  }
   0xf   : > { %770 = vmatprep.subr.bf16.mxu0 %v1522_v1  ;;  %1347 = vmatprep.subr.bf16.mxu1 %v1522_v1  ;;  %v1404_v6 = vld [vmem:[%s1582_s28 + $0x4] ss:$8 sps:$4 sm:$0xff]   ;;  %v763_v11 = vsel %vm761_vm1, 4294967295, %v1523_v10  ;;  %v1400_v13 = vld [vmem:[%s1912_s1 + $0x48] ss:$0 sps:$4 sm:$0x33]  }
  0x10   : > { %v1407_v7 = vld [vmem:[%s1582_s28 + $0x104] ss:$8 sps:$4 sm:$0xff]   ;;  %1311 = vmatprep.mubr.msk.bf16.mxu0 %vm664_vm0, %v1404_v6  ;;  %v764_v14 = vsel %vm762_vm2, %v763_v11, 0  ;;  %v1402_v17 = vld [vmem:[%s1582_s28] ss:$8 sps:$4 sm:$0xff]  }
  0x11   : > { %1327 = vmatprep.mubr.msk.bf16.mxu1 %vm664_vm0, %v1407_v7  ;;  %v766_v15 = vand.u32 %v1400_v13, %v764_v14  ;;  %v1401_v16 = vld [vmem:[%s1912_s1 + $0x40] sm:$0xff]   ;;  %v1408_v19 = vld [vmem:[%s1582_s28 + $0x14] ss:$8 sps:$4 sm:$0xff]   ;;  %v1412_v21 = vld [vmem:[%s1582_s28 + $0x10] ss:$8 sps:$4 sm:$0xff]  }
  0x12   : > { %771 = vmatpush1.bf16.msra.mxu0 %v1393_v2  ;;  %1357 = vmatpush1.bf16.msra.mxu1 %v1393_v2  ;;  %v1405_v18 = vld [vmem:[%s1582_s28 + $0x100] ss:$8 sps:$4 sm:$0xff]   ;;  %v1410_v20 = vld [vmem:[%s1582_s28 + $0x114] ss:$8 sps:$4 sm:$0xff]   ;;  %v1413_v22 = vld [vmem:[%s1582_s28 + $0x110] ss:$8 sps:$4 sm:$0xff]  }
  0x13   : > { %772 = vmatprep.subr.bf16.mxu0 %v1522_v1  ;;  %1348 = vmatprep.subr.bf16.mxu1 %v1522_v1  ;;  %v1414_v23 = vld [vmem:[%s1582_s28 + $0x24] ss:$8 sps:$4 sm:$0xff]   ;;  %v1418_v25 = vld [vmem:[%s1582_s28 + $0x20] ss:$8 sps:$4 sm:$0xff]   ;;  %v1420_v27 = vld [vmem:[%s1582_s28 + $0x34] ss:$8 sps:$4 sm:$0xff]  }
  0x14   : > { %v1416_v24 = vld [vmem:[%s1582_s28 + $0x124] ss:$8 sps:$4 sm:$0xff]   ;;  %v1419_v26 = vld [vmem:[%s1582_s28 + $0x120] ss:$8 sps:$4 sm:$0xff]   ;;  %v1422_v28 = vld [vmem:[%s1582_s28 + $0x134] ss:$8 sps:$4 sm:$0xff]  }
  0x15   : > { %v1424_v29 = vld [vmem:[%s1582_s28 + $0x30] ss:$8 sps:$4 sm:$0xff]   ;;  %v1426_v31 = vld [vmem:[%s1582_s28 + $0x44] ss:$8 sps:$4 sm:$0xff]   ;;  %v1430_v33 = vld [vmem:[%s1582_s28 + $0x40] ss:$8 sps:$4 sm:$0xff]  }
  0x16   : > { %773 = vmatpush1.bf16.msra.mxu0 %v1394_v3  ;;  %1358 = vmatpush1.bf16.msra.mxu1 %v1394_v3  ;;  %v1425_v30 = vld [vmem:[%s1582_s28 + $0x130] ss:$8 sps:$4 sm:$0xff]   ;;  %v1428_v32 = vld [vmem:[%s1582_s28 + $0x144] ss:$8 sps:$4 sm:$0xff]   ;;  %v1431_v34 = vld [vmem:[%s1582_s28 + $0x140] ss:$8 sps:$4 sm:$0xff]  }
  0x17   : > { %774 = vmatprep.subr.bf16.mxu0 %v1522_v1  ;;  %1349 = vmatprep.subr.bf16.mxu1 %v1522_v1  ;;  %v1432_v35 = vld [vmem:[%s1582_s28 + $0x54] ss:$8 sps:$4 sm:$0xff]   ;;  %v1436_v37 = vld [vmem:[%s1582_s28 + $0x50] ss:$8 sps:$4 sm:$0xff]   ;;  %v1438_v39 = vld [vmem:[%s1582_s28 + $0x64] ss:$8 sps:$4 sm:$0xff]  }
  0x18   : > { %v1434_v36 = vld [vmem:[%s1582_s28 + $0x154] ss:$8 sps:$4 sm:$0xff]   ;;  %v1437_v38 = vld [vmem:[%s1582_s28 + $0x150] ss:$8 sps:$4 sm:$0xff]   ;;  %v1440_v40 = vld [vmem:[%s1582_s28 + $0x164] ss:$8 sps:$4 sm:$0xff]  }
  0x19   : > { %v1442_v41 = vld [vmem:[%s1582_s28 + $0x60] ss:$8 sps:$4 sm:$0xff]   ;;  %v1444_v43 = vld [vmem:[%s1582_s28 + $0x74] ss:$8 sps:$4 sm:$0xff]   ;;  %v1448_v45 = vld [vmem:[%s1582_s28 + $0x70] ss:$8 sps:$4 sm:$0xff]  }
  0x1a   : > { %775 = vmatpush1.bf16.msra.mxu0 %v1395_v4  ;;  %1359 = vmatpush1.bf16.msra.mxu1 %v1395_v4  ;;  %v1443_v42 = vld [vmem:[%s1582_s28 + $0x160] ss:$8 sps:$4 sm:$0xff]   ;;  %v1446_v44 = vld [vmem:[%s1582_s28 + $0x174] ss:$8 sps:$4 sm:$0xff]   ;;  %v1449_v46 = vld [vmem:[%s1582_s28 + $0x170] ss:$8 sps:$4 sm:$0xff]  }
  0x1b   : > { %776 = vmatprep.subr.bf16.mxu0 %v1522_v1  ;;  %1350 = vmatprep.subr.bf16.mxu1 %v1522_v1  ;;  %v1450_v47 = vld [vmem:[%s1582_s28 + $0x84] ss:$8 sps:$4 sm:$0xff]   ;;  %v1454_v49 = vld [vmem:[%s1582_s28 + $0x80] ss:$8 sps:$4 sm:$0xff]   ;;  %v1456_v51 = vld [vmem:[%s1582_s28 + $0x94] ss:$8 sps:$4 sm:$0xff]  }
  0x1c   : > { %v1452_v48 = vld [vmem:[%s1582_s28 + $0x184] ss:$8 sps:$4 sm:$0xff]   ;;  %v1455_v50 = vld [vmem:[%s1582_s28 + $0x180] ss:$8 sps:$4 sm:$0xff]   ;;  %v1458_v52 = vld [vmem:[%s1582_s28 + $0x194] ss:$8 sps:$4 sm:$0xff]  }
  0x1d   : > { %v1460_v53 = vld [vmem:[%s1582_s28 + $0x90] ss:$8 sps:$4 sm:$0xff]   ;;  %v1462_v55 = vld [vmem:[%s1582_s28 + $0xa4] ss:$8 sps:$4 sm:$0xff]   ;;  %v1466_v57 = vld [vmem:[%s1582_s28 + $0xa0] ss:$8 sps:$4 sm:$0xff]  }
  0x1e   : > { %777 = vmatpush1.bf16.msra.mxu0 %v1396_v5  ;;  %1360 = vmatpush1.bf16.msra.mxu1 %v1396_v5  ;;  %v1461_v54 = vld [vmem:[%s1582_s28 + $0x190] ss:$8 sps:$4 sm:$0xff]   ;;  %v1464_v56 = vld [vmem:[%s1582_s28 + $0x1a4] ss:$8 sps:$4 sm:$0xff]   ;;  %v1467_v58 = vld [vmem:[%s1582_s28 + $0x1a0] ss:$8 sps:$4 sm:$0xff]  }
  0x1f   : > { %778 = vmatprep.subr.bf16.mxu0 %v1522_v1  ;;  %1351 = vmatprep.subr.bf16.mxu1 %v1522_v1  ;;  %v1468_v59 = vld [vmem:[%s1582_s28 + $0xb4] ss:$8 sps:$4 sm:$0xff]   ;;  %v1472_v61 = vld [vmem:[%s1582_s28 + $0xb0] ss:$8 sps:$4 sm:$0xff]   ;;  %v1474_v63 = vld [vmem:[%s1582_s28 + $0xc4] ss:$8 sps:$4 sm:$0xff]  }
  0x20   : > { %v1470_v60 = vld [vmem:[%s1582_s28 + $0x1b4] ss:$8 sps:$4 sm:$0xff]   ;;  %v1473_v62 = vld [vmem:[%s1582_s28 + $0x1b0] ss:$8 sps:$4 sm:$0xff]   ;;  %v1476_v0 = vld [vmem:[%s1582_s28 + $0x1c4] ss:$8 sps:$4 sm:$0xff]  }
  0x21   : > { %v1479_v2 = vld [vmem:[%s1582_s28 + $0x1c0] ss:$8 sps:$4 sm:$0xff]   ;;  %v1480_v3 = vld [vmem:[%s1582_s28 + $0xd4] ss:$8 sps:$4 sm:$0xff]   ;;  %v1484_v5 = vld [vmem:[%s1582_s28 + $0xd0] ss:$8 sps:$4 sm:$0xff]  }
  0x22   : > { %779 = vmatpush1.bf16.msra.mxu0 %v1397_v8  ;;  %1361 = vmatpush1.bf16.msra.mxu1 %v1397_v8  ;;  %v1482_v4 = vld [vmem:[%s1582_s28 + $0x1d4] ss:$8 sps:$4 sm:$0xff]   ;;  %v1485_v6 = vld [vmem:[%s1582_s28 + $0x1d0] ss:$8 sps:$4 sm:$0xff]   ;;  %v1486_v7 = vld [vmem:[%s1582_s28 + $0xe4] ss:$8 sps:$4 sm:$0xff]  }
  0x23   : > { %780 = vmatprep.subr.bf16.mxu0 %v1522_v1  ;;  %1352 = vmatprep.subr.bf16.mxu1 %v1522_v1  ;;  %v1488_v8 = vld [vmem:[%s1582_s28 + $0x1e4] ss:$8 sps:$4 sm:$0xff]   ;;  %v1491_v10 = vld [vmem:[%s1582_s28 + $0x1e0] ss:$8 sps:$4 sm:$0xff]   ;;  %v1492_v11 = vld [vmem:[%s1582_s28 + $0xf4] ss:$8 sps:$4 sm:$0xff]  }
  0x24   : > { %v1496_v13 = vld [vmem:[%s1582_s28 + $0xf0] ss:$8 sps:$4 sm:$0xff]  }
  0x25   : > { %v1497_v14 = vld [vmem:[%s1582_s28 + $0x1f0] ss:$8 sps:$4 sm:$0xff]  }
  0x26   : > { %781 = vmatpush1.bf16.msra.mxu0 %v1398_v9  ;;  %1362 = vmatpush1.bf16.msra.mxu1 %v1398_v9  ;;  %v1490_v9 = vld [vmem:[%s1582_s28 + $0xe0] ss:$8 sps:$4 sm:$0xff]  }
  0x27   : > { %782 = vmatprep.subr.bf16.mxu0 %v1522_v1  ;;  %1353 = vmatprep.subr.bf16.mxu1 %v1522_v1 }
  0x2a   : > { %783 = vmatpush1.bf16.msra.mxu0 %v1399_v12  ;;  %1363 = vmatpush1.bf16.msra.mxu1 %v1399_v12  ;;  %v1494_v12 = vld [vmem:[%s1582_s28 + $0x1f4] ss:$8 sps:$4 sm:$0xff]  }
  0x2b   : > { %796 = vmatprep.subr.bf16.mxu0 %v1522_v1  ;;  %1354 = vmatprep.subr.bf16.mxu1 %v1522_v1 }
  0x2e   : > { %797 = vmatpush2.bf16.msra.mxu0 %v766_v15  ;;  %1364 = vmatpush2.bf16.msra.mxu1 %v766_v15  ;;  %v1701_v15 = vld [vmem:[%s1913_s2] ss:$0 sm:$0xff] }
  0x2f   : > { %798 = vmatprep.subr.bf16.mxu0 %v1522_v1  ;;  %1355 = vmatprep.subr.bf16.mxu1 %v1522_v1  ;;  %v1478_v1 = vld [vmem:[%s1582_s28 + $0xc0] ss:$8 sps:$4 sm:$0xff]  }
  0x32   : > { %799 = vmatpush2.bf16.msra.mxu0 %v1401_v16  ;;  %1365 = vmatpush2.bf16.msra.mxu1 %v1401_v16 }
  0x35   : > { %801 = vmatmul.mubr.bf16.vlgmr.msra.gmra.mxu0 %v1402_v17  ;;  %929 = vmatmul.mubr.bf16.vlgmr.msra.gmra.mxu1 %v1405_v18 }
  0x36   : > { %1312 = vmatprep.mubr.msk.bf16.mxu0 %vm664_vm0, %v1408_v19  ;;  %1328 = vmatprep.mubr.msk.bf16.mxu1 %vm664_vm0, %v1410_v20 }
  0x3d   : > { %809 = vmatmul.mubr.bf16.gmra.mxu0 %v1412_v21  ;;  %937 = vmatmul.mubr.bf16.gmra.mxu1 %v1413_v22 }
  0x3e   : > { %1313 = vmatprep.mubr.msk.bf16.mxu0 %vm664_vm0, %v1414_v23  ;;  %1329 = vmatprep.mubr.msk.bf16.mxu1 %vm664_vm0, %v1416_v24 }
  0x45   : > { %817 = vmatmul.mubr.bf16.gmra.mxu0 %v1418_v25  ;;  %945 = vmatmul.mubr.bf16.gmra.mxu1 %v1419_v26 }
  0x46   : > { %1314 = vmatprep.mubr.msk.bf16.mxu0 %vm664_vm0, %v1420_v27  ;;  %1330 = vmatprep.mubr.msk.bf16.mxu1 %vm664_vm0, %v1422_v28 }
  0x4d   : > { %825 = vmatmul.mubr.bf16.gmra.mxu0 %v1424_v29  ;;  %953 = vmatmul.mubr.bf16.gmra.mxu1 %v1425_v30 }
  0x4e   : > { %1315 = vmatprep.mubr.msk.bf16.mxu0 %vm664_vm0, %v1426_v31  ;;  %1331 = vmatprep.mubr.msk.bf16.mxu1 %vm664_vm0, %v1428_v32 }
  0x55   : > { %833 = vmatmul.mubr.bf16.gmra.mxu0 %v1430_v33  ;;  %961 = vmatmul.mubr.bf16.gmra.mxu1 %v1431_v34 }
  0x56   : > { %1316 = vmatprep.mubr.msk.bf16.mxu0 %vm664_vm0, %v1432_v35  ;;  %1332 = vmatprep.mubr.msk.bf16.mxu1 %vm664_vm0, %v1434_v36 }
  0x5d   : > { %841 = vmatmul.mubr.bf16.gmra.mxu0 %v1436_v37  ;;  %969 = vmatmul.mubr.bf16.gmra.mxu1 %v1437_v38 }
  0x5e   : > { %1317 = vmatprep.mubr.msk.bf16.mxu0 %vm664_vm0, %v1438_v39  ;;  %1333 = vmatprep.mubr.msk.bf16.mxu1 %vm664_vm0, %v1440_v40 }
  0x65   : > { %849 = vmatmul.mubr.bf16.gmra.mxu0 %v1442_v41  ;;  %977 = vmatmul.mubr.bf16.gmra.mxu1 %v1443_v42 }
  0x66   : > { %1318 = vmatprep.mubr.msk.bf16.mxu0 %vm664_vm0, %v1444_v43  ;;  %1334 = vmatprep.mubr.msk.bf16.mxu1 %vm664_vm0, %v1446_v44 }
  0x6d   : > { %857 = vmatmul.mubr.bf16.gmra.mxu0 %v1448_v45  ;;  %985 = vmatmul.mubr.bf16.gmra.mxu1 %v1449_v46 }
  0x6e   : > { %1319 = vmatprep.mubr.msk.bf16.mxu0 %vm664_vm0, %v1450_v47  ;;  %1335 = vmatprep.mubr.msk.bf16.mxu1 %vm664_vm0, %v1452_v48 }
  0x75   : > { %865 = vmatmul.mubr.bf16.gmra.mxu0 %v1454_v49  ;;  %993 = vmatmul.mubr.bf16.gmra.mxu1 %v1455_v50 }
  0x76   : > { %1320 = vmatprep.mubr.msk.bf16.mxu0 %vm664_vm0, %v1456_v51  ;;  %1336 = vmatprep.mubr.msk.bf16.mxu1 %vm664_vm0, %v1458_v52 }
  0x7d   : > { %873 = vmatmul.mubr.bf16.gmra.mxu0 %v1460_v53  ;;  %1001 = vmatmul.mubr.bf16.gmra.mxu1 %v1461_v54 }
  0x7e   : > { %1321 = vmatprep.mubr.msk.bf16.mxu0 %vm664_vm0, %v1462_v55  ;;  %1337 = vmatprep.mubr.msk.bf16.mxu1 %vm664_vm0, %v1464_v56 }
  0x85   : > { %881 = vmatmul.mubr.bf16.gmra.mxu0 %v1466_v57  ;;  %1009 = vmatmul.mubr.bf16.gmra.mxu1 %v1467_v58 }
  0x86   : > { %1322 = vmatprep.mubr.msk.bf16.mxu0 %vm664_vm0, %v1468_v59  ;;  %1338 = vmatprep.mubr.msk.bf16.mxu1 %vm664_vm0, %v1470_v60 }
  0x8d   : > { %889 = vmatmul.mubr.bf16.gmra.mxu0 %v1472_v61  ;;  %1017 = vmatmul.mubr.bf16.gmra.mxu1 %v1473_v62 }
  0x8e   : > { %1323 = vmatprep.mubr.msk.bf16.mxu0 %vm664_vm0, %v1474_v63  ;;  %1339 = vmatprep.mubr.msk.bf16.mxu1 %vm664_vm0, %v1476_v0 }
  0x95   : > { %897 = vmatmul.mubr.bf16.gmra.mxu0 %v1478_v1  ;;  %1025 = vmatmul.mubr.bf16.gmra.mxu1 %v1479_v2 }
  0x96   : > { %1324 = vmatprep.mubr.msk.bf16.mxu0 %vm664_vm0, %v1480_v3  ;;  %1340 = vmatprep.mubr.msk.bf16.mxu1 %vm664_vm0, %v1482_v4 }
  0x9d   : > { %905 = vmatmul.mubr.bf16.gmra.mxu0 %v1484_v5  ;;  %1033 = vmatmul.mubr.bf16.gmra.mxu1 %v1485_v6 }
  0x9e   : > { %1325 = vmatprep.mubr.msk.bf16.mxu0 %vm664_vm0, %v1486_v7  ;;  %1341 = vmatprep.mubr.msk.bf16.mxu1 %vm664_vm0, %v1488_v8 }
  0xa5   : > { %913 = vmatmul.mubr.bf16.gmra.mxu0 %v1490_v9  ;;  %1041 = vmatmul.mubr.bf16.gmra.mxu1 %v1491_v10 }
  0xa6   : > { %1326 = vmatprep.mubr.msk.bf16.mxu0 %vm664_vm0, %v1492_v11  ;;  %1342 = vmatprep.mubr.msk.bf16.mxu1 %vm664_vm0, %v1494_v12 }
  0xad   : > { %921 = vmatmul.mubr.bf16.gmra.mxu0 %v1496_v13  ;;  %1049 = vmatmul.mubr.bf16.gmra.mxu1 %v1497_v14 }
  0xf5   : > { %v802_v16 = vpop.f32.mrf.mxu0  ;;  %v930_v17 = vpop.f32.mrf.mxu1 }
  0xf6   : > { %v803_v18 = vadd.f32 %v1701_v15, %v802_v16  ;;  %v931_v19 = vadd.f32 %v1701_v15, %v930_v17 }
  0xf7   : > { %v804_v20 = vpop.f32.mrf.mxu0  ;;  %v932_v21 = vpop.f32.mrf.mxu1 }
  0xf8   : > { %1058 = vst.msk [vmem:[%s1708_s21] sm:$0xff] %vm1057_vm3, %v803_v18  ;;  %1090 = vst.msk [vmem:[%s1708_s21 + $0x100] sm:$0xff] %vm1057_vm3, %v931_v19 }
  0xf9   : > { %v805_v22 = vpop.f32.mrf.mxu0  ;;  %v933_v23 = vpop.f32.mrf.mxu1 }
  0xfa   : > { %v806_v24 = vadd.f32 %v1701_v15, %v805_v22  ;;  %v934_v25 = vadd.f32 %v1701_v15, %v933_v23 }
  0xfb   : > { %v807_v26 = vpop.f32.mrf.mxu0  ;;  %v935_v27 = vpop.f32.mrf.mxu1 }
  0xfc   : > { %1059 = vst.msk [vmem:[%s1708_s21 + $0x8] sm:$0xff] %vm1057_vm3, %v806_v24  ;;  %1091 = vst.msk [vmem:[%s1708_s21 + $0x108] sm:$0xff] %vm1057_vm3, %v934_v25 }
  0xfd   : > { %v810_v28 = vpop.f32.mrf.mxu0  ;;  %v938_v29 = vpop.f32.mrf.mxu1 }
  0xfe   : > { %v811_v30 = vadd.f32 %v1701_v15, %v810_v28  ;;  %v939_v31 = vadd.f32 %v1701_v15, %v938_v29 }
  0xff   : > { %v812_v32 = vpop.f32.mrf.mxu0  ;;  %v940_v33 = vpop.f32.mrf.mxu1 }
 0x100   : > { %1060 = vst.msk [vmem:[%s1708_s21 + $0x10] sm:$0xff] %vm1057_vm3, %v811_v30  ;;  %1092 = vst.msk [vmem:[%s1708_s21 + $0x110] sm:$0xff] %vm1057_vm3, %v939_v31 }
 0x101   : > { %v813_v34 = vpop.f32.mrf.mxu0  ;;  %v941_v35 = vpop.f32.mrf.mxu1 }
 0x102   : > { %v814_v36 = vadd.f32 %v1701_v15, %v813_v34  ;;  %v942_v37 = vadd.f32 %v1701_v15, %v941_v35 }
 0x103   : > { %v815_v38 = vpop.f32.mrf.mxu0  ;;  %v943_v39 = vpop.f32.mrf.mxu1 }
 0x104   : > { %1061 = vst.msk [vmem:[%s1708_s21 + $0x18] sm:$0xff] %vm1057_vm3, %v814_v36  ;;  %1093 = vst.msk [vmem:[%s1708_s21 + $0x118] sm:$0xff] %vm1057_vm3, %v942_v37 }
 0x105   : > { %v818_v40 = vpop.f32.mrf.mxu0  ;;  %v946_v41 = vpop.f32.mrf.mxu1 }
 0x106   : > { %v819_v42 = vadd.f32 %v1701_v15, %v818_v40  ;;  %v947_v43 = vadd.f32 %v1701_v15, %v946_v41 }
 0x107   : > { %v820_v44 = vpop.f32.mrf.mxu0  ;;  %v948_v45 = vpop.f32.mrf.mxu1 }
 0x108   : > { %1062 = vst.msk [vmem:[%s1708_s21 + $0x20] sm:$0xff] %vm1057_vm3, %v819_v42  ;;  %1094 = vst.msk [vmem:[%s1708_s21 + $0x120] sm:$0xff] %vm1057_vm3, %v947_v43 }
 0x109   : > { %v821_v46 = vpop.f32.mrf.mxu0  ;;  %v949_v47 = vpop.f32.mrf.mxu1 }
 0x10a   : > { %v822_v48 = vadd.f32 %v1701_v15, %v821_v46  ;;  %v950_v49 = vadd.f32 %v1701_v15, %v949_v47 }
 0x10b   : > { %v823_v50 = vpop.f32.mrf.mxu0  ;;  %v951_v51 = vpop.f32.mrf.mxu1 }
 0x10c   : > { %1063 = vst.msk [vmem:[%s1708_s21 + $0x28] sm:$0xff] %vm1057_vm3, %v822_v48  ;;  %1095 = vst.msk [vmem:[%s1708_s21 + $0x128] sm:$0xff] %vm1057_vm3, %v950_v49 }
 0x10d   : > { %v826_v52 = vpop.f32.mrf.mxu0  ;;  %v954_v53 = vpop.f32.mrf.mxu1 }
 0x10e   : > { %v827_v54 = vadd.f32 %v1701_v15, %v826_v52  ;;  %v955_v55 = vadd.f32 %v1701_v15, %v954_v53 }
 0x10f   : > { %v828_v56 = vpop.f32.mrf.mxu0  ;;  %v956_v57 = vpop.f32.mrf.mxu1 }
 0x110   : > { %1064 = vst.msk [vmem:[%s1708_s21 + $0x30] sm:$0xff] %vm1057_vm3, %v827_v54  ;;  %1096 = vst.msk [vmem:[%s1708_s21 + $0x130] sm:$0xff] %vm1057_vm3, %v955_v55 }
 0x111   : > { %v829_v58 = vpop.f32.mrf.mxu0  ;;  %v957_v59 = vpop.f32.mrf.mxu1 }
 0x112   : > { %v830_v60 = vadd.f32 %v1701_v15, %v829_v58  ;;  %v958_v61 = vadd.f32 %v1701_v15, %v957_v59 }
 0x113   : > { %v831_v62 = vpop.f32.mrf.mxu0  ;;  %v959_v63 = vpop.f32.mrf.mxu1 }
 0x114   : > { %1065 = vst.msk [vmem:[%s1708_s21 + $0x38] sm:$0xff] %vm1057_vm3, %v830_v60  ;;  %1097 = vst.msk [vmem:[%s1708_s21 + $0x138] sm:$0xff] %vm1057_vm3, %v958_v61 }
 0x115   : > { %v834_v0 = vpop.f32.mrf.mxu0  ;;  %v962_v1 = vpop.f32.mrf.mxu1 }
 0x116   : > { %v835_v2 = vadd.f32 %v1701_v15, %v834_v0  ;;  %v963_v3 = vadd.f32 %v1701_v15, %v962_v1 }
 0x117   : > { %v836_v4 = vpop.f32.mrf.mxu0  ;;  %v964_v5 = vpop.f32.mrf.mxu1 }
 0x118   : > { %1066 = vst.msk [vmem:[%s1708_s21 + $0x40] sm:$0xff] %vm1057_vm3, %v835_v2  ;;  %1098 = vst.msk [vmem:[%s1708_s21 + $0x140] sm:$0xff] %vm1057_vm3, %v963_v3 }
 0x119   : > { %v837_v6 = vpop.f32.mrf.mxu0  ;;  %v965_v7 = vpop.f32.mrf.mxu1 }
 0x11a   : > { %v838_v8 = vadd.f32 %v1701_v15, %v837_v6  ;;  %v966_v9 = vadd.f32 %v1701_v15, %v965_v7 }
 0x11b   : > { %v839_v10 = vpop.f32.mrf.mxu0  ;;  %v967_v11 = vpop.f32.mrf.mxu1 }
 0x11c   : > { %1067 = vst.msk [vmem:[%s1708_s21 + $0x48] sm:$0xff] %vm1057_vm3, %v838_v8  ;;  %1099 = vst.msk [vmem:[%s1708_s21 + $0x148] sm:$0xff] %vm1057_vm3, %v966_v9 }
 0x11d   : > { %v842_v12 = vpop.f32.mrf.mxu0  ;;  %v970_v13 = vpop.f32.mrf.mxu1 }
 0x11e   : > { %v843_v14 = vadd.f32 %v1701_v15, %v842_v12  ;;  %v971_v16 = vadd.f32 %v1701_v15, %v970_v13 }
 0x11f   : > { %v844_v17 = vpop.f32.mrf.mxu0  ;;  %v972_v18 = vpop.f32.mrf.mxu1 }
 0x120   : > { %1068 = vst.msk [vmem:[%s1708_s21 + $0x50] sm:$0xff] %vm1057_vm3, %v843_v14  ;;  %1100 = vst.msk [vmem:[%s1708_s21 + $0x150] sm:$0xff] %vm1057_vm3, %v971_v16 }
 0x121   : > { %v845_v19 = vpop.f32.mrf.mxu0  ;;  %v973_v20 = vpop.f32.mrf.mxu1 }
 0x122   : > { %v846_v21 = vadd.f32 %v1701_v15, %v845_v19  ;;  %v974_v22 = vadd.f32 %v1701_v15, %v973_v20 }
 0x123   : > { %v847_v23 = vpop.f32.mrf.mxu0  ;;  %v975_v24 = vpop.f32.mrf.mxu1 }
 0x124   : > { %1069 = vst.msk [vmem:[%s1708_s21 + $0x58] sm:$0xff] %vm1057_vm3, %v846_v21  ;;  %1101 = vst.msk [vmem:[%s1708_s21 + $0x158] sm:$0xff] %vm1057_vm3, %v974_v22 }
 0x125   : > { %v850_v25 = vpop.f32.mrf.mxu0  ;;  %v978_v26 = vpop.f32.mrf.mxu1 }
 0x126   : > { %v851_v27 = vadd.f32 %v1701_v15, %v850_v25  ;;  %v979_v28 = vadd.f32 %v1701_v15, %v978_v26 }
 0x127   : > { %v852_v29 = vpop.f32.mrf.mxu0  ;;  %v980_v30 = vpop.f32.mrf.mxu1 }
 0x128   : > { %1070 = vst.msk [vmem:[%s1708_s21 + $0x60] sm:$0xff] %vm1057_vm3, %v851_v27  ;;  %1102 = vst.msk [vmem:[%s1708_s21 + $0x160] sm:$0xff] %vm1057_vm3, %v979_v28 }
 0x129   : > { %v853_v31 = vpop.f32.mrf.mxu0  ;;  %v981_v32 = vpop.f32.mrf.mxu1 }
 0x12a   : > { %v854_v33 = vadd.f32 %v1701_v15, %v853_v31  ;;  %v982_v34 = vadd.f32 %v1701_v15, %v981_v32 }
 0x12b   : > { %v855_v35 = vpop.f32.mrf.mxu0  ;;  %v983_v36 = vpop.f32.mrf.mxu1 }
 0x12c   : > { %1071 = vst.msk [vmem:[%s1708_s21 + $0x68] sm:$0xff] %vm1057_vm3, %v854_v33  ;;  %1103 = vst.msk [vmem:[%s1708_s21 + $0x168] sm:$0xff] %vm1057_vm3, %v982_v34 }
 0x12d   : > { %v858_v37 = vpop.f32.mrf.mxu0  ;;  %v986_v38 = vpop.f32.mrf.mxu1 }
 0x12e   : > { %v859_v39 = vadd.f32 %v1701_v15, %v858_v37  ;;  %v987_v40 = vadd.f32 %v1701_v15, %v986_v38 }
 0x12f   : > { %v860_v41 = vpop.f32.mrf.mxu0  ;;  %v988_v42 = vpop.f32.mrf.mxu1 }
 0x130   : > { %1072 = vst.msk [vmem:[%s1708_s21 + $0x70] sm:$0xff] %vm1057_vm3, %v859_v39  ;;  %1104 = vst.msk [vmem:[%s1708_s21 + $0x170] sm:$0xff] %vm1057_vm3, %v987_v40 }
 0x131   : > { %v861_v43 = vpop.f32.mrf.mxu0  ;;  %v989_v44 = vpop.f32.mrf.mxu1 }
 0x132   : > { %v862_v45 = vadd.f32 %v1701_v15, %v861_v43  ;;  %v990_v46 = vadd.f32 %v1701_v15, %v989_v44 }
 0x133   : > { %v863_v47 = vpop.f32.mrf.mxu0  ;;  %v991_v48 = vpop.f32.mrf.mxu1 }
 0x134   : > { %1073 = vst.msk [vmem:[%s1708_s21 + $0x78] sm:$0xff] %vm1057_vm3, %v862_v45  ;;  %1105 = vst.msk [vmem:[%s1708_s21 + $0x178] sm:$0xff] %vm1057_vm3, %v990_v46 }
 0x135   : > { %v866_v49 = vpop.f32.mrf.mxu0  ;;  %v994_v50 = vpop.f32.mrf.mxu1 }
 0x136   : > { %v867_v51 = vadd.f32 %v1701_v15, %v866_v49  ;;  %v995_v52 = vadd.f32 %v1701_v15, %v994_v50 }
 0x137   : > { %v868_v53 = vpop.f32.mrf.mxu0  ;;  %v996_v54 = vpop.f32.mrf.mxu1 }
 0x138   : > { %1074 = vst.msk [vmem:[%s1708_s21 + $0x80] sm:$0xff] %vm1057_vm3, %v867_v51  ;;  %1106 = vst.msk [vmem:[%s1708_s21 + $0x180] sm:$0xff] %vm1057_vm3, %v995_v52 }
 0x139   : > { %v869_v55 = vpop.f32.mrf.mxu0  ;;  %v997_v56 = vpop.f32.mrf.mxu1 }
 0x13a   : > { %v870_v57 = vadd.f32 %v1701_v15, %v869_v55  ;;  %v998_v58 = vadd.f32 %v1701_v15, %v997_v56 }
 0x13b   : > { %v871_v59 = vpop.f32.mrf.mxu0  ;;  %v999_v60 = vpop.f32.mrf.mxu1 }
 0x13c   : > { %1075 = vst.msk [vmem:[%s1708_s21 + $0x88] sm:$0xff] %vm1057_vm3, %v870_v57  ;;  %1107 = vst.msk [vmem:[%s1708_s21 + $0x188] sm:$0xff] %vm1057_vm3, %v998_v58 }
 0x13d   : > { %v874_v61 = vpop.f32.mrf.mxu0  ;;  %v1002_v62 = vpop.f32.mrf.mxu1 }
 0x13e   : > { %v875_v63 = vadd.f32 %v1701_v15, %v874_v61  ;;  %v1003_v0 = vadd.f32 %v1701_v15, %v1002_v62 }
 0x13f   : > { %v876_v1 = vpop.f32.mrf.mxu0  ;;  %v1004_v2 = vpop.f32.mrf.mxu1 }
 0x140   : > { %1076 = vst.msk [vmem:[%s1708_s21 + $0x90] sm:$0xff] %vm1057_vm3, %v875_v63  ;;  %1108 = vst.msk [vmem:[%s1708_s21 + $0x190] sm:$0xff] %vm1057_vm3, %v1003_v0 }
 0x141   : > { %v877_v3 = vpop.f32.mrf.mxu0  ;;  %v1005_v4 = vpop.f32.mrf.mxu1 }
 0x142   : > { %v878_v5 = vadd.f32 %v1701_v15, %v877_v3  ;;  %v1006_v6 = vadd.f32 %v1701_v15, %v1005_v4 }
 0x143   : > { %v879_v7 = vpop.f32.mrf.mxu0  ;;  %v1007_v8 = vpop.f32.mrf.mxu1 }
 0x144   : > { %1077 = vst.msk [vmem:[%s1708_s21 + $0x98] sm:$0xff] %vm1057_vm3, %v878_v5  ;;  %1109 = vst.msk [vmem:[%s1708_s21 + $0x198] sm:$0xff] %vm1057_vm3, %v1006_v6 }
 0x145   : > { %v882_v9 = vpop.f32.mrf.mxu0  ;;  %v1010_v10 = vpop.f32.mrf.mxu1 }
 0x146   : > { %v883_v11 = vadd.f32 %v1701_v15, %v882_v9  ;;  %v1011_v12 = vadd.f32 %v1701_v15, %v1010_v10 }
 0x147   : > { %v884_v13 = vpop.f32.mrf.mxu0  ;;  %v1012_v14 = vpop.f32.mrf.mxu1 }
 0x148   : > { %1078 = vst.msk [vmem:[%s1708_s21 + $0xa0] sm:$0xff] %vm1057_vm3, %v883_v11  ;;  %1110 = vst.msk [vmem:[%s1708_s21 + $0x1a0] sm:$0xff] %vm1057_vm3, %v1011_v12 }
 0x149   : > { %v885_v16 = vpop.f32.mrf.mxu0  ;;  %v1013_v17 = vpop.f32.mrf.mxu1 }
 0x14a   : > { %v886_v18 = vadd.f32 %v1701_v15, %v885_v16  ;;  %v1014_v19 = vadd.f32 %v1701_v15, %v1013_v17 }
 0x14b   : > { %v887_v20 = vpop.f32.mrf.mxu0  ;;  %v1015_v21 = vpop.f32.mrf.mxu1 }
 0x14c   : > { %1079 = vst.msk [vmem:[%s1708_s21 + $0xa8] sm:$0xff] %vm1057_vm3, %v886_v18  ;;  %1111 = vst.msk [vmem:[%s1708_s21 + $0x1a8] sm:$0xff] %vm1057_vm3, %v1014_v19 }
 0x14d   : > { %v890_v22 = vpop.f32.mrf.mxu0  ;;  %v1018_v23 = vpop.f32.mrf.mxu1 }
 0x14e   : > { %v891_v24 = vadd.f32 %v1701_v15, %v890_v22  ;;  %v1019_v25 = vadd.f32 %v1701_v15, %v1018_v23 }
 0x14f   : > { %v892_v26 = vpop.f32.mrf.mxu0  ;;  %v1020_v27 = vpop.f32.mrf.mxu1 }
 0x150   : > { %1080 = vst.msk [vmem:[%s1708_s21 + $0xb0] sm:$0xff] %vm1057_vm3, %v891_v24  ;;  %1112 = vst.msk [vmem:[%s1708_s21 + $0x1b0] sm:$0xff] %vm1057_vm3, %v1019_v25 }
 0x151   : > { %v893_v28 = vpop.f32.mrf.mxu0  ;;  %v1021_v29 = vpop.f32.mrf.mxu1 }
 0x152   : > { %v894_v30 = vadd.f32 %v1701_v15, %v893_v28  ;;  %v1022_v31 = vadd.f32 %v1701_v15, %v1021_v29 }
 0x153   : > { %v895_v32 = vpop.f32.mrf.mxu0  ;;  %v1023_v33 = vpop.f32.mrf.mxu1 }
 0x154   : > { %1081 = vst.msk [vmem:[%s1708_s21 + $0xb8] sm:$0xff] %vm1057_vm3, %v894_v30  ;;  %1113 = vst.msk [vmem:[%s1708_s21 + $0x1b8] sm:$0xff] %vm1057_vm3, %v1022_v31 }
 0x155   : > { %v898_v34 = vpop.f32.mrf.mxu0  ;;  %v1026_v35 = vpop.f32.mrf.mxu1 }
 0x156   : > { %v899_v36 = vadd.f32 %v1701_v15, %v898_v34  ;;  %v1027_v37 = vadd.f32 %v1701_v15, %v1026_v35 }
 0x157   : > { %v900_v38 = vpop.f32.mrf.mxu0  ;;  %v1028_v39 = vpop.f32.mrf.mxu1 }
 0x158   : > { %1082 = vst.msk [vmem:[%s1708_s21 + $0xc0] sm:$0xff] %vm1057_vm3, %v899_v36  ;;  %1114 = vst.msk [vmem:[%s1708_s21 + $0x1c0] sm:$0xff] %vm1057_vm3, %v1027_v37 }
 0x159   : > { %v901_v40 = vpop.f32.mrf.mxu0  ;;  %v1029_v41 = vpop.f32.mrf.mxu1 }
 0x15a   : > { %v902_v42 = vadd.f32 %v1701_v15, %v901_v40  ;;  %v1030_v43 = vadd.f32 %v1701_v15, %v1029_v41 }
 0x15b   : > { %v903_v44 = vpop.f32.mrf.mxu0  ;;  %v1031_v45 = vpop.f32.mrf.mxu1 }
 0x15c   : > { %1083 = vst.msk [vmem:[%s1708_s21 + $0xc8] sm:$0xff] %vm1057_vm3, %v902_v42  ;;  %1115 = vst.msk [vmem:[%s1708_s21 + $0x1c8] sm:$0xff] %vm1057_vm3, %v1030_v43 }
 0x15d   : > { %v906_v46 = vpop.f32.mrf.mxu0  ;;  %v1034_v47 = vpop.f32.mrf.mxu1 }
 0x15e   : > { %v907_v48 = vadd.f32 %v1701_v15, %v906_v46  ;;  %v1035_v49 = vadd.f32 %v1701_v15, %v1034_v47 }
 0x15f   : > { %v908_v50 = vpop.f32.mrf.mxu0  ;;  %v1036_v51 = vpop.f32.mrf.mxu1 }
 0x160   : > { %1084 = vst.msk [vmem:[%s1708_s21 + $0xd0] sm:$0xff] %vm1057_vm3, %v907_v48  ;;  %1116 = vst.msk [vmem:[%s1708_s21 + $0x1d0] sm:$0xff] %vm1057_vm3, %v1035_v49 }
 0x161   : > { %v909_v52 = vpop.f32.mrf.mxu0  ;;  %v1037_v53 = vpop.f32.mrf.mxu1 }
 0x162   : > { %v910_v54 = vadd.f32 %v1701_v15, %v909_v52  ;;  %v1038_v55 = vadd.f32 %v1701_v15, %v1037_v53 }
 0x163   : > { %v911_v56 = vpop.f32.mrf.mxu0  ;;  %v1039_v57 = vpop.f32.mrf.mxu1 }
 0x164   : > { %1085 = vst.msk [vmem:[%s1708_s21 + $0xd8] sm:$0xff] %vm1057_vm3, %v910_v54  ;;  %1117 = vst.msk [vmem:[%s1708_s21 + $0x1d8] sm:$0xff] %vm1057_vm3, %v1038_v55 }
 0x165   : > { %v914_v58 = vpop.f32.mrf.mxu0  ;;  %v1042_v59 = vpop.f32.mrf.mxu1 }
 0x166   : > { %v915_v60 = vadd.f32 %v1701_v15, %v914_v58  ;;  %v1043_v61 = vadd.f32 %v1701_v15, %v1042_v59 }
 0x167   : > { %v916_v62 = vpop.f32.mrf.mxu0  ;;  %v1044_v63 = vpop.f32.mrf.mxu1 }
 0x168   : > { %1086 = vst.msk [vmem:[%s1708_s21 + $0xe0] sm:$0xff] %vm1057_vm3, %v915_v60  ;;  %1118 = vst.msk [vmem:[%s1708_s21 + $0x1e0] sm:$0xff] %vm1057_vm3, %v1043_v61 }
 0x169   : > { %v917_v0 = vpop.f32.mrf.mxu0  ;;  %v1045_v1 = vpop.f32.mrf.mxu1 }
 0x16a   : > { %v918_v2 = vadd.f32 %v1701_v15, %v917_v0  ;;  %v1046_v3 = vadd.f32 %v1701_v15, %v1045_v1 }
 0x16b   : > { %v919_v4 = vpop.f32.mrf.mxu0  ;;  %v1047_v5 = vpop.f32.mrf.mxu1 }
 0x16c   : > { %1087 = vst.msk [vmem:[%s1708_s21 + $0xe8] sm:$0xff] %vm1057_vm3, %v918_v2  ;;  %1119 = vst.msk [vmem:[%s1708_s21 + $0x1e8] sm:$0xff] %vm1057_vm3, %v1046_v3 }
 0x16d   : > { %v922_v6 = vpop.f32.mrf.mxu0  ;;  %v1050_v7 = vpop.f32.mrf.mxu1 }
 0x16e   : > { %v923_v8 = vadd.f32 %v1701_v15, %v922_v6  ;;  %v1051_v9 = vadd.f32 %v1701_v15, %v1050_v7 }
 0x16f   : > { %v924_v10 = vpop.f32.mrf.mxu0  ;;  %v1052_v11 = vpop.f32.mrf.mxu1 }
 0x170   : > { %1088 = vst.msk [vmem:[%s1708_s21 + $0xf0] sm:$0xff] %vm1057_vm3, %v923_v8  ;;  %1120 = vst.msk [vmem:[%s1708_s21 + $0x1f0] sm:$0xff] %vm1057_vm3, %v1051_v9 }
 0x171   : > { %v925_v12 = vpop.f32.mrf.mxu0  ;;  %v1053_v13 = vpop.f32.mrf.mxu1 }
 0x172   : > { %v926_v14 = vadd.f32 %v1701_v15, %v925_v12  ;;  %v1054_v16 = vadd.f32 %v1701_v15, %v1053_v13 }
 0x173   : > { %v927_v17 = vpop.f32.mrf.mxu0  ;;  %v1055_v18 = vpop.f32.mrf.mxu1 }
 0x174   : > { %1089 = vst.msk [vmem:[%s1708_s21 + $0xf8] sm:$0xff] %vm1057_vm3, %v926_v14  ;;  %1121 = vst.msk [vmem:[%s1708_s21 + $0x1f8] sm:$0xff] %vm1057_vm3, %v1054_v16 }
 0x175 PF: > { %s13_s14 = sadd.s32 1, %s1520_s14   ;;  %s1915_s12 = smov %s1516_s13 }
 0x176   : > { %p10_p5 = scmp.ge.s32.totalorder %s13_s14, 6   ;;  %s1916_s13 = smov %s1918_s15 }
 0x178   :  { %12 = sbr.rel (!%p10_p5) target bundleno = 2 (0x2), region = 68 }

// kernel: _lambda_.14
= control target key start
LH: loop header
LB: loop body
LE: loop exit
PB: predicated region body
PF: predicated region fallthrough
CT: control target
= control target key end

     0   :  { %s1527_s12 = smov 0   ;;  %s1529_s13 = smov 0   ;;  %s1891_s0 = inlined_call_operand.vmem [shape: bf16[2048,144], index: 0, kind: input, shape index: {}]   ;;  %s1892_s1 = inlined_call_operand.vmem [shape: bf16[144,32], index: 1, kind: input, shape index: {}]   ;;  %s1893_s2 = inlined_call_operand.vmem [shape: f32[1,32], index: 2, kind: input, shape index: {}]   ;;  %s1894_s3 = inlined_call_operand.vmem [shape: f32[2048,32], index: 3, kind: output, shape index: {}]  }
   0x1   :  { %s1531_s14 = smov 0  }
   0x2 LB: > { %s25_s15 = sadd.s32 1, %s1500_s13  ;;  %p1219_p0 = scmp.ge.s32.totalorder %s1504_s14, 1  ;;  %s1504_s14 = sphi %s1531_s14, %s13_s14   ;;  %s1500_s13 = sphi %s1529_s13, %s1896_s13   ;;  %s1496_s12 = sphi %s1527_s12, %s1895_s12  }
   0x3   : > { %p27_p1 = scmp.ge.s32.totalorder %s25_s15, 4  ;;  %p170_p2 = scmp.lt.s32.totalorder %s1504_s14, 5 }
   0x5   : > { %s1898_s15 = smov (%p27_p1, %s25_s15), 0  ;;  %p171_p3 = pnand %p1219_p0, %p170_p2 }
   0x6   : > { %s1220_s18 = sshll.u32 (!%p171_p3), %s1496_s12, 6 }
   0x7   : > { %174 = sbr.rel (%p171_p3) target bundleno = 369 (0x171), region = 32  ;;  %p206_p4 = scmp.lt.s32.totalorder (!%p171_p3), %s1220_s18, 255 }
   0xc   : > { %v1377_v0 = vld [vmem:[%s1892_s1 + $0x38] sm:$0xff]   ;;  %v1506_v1 = vmov 0   ;;  %v1378_v2 = vld [vmem:[%s1892_s1 + $0x30] sm:$0xff]   ;;  %s1900_s18 = smov (!%p206_p4, %s1220_s18), 255  ;;  %v1379_v3 = vld [vmem:[%s1892_s1 + $0x28] sm:$0xff]   ;;  %vm660_vm0 = vcmask 130048  }
   0xd   : > { %757 = vmatprep.subr.bf16.mxu0 %v1506_v1  ;;  %1334 = vmatprep.subr.bf16.mxu1 %v1506_v1  ;;  %s1333_s23 = sshll.u32 %s1900_s18, 3  ;;  %v1380_v4 = vld [vmem:[%s1892_s1 + $0x20] sm:$0xff]   ;;  %v1381_v7 = vld [vmem:[%s1892_s1 + $0x18] sm:$0xff]   ;;  %v1382_v8 = vld [vmem:[%s1892_s1 + $0x10] sm:$0xff]   ;;  %vm1046_vm1 = vcmask 261120  }
   0xe   : > { %758 = vmatpush1.bf16.msra.mxu0 %v1377_v0  ;;  %1343 = vmatpush1.bf16.msra.mxu1 %v1377_v0  ;;  %s1562_s26 = scalar_lea.vmem %s1891_s0, %s1333_s23  ;;  %v1383_v9 = vld [vmem:[%s1892_s1 + $0x8] sm:$0xff]   ;;  %v1384_v10 = vld [vmem:[%s1892_s1] sm:$0xff]   ;;  %s1688_s20 = scalar_lea.vmem %s1894_s3, %s1333_s23 }
   0xf   : > { %759 = vmatprep.subr.bf16.mxu0 %v1506_v1  ;;  %1335 = vmatprep.subr.bf16.mxu1 %v1506_v1  ;;  %v1388_v5 = vld [vmem:[%s1562_s26 + $0x4] ss:$8 sps:$4 sm:$0xff]   ;;  %v1386_v12 = vld [vmem:[%s1562_s26] ss:$8 sps:$4 sm:$0xff]   ;;  %v1392_v14 = vld [vmem:[%s1562_s26 + $0x14] ss:$8 sps:$4 sm:$0xff]  }
  0x10   : > { %v1391_v6 = vld [vmem:[%s1562_s26 + $0x104] ss:$8 sps:$4 sm:$0xff]   ;;  %1299 = vmatprep.mubr.msk.bf16.mxu0 %vm660_vm0, %v1388_v5  ;;  %v1389_v13 = vld [vmem:[%s1562_s26 + $0x100] ss:$8 sps:$4 sm:$0xff]   ;;  %v1394_v15 = vld [vmem:[%s1562_s26 + $0x114] ss:$8 sps:$4 sm:$0xff]  }
  0x11   : > { %1315 = vmatprep.mubr.msk.bf16.mxu1 %vm660_vm0, %v1391_v6  ;;  %v1385_v11 = vld [vmem:[%s1892_s1 + $0x40] sm:$0xff]   ;;  %v1396_v16 = vld [vmem:[%s1562_s26 + $0x10] ss:$8 sps:$4 sm:$0xff]   ;;  %v1404_v22 = vld [vmem:[%s1562_s26 + $0x34] ss:$8 sps:$4 sm:$0xff]  }
  0x12   : > { %760 = vmatpush1.bf16.msra.mxu0 %v1378_v2  ;;  %1344 = vmatpush1.bf16.msra.mxu1 %v1378_v2  ;;  %v1397_v17 = vld [vmem:[%s1562_s26 + $0x110] ss:$8 sps:$4 sm:$0xff]   ;;  %v1398_v18 = vld [vmem:[%s1562_s26 + $0x24] ss:$8 sps:$4 sm:$0xff]   ;;  %v1402_v20 = vld [vmem:[%s1562_s26 + $0x20] ss:$8 sps:$4 sm:$0xff]  }
  0x13   : > { %761 = vmatprep.subr.bf16.mxu0 %v1506_v1  ;;  %1336 = vmatprep.subr.bf16.mxu1 %v1506_v1  ;;  %v1400_v19 = vld [vmem:[%s1562_s26 + $0x124] ss:$8 sps:$4 sm:$0xff]   ;;  %v1403_v21 = vld [vmem:[%s1562_s26 + $0x120] ss:$8 sps:$4 sm:$0xff]   ;;  %v1406_v23 = vld [vmem:[%s1562_s26 + $0x134] ss:$8 sps:$4 sm:$0xff]  }
  0x14   : > { %v1408_v24 = vld [vmem:[%s1562_s26 + $0x30] ss:$8 sps:$4 sm:$0xff]   ;;  %v1410_v26 = vld [vmem:[%s1562_s26 + $0x44] ss:$8 sps:$4 sm:$0xff]   ;;  %v1414_v28 = vld [vmem:[%s1562_s26 + $0x40] ss:$8 sps:$4 sm:$0xff]  }
  0x15   : > { %v1409_v25 = vld [vmem:[%s1562_s26 + $0x130] ss:$8 sps:$4 sm:$0xff]   ;;  %v1412_v27 = vld [vmem:[%s1562_s26 + $0x144] ss:$8 sps:$4 sm:$0xff]   ;;  %v1415_v29 = vld [vmem:[%s1562_s26 + $0x140] ss:$8 sps:$4 sm:$0xff]  }
  0x16   : > { %762 = vmatpush1.bf16.msra.mxu0 %v1379_v3  ;;  %1345 = vmatpush1.bf16.msra.mxu1 %v1379_v3  ;;  %v1416_v30 = vld [vmem:[%s1562_s26 + $0x54] ss:$8 sps:$4 sm:$0xff]   ;;  %v1420_v32 = vld [vmem:[%s1562_s26 + $0x50] ss:$8 sps:$4 sm:$0xff]   ;;  %v1422_v34 = vld [vmem:[%s1562_s26 + $0x64] ss:$8 sps:$4 sm:$0xff]  }
  0x17   : > { %763 = vmatprep.subr.bf16.mxu0 %v1506_v1  ;;  %1337 = vmatprep.subr.bf16.mxu1 %v1506_v1  ;;  %v1418_v31 = vld [vmem:[%s1562_s26 + $0x154] ss:$8 sps:$4 sm:$0xff]   ;;  %v1421_v33 = vld [vmem:[%s1562_s26 + $0x150] ss:$8 sps:$4 sm:$0xff]   ;;  %v1424_v35 = vld [vmem:[%s1562_s26 + $0x164] ss:$8 sps:$4 sm:$0xff]  }
  0x18   : > { %v1426_v36 = vld [vmem:[%s1562_s26 + $0x60] ss:$8 sps:$4 sm:$0xff]   ;;  %v1428_v38 = vld [vmem:[%s1562_s26 + $0x74] ss:$8 sps:$4 sm:$0xff]   ;;  %v1432_v40 = vld [vmem:[%s1562_s26 + $0x70] ss:$8 sps:$4 sm:$0xff]  }
  0x19   : > { %v1427_v37 = vld [vmem:[%s1562_s26 + $0x160] ss:$8 sps:$4 sm:$0xff]   ;;  %v1430_v39 = vld [vmem:[%s1562_s26 + $0x174] ss:$8 sps:$4 sm:$0xff]   ;;  %v1433_v41 = vld [vmem:[%s1562_s26 + $0x170] ss:$8 sps:$4 sm:$0xff]  }
  0x1a   : > { %764 = vmatpush1.bf16.msra.mxu0 %v1380_v4  ;;  %1346 = vmatpush1.bf16.msra.mxu1 %v1380_v4  ;;  %v1434_v42 = vld [vmem:[%s1562_s26 + $0x84] ss:$8 sps:$4 sm:$0xff]   ;;  %v1438_v44 = vld [vmem:[%s1562_s26 + $0x80] ss:$8 sps:$4 sm:$0xff]   ;;  %v1440_v46 = vld [vmem:[%s1562_s26 + $0x94] ss:$8 sps:$4 sm:$0xff]  }
  0x1b   : > { %765 = vmatprep.subr.bf16.mxu0 %v1506_v1  ;;  %1338 = vmatprep.subr.bf16.mxu1 %v1506_v1  ;;  %v1436_v43 = vld [vmem:[%s1562_s26 + $0x184] ss:$8 sps:$4 sm:$0xff]   ;;  %v1439_v45 = vld [vmem:[%s1562_s26 + $0x180] ss:$8 sps:$4 sm:$0xff]   ;;  %v1442_v47 = vld [vmem:[%s1562_s26 + $0x194] ss:$8 sps:$4 sm:$0xff]  }
  0x1c   : > { %v1444_v48 = vld [vmem:[%s1562_s26 + $0x90] ss:$8 sps:$4 sm:$0xff]   ;;  %v1446_v50 = vld [vmem:[%s1562_s26 + $0xa4] ss:$8 sps:$4 sm:$0xff]   ;;  %v1450_v52 = vld [vmem:[%s1562_s26 + $0xa0] ss:$8 sps:$4 sm:$0xff]  }
  0x1d   : > { %v1445_v49 = vld [vmem:[%s1562_s26 + $0x190] ss:$8 sps:$4 sm:$0xff]   ;;  %v1448_v51 = vld [vmem:[%s1562_s26 + $0x1a4] ss:$8 sps:$4 sm:$0xff]   ;;  %v1451_v53 = vld [vmem:[%s1562_s26 + $0x1a0] ss:$8 sps:$4 sm:$0xff]  }
  0x1e   : > { %766 = vmatpush1.bf16.msra.mxu0 %v1381_v7  ;;  %1347 = vmatpush1.bf16.msra.mxu1 %v1381_v7  ;;  %v1452_v54 = vld [vmem:[%s1562_s26 + $0xb4] ss:$8 sps:$4 sm:$0xff]   ;;  %v1456_v56 = vld [vmem:[%s1562_s26 + $0xb0] ss:$8 sps:$4 sm:$0xff]   ;;  %v1458_v58 = vld [vmem:[%s1562_s26 + $0xc4] ss:$8 sps:$4 sm:$0xff]  }
  0x1f   : > { %767 = vmatprep.subr.bf16.mxu0 %v1506_v1  ;;  %1339 = vmatprep.subr.bf16.mxu1 %v1506_v1  ;;  %v1454_v55 = vld [vmem:[%s1562_s26 + $0x1b4] ss:$8 sps:$4 sm:$0xff]   ;;  %v1457_v57 = vld [vmem:[%s1562_s26 + $0x1b0] ss:$8 sps:$4 sm:$0xff]   ;;  %v1460_v59 = vld [vmem:[%s1562_s26 + $0x1c4] ss:$8 sps:$4 sm:$0xff]  }
  0x20   : > { %v1462_v60 = vld [vmem:[%s1562_s26 + $0xc0] ss:$8 sps:$4 sm:$0xff]   ;;  %v1464_v62 = vld [vmem:[%s1562_s26 + $0xd4] ss:$8 sps:$4 sm:$0xff]   ;;  %v1468_v0 = vld [vmem:[%s1562_s26 + $0xd0] ss:$8 sps:$4 sm:$0xff]  }
  0x21   : > { %v1463_v61 = vld [vmem:[%s1562_s26 + $0x1c0] ss:$8 sps:$4 sm:$0xff]   ;;  %v1466_v63 = vld [vmem:[%s1562_s26 + $0x1d4] ss:$8 sps:$4 sm:$0xff]   ;;  %v1470_v2 = vld [vmem:[%s1562_s26 + $0xe4] ss:$8 sps:$4 sm:$0xff]  }
  0x22   : > { %768 = vmatpush1.bf16.msra.mxu0 %v1382_v8  ;;  %1348 = vmatpush1.bf16.msra.mxu1 %v1382_v8  ;;  %v1472_v3 = vld [vmem:[%s1562_s26 + $0x1e4] ss:$8 sps:$4 sm:$0xff]   ;;  %v1474_v4 = vld [vmem:[%s1562_s26 + $0xe0] ss:$8 sps:$4 sm:$0xff]   ;;  %v1476_v6 = vld [vmem:[%s1562_s26 + $0xf4] ss:$8 sps:$4 sm:$0xff]  }
  0x23   : > { %769 = vmatprep.subr.bf16.mxu0 %v1506_v1  ;;  %1340 = vmatprep.subr.bf16.mxu1 %v1506_v1  ;;  %v1475_v5 = vld [vmem:[%s1562_s26 + $0x1e0] ss:$8 sps:$4 sm:$0xff]   ;;  %v1478_v7 = vld [vmem:[%s1562_s26 + $0x1f4] ss:$8 sps:$4 sm:$0xff]   ;;  %v1480_v8 = vld [vmem:[%s1562_s26 + $0xf0] ss:$8 sps:$4 sm:$0xff]  }
  0x26   : > { %770 = vmatpush1.bf16.msra.mxu0 %v1383_v9  ;;  %1349 = vmatpush1.bf16.msra.mxu1 %v1383_v9  ;;  %v1481_v9 = vld [vmem:[%s1562_s26 + $0x1f0] ss:$8 sps:$4 sm:$0xff]  }
  0x27   : > { %771 = vmatprep.subr.bf16.mxu0 %v1506_v1  ;;  %1341 = vmatprep.subr.bf16.mxu1 %v1506_v1 }
  0x2a   : > { %772 = vmatpush1.bf16.msra.mxu0 %v1384_v10  ;;  %1350 = vmatpush1.bf16.msra.mxu1 %v1384_v10  ;;  %v1681_v10 = vld [vmem:[%s1893_s2] ss:$0 sm:$0xff] }
  0x2b   : > { %787 = vmatprep.subr.bf16.mxu0 %v1506_v1  ;;  %1342 = vmatprep.subr.bf16.mxu1 %v1506_v1  ;;  %v1469_v1 = vld [vmem:[%s1562_s26 + $0x1d0] ss:$8 sps:$4 sm:$0xff]  }
  0x2e   : > { %788 = vmatpush2.bf16.msra.mxu0 %v1385_v11  ;;  %1351 = vmatpush2.bf16.msra.mxu1 %v1385_v11 }
  0x31   : > { %790 = vmatmul.mubr.bf16.vlgmr.msra.gmra.mxu0 %v1386_v12  ;;  %918 = vmatmul.mubr.bf16.vlgmr.msra.gmra.mxu1 %v1389_v13 }
  0x32   : > { %1300 = vmatprep.mubr.msk.bf16.mxu0 %vm660_vm0, %v1392_v14  ;;  %1316 = vmatprep.mubr.msk.bf16.mxu1 %vm660_vm0, %v1394_v15 }
  0x39   : > { %798 = vmatmul.mubr.bf16.gmra.mxu0 %v1396_v16  ;;  %926 = vmatmul.mubr.bf16.gmra.mxu1 %v1397_v17 }
  0x3a   : > { %1301 = vmatprep.mubr.msk.bf16.mxu0 %vm660_vm0, %v1398_v18  ;;  %1317 = vmatprep.mubr.msk.bf16.mxu1 %vm660_vm0, %v1400_v19 }
  0x41   : > { %806 = vmatmul.mubr.bf16.gmra.mxu0 %v1402_v20  ;;  %934 = vmatmul.mubr.bf16.gmra.mxu1 %v1403_v21 }
  0x42   : > { %1302 = vmatprep.mubr.msk.bf16.mxu0 %vm660_vm0, %v1404_v22  ;;  %1318 = vmatprep.mubr.msk.bf16.mxu1 %vm660_vm0, %v1406_v23 }
  0x49   : > { %814 = vmatmul.mubr.bf16.gmra.mxu0 %v1408_v24  ;;  %942 = vmatmul.mubr.bf16.gmra.mxu1 %v1409_v25 }
  0x4a   : > { %1303 = vmatprep.mubr.msk.bf16.mxu0 %vm660_vm0, %v1410_v26  ;;  %1319 = vmatprep.mubr.msk.bf16.mxu1 %vm660_vm0, %v1412_v27 }
  0x51   : > { %822 = vmatmul.mubr.bf16.gmra.mxu0 %v1414_v28  ;;  %950 = vmatmul.mubr.bf16.gmra.mxu1 %v1415_v29 }
  0x52   : > { %1304 = vmatprep.mubr.msk.bf16.mxu0 %vm660_vm0, %v1416_v30  ;;  %1320 = vmatprep.mubr.msk.bf16.mxu1 %vm660_vm0, %v1418_v31 }
  0x59   : > { %830 = vmatmul.mubr.bf16.gmra.mxu0 %v1420_v32  ;;  %958 = vmatmul.mubr.bf16.gmra.mxu1 %v1421_v33 }
  0x5a   : > { %1305 = vmatprep.mubr.msk.bf16.mxu0 %vm660_vm0, %v1422_v34  ;;  %1321 = vmatprep.mubr.msk.bf16.mxu1 %vm660_vm0, %v1424_v35 }
  0x61   : > { %838 = vmatmul.mubr.bf16.gmra.mxu0 %v1426_v36  ;;  %966 = vmatmul.mubr.bf16.gmra.mxu1 %v1427_v37 }
  0x62   : > { %1306 = vmatprep.mubr.msk.bf16.mxu0 %vm660_vm0, %v1428_v38  ;;  %1322 = vmatprep.mubr.msk.bf16.mxu1 %vm660_vm0, %v1430_v39 }
  0x69   : > { %846 = vmatmul.mubr.bf16.gmra.mxu0 %v1432_v40  ;;  %974 = vmatmul.mubr.bf16.gmra.mxu1 %v1433_v41 }
  0x6a   : > { %1307 = vmatprep.mubr.msk.bf16.mxu0 %vm660_vm0, %v1434_v42  ;;  %1323 = vmatprep.mubr.msk.bf16.mxu1 %vm660_vm0, %v1436_v43 }
  0x71   : > { %854 = vmatmul.mubr.bf16.gmra.mxu0 %v1438_v44  ;;  %982 = vmatmul.mubr.bf16.gmra.mxu1 %v1439_v45 }
  0x72   : > { %1308 = vmatprep.mubr.msk.bf16.mxu0 %vm660_vm0, %v1440_v46  ;;  %1324 = vmatprep.mubr.msk.bf16.mxu1 %vm660_vm0, %v1442_v47 }
  0x79   : > { %862 = vmatmul.mubr.bf16.gmra.mxu0 %v1444_v48  ;;  %990 = vmatmul.mubr.bf16.gmra.mxu1 %v1445_v49 }
  0x7a   : > { %1309 = vmatprep.mubr.msk.bf16.mxu0 %vm660_vm0, %v1446_v50  ;;  %1325 = vmatprep.mubr.msk.bf16.mxu1 %vm660_vm0, %v1448_v51 }
  0x81   : > { %870 = vmatmul.mubr.bf16.gmra.mxu0 %v1450_v52  ;;  %998 = vmatmul.mubr.bf16.gmra.mxu1 %v1451_v53 }
  0x82   : > { %1310 = vmatprep.mubr.msk.bf16.mxu0 %vm660_vm0, %v1452_v54  ;;  %1326 = vmatprep.mubr.msk.bf16.mxu1 %vm660_vm0, %v1454_v55 }
  0x89   : > { %878 = vmatmul.mubr.bf16.gmra.mxu0 %v1456_v56  ;;  %1006 = vmatmul.mubr.bf16.gmra.mxu1 %v1457_v57 }
  0x8a   : > { %1311 = vmatprep.mubr.msk.bf16.mxu0 %vm660_vm0, %v1458_v58  ;;  %1327 = vmatprep.mubr.msk.bf16.mxu1 %vm660_vm0, %v1460_v59 }
  0x91   : > { %886 = vmatmul.mubr.bf16.gmra.mxu0 %v1462_v60  ;;  %1014 = vmatmul.mubr.bf16.gmra.mxu1 %v1463_v61 }
  0x92   : > { %1312 = vmatprep.mubr.msk.bf16.mxu0 %vm660_vm0, %v1464_v62  ;;  %1328 = vmatprep.mubr.msk.bf16.mxu1 %vm660_vm0, %v1466_v63 }
  0x99   : > { %894 = vmatmul.mubr.bf16.gmra.mxu0 %v1468_v0  ;;  %1022 = vmatmul.mubr.bf16.gmra.mxu1 %v1469_v1 }
  0x9a   : > { %1313 = vmatprep.mubr.msk.bf16.mxu0 %vm660_vm0, %v1470_v2  ;;  %1329 = vmatprep.mubr.msk.bf16.mxu1 %vm660_vm0, %v1472_v3 }
  0xa1   : > { %902 = vmatmul.mubr.bf16.gmra.mxu0 %v1474_v4  ;;  %1030 = vmatmul.mubr.bf16.gmra.mxu1 %v1475_v5 }
  0xa2   : > { %1314 = vmatprep.mubr.msk.bf16.mxu0 %vm660_vm0, %v1476_v6  ;;  %1330 = vmatprep.mubr.msk.bf16.mxu1 %vm660_vm0, %v1478_v7 }
  0xa9   : > { %910 = vmatmul.mubr.bf16.gmra.mxu0 %v1480_v8  ;;  %1038 = vmatmul.mubr.bf16.gmra.mxu1 %v1481_v9 }
  0xf1   : > { %v791_v11 = vpop.f32.mrf.mxu0  ;;  %v919_v12 = vpop.f32.mrf.mxu1 }
  0xf2   : > { %v792_v13 = vadd.f32 %v1681_v10, %v791_v11  ;;  %v920_v14 = vadd.f32 %v1681_v10, %v919_v12 }
  0xf3   : > { %v793_v15 = vpop.f32.mrf.mxu0  ;;  %v921_v16 = vpop.f32.mrf.mxu1 }
  0xf4   : > { %1047 = vst.msk [vmem:[%s1688_s20] sm:$0xff] %vm1046_vm1, %v792_v13  ;;  %1079 = vst.msk [vmem:[%s1688_s20 + $0x100] sm:$0xff] %vm1046_vm1, %v920_v14 }
  0xf5   : > { %v794_v17 = vpop.f32.mrf.mxu0  ;;  %v922_v18 = vpop.f32.mrf.mxu1 }
  0xf6   : > { %v795_v19 = vadd.f32 %v1681_v10, %v794_v17  ;;  %v923_v20 = vadd.f32 %v1681_v10, %v922_v18 }
  0xf7   : > { %v796_v21 = vpop.f32.mrf.mxu0  ;;  %v924_v22 = vpop.f32.mrf.mxu1 }
  0xf8   : > { %1048 = vst.msk [vmem:[%s1688_s20 + $0x8] sm:$0xff] %vm1046_vm1, %v795_v19  ;;  %1080 = vst.msk [vmem:[%s1688_s20 + $0x108] sm:$0xff] %vm1046_vm1, %v923_v20 }
  0xf9   : > { %v799_v23 = vpop.f32.mrf.mxu0  ;;  %v927_v24 = vpop.f32.mrf.mxu1 }
  0xfa   : > { %v800_v25 = vadd.f32 %v1681_v10, %v799_v23  ;;  %v928_v26 = vadd.f32 %v1681_v10, %v927_v24 }
  0xfb   : > { %v801_v27 = vpop.f32.mrf.mxu0  ;;  %v929_v28 = vpop.f32.mrf.mxu1 }
  0xfc   : > { %1049 = vst.msk [vmem:[%s1688_s20 + $0x10] sm:$0xff] %vm1046_vm1, %v800_v25  ;;  %1081 = vst.msk [vmem:[%s1688_s20 + $0x110] sm:$0xff] %vm1046_vm1, %v928_v26 }
  0xfd   : > { %v802_v29 = vpop.f32.mrf.mxu0  ;;  %v930_v30 = vpop.f32.mrf.mxu1 }
  0xfe   : > { %v803_v31 = vadd.f32 %v1681_v10, %v802_v29  ;;  %v931_v32 = vadd.f32 %v1681_v10, %v930_v30 }
  0xff   : > { %v804_v33 = vpop.f32.mrf.mxu0  ;;  %v932_v34 = vpop.f32.mrf.mxu1 }
 0x100   : > { %1050 = vst.msk [vmem:[%s1688_s20 + $0x18] sm:$0xff] %vm1046_vm1, %v803_v31  ;;  %1082 = vst.msk [vmem:[%s1688_s20 + $0x118] sm:$0xff] %vm1046_vm1, %v931_v32 }
 0x101   : > { %v807_v35 = vpop.f32.mrf.mxu0  ;;  %v935_v36 = vpop.f32.mrf.mxu1 }
 0x102   : > { %v808_v37 = vadd.f32 %v1681_v10, %v807_v35  ;;  %v936_v38 = vadd.f32 %v1681_v10, %v935_v36 }
 0x103   : > { %v809_v39 = vpop.f32.mrf.mxu0  ;;  %v937_v40 = vpop.f32.mrf.mxu1 }
 0x104   : > { %1051 = vst.msk [vmem:[%s1688_s20 + $0x20] sm:$0xff] %vm1046_vm1, %v808_v37  ;;  %1083 = vst.msk [vmem:[%s1688_s20 + $0x120] sm:$0xff] %vm1046_vm1, %v936_v38 }
 0x105   : > { %v810_v41 = vpop.f32.mrf.mxu0  ;;  %v938_v42 = vpop.f32.mrf.mxu1 }
 0x106   : > { %v811_v43 = vadd.f32 %v1681_v10, %v810_v41  ;;  %v939_v44 = vadd.f32 %v1681_v10, %v938_v42 }
 0x107   : > { %v812_v45 = vpop.f32.mrf.mxu0  ;;  %v940_v46 = vpop.f32.mrf.mxu1 }
 0x108   : > { %1052 = vst.msk [vmem:[%s1688_s20 + $0x28] sm:$0xff] %vm1046_vm1, %v811_v43  ;;  %1084 = vst.msk [vmem:[%s1688_s20 + $0x128] sm:$0xff] %vm1046_vm1, %v939_v44 }
 0x109   : > { %v815_v47 = vpop.f32.mrf.mxu0  ;;  %v943_v48 = vpop.f32.mrf.mxu1 }
 0x10a   : > { %v816_v49 = vadd.f32 %v1681_v10, %v815_v47  ;;  %v944_v50 = vadd.f32 %v1681_v10, %v943_v48 }
 0x10b   : > { %v817_v51 = vpop.f32.mrf.mxu0  ;;  %v945_v52 = vpop.f32.mrf.mxu1 }
 0x10c   : > { %1053 = vst.msk [vmem:[%s1688_s20 + $0x30] sm:$0xff] %vm1046_vm1, %v816_v49  ;;  %1085 = vst.msk [vmem:[%s1688_s20 + $0x130] sm:$0xff] %vm1046_vm1, %v944_v50 }
 0x10d   : > { %v818_v53 = vpop.f32.mrf.mxu0  ;;  %v946_v54 = vpop.f32.mrf.mxu1 }
 0x10e   : > { %v819_v55 = vadd.f32 %v1681_v10, %v818_v53  ;;  %v947_v56 = vadd.f32 %v1681_v10, %v946_v54 }
 0x10f   : > { %v820_v57 = vpop.f32.mrf.mxu0  ;;  %v948_v58 = vpop.f32.mrf.mxu1 }
 0x110   : > { %1054 = vst.msk [vmem:[%s1688_s20 + $0x38] sm:$0xff] %vm1046_vm1, %v819_v55  ;;  %1086 = vst.msk [vmem:[%s1688_s20 + $0x138] sm:$0xff] %vm1046_vm1, %v947_v56 }
 0x111   : > { %v823_v59 = vpop.f32.mrf.mxu0  ;;  %v951_v60 = vpop.f32.mrf.mxu1 }
 0x112   : > { %v824_v61 = vadd.f32 %v1681_v10, %v823_v59  ;;  %v952_v62 = vadd.f32 %v1681_v10, %v951_v60 }
 0x113   : > { %v825_v63 = vpop.f32.mrf.mxu0  ;;  %v953_v0 = vpop.f32.mrf.mxu1 }
 0x114   : > { %1055 = vst.msk [vmem:[%s1688_s20 + $0x40] sm:$0xff] %vm1046_vm1, %v824_v61  ;;  %1087 = vst.msk [vmem:[%s1688_s20 + $0x140] sm:$0xff] %vm1046_vm1, %v952_v62 }
 0x115   : > { %v826_v1 = vpop.f32.mrf.mxu0  ;;  %v954_v2 = vpop.f32.mrf.mxu1 }
 0x116   : > { %v827_v3 = vadd.f32 %v1681_v10, %v826_v1  ;;  %v955_v4 = vadd.f32 %v1681_v10, %v954_v2 }
 0x117   : > { %v828_v5 = vpop.f32.mrf.mxu0  ;;  %v956_v6 = vpop.f32.mrf.mxu1 }
 0x118   : > { %1056 = vst.msk [vmem:[%s1688_s20 + $0x48] sm:$0xff] %vm1046_vm1, %v827_v3  ;;  %1088 = vst.msk [vmem:[%s1688_s20 + $0x148] sm:$0xff] %vm1046_vm1, %v955_v4 }
 0x119   : > { %v831_v7 = vpop.f32.mrf.mxu0  ;;  %v959_v8 = vpop.f32.mrf.mxu1 }
 0x11a   : > { %v832_v9 = vadd.f32 %v1681_v10, %v831_v7  ;;  %v960_v11 = vadd.f32 %v1681_v10, %v959_v8 }
 0x11b   : > { %v833_v12 = vpop.f32.mrf.mxu0  ;;  %v961_v13 = vpop.f32.mrf.mxu1 }
 0x11c   : > { %1057 = vst.msk [vmem:[%s1688_s20 + $0x50] sm:$0xff] %vm1046_vm1, %v832_v9  ;;  %1089 = vst.msk [vmem:[%s1688_s20 + $0x150] sm:$0xff] %vm1046_vm1, %v960_v11 }
 0x11d   : > { %v834_v14 = vpop.f32.mrf.mxu0  ;;  %v962_v15 = vpop.f32.mrf.mxu1 }
 0x11e   : > { %v835_v16 = vadd.f32 %v1681_v10, %v834_v14  ;;  %v963_v17 = vadd.f32 %v1681_v10, %v962_v15 }
 0x11f   : > { %v836_v18 = vpop.f32.mrf.mxu0  ;;  %v964_v19 = vpop.f32.mrf.mxu1 }
 0x120   : > { %1058 = vst.msk [vmem:[%s1688_s20 + $0x58] sm:$0xff] %vm1046_vm1, %v835_v16  ;;  %1090 = vst.msk [vmem:[%s1688_s20 + $0x158] sm:$0xff] %vm1046_vm1, %v963_v17 }
 0x121   : > { %v839_v20 = vpop.f32.mrf.mxu0  ;;  %v967_v21 = vpop.f32.mrf.mxu1 }
 0x122   : > { %v840_v22 = vadd.f32 %v1681_v10, %v839_v20  ;;  %v968_v23 = vadd.f32 %v1681_v10, %v967_v21 }
 0x123   : > { %v841_v24 = vpop.f32.mrf.mxu0  ;;  %v969_v25 = vpop.f32.mrf.mxu1 }
 0x124   : > { %1059 = vst.msk [vmem:[%s1688_s20 + $0x60] sm:$0xff] %vm1046_vm1, %v840_v22  ;;  %1091 = vst.msk [vmem:[%s1688_s20 + $0x160] sm:$0xff] %vm1046_vm1, %v968_v23 }
 0x125   : > { %v842_v26 = vpop.f32.mrf.mxu0  ;;  %v970_v27 = vpop.f32.mrf.mxu1 }
 0x126   : > { %v843_v28 = vadd.f32 %v1681_v10, %v842_v26  ;;  %v971_v29 = vadd.f32 %v1681_v10, %v970_v27 }
 0x127   : > { %v844_v30 = vpop.f32.mrf.mxu0  ;;  %v972_v31 = vpop.f32.mrf.mxu1 }
 0x128   : > { %1060 = vst.msk [vmem:[%s1688_s20 + $0x68] sm:$0xff] %vm1046_vm1, %v843_v28  ;;  %1092 = vst.msk [vmem:[%s1688_s20 + $0x168] sm:$0xff] %vm1046_vm1, %v971_v29 }
 0x129   : > { %v847_v32 = vpop.f32.mrf.mxu0  ;;  %v975_v33 = vpop.f32.mrf.mxu1 }
 0x12a   : > { %v848_v34 = vadd.f32 %v1681_v10, %v847_v32  ;;  %v976_v35 = vadd.f32 %v1681_v10, %v975_v33 }
 0x12b   : > { %v849_v36 = vpop.f32.mrf.mxu0  ;;  %v977_v37 = vpop.f32.mrf.mxu1 }
 0x12c   : > { %1061 = vst.msk [vmem:[%s1688_s20 + $0x70] sm:$0xff] %vm1046_vm1, %v848_v34  ;;  %1093 = vst.msk [vmem:[%s1688_s20 + $0x170] sm:$0xff] %vm1046_vm1, %v976_v35 }
 0x12d   : > { %v850_v38 = vpop.f32.mrf.mxu0  ;;  %v978_v39 = vpop.f32.mrf.mxu1 }
 0x12e   : > { %v851_v40 = vadd.f32 %v1681_v10, %v850_v38  ;;  %v979_v41 = vadd.f32 %v1681_v10, %v978_v39 }
 0x12f   : > { %v852_v42 = vpop.f32.mrf.mxu0  ;;  %v980_v43 = vpop.f32.mrf.mxu1 }
 0x130   : > { %1062 = vst.msk [vmem:[%s1688_s20 + $0x78] sm:$0xff] %vm1046_vm1, %v851_v40  ;;  %1094 = vst.msk [vmem:[%s1688_s20 + $0x178] sm:$0xff] %vm1046_vm1, %v979_v41 }
 0x131   : > { %v855_v44 = vpop.f32.mrf.mxu0  ;;  %v983_v45 = vpop.f32.mrf.mxu1 }
 0x132   : > { %v856_v46 = vadd.f32 %v1681_v10, %v855_v44  ;;  %v984_v47 = vadd.f32 %v1681_v10, %v983_v45 }
 0x133   : > { %v857_v48 = vpop.f32.mrf.mxu0  ;;  %v985_v49 = vpop.f32.mrf.mxu1 }
 0x134   : > { %1063 = vst.msk [vmem:[%s1688_s20 + $0x80] sm:$0xff] %vm1046_vm1, %v856_v46  ;;  %1095 = vst.msk [vmem:[%s1688_s20 + $0x180] sm:$0xff] %vm1046_vm1, %v984_v47 }
 0x135   : > { %v858_v50 = vpop.f32.mrf.mxu0  ;;  %v986_v51 = vpop.f32.mrf.mxu1 }
 0x136   : > { %v859_v52 = vadd.f32 %v1681_v10, %v858_v50  ;;  %v987_v53 = vadd.f32 %v1681_v10, %v986_v51 }
 0x137   : > { %v860_v54 = vpop.f32.mrf.mxu0  ;;  %v988_v55 = vpop.f32.mrf.mxu1 }
 0x138   : > { %1064 = vst.msk [vmem:[%s1688_s20 + $0x88] sm:$0xff] %vm1046_vm1, %v859_v52  ;;  %1096 = vst.msk [vmem:[%s1688_s20 + $0x188] sm:$0xff] %vm1046_vm1, %v987_v53 }
 0x139   : > { %v863_v56 = vpop.f32.mrf.mxu0  ;;  %v991_v57 = vpop.f32.mrf.mxu1 }
 0x13a   : > { %v864_v58 = vadd.f32 %v1681_v10, %v863_v56  ;;  %v992_v59 = vadd.f32 %v1681_v10, %v991_v57 }
 0x13b   : > { %v865_v60 = vpop.f32.mrf.mxu0  ;;  %v993_v61 = vpop.f32.mrf.mxu1 }
 0x13c   : > { %1065 = vst.msk [vmem:[%s1688_s20 + $0x90] sm:$0xff] %vm1046_vm1, %v864_v58  ;;  %1097 = vst.msk [vmem:[%s1688_s20 + $0x190] sm:$0xff] %vm1046_vm1, %v992_v59 }
 0x13d   : > { %v866_v62 = vpop.f32.mrf.mxu0  ;;  %v994_v63 = vpop.f32.mrf.mxu1 }
 0x13e   : > { %v867_v0 = vadd.f32 %v1681_v10, %v866_v62  ;;  %v995_v1 = vadd.f32 %v1681_v10, %v994_v63 }
 0x13f   : > { %v868_v2 = vpop.f32.mrf.mxu0  ;;  %v996_v3 = vpop.f32.mrf.mxu1 }
 0x140   : > { %1066 = vst.msk [vmem:[%s1688_s20 + $0x98] sm:$0xff] %vm1046_vm1, %v867_v0  ;;  %1098 = vst.msk [vmem:[%s1688_s20 + $0x198] sm:$0xff] %vm1046_vm1, %v995_v1 }
 0x141   : > { %v871_v4 = vpop.f32.mrf.mxu0  ;;  %v999_v5 = vpop.f32.mrf.mxu1 }
 0x142   : > { %v872_v6 = vadd.f32 %v1681_v10, %v871_v4  ;;  %v1000_v7 = vadd.f32 %v1681_v10, %v999_v5 }
 0x143   : > { %v873_v8 = vpop.f32.mrf.mxu0  ;;  %v1001_v9 = vpop.f32.mrf.mxu1 }
 0x144   : > { %1067 = vst.msk [vmem:[%s1688_s20 + $0xa0] sm:$0xff] %vm1046_vm1, %v872_v6  ;;  %1099 = vst.msk [vmem:[%s1688_s20 + $0x1a0] sm:$0xff] %vm1046_vm1, %v1000_v7 }
 0x145   : > { %v874_v11 = vpop.f32.mrf.mxu0  ;;  %v1002_v12 = vpop.f32.mrf.mxu1 }
 0x146   : > { %v875_v13 = vadd.f32 %v1681_v10, %v874_v11  ;;  %v1003_v14 = vadd.f32 %v1681_v10, %v1002_v12 }
 0x147   : > { %v876_v15 = vpop.f32.mrf.mxu0  ;;  %v1004_v16 = vpop.f32.mrf.mxu1 }
 0x148   : > { %1068 = vst.msk [vmem:[%s1688_s20 + $0xa8] sm:$0xff] %vm1046_vm1, %v875_v13  ;;  %1100 = vst.msk [vmem:[%s1688_s20 + $0x1a8] sm:$0xff] %vm1046_vm1, %v1003_v14 }
 0x149   : > { %v879_v17 = vpop.f32.mrf.mxu0  ;;  %v1007_v18 = vpop.f32.mrf.mxu1 }
 0x14a   : > { %v880_v19 = vadd.f32 %v1681_v10, %v879_v17  ;;  %v1008_v20 = vadd.f32 %v1681_v10, %v1007_v18 }
 0x14b   : > { %v881_v21 = vpop.f32.mrf.mxu0  ;;  %v1009_v22 = vpop.f32.mrf.mxu1 }
 0x14c   : > { %1069 = vst.msk [vmem:[%s1688_s20 + $0xb0] sm:$0xff] %vm1046_vm1, %v880_v19  ;;  %1101 = vst.msk [vmem:[%s1688_s20 + $0x1b0] sm:$0xff] %vm1046_vm1, %v1008_v20 }
 0x14d   : > { %v882_v23 = vpop.f32.mrf.mxu0  ;;  %v1010_v24 = vpop.f32.mrf.mxu1 }
 0x14e   : > { %v883_v25 = vadd.f32 %v1681_v10, %v882_v23  ;;  %v1011_v26 = vadd.f32 %v1681_v10, %v1010_v24 }
 0x14f   : > { %v884_v27 = vpop.f32.mrf.mxu0  ;;  %v1012_v28 = vpop.f32.mrf.mxu1 }
 0x150   : > { %1070 = vst.msk [vmem:[%s1688_s20 + $0xb8] sm:$0xff] %vm1046_vm1, %v883_v25  ;;  %1102 = vst.msk [vmem:[%s1688_s20 + $0x1b8] sm:$0xff] %vm1046_vm1, %v1011_v26 }
 0x151   : > { %v887_v29 = vpop.f32.mrf.mxu0  ;;  %v1015_v30 = vpop.f32.mrf.mxu1 }
 0x152   : > { %v888_v31 = vadd.f32 %v1681_v10, %v887_v29  ;;  %v1016_v32 = vadd.f32 %v1681_v10, %v1015_v30 }
 0x153   : > { %v889_v33 = vpop.f32.mrf.mxu0  ;;  %v1017_v34 = vpop.f32.mrf.mxu1 }
 0x154   : > { %1071 = vst.msk [vmem:[%s1688_s20 + $0xc0] sm:$0xff] %vm1046_vm1, %v888_v31  ;;  %1103 = vst.msk [vmem:[%s1688_s20 + $0x1c0] sm:$0xff] %vm1046_vm1, %v1016_v32 }
 0x155   : > { %v890_v35 = vpop.f32.mrf.mxu0  ;;  %v1018_v36 = vpop.f32.mrf.mxu1 }
 0x156   : > { %v891_v37 = vadd.f32 %v1681_v10, %v890_v35  ;;  %v1019_v38 = vadd.f32 %v1681_v10, %v1018_v36 }
 0x157   : > { %v892_v39 = vpop.f32.mrf.mxu0  ;;  %v1020_v40 = vpop.f32.mrf.mxu1 }
 0x158   : > { %1072 = vst.msk [vmem:[%s1688_s20 + $0xc8] sm:$0xff] %vm1046_vm1, %v891_v37  ;;  %1104 = vst.msk [vmem:[%s1688_s20 + $0x1c8] sm:$0xff] %vm1046_vm1, %v1019_v38 }
 0x159   : > { %v895_v41 = vpop.f32.mrf.mxu0  ;;  %v1023_v42 = vpop.f32.mrf.mxu1 }
 0x15a   : > { %v896_v43 = vadd.f32 %v1681_v10, %v895_v41  ;;  %v1024_v44 = vadd.f32 %v1681_v10, %v1023_v42 }
 0x15b   : > { %v897_v45 = vpop.f32.mrf.mxu0  ;;  %v1025_v46 = vpop.f32.mrf.mxu1 }
 0x15c   : > { %1073 = vst.msk [vmem:[%s1688_s20 + $0xd0] sm:$0xff] %vm1046_vm1, %v896_v43  ;;  %1105 = vst.msk [vmem:[%s1688_s20 + $0x1d0] sm:$0xff] %vm1046_vm1, %v1024_v44 }
 0x15d   : > { %v898_v47 = vpop.f32.mrf.mxu0  ;;  %v1026_v48 = vpop.f32.mrf.mxu1 }
 0x15e   : > { %v899_v49 = vadd.f32 %v1681_v10, %v898_v47  ;;  %v1027_v50 = vadd.f32 %v1681_v10, %v1026_v48 }
 0x15f   : > { %v900_v51 = vpop.f32.mrf.mxu0  ;;  %v1028_v52 = vpop.f32.mrf.mxu1 }
 0x160   : > { %1074 = vst.msk [vmem:[%s1688_s20 + $0xd8] sm:$0xff] %vm1046_vm1, %v899_v49  ;;  %1106 = vst.msk [vmem:[%s1688_s20 + $0x1d8] sm:$0xff] %vm1046_vm1, %v1027_v50 }
 0x161   : > { %v903_v53 = vpop.f32.mrf.mxu0  ;;  %v1031_v54 = vpop.f32.mrf.mxu1 }
 0x162   : > { %v904_v55 = vadd.f32 %v1681_v10, %v903_v53  ;;  %v1032_v56 = vadd.f32 %v1681_v10, %v1031_v54 }
 0x163   : > { %v905_v57 = vpop.f32.mrf.mxu0  ;;  %v1033_v58 = vpop.f32.mrf.mxu1 }
 0x164   : > { %1075 = vst.msk [vmem:[%s1688_s20 + $0xe0] sm:$0xff] %vm1046_vm1, %v904_v55  ;;  %1107 = vst.msk [vmem:[%s1688_s20 + $0x1e0] sm:$0xff] %vm1046_vm1, %v1032_v56 }
 0x165   : > { %v906_v59 = vpop.f32.mrf.mxu0  ;;  %v1034_v60 = vpop.f32.mrf.mxu1 }
 0x166   : > { %v907_v61 = vadd.f32 %v1681_v10, %v906_v59  ;;  %v1035_v62 = vadd.f32 %v1681_v10, %v1034_v60 }
 0x167   : > { %v908_v63 = vpop.f32.mrf.mxu0  ;;  %v1036_v0 = vpop.f32.mrf.mxu1 }
 0x168   : > { %1076 = vst.msk [vmem:[%s1688_s20 + $0xe8] sm:$0xff] %vm1046_vm1, %v907_v61  ;;  %1108 = vst.msk [vmem:[%s1688_s20 + $0x1e8] sm:$0xff] %vm1046_vm1, %v1035_v62 }
 0x169   : > { %v911_v1 = vpop.f32.mrf.mxu0  ;;  %v1039_v2 = vpop.f32.mrf.mxu1 }
 0x16a   : > { %v912_v3 = vadd.f32 %v1681_v10, %v911_v1  ;;  %v1040_v4 = vadd.f32 %v1681_v10, %v1039_v2 }
 0x16b   : > { %v913_v5 = vpop.f32.mrf.mxu0  ;;  %v1041_v6 = vpop.f32.mrf.mxu1 }
 0x16c   : > { %1077 = vst.msk [vmem:[%s1688_s20 + $0xf0] sm:$0xff] %vm1046_vm1, %v912_v3  ;;  %1109 = vst.msk [vmem:[%s1688_s20 + $0x1f0] sm:$0xff] %vm1046_vm1, %v1040_v4 }
 0x16d   : > { %v914_v7 = vpop.f32.mrf.mxu0  ;;  %v1042_v8 = vpop.f32.mrf.mxu1 }
 0x16e   : > { %v915_v9 = vadd.f32 %v1681_v10, %v914_v7  ;;  %v1043_v11 = vadd.f32 %v1681_v10, %v1042_v8 }
 0x16f   : > { %v916_v12 = vpop.f32.mrf.mxu0  ;;  %v1044_v13 = vpop.f32.mrf.mxu1 }
 0x170   : > { %1078 = vst.msk [vmem:[%s1688_s20 + $0xf8] sm:$0xff] %vm1046_vm1, %v915_v9  ;;  %1110 = vst.msk [vmem:[%s1688_s20 + $0x1f8] sm:$0xff] %vm1046_vm1, %v1043_v11 }
 0x171 PF: > { %s13_s14 = sadd.s32 1, %s1504_s14   ;;  %s1895_s12 = smov %s1500_s13 }
 0x172   : > { %p10_p5 = scmp.ge.s32.totalorder %s13_s14, 6   ;;  %s1896_s13 = smov %s1898_s15 }
 0x174   :  { %12 = sbr.rel (!%p10_p5) target bundleno = 2 (0x2), region = 68 }

// kernel: _lambda_.15
= control target key start
LH: loop header
LB: loop body
LE: loop exit
PB: predicated region body
PF: predicated region fallthrough
CT: control target
= control target key end

     0   :  { %v1946_v0 = vmov 0   ;;  %vm774_vm0 = vcmask 261120   ;;  %vm1449_vm1 = vcmask 523264   ;;  %s2812_s1 = inlined_call_operand.vmem [shape: bf16[288,64], index: 1, kind: input, shape index: {}]   ;;  %s2813_s0 = inlined_call_operand.vmem [shape: bf16[512,288], index: 0, kind: input, shape index: {}]   ;;  %s2814_s2 = inlined_call_operand.vmem [shape: f32[1,64], index: 2, kind: input, shape index: {}]   ;;  %s2815_s3 = inlined_call_operand.vmem [shape: f32[512,64], index: 3, kind: output, shape index: {}]  }
   0x1   :  { %871 = vmatprep.subr.bf16.mxu0 %v1946_v0  ;;  %1767 = vmatprep.subr.bf16.mxu1 %v1946_v0  ;;  %v1800_v1 = vld [vmem:[%s2812_s1 + $0x38] sm:$0xff]   ;;  %v1801_v2 = vld [vmem:[%s2812_s1 + $0x30] sm:$0xff]   ;;  %v1802_v3 = vld [vmem:[%s2812_s1 + $0x28] sm:$0xff]  }
   0x2   :  { %872 = vmatpush1.bf16.msra.mxu0 %v1800_v1  ;;  %1783 = vmatpush1.bf16.msra.mxu1 %v1800_v1  ;;  %v1803_v4 = vld [vmem:[%s2812_s1 + $0x20] sm:$0xff]   ;;  %v1804_v5 = vld [vmem:[%s2812_s1 + $0x18] sm:$0xff]   ;;  %v1805_v7 = vld [vmem:[%s2812_s1 + $0x10] sm:$0xff]  }
   0x3   :  { %873 = vmatprep.subr.bf16.mxu0 %v1946_v0  ;;  %1768 = vmatprep.subr.bf16.mxu1 %v1946_v0  ;;  %v1818_v6 = vld [vmem:[%s2813_s0 + $0x4] ss:$12 sps:$4 sm:$0xff]   ;;  %v1806_v9 = vld [vmem:[%s2812_s1 + $0x8] sm:$0xff]   ;;  %v1808_v11 = vld [vmem:[%s2812_s1 + $0x78] sm:$0xff]  }
   0x4   :  { %v1821_v8 = vld [vmem:[%s2813_s0 + $0x244] ss:$12 sps:$4 sm:$0xff]   ;;  %903 = vmatprep.mubr.bf16.mxu0 %v1818_v6  ;;  %v1810_v13 = vld [vmem:[%s2812_s1 + $0x68] sm:$0xff]   ;;  %v1812_v15 = vld [vmem:[%s2812_s1 + $0x58] sm:$0xff]  }
   0x5   :  { %1095 = vmatprep.mubr.bf16.mxu1 %v1821_v8  ;;  %v1807_v10 = vld [vmem:[%s2812_s1] sm:$0xff]   ;;  %v1809_v12 = vld [vmem:[%s2812_s1 + $0x70] sm:$0xff]   ;;  %v1814_v17 = vld [vmem:[%s2812_s1 + $0x48] sm:$0xff]  }
   0x6   :  { %874 = vmatpush1.bf16.msra.mxu0 %v1801_v2  ;;  %1784 = vmatpush1.bf16.msra.mxu1 %v1801_v2  ;;  %v1811_v14 = vld [vmem:[%s2812_s1 + $0x60] sm:$0xff]   ;;  %v1813_v16 = vld [vmem:[%s2812_s1 + $0x50] sm:$0xff]   ;;  %v1822_v19 = vld [vmem:[%s2812_s1 + $0x88] sm:$0xff]  }
   0x7   :  { %875 = vmatprep.subr.bf16.mxu0 %v1946_v0  ;;  %1769 = vmatprep.subr.bf16.mxu1 %v1946_v0  ;;  %v1815_v18 = vld [vmem:[%s2812_s1 + $0x40] sm:$0xff]   ;;  %v1823_v22 = vld [vmem:[%s2813_s0 + $0x1c] ss:$12 sps:$4 sm:$0xff]   ;;  %v1835_v31 = vld [vmem:[%s2813_s0 + $0x4c] ss:$12 sps:$4 sm:$0xff]  }
   0x8   :  { %v1816_v20 = vld [vmem:[%s2813_s0] ss:$12 sps:$4 sm:$0xff]   ;;  %v1825_v23 = vld [vmem:[%s2813_s0 + $0x25c] ss:$12 sps:$4 sm:$0xff]   ;;  %v1827_v25 = vld [vmem:[%s2813_s0 + $0x18] ss:$12 sps:$4 sm:$0xff]  }
   0x9   :  { %v1819_v21 = vld [vmem:[%s2813_s0 + $0x240] ss:$12 sps:$4 sm:$0xff]   ;;  %v1828_v26 = vld [vmem:[%s2813_s0 + $0x258] ss:$12 sps:$4 sm:$0xff]   ;;  %v1833_v29 = vld [vmem:[%s2813_s0 + $0x30] ss:$12 sps:$4 sm:$0xff]  }
   0xa   :  { %876 = vmatpush1.bf16.msra.mxu0 %v1802_v3  ;;  %1785 = vmatpush1.bf16.msra.mxu1 %v1802_v3  ;;  %v1847_v24 = vld [vmem:[%s2812_s1 + $0x80] sm:$0xff]   ;;  %v1834_v30 = vld [vmem:[%s2813_s0 + $0x270] ss:$12 sps:$4 sm:$0xff]   ;;  %v1837_v32 = vld [vmem:[%s2813_s0 + $0x28c] ss:$12 sps:$4 sm:$0xff]  }
   0xb   :  { %877 = vmatprep.subr.bf16.mxu0 %v1946_v0  ;;  %1770 = vmatprep.subr.bf16.mxu1 %v1946_v0  ;;  %v1829_v27 = vld [vmem:[%s2813_s0 + $0x34] ss:$12 sps:$4 sm:$0xff]   ;;  %v1841_v35 = vld [vmem:[%s2813_s0 + $0x64] ss:$12 sps:$4 sm:$0xff]   ;;  %v1848_v39 = vld [vmem:[%s2813_s0 + $0x7c] ss:$12 sps:$4 sm:$0xff]  }
   0xc   :  { %v1831_v28 = vld [vmem:[%s2813_s0 + $0x274] ss:$12 sps:$4 sm:$0xff]   ;;  %v1843_v36 = vld [vmem:[%s2813_s0 + $0x2a4] ss:$12 sps:$4 sm:$0xff]   ;;  %v1850_v40 = vld [vmem:[%s2813_s0 + $0x2bc] ss:$12 sps:$4 sm:$0xff]  }
   0xd   :  { %v1839_v33 = vld [vmem:[%s2813_s0 + $0x48] ss:$12 sps:$4 sm:$0xff]   ;;  %v1845_v37 = vld [vmem:[%s2813_s0 + $0x60] ss:$12 sps:$4 sm:$0xff]   ;;  %v1852_v41 = vld [vmem:[%s2813_s0 + $0x78] ss:$12 sps:$4 sm:$0xff]  }
   0xe   :  { %878 = vmatpush1.bf16.msra.mxu0 %v1803_v4  ;;  %1786 = vmatpush1.bf16.msra.mxu1 %v1803_v4  ;;  %v1840_v34 = vld [vmem:[%s2813_s0 + $0x288] ss:$12 sps:$4 sm:$0xff]   ;;  %v1846_v38 = vld [vmem:[%s2813_s0 + $0x2a0] ss:$12 sps:$4 sm:$0xff]   ;;  %v1853_v42 = vld [vmem:[%s2813_s0 + $0x2b8] ss:$12 sps:$4 sm:$0xff]  }
   0xf   :  { %879 = vmatprep.subr.bf16.mxu0 %v1946_v0  ;;  %1771 = vmatprep.subr.bf16.mxu1 %v1946_v0  ;;  %v1854_v43 = vld [vmem:[%s2813_s0 + $0x94] ss:$12 sps:$4 sm:$0xff]   ;;  %v1858_v45 = vld [vmem:[%s2813_s0 + $0x90] ss:$12 sps:$4 sm:$0xff]   ;;  %v1860_v47 = vld [vmem:[%s2813_s0 + $0xac] ss:$12 sps:$4 sm:$0xff]  }
  0x10   :  { %v1856_v44 = vld [vmem:[%s2813_s0 + $0x2d4] ss:$12 sps:$4 sm:$0xff]   ;;  %v1859_v46 = vld [vmem:[%s2813_s0 + $0x2d0] ss:$12 sps:$4 sm:$0xff]   ;;  %v1862_v48 = vld [vmem:[%s2813_s0 + $0x2ec] ss:$12 sps:$4 sm:$0xff]  }
  0x11   :  { %v1864_v49 = vld [vmem:[%s2813_s0 + $0xa8] ss:$12 sps:$4 sm:$0xff]   ;;  %v1866_v51 = vld [vmem:[%s2813_s0 + $0xc4] ss:$12 sps:$4 sm:$0xff]   ;;  %v1869_v53 = vld [vmem:[%s2813_s0 + $0xc0] ss:$12 sps:$4 sm:$0xff]  }
  0x12   :  { %880 = vmatpush1.bf16.msra.mxu0 %v1804_v5  ;;  %1787 = vmatpush1.bf16.msra.mxu1 %v1804_v5  ;;  %v1865_v50 = vld [vmem:[%s2813_s0 + $0x2e8] ss:$12 sps:$4 sm:$0xff]   ;;  %v1870_v54 = vld [vmem:[%s2813_s0 + $0x20] ss:$12 sps:$4 sm:$0xff]   ;;  %v1873_v56 = vld [vmem:[%s2813_s0 + $0x38] ss:$12 sps:$4 sm:$0xff]  }
  0x13   :  { %881 = vmatprep.subr.bf16.mxu0 %v1946_v0  ;;  %1772 = vmatprep.subr.bf16.mxu1 %v1946_v0  ;;  %v1868_v52 = vld [vmem:[%s2813_s0 + $0x8] ss:$12 sps:$4 sm:$0xff]   ;;  %v1874_v57 = vld [vmem:[%s2813_s0 + $0xd8] ss:$12 sps:$4 sm:$0xff]   ;;  %v1875_v58 = vld [vmem:[%s2813_s0 + $0x50] ss:$12 sps:$4 sm:$0xff]  }
  0x14   :  { %v1871_v55 = vld [vmem:[%s2813_s0 + $0xdc] ss:$12 sps:$4 sm:$0xff]   ;;  %v1876_v59 = vld [vmem:[%s2813_s0 + $0xf4] ss:$12 sps:$4 sm:$0xff]   ;;  %v1881_v63 = vld [vmem:[%s2813_s0 + $0x10c] ss:$12 sps:$4 sm:$0xff]  }
  0x15   :  { %v1878_v60 = vld [vmem:[%s2813_s0 + $0x68] ss:$12 sps:$4 sm:$0xff]   ;;  %v1879_v61 = vld [vmem:[%s2813_s0 + $0xf0] ss:$12 sps:$4 sm:$0xff]   ;;  %v1880_v62 = vld [vmem:[%s2813_s0 + $0x80] ss:$12 sps:$4 sm:$0xff]  }
  0x16   :  { %882 = vmatpush1.bf16.msra.mxu0 %v1805_v7  ;;  %1788 = vmatpush1.bf16.msra.mxu1 %v1805_v7  ;;  %v1884_v1 = vld [vmem:[%s2813_s0 + $0x108] ss:$12 sps:$4 sm:$0xff]   ;;  %v1885_v2 = vld [vmem:[%s2813_s0 + $0xb0] ss:$12 sps:$4 sm:$0xff]   ;;  %v1889_v5 = vld [vmem:[%s2813_s0 + $0x120] ss:$12 sps:$4 sm:$0xff]  }
  0x17   :  { %883 = vmatprep.subr.bf16.mxu0 %v1946_v0  ;;  %1773 = vmatprep.subr.bf16.mxu1 %v1946_v0  ;;  %v1886_v3 = vld [vmem:[%s2813_s0 + $0x124] ss:$12 sps:$4 sm:$0xff]   ;;  %v1888_v4 = vld [vmem:[%s2813_s0 + $0xc8] ss:$12 sps:$4 sm:$0xff]   ;;  %v1890_v6 = vld [vmem:[%s2813_s0 + $0xe0] ss:$12 sps:$4 sm:$0xff]  }
  0x18   :  { %v1891_v7 = vld [vmem:[%s2813_s0 + $0x13c] ss:$12 sps:$4 sm:$0xff]   ;;  %v1893_v8 = vld [vmem:[%s2813_s0 + $0xf8] ss:$12 sps:$4 sm:$0xff]  }
  0x1a   :  { %884 = vmatpush1.bf16.msra.mxu0 %v1806_v9  ;;  %1789 = vmatpush1.bf16.msra.mxu1 %v1806_v9  ;;  %v1894_v9 = vld [vmem:[%s2813_s0 + $0x138] ss:$12 sps:$4 sm:$0xff]  }
  0x1b   :  { %885 = vmatprep.subr.bf16.mxu0 %v1946_v0  ;;  %1774 = vmatprep.subr.bf16.mxu1 %v1946_v0 }
  0x1e   :  { %886 = vmatpush1.bf16.msra.mxu0 %v1807_v10  ;;  %1790 = vmatpush1.bf16.msra.mxu1 %v1807_v10  ;;  %v1895_v10 = vld [vmem:[%s2813_s0 + $0x110] ss:$12 sps:$4 sm:$0xff]  }
  0x1f   :  { %887 = vmatprep.subr.bf16.mxu0 %v1946_v0  ;;  %1775 = vmatprep.subr.bf16.mxu1 %v1946_v0 }
  0x22   :  { %888 = vmatpush2.bf16.msra.mxu0 %v1808_v11  ;;  %1791 = vmatpush2.bf16.msra.mxu1 %v1808_v11  ;;  %v1896_v11 = vld [vmem:[%s2813_s0 + $0x154] ss:$12 sps:$4 sm:$0xff]  }
  0x23   :  { %889 = vmatprep.subr.bf16.mxu0 %v1946_v0  ;;  %1776 = vmatprep.subr.bf16.mxu1 %v1946_v0 }
  0x26   :  { %890 = vmatpush2.bf16.msra.mxu0 %v1809_v12  ;;  %1792 = vmatpush2.bf16.msra.mxu1 %v1809_v12  ;;  %v1898_v12 = vld [vmem:[%s2813_s0 + $0x128] ss:$12 sps:$4 sm:$0xff]  }
  0x27   :  { %891 = vmatprep.subr.bf16.mxu0 %v1946_v0  ;;  %1777 = vmatprep.subr.bf16.mxu1 %v1946_v0 }
  0x2a   :  { %892 = vmatpush2.bf16.msra.mxu0 %v1810_v13  ;;  %1793 = vmatpush2.bf16.msra.mxu1 %v1810_v13  ;;  %v1899_v13 = vld [vmem:[%s2813_s0 + $0x150] ss:$12 sps:$4 sm:$0xff]  }
  0x2b   :  { %893 = vmatprep.subr.bf16.mxu0 %v1946_v0  ;;  %1778 = vmatprep.subr.bf16.mxu1 %v1946_v0 }
  0x2e   :  { %894 = vmatpush2.bf16.msra.mxu0 %v1811_v14  ;;  %1794 = vmatpush2.bf16.msra.mxu1 %v1811_v14  ;;  %v1900_v14 = vld [vmem:[%s2813_s0 + $0x140] ss:$12 sps:$4 sm:$0xff]  }
  0x2f   :  { %895 = vmatprep.subr.bf16.mxu0 %v1946_v0  ;;  %1779 = vmatprep.subr.bf16.mxu1 %v1946_v0 }
  0x32   :  { %896 = vmatpush2.bf16.msra.mxu0 %v1812_v15  ;;  %1795 = vmatpush2.bf16.msra.mxu1 %v1812_v15  ;;  %v1901_v15 = vld [vmem:[%s2813_s0 + $0x16c] ss:$12 sps:$4 sm:$0xff]  }
  0x33   :  { %897 = vmatprep.subr.bf16.mxu0 %v1946_v0  ;;  %1780 = vmatprep.subr.bf16.mxu1 %v1946_v0 }
  0x36   :  { %898 = vmatpush2.bf16.msra.mxu0 %v1813_v16  ;;  %1796 = vmatpush2.bf16.msra.mxu1 %v1813_v16  ;;  %v1903_v16 = vld [vmem:[%s2813_s0 + $0x158] ss:$12 sps:$4 sm:$0xff]  }
  0x37   :  { %899 = vmatprep.subr.bf16.mxu0 %v1946_v0  ;;  %1781 = vmatprep.subr.bf16.mxu1 %v1946_v0 }
  0x3a   :  { %900 = vmatpush2.bf16.msra.mxu0 %v1814_v17  ;;  %1797 = vmatpush2.bf16.msra.mxu1 %v1814_v17  ;;  %v1904_v17 = vld [vmem:[%s2813_s0 + $0x168] ss:$12 sps:$4 sm:$0xff]  }
  0x3b   :  { %901 = vmatprep.subr.bf16.mxu0 %v1946_v0  ;;  %1782 = vmatprep.subr.bf16.mxu1 %v1946_v0  ;;  %v1883_v0 = vld [vmem:[%s2813_s0 + $0x98] ss:$12 sps:$4 sm:$0xff]  }
  0x3e   :  { %902 = vmatpush2.bf16.msra.mxu0 %v1815_v18  ;;  %1798 = vmatpush2.bf16.msra.mxu1 %v1815_v18  ;;  %v1905_v18 = vld [vmem:[%s2813_s0 + $0x170] ss:$12 sps:$4 sm:$0xff]  }
  0x3f   :  { %1699 = vmatprep.subr.bf16.mxu1 %v1822_v19 }
  0x41   :  { %904 = vmatmul.mubr.bf16.vlgmr.msra.gmra.mxu0 %v1816_v20  ;;  %1096 = vmatmul.mubr.bf16.vlgmr.msra.gmra.mxu1 %v1819_v21  ;;  %v1908_v20 = vld [vmem:[%s2813_s0 + $0x188] ss:$12 sps:$4 sm:$0xff]   ;;  %v1909_v21 = vld [vmem:[%s2813_s0 + $0x180] ss:$12 sps:$4 sm:$0xff]  }
  0x42   :  { %1700 = vmatpush3.bf16.msra.mxu1 %v1822_v19  ;;  %911 = vmatprep.mubr.bf16.mxu0 %v1823_v22  ;;  %v1906_v19 = vld [vmem:[%s2813_s0 + $0x184] ss:$12 sps:$4 sm:$0xff]   ;;  %v1910_v22 = vld [vmem:[%s2813_s0 + $0x1a0] ss:$12 sps:$4 sm:$0xff]  }
  0x43   :  { %1103 = vmatprep.mubr.bf16.mxu1 %v1825_v23  ;;  %1701 = vmatprep.subr.bf16.mxu1 %v1847_v24  ;;  %v1911_v23 = vld [vmem:[%s2813_s0 + $0x19c] ss:$12 sps:$4 sm:$0xff]  }
  0x46   :  { %1702 = vmatpush3.bf16.msra.mxu1 %v1847_v24  ;;  %v1913_v24 = vld [vmem:[%s2813_s0 + $0x1b8] ss:$12 sps:$4 sm:$0xff]  }
  0x49   :  { %912 = vmatmul.mubr.bf16.gmra.mxu0 %v1827_v25  ;;  %1104 = vmatmul.mubr.bf16.gmra.mxu1 %v1828_v26  ;;  %v1914_v25 = vld [vmem:[%s2813_s0 + $0x198] ss:$12 sps:$4 sm:$0xff]   ;;  %v1915_v26 = vld [vmem:[%s2813_s0 + $0x1d0] ss:$12 sps:$4 sm:$0xff]  }
  0x4a   :  { %919 = vmatprep.mubr.bf16.mxu0 %v1829_v27  ;;  %1111 = vmatprep.mubr.bf16.mxu1 %v1831_v28  ;;  %v1916_v27 = vld [vmem:[%s2813_s0 + $0x1b4] ss:$12 sps:$4 sm:$0xff]  }
  0x4b   :  { %v1918_v28 = vld [vmem:[%s2813_s0 + $0x1e8] ss:$12 sps:$4 sm:$0xff]  }
  0x51   :  { %920 = vmatmul.mubr.bf16.gmra.mxu0 %v1833_v29  ;;  %1112 = vmatmul.mubr.bf16.gmra.mxu1 %v1834_v30  ;;  %v1919_v29 = vld [vmem:[%s2813_s0 + $0x1b0] ss:$12 sps:$4 sm:$0xff]   ;;  %v1920_v30 = vld [vmem:[%s2813_s0 + $0x200] ss:$12 sps:$4 sm:$0xff]  }
  0x52   :  { %927 = vmatprep.mubr.bf16.mxu0 %v1835_v31  ;;  %1119 = vmatprep.mubr.bf16.mxu1 %v1837_v32  ;;  %v1921_v31 = vld [vmem:[%s2813_s0 + $0x1cc] ss:$12 sps:$4 sm:$0xff]  }
  0x53   :  { %v1923_v32 = vld [vmem:[%s2813_s0 + $0x218] ss:$12 sps:$4 sm:$0xff]  }
  0x59   :  { %928 = vmatmul.mubr.bf16.gmra.mxu0 %v1839_v33  ;;  %1120 = vmatmul.mubr.bf16.gmra.mxu1 %v1840_v34  ;;  %v1924_v33 = vld [vmem:[%s2813_s0 + $0x1c8] ss:$12 sps:$4 sm:$0xff]   ;;  %v1925_v34 = vld [vmem:[%s2813_s0 + $0x230] ss:$12 sps:$4 sm:$0xff]  }
  0x5a   :  { %935 = vmatprep.mubr.bf16.mxu0 %v1841_v35  ;;  %1127 = vmatprep.mubr.bf16.mxu1 %v1843_v36  ;;  %v1926_v35 = vld [vmem:[%s2813_s0 + $0x1e4] ss:$12 sps:$4 sm:$0xff]   ;;  %v1928_v36 = vld [vmem:[%s2813_s0 + $0x248] ss:$12 sps:$4 sm:$0xff]  }
  0x61   :  { %936 = vmatmul.mubr.bf16.gmra.mxu0 %v1845_v37  ;;  %1128 = vmatmul.mubr.bf16.gmra.mxu1 %v1846_v38  ;;  %v1929_v37 = vld [vmem:[%s2813_s0 + $0x1e0] ss:$12 sps:$4 sm:$0xff]  }
  0x62   :  { %943 = vmatprep.mubr.bf16.mxu0 %v1848_v39  ;;  %1135 = vmatprep.mubr.bf16.mxu1 %v1850_v40  ;;  %v1930_v38 = vld [vmem:[%s2813_s0 + $0x260] ss:$12 sps:$4 sm:$0xff]   ;;  %v1931_v39 = vld [vmem:[%s2813_s0 + $0x1fc] ss:$12 sps:$4 sm:$0xff]   ;;  %v1933_v40 = vld [vmem:[%s2813_s0 + $0x278] ss:$12 sps:$4 sm:$0xff]  }
  0x69   :  { %944 = vmatmul.mubr.bf16.gmra.mxu0 %v1852_v41  ;;  %1136 = vmatmul.mubr.bf16.gmra.mxu1 %v1853_v42  ;;  %v1934_v41 = vld [vmem:[%s2813_s0 + $0x1f8] ss:$12 sps:$4 sm:$0xff]   ;;  %v1935_v42 = vld [vmem:[%s2813_s0 + $0x290] ss:$12 sps:$4 sm:$0xff]  }
  0x6a   :  { %951 = vmatprep.mubr.bf16.mxu0 %v1854_v43  ;;  %1143 = vmatprep.mubr.bf16.mxu1 %v1856_v44  ;;  %v1936_v43 = vld [vmem:[%s2813_s0 + $0x214] ss:$12 sps:$4 sm:$0xff]  }
  0x6b   :  { %v1938_v44 = vld [vmem:[%s2813_s0 + $0x2a8] ss:$12 sps:$4 sm:$0xff]  }
  0x71   :  { %952 = vmatmul.mubr.bf16.gmra.mxu0 %v1858_v45  ;;  %1144 = vmatmul.mubr.bf16.gmra.mxu1 %v1859_v46  ;;  %v1939_v45 = vld [vmem:[%s2813_s0 + $0x210] ss:$12 sps:$4 sm:$0xff]   ;;  %v1940_v46 = vld [vmem:[%s2813_s0 + $0x2c0] ss:$12 sps:$4 sm:$0xff]  }
  0x72   :  { %959 = vmatprep.mubr.bf16.mxu0 %v1860_v47  ;;  %1151 = vmatprep.mubr.bf16.mxu1 %v1862_v48  ;;  %v1941_v47 = vld [vmem:[%s2813_s0 + $0x22c] ss:$12 sps:$4 sm:$0xff]  }
  0x73   :  { %v1943_v48 = vld [vmem:[%s2813_s0 + $0x2d8] ss:$12 sps:$4 sm:$0xff]  }
  0x79   :  { %960 = vmatmul.mubr.bf16.gmra.mxu0 %v1864_v49  ;;  %1152 = vmatmul.mubr.bf16.gmra.mxu1 %v1865_v50  ;;  %v1944_v49 = vld [vmem:[%s2813_s0 + $0x228] ss:$12 sps:$4 sm:$0xff]   ;;  %v1945_v50 = vld [vmem:[%s2813_s0 + $0x2f0] ss:$12 sps:$4 sm:$0xff]  }
  0x7a   :  { %967 = vmatprep.mubr.bf16.mxu0 %v1866_v51  ;;  %1703 = vmatprep.mubr.msk.bf16.mxu1 %vm774_vm0, %v1868_v52 }
  0x81   :  { %968 = vmatmul.mubr.bf16.gmra.mxu0 %v1869_v53  ;;  %1704 = vmatmul.mubr.msk.bf16.vlgmr.msra.gmra.mxu1 %vm774_vm0, %v1870_v54 }
  0x82   :  { %975 = vmatprep.mubr.bf16.mxu0 %v1871_v55  ;;  %1707 = vmatprep.mubr.msk.bf16.mxu1 %vm774_vm0, %v1873_v56 }
  0x89   :  { %976 = vmatmul.mubr.bf16.gmra.mxu0 %v1874_v57  ;;  %1708 = vmatmul.mubr.msk.bf16.gmra.mxu1 %vm774_vm0, %v1875_v58 }
  0x8a   :  { %983 = vmatprep.mubr.bf16.mxu0 %v1876_v59  ;;  %1711 = vmatprep.mubr.msk.bf16.mxu1 %vm774_vm0, %v1878_v60 }
  0x91   :  { %984 = vmatmul.mubr.bf16.gmra.mxu0 %v1879_v61  ;;  %1712 = vmatmul.mubr.msk.bf16.gmra.mxu1 %vm774_vm0, %v1880_v62 }
  0x92   :  { %991 = vmatprep.mubr.bf16.mxu0 %v1881_v63  ;;  %1715 = vmatprep.mubr.msk.bf16.mxu1 %vm774_vm0, %v1883_v0 }
  0x99   :  { %992 = vmatmul.mubr.bf16.gmra.mxu0 %v1884_v1  ;;  %1716 = vmatmul.mubr.msk.bf16.gmra.mxu1 %vm774_vm0, %v1885_v2 }
  0x9a   :  { %999 = vmatprep.mubr.bf16.mxu0 %v1886_v3  ;;  %1719 = vmatprep.mubr.msk.bf16.mxu1 %vm774_vm0, %v1888_v4 }
  0xa1   :  { %1000 = vmatmul.mubr.bf16.gmra.mxu0 %v1889_v5  ;;  %1720 = vmatmul.mubr.msk.bf16.gmra.mxu1 %vm774_vm0, %v1890_v6 }
  0xa2   :  { %1007 = vmatprep.mubr.bf16.mxu0 %v1891_v7  ;;  %1723 = vmatprep.mubr.msk.bf16.mxu1 %vm774_vm0, %v1893_v8 }
  0xa9   :  { %1008 = vmatmul.mubr.bf16.gmra.mxu0 %v1894_v9  ;;  %1724 = vmatmul.mubr.msk.bf16.gmra.mxu1 %vm774_vm0, %v1895_v10 }
  0xaa   :  { %1015 = vmatprep.mubr.bf16.mxu0 %v1896_v11  ;;  %1727 = vmatprep.mubr.msk.bf16.mxu1 %vm774_vm0, %v1898_v12 }
  0xb1   :  { %1016 = vmatmul.mubr.bf16.gmra.mxu0 %v1899_v13  ;;  %1728 = vmatmul.mubr.msk.bf16.gmra.mxu1 %vm774_vm0, %v1900_v14 }
  0xb2   :  { %1023 = vmatprep.mubr.bf16.mxu0 %v1901_v15  ;;  %1731 = vmatprep.mubr.msk.bf16.mxu1 %vm774_vm0, %v1903_v16 }
  0xb9   :  { %1024 = vmatmul.mubr.bf16.gmra.mxu0 %v1904_v17  ;;  %1732 = vmatmul.mubr.msk.bf16.gmra.mxu1 %vm774_vm0, %v1905_v18 }
  0xba   :  { %1031 = vmatprep.mubr.bf16.mxu0 %v1906_v19  ;;  %1735 = vmatprep.mubr.msk.bf16.mxu1 %vm774_vm0, %v1908_v20 }
  0xc1   :  { %1032 = vmatmul.mubr.bf16.gmra.mxu0 %v1909_v21  ;;  %1736 = vmatmul.mubr.msk.bf16.gmra.mxu1 %vm774_vm0, %v1910_v22 }
  0xc2   :  { %1039 = vmatprep.mubr.bf16.mxu0 %v1911_v23  ;;  %1739 = vmatprep.mubr.msk.bf16.mxu1 %vm774_vm0, %v1913_v24 }
  0xc9   :  { %1040 = vmatmul.mubr.bf16.gmra.mxu0 %v1914_v25  ;;  %1740 = vmatmul.mubr.msk.bf16.gmra.mxu1 %vm774_vm0, %v1915_v26 }
  0xca   :  { %1047 = vmatprep.mubr.bf16.mxu0 %v1916_v27  ;;  %1743 = vmatprep.mubr.msk.bf16.mxu1 %vm774_vm0, %v1918_v28 }
  0xd1   :  { %1048 = vmatmul.mubr.bf16.gmra.mxu0 %v1919_v29  ;;  %1744 = vmatmul.mubr.msk.bf16.gmra.mxu1 %vm774_vm0, %v1920_v30 }
  0xd2   :  { %1055 = vmatprep.mubr.bf16.mxu0 %v1921_v31  ;;  %1747 = vmatprep.mubr.msk.bf16.mxu1 %vm774_vm0, %v1923_v32 }
  0xd9   :  { %1056 = vmatmul.mubr.bf16.gmra.mxu0 %v1924_v33  ;;  %1748 = vmatmul.mubr.msk.bf16.gmra.mxu1 %vm774_vm0, %v1925_v34 }
  0xda   :  { %1063 = vmatprep.mubr.bf16.mxu0 %v1926_v35  ;;  %1751 = vmatprep.mubr.msk.bf16.mxu1 %vm774_vm0, %v1928_v36 }
  0xe1   :  { %1064 = vmatmul.mubr.bf16.gmra.mxu0 %v1929_v37  ;;  %1752 = vmatmul.mubr.msk.bf16.gmra.mxu1 %vm774_vm0, %v1930_v38 }
  0xe2   :  { %1071 = vmatprep.mubr.bf16.mxu0 %v1931_v39  ;;  %1755 = vmatprep.mubr.msk.bf16.mxu1 %vm774_vm0, %v1933_v40 }
  0xe9   :  { %1072 = vmatmul.mubr.bf16.gmra.mxu0 %v1934_v41  ;;  %1756 = vmatmul.mubr.msk.bf16.gmra.mxu1 %vm774_vm0, %v1935_v42 }
  0xea   :  { %1079 = vmatprep.mubr.bf16.mxu0 %v1936_v43  ;;  %1759 = vmatprep.mubr.msk.bf16.mxu1 %vm774_vm0, %v1938_v44 }
  0xf1   :  { %1080 = vmatmul.mubr.bf16.gmra.mxu0 %v1939_v45  ;;  %1760 = vmatmul.mubr.msk.bf16.gmra.mxu1 %vm774_vm0, %v1940_v46 }
  0xf2   :  { %1087 = vmatprep.mubr.bf16.mxu0 %v1941_v47  ;;  %1763 = vmatprep.mubr.msk.bf16.mxu1 %vm774_vm0, %v1943_v48 }
  0xf9   :  { %1088 = vmatmul.mubr.bf16.gmra.mxu0 %v1944_v49  ;;  %1764 = vmatmul.mubr.msk.bf16.gmra.mxu1 %vm774_vm0, %v1945_v50  ;;  %v2436_v49 = vld [vmem:[%s2814_s2] ss:$0 sm:$0xff] }
 0x101   :  { %v2373_v51 = vpop.f32.mrf.mxu0  ;;  %v2375_v52 = vpop.f32.mrf.mxu1 }
 0x103   :  { %v907_v53 = vpop.f32.mrf.mxu0  ;;  %v1099_v54 = vpop.f32.mrf.mxu1 }
 0x105   :  { %v2377_v55 = vpop.f32.mrf.mxu0  ;;  %v2379_v56 = vpop.f32.mrf.mxu1 }
 0x107   :  { %v910_v57 = vpop.f32.mrf.mxu0  ;;  %v1102_v58 = vpop.f32.mrf.mxu1 }
 0x109   :  { %v913_v59 = vpop.f32.mrf.mxu0  ;;  %v2381_v60 = vpop.f32.mrf.mxu1 }
 0x10a   :  { %v914_v54 = vadd.f32 %v2436_v49, %v913_v59 }
 0x10b   :  { %v915_v61 = vpop.f32.mrf.mxu0  ;;  %v1107_v62 = vpop.f32.mrf.mxu1 }
 0x10c   :  { %v906_v61 = vadd.f32 %v2436_v49, %v2373_v51 }
 0x10d   :  { %v2383_v63 = vpop.f32.mrf.mxu0  ;;  %v2385_v0 = vpop.f32.mrf.mxu1 }
 0x10f   :  { %v918_v1 = vpop.f32.mrf.mxu0  ;;  %v1110_v2 = vpop.f32.mrf.mxu1 }
 0x111   :  { %v2387_v3 = vpop.f32.mrf.mxu0  ;;  %v2389_v4 = vpop.f32.mrf.mxu1 }
 0x113   :  { %v923_v5 = vpop.f32.mrf.mxu0  ;;  %v1115_v6 = vpop.f32.mrf.mxu1 }
 0x114   :  { %v917_v5 = vadd.f32 %v2436_v49, %v2383_v63 }
 0x115   :  { %v2391_v7 = vpop.f32.mrf.mxu0  ;;  %v2393_v8 = vpop.f32.mrf.mxu1 }
 0x117   :  { %v926_v9 = vpop.f32.mrf.mxu0  ;;  %v1118_v10 = vpop.f32.mrf.mxu1 }
 0x118   :  { %v909_v10 = vadd.f32 %v2436_v49, %v2377_v55  ;;  %v922_v55 = vadd.f32 %v2436_v49, %v2387_v3  ;;  %v925_v3 = vadd.f32 %v2436_v49, %v2391_v7 }
 0x119   :  { %v929_v11 = vpop.f32.mrf.mxu0  ;;  %v2395_v12 = vpop.f32.mrf.mxu1 }
 0x11b   :  { %v931_v13 = vpop.f32.mrf.mxu0  ;;  %v1123_v14 = vpop.f32.mrf.mxu1 }
 0x11c   :  { %v930_v14 = vadd.f32 %v2436_v49, %v929_v11 }
 0x11d   :  { %v2397_v15 = vpop.f32.mrf.mxu0  ;;  %v2399_v16 = vpop.f32.mrf.mxu1 }
 0x11e   :  { %v933_v11 = vadd.f32 %v2436_v49, %v2397_v15 }
 0x11f   :  { %v934_v17 = vpop.f32.mrf.mxu0  ;;  %v1126_v18 = vpop.f32.mrf.mxu1 }
 0x121   :  { %v2401_v19 = vpop.f32.mrf.mxu0  ;;  %v2403_v20 = vpop.f32.mrf.mxu1 }
 0x122   :  { %v938_v7 = vadd.f32 %v2436_v49, %v2401_v19 }
 0x123   :  { %v939_v21 = vpop.f32.mrf.mxu0  ;;  %v1131_v22 = vpop.f32.mrf.mxu1 }
 0x125   :  { %v2405_v23 = vpop.f32.mrf.mxu0  ;;  %v2407_v24 = vpop.f32.mrf.mxu1 }
 0x126   :  { %v941_v19 = vadd.f32 %v2436_v49, %v2405_v23 }
 0x127   :  { %v942_v25 = vpop.f32.mrf.mxu0  ;;  %v1134_v26 = vpop.f32.mrf.mxu1 }
 0x129   :  { %v2409_v27 = vpop.f32.mrf.mxu0  ;;  %v2411_v28 = vpop.f32.mrf.mxu1 }
 0x12a   :  { %v946_v15 = vadd.f32 %v2436_v49, %v2409_v27 }
 0x12b   :  { %v947_v29 = vpop.f32.mrf.mxu0  ;;  %v1139_v30 = vpop.f32.mrf.mxu1 }
 0x12d   :  { %v2413_v31 = vpop.f32.mrf.mxu0  ;;  %v2415_v32 = vpop.f32.mrf.mxu1 }
 0x12e   :  { %v949_v27 = vadd.f32 %v2436_v49, %v2413_v31 }
 0x12f   :  { %v950_v33 = vpop.f32.mrf.mxu0  ;;  %v1142_v34 = vpop.f32.mrf.mxu1 }
 0x131   :  { %v2417_v35 = vpop.f32.mrf.mxu0  ;;  %v2419_v36 = vpop.f32.mrf.mxu1 }
 0x132   :  { %v954_v23 = vadd.f32 %v2436_v49, %v2417_v35 }
 0x133   :  { %v955_v37 = vpop.f32.mrf.mxu0  ;;  %v1147_v38 = vpop.f32.mrf.mxu1 }
 0x135   :  { %v2421_v39 = vpop.f32.mrf.mxu0  ;;  %v2423_v40 = vpop.f32.mrf.mxu1 }
 0x136   :  { %v957_v35 = vadd.f32 %v2436_v49, %v2421_v39 }
 0x137   :  { %v958_v41 = vpop.f32.mrf.mxu0  ;;  %v1150_v42 = vpop.f32.mrf.mxu1 }
 0x139   :  { %v2425_v43 = vpop.f32.mrf.mxu0  ;;  %v2427_v44 = vpop.f32.mrf.mxu1 }
 0x13a   :  { %v962_v31 = vadd.f32 %v2436_v49, %v2425_v43 }
 0x13b   :  { %v963_v45 = vpop.f32.mrf.mxu0  ;;  %v1155_v46 = vpop.f32.mrf.mxu1 }
 0x13d   :  { %v2429_v47 = vpop.f32.mrf.mxu0  ;;  %v2431_v48 = vpop.f32.mrf.mxu1 }
 0x13e   :  { %v965_v43 = vadd.f32 %v2436_v49, %v2429_v47 }
 0x13f   :  { %v966_v50 = vpop.f32.mrf.mxu0  ;;  %v1158_v53 = vpop.f32.mrf.mxu1 }
 0x141   :  { %v2439_v57 = vpop.f32.mrf.mxu0  ;;  %v1705_v58 = vpop.f32.mrf.mxu1 }
 0x142   :  { %v1203_v62 = vadd.f32 %v1705_v58, %v914_v54  ;;  %v970_v39 = vadd.f32 %v2436_v49, %v2439_v57 }
 0x143   :  { %v971_v1 = vpop.f32.mrf.mxu0  ;;  %v1194_v2 = vpop.f32.mrf.mxu1 }
 0x144   :  { %1452 = vst.msk [vmem:[%s2815_s3 + $0x10] sm:$0xff] %vm1449_vm1, %v1203_v62  ;;  %v1195_v6 = vadd.f32 %v1194_v2, %v906_v61 }
 0x145   :  { %v2449_v59 = vpop.f32.mrf.mxu0  ;;  %v1706_v9 = vpop.f32.mrf.mxu1 }
 0x146   :  { %1450 = vst.msk [vmem:[%s2815_s3] sm:$0xff] %vm1449_vm1, %v1195_v6  ;;  %v1206_v51 = vadd.f32 %v1706_v9, %v917_v5  ;;  %v973_v57 = vadd.f32 %v2436_v49, %v2449_v59 }
 0x147   :  { %v974_v13 = vpop.f32.mrf.mxu0  ;;  %v1197_v63 = vpop.f32.mrf.mxu1 }
 0x148   :  { %1453 = vst.msk [vmem:[%s2815_s3 + $0x18] sm:$0xff] %vm1449_vm1, %v1206_v51  ;;  %v1198_v17 = vadd.f32 %v1197_v63, %v909_v10 }
 0x149   :  { %v977_v18 = vpop.f32.mrf.mxu0  ;;  %v1709_v21 = vpop.f32.mrf.mxu1 }
 0x14a   :  { %1451 = vst.msk [vmem:[%s2815_s3 + $0x8] sm:$0xff] %vm1449_vm1, %v1198_v17  ;;  %v1219_v22 = vadd.f32 %v1709_v21, %v930_v14  ;;  %v978_v47 = vadd.f32 %v2436_v49, %v977_v18 }
 0x14b   :  { %v979_v25 = vpop.f32.mrf.mxu0  ;;  %v1210_v26 = vpop.f32.mrf.mxu1 }
 0x14c   :  { %1456 = vst.msk [vmem:[%s2815_s3 + $0x30] sm:$0xff] %vm1449_vm1, %v1219_v22  ;;  %v1211_v29 = vadd.f32 %v1210_v26, %v922_v55 }
 0x14d   :  { %v980_v30 = vpop.f32.mrf.mxu0  ;;  %v1710_v33 = vpop.f32.mrf.mxu1 }
 0x14e   :  { %1454 = vst.msk [vmem:[%s2815_s3 + $0x20] sm:$0xff] %vm1449_vm1, %v1211_v29  ;;  %v1222_v34 = vadd.f32 %v1710_v33, %v933_v11  ;;  %v981_v18 = vadd.f32 %v2436_v49, %v980_v30 }
 0x14f   :  { %v982_v37 = vpop.f32.mrf.mxu0  ;;  %v1213_v38 = vpop.f32.mrf.mxu1 }
 0x150   :  { %1457 = vst.msk [vmem:[%s2815_s3 + $0x38] sm:$0xff] %vm1449_vm1, %v1222_v34  ;;  %v1214_v41 = vadd.f32 %v1213_v38, %v925_v3 }
 0x151   :  { %v985_v42 = vpop.f32.mrf.mxu0  ;;  %v1713_v45 = vpop.f32.mrf.mxu1 }
 0x152   :  { %1455 = vst.msk [vmem:[%s2815_s3 + $0x28] sm:$0xff] %vm1449_vm1, %v1214_v41  ;;  %v1235_v46 = vadd.f32 %v1713_v45, %v946_v15  ;;  %v986_v59 = vadd.f32 %v2436_v49, %v985_v42 }
 0x153   :  { %v987_v50 = vpop.f32.mrf.mxu0  ;;  %v1226_v53 = vpop.f32.mrf.mxu1 }
 0x154   :  { %1460 = vst.msk [vmem:[%s2815_s3 + $0x50] sm:$0xff] %vm1449_vm1, %v1235_v46  ;;  %v1227_v54 = vadd.f32 %v1226_v53, %v938_v7 }
 0x155   :  { %v988_v58 = vpop.f32.mrf.mxu0  ;;  %v1714_v61 = vpop.f32.mrf.mxu1 }
 0x156   :  { %1458 = vst.msk [vmem:[%s2815_s3 + $0x40] sm:$0xff] %vm1449_vm1, %v1227_v54  ;;  %v1238_v62 = vadd.f32 %v1714_v61, %v949_v27  ;;  %v989_v42 = vadd.f32 %v2436_v49, %v988_v58 }
 0x157   :  { %v990_v1 = vpop.f32.mrf.mxu0  ;;  %v1229_v2 = vpop.f32.mrf.mxu1 }
 0x158   :  { %1461 = vst.msk [vmem:[%s2815_s3 + $0x58] sm:$0xff] %vm1449_vm1, %v1238_v62  ;;  %v1230_v5 = vadd.f32 %v1229_v2, %v941_v19 }
 0x159   :  { %v993_v6 = vpop.f32.mrf.mxu0  ;;  %v1717_v9 = vpop.f32.mrf.mxu1 }
 0x15a   :  { %1459 = vst.msk [vmem:[%s2815_s3 + $0x48] sm:$0xff] %vm1449_vm1, %v1230_v5  ;;  %v1251_v10 = vadd.f32 %v1717_v9, %v962_v31  ;;  %v994_v30 = vadd.f32 %v2436_v49, %v993_v6 }
 0x15b   :  { %v995_v51 = vpop.f32.mrf.mxu0  ;;  %v1242_v13 = vpop.f32.mrf.mxu1 }
 0x15c   :  { %1464 = vst.msk [vmem:[%s2815_s3 + $0x70] sm:$0xff] %vm1449_vm1, %v1251_v10  ;;  %v1243_v63 = vadd.f32 %v1242_v13, %v954_v23 }
 0x15d   :  { %v996_v14 = vpop.f32.mrf.mxu0  ;;  %v1718_v17 = vpop.f32.mrf.mxu1 }
 0x15e   :  { %1462 = vst.msk [vmem:[%s2815_s3 + $0x60] sm:$0xff] %vm1449_vm1, %v1243_v63  ;;  %v1254_v21 = vadd.f32 %v1718_v17, %v965_v43  ;;  %v997_v61 = vadd.f32 %v2436_v49, %v996_v14 }
 0x15f   :  { %v998_v55 = vpop.f32.mrf.mxu0  ;;  %v1245_v22 = vpop.f32.mrf.mxu1 }
 0x160   :  { %1465 = vst.msk [vmem:[%s2815_s3 + $0x78] sm:$0xff] %vm1449_vm1, %v1254_v21  ;;  %v1246_v25 = vadd.f32 %v1245_v22, %v957_v35 }
 0x161   :  { %v1001_v26 = vpop.f32.mrf.mxu0  ;;  %v1721_v11 = vpop.f32.mrf.mxu1 }
 0x162   :  { %1463 = vst.msk [vmem:[%s2815_s3 + $0x68] sm:$0xff] %vm1449_vm1, %v1246_v25  ;;  %v1267_v29 = vadd.f32 %v1721_v11, %v978_v47  ;;  %v1002_v58 = vadd.f32 %v2436_v49, %v1001_v26 }
 0x163   :  { %v1003_v33 = vpop.f32.mrf.mxu0  ;;  %v1258_v3 = vpop.f32.mrf.mxu1 }
 0x164   :  { %1468 = vst.msk [vmem:[%s2815_s3 + $0x90] sm:$0xff] %vm1449_vm1, %v1267_v29  ;;  %v1259_v34 = vadd.f32 %v1258_v3, %v970_v39 }
 0x165   :  { %v1004_v37 = vpop.f32.mrf.mxu0  ;;  %v1722_v38 = vpop.f32.mrf.mxu1 }
 0x166   :  { %1466 = vst.msk [vmem:[%s2815_s3 + $0x80] sm:$0xff] %vm1449_vm1, %v1259_v34  ;;  %v1270_v15 = vadd.f32 %v1722_v38, %v981_v18  ;;  %v1005_v21 = vadd.f32 %v2436_v49, %v1004_v37 }
 0x167   :  { %v1006_v41 = vpop.f32.mrf.mxu0  ;;  %v1261_v45 = vpop.f32.mrf.mxu1 }
 0x168   :  { %1469 = vst.msk [vmem:[%s2815_s3 + $0x98] sm:$0xff] %vm1449_vm1, %v1270_v15  ;;  %v1262_v7 = vadd.f32 %v1261_v45, %v973_v57 }
 0x169   :  { %v1009_v46 = vpop.f32.mrf.mxu0  ;;  %v1725_v50 = vpop.f32.mrf.mxu1 }
 0x16a   :  { %1467 = vst.msk [vmem:[%s2815_s3 + $0x88] sm:$0xff] %vm1449_vm1, %v1262_v7  ;;  %v1283_v53 = vadd.f32 %v1725_v50, %v994_v30  ;;  %v1010_v6 = vadd.f32 %v2436_v49, %v1009_v46 }
 0x16b   :  { %v1011_v27 = vpop.f32.mrf.mxu0  ;;  %v1274_v54 = vpop.f32.mrf.mxu1 }
 0x16c   :  { %1472 = vst.msk [vmem:[%s2815_s3 + $0xb0] sm:$0xff] %vm1449_vm1, %v1283_v53  ;;  %v1275_v19 = vadd.f32 %v1274_v54, %v986_v59 }
 0x16d   :  { %v1012_v62 = vpop.f32.mrf.mxu0  ;;  %v1726_v1 = vpop.f32.mrf.mxu1 }
 0x16e   :  { %1470 = vst.msk [vmem:[%s2815_s3 + $0xa0] sm:$0xff] %vm1449_vm1, %v1275_v19  ;;  %v1286_v2 = vadd.f32 %v1726_v1, %v997_v61  ;;  %v1013_v63 = vadd.f32 %v2436_v49, %v1012_v62 }
 0x16f   :  { %v1014_v31 = vpop.f32.mrf.mxu0  ;;  %v1277_v5 = vpop.f32.mrf.mxu1 }
 0x170   :  { %1473 = vst.msk [vmem:[%s2815_s3 + $0xb8] sm:$0xff] %vm1449_vm1, %v1286_v2  ;;  %v1278_v9 = vadd.f32 %v1277_v5, %v989_v42 }
 0x171   :  { %v1017_v23 = vpop.f32.mrf.mxu0  ;;  %v1729_v10 = vpop.f32.mrf.mxu1 }
 0x172   :  { %1471 = vst.msk [vmem:[%s2815_s3 + $0xa8] sm:$0xff] %vm1449_vm1, %v1278_v9  ;;  %v1299_v51 = vadd.f32 %v1729_v10, %v1010_v6  ;;  %v1018_v39 = vadd.f32 %v2436_v49, %v1017_v23 }
 0x173   :  { %v1019_v13 = vpop.f32.mrf.mxu0  ;;  %v1290_v43 = vpop.f32.mrf.mxu1 }
 0x174   :  { %1476 = vst.msk [vmem:[%s2815_s3 + $0xd0] sm:$0xff] %vm1449_vm1, %v1299_v51  ;;  %v1291_v14 = vadd.f32 %v1290_v43, %v1002_v58 }
 0x175   :  { %v1020_v17 = vpop.f32.mrf.mxu0  ;;  %v1730_v35 = vpop.f32.mrf.mxu1 }
 0x176   :  { %1474 = vst.msk [vmem:[%s2815_s3 + $0xc0] sm:$0xff] %vm1449_vm1, %v1291_v14  ;;  %v1302_v55 = vadd.f32 %v1730_v35, %v1013_v63  ;;  %v1021_v57 = vadd.f32 %v2436_v49, %v1020_v17 }
 0x177   :  { %v1022_v22 = vpop.f32.mrf.mxu0  ;;  %v1293_v47 = vpop.f32.mrf.mxu1 }
 0x178   :  { %1477 = vst.msk [vmem:[%s2815_s3 + $0xd8] sm:$0xff] %vm1449_vm1, %v1302_v55  ;;  %v1294_v25 = vadd.f32 %v1293_v47, %v1005_v21 }
 0x179   :  { %v1025_v26 = vpop.f32.mrf.mxu0  ;;  %v1733_v11 = vpop.f32.mrf.mxu1 }
 0x17a   :  { %1475 = vst.msk [vmem:[%s2815_s3 + $0xc8] sm:$0xff] %vm1449_vm1, %v1294_v25  ;;  %v1026_v29 = vadd.f32 %v2436_v49, %v1025_v26 }
 0x17b   :  { %v1027_v33 = vpop.f32.mrf.mxu0  ;;  %v1306_v3 = vpop.f32.mrf.mxu1 }
 0x17c   :  { %v1315_v18 = vadd.f32 %v1733_v11, %v1026_v29  ;;  %v1307_v34 = vadd.f32 %v1306_v3, %v1018_v39 }
 0x17d   :  { %v1028_v37 = vpop.f32.mrf.mxu0  ;;  %v1734_v38 = vpop.f32.mrf.mxu1 }
 0x17e   :  { %1480 = vst.msk [vmem:[%s2815_s3 + $0xf0] sm:$0xff] %vm1449_vm1, %v1315_v18  ;;  %1478 = vst.msk [vmem:[%s2815_s3 + $0xe0] sm:$0xff] %vm1449_vm1, %v1307_v34  ;;  %v1029_v15 = vadd.f32 %v2436_v49, %v1028_v37 }
 0x17f   :  { %v1030_v41 = vpop.f32.mrf.mxu0  ;;  %v1309_v45 = vpop.f32.mrf.mxu1 }
 0x180   :  { %v1318_v30 = vadd.f32 %v1734_v38, %v1029_v15  ;;  %v1310_v7 = vadd.f32 %v1309_v45, %v1021_v57 }
 0x181   :  { %v1033_v46 = vpop.f32.mrf.mxu0  ;;  %v1737_v50 = vpop.f32.mrf.mxu1 }
 0x182   :  { %1481 = vst.msk [vmem:[%s2815_s3 + $0xf8] sm:$0xff] %vm1449_vm1, %v1318_v30  ;;  %1479 = vst.msk [vmem:[%s2815_s3 + $0xe8] sm:$0xff] %vm1449_vm1, %v1310_v7  ;;  %v1034_v59 = vadd.f32 %v2436_v49, %v1033_v46  ;;  %v1106_v46 = vadd.f32 %v2436_v49, %v2381_v60 }
 0x183   :  { %v1035_v53 = vpop.f32.mrf.mxu0  ;;  %v1322_v27 = vpop.f32.mrf.mxu1 }
 0x184   :  { %v1323_v54 = vadd.f32 %v1322_v27, %v1034_v59  ;;  %v1098_v27 = vadd.f32 %v2436_v49, %v2375_v52 }
 0x185   :  { %v1036_v61 = vpop.f32.mrf.mxu0  ;;  %v1738_v19 = vpop.f32.mrf.mxu1 }
 0x186   :  { %1482 = vst.msk [vmem:[%s2815_s3 + $0x100] sm:$0xff] %vm1449_vm1, %v1323_v54  ;;  %v1037_v62 = vadd.f32 %v2436_v49, %v1036_v61 }
 0x187   :  { %v1038_v1 = vpop.f32.mrf.mxu0  ;;  %v1325_v42 = vpop.f32.mrf.mxu1 }
 0x188   :  { %v1326_v2 = vadd.f32 %v1325_v42, %v1037_v62  ;;  %v1109_v1 = vadd.f32 %v2436_v49, %v2385_v0 }
 0x189   :  { %v1041_v31 = vpop.f32.mrf.mxu0  ;;  %v1741_v5 = vpop.f32.mrf.mxu1 }
 0x18a   :  { %1483 = vst.msk [vmem:[%s2815_s3 + $0x108] sm:$0xff] %vm1449_vm1, %v1326_v2  ;;  %v1042_v6 = vadd.f32 %v2436_v49, %v1041_v31  ;;  %v1101_v31 = vadd.f32 %v2436_v49, %v2379_v56 }
 0x18b   :  { %v1043_v9 = vpop.f32.mrf.mxu0  ;;  %v1338_v23 = vpop.f32.mrf.mxu1 }
 0x18c   :  { %v1331_v10 = vadd.f32 %v1737_v50, %v1042_v6 }
 0x18d   :  { %v1044_v58 = vpop.f32.mrf.mxu0  ;;  %v1742_v51 = vpop.f32.mrf.mxu1 }
 0x18e   :  { %1484 = vst.msk [vmem:[%s2815_s3 + $0x110] sm:$0xff] %vm1449_vm1, %v1331_v10  ;;  %v1045_v13 = vadd.f32 %v2436_v49, %v1044_v58 }
 0x18f   :  { %v1046_v43 = vpop.f32.mrf.mxu0  ;;  %v1341_v63 = vpop.f32.mrf.mxu1 }
 0x190   :  { %v1334_v14 = vadd.f32 %v1738_v19, %v1045_v13  ;;  %v1114_v13 = vadd.f32 %v2436_v49, %v2389_v4 }
 0x191   :  { %v1049_v17 = vpop.f32.mrf.mxu0  ;;  %v2634_v35 = vpop.f32.mrf.mxu1 }
 0x192   :  { %1485 = vst.msk [vmem:[%s2815_s3 + $0x118] sm:$0xff] %vm1449_vm1, %v1334_v14  ;;  %v1050_v21 = vadd.f32 %v2436_v49, %v1049_v17  ;;  %v1125_v17 = vadd.f32 %v2436_v49, %v2399_v16 }
 0x193   :  { %v1051_v55 = vpop.f32.mrf.mxu0  ;;  %v1354_v22 = vpop.f32.mrf.mxu1 }
 0x194   :  { %v1339_v47 = vadd.f32 %v1338_v23, %v1050_v21  ;;  %v1122_v23 = vadd.f32 %v2436_v49, %v2395_v12 }
 0x195   :  { %v1052_v25 = vpop.f32.mrf.mxu0  ;;  %v2641_v26 = vpop.f32.mrf.mxu1 }
 0x196   :  { %1486 = vst.msk [vmem:[%s2815_s3 + $0x120] sm:$0xff] %vm1449_vm1, %v1339_v47  ;;  %v1053_v11 = vadd.f32 %v2436_v49, %v1052_v25  ;;  %v1117_v47 = vadd.f32 %v2436_v49, %v2393_v8 }
 0x197   :  { %v1054_v39 = vpop.f32.mrf.mxu0  ;;  %v1357_v29 = vpop.f32.mrf.mxu1 }
 0x198   :  { %v1342_v33 = vadd.f32 %v1341_v63, %v1053_v11  ;;  %v1138_v39 = vadd.f32 %v2436_v49, %v2411_v28 }
 0x199   :  { %v1057_v3 = vpop.f32.mrf.mxu0  ;;  %v2648_v18 = vpop.f32.mrf.mxu1 }
 0x19a   :  { %1487 = vst.msk [vmem:[%s2815_s3 + $0x128] sm:$0xff] %vm1449_vm1, %v1342_v33  ;;  %v1058_v34 = vadd.f32 %v2436_v49, %v1057_v3 }
 0x19b   :  { %v1059_v37 = vpop.f32.mrf.mxu0  ;;  %v2655_v38 = vpop.f32.mrf.mxu1 }
 0x19c   :  { %v1347_v57 = vadd.f32 %v1741_v5, %v1058_v34  ;;  %v1130_v34 = vadd.f32 %v2436_v49, %v2403_v20 }
 0x19d   :  { %v1060_v15 = vpop.f32.mrf.mxu0  ;;  %v2657_v41 = vpop.f32.mrf.mxu1 }
 0x19e   :  { %1488 = vst.msk [vmem:[%s2815_s3 + $0x130] sm:$0xff] %vm1449_vm1, %v1347_v57  ;;  %v1061_v45 = vadd.f32 %v2436_v49, %v1060_v15  ;;  %v1141_v15 = vadd.f32 %v2436_v49, %v2415_v32 }
 0x19f   :  { %v1062_v30 = vpop.f32.mrf.mxu0  ;;  %v2664_v7 = vpop.f32.mrf.mxu1 }
 0x1a0   :  { %v1350_v50 = vadd.f32 %v1742_v51, %v1061_v45 }
 0x1a1   :  { %v1065_v59 = vpop.f32.mrf.mxu0  ;;  %v1753_v53 = vpop.f32.mrf.mxu1 }
 0x1a2   :  { %1489 = vst.msk [vmem:[%s2815_s3 + $0x138] sm:$0xff] %vm1449_vm1, %v1350_v50  ;;  %v1066_v54 = vadd.f32 %v2436_v49, %v1065_v59  ;;  %v1395_v61 = vadd.f32 %v1753_v53, %v1106_v46  ;;  %v1133_v50 = vadd.f32 %v2436_v49, %v2407_v24 }
 0x1a3   :  { %v1067_v19 = vpop.f32.mrf.mxu0  ;;  %v1386_v62 = vpop.f32.mrf.mxu1 }
 0x1a4   :  { %v1355_v60 = vadd.f32 %v1354_v22, %v1066_v54  ;;  %1500 = vst.msk [vmem:[%s2815_s3 + $0x190] sm:$0xff] %vm1449_vm1, %v1395_v61  ;;  %v1387_v52 = vadd.f32 %v1386_v62, %v1098_v27  ;;  %v1154_v27 = vadd.f32 %v2436_v49, %v2427_v44  ;;  %v1146_v62 = vadd.f32 %v2436_v49, %v2419_v36 }
 0x1a5   :  { %v1068_v42 = vpop.f32.mrf.mxu0  ;;  %v1754_v2 = vpop.f32.mrf.mxu1 }
 0x1a6   :  { %1490 = vst.msk [vmem:[%s2815_s3 + $0x140] sm:$0xff] %vm1449_vm1, %v1355_v60  ;;  %1498 = vst.msk [vmem:[%s2815_s3 + $0x180] sm:$0xff] %vm1449_vm1, %v1387_v52  ;;  %v1069_v0 = vadd.f32 %v2436_v49, %v1068_v42  ;;  %v1398_v5 = vadd.f32 %v1754_v2, %v1109_v1  ;;  %v1157_v52 = vadd.f32 %v2436_v49, %v2431_v48 }
 0x1a7   :  { %v1070_v6 = vpop.f32.mrf.mxu0  ;;  %v1389_v9 = vpop.f32.mrf.mxu1 }
 0x1a8   :  { %v1358_v10 = vadd.f32 %v1357_v29, %v1069_v0  ;;  %1501 = vst.msk [vmem:[%s2815_s3 + $0x198] sm:$0xff] %vm1449_vm1, %v1398_v5  ;;  %v1390_v56 = vadd.f32 %v1389_v9, %v1101_v31  ;;  %v1149_v0 = vadd.f32 %v2436_v49, %v2423_v40 }
 0x1a9   :  { %v1073_v58 = vpop.f32.mrf.mxu0  ;;  %v1757_v51 = vpop.f32.mrf.mxu1 }
 0x1aa   :  { %1491 = vst.msk [vmem:[%s2815_s3 + $0x148] sm:$0xff] %vm1449_vm1, %v1358_v10  ;;  %1499 = vst.msk [vmem:[%s2815_s3 + $0x188] sm:$0xff] %vm1449_vm1, %v1390_v56  ;;  %v1074_v12 = vadd.f32 %v2436_v49, %v1073_v58  ;;  %v1411_v43 = vadd.f32 %v1757_v51, %v1122_v23 }
 0x1ab   :  { %v1075_v63 = vpop.f32.mrf.mxu0  ;;  %v1402_v14 = vpop.f32.mrf.mxu1 }
 0x1ac   :  { %v1363_v4 = vadd.f32 %v2634_v35, %v1074_v12  ;;  %1504 = vst.msk [vmem:[%s2815_s3 + $0x1b0] sm:$0xff] %vm1449_vm1, %v1411_v43  ;;  %v1403_v21 = vadd.f32 %v1402_v14, %v1114_v13 }
 0x1ad   :  { %v1076_v55 = vpop.f32.mrf.mxu0  ;;  %v1758_v22 = vpop.f32.mrf.mxu1 }
 0x1ae   :  { %1492 = vst.msk [vmem:[%s2815_s3 + $0x150] sm:$0xff] %vm1449_vm1, %v1363_v4  ;;  %1502 = vst.msk [vmem:[%s2815_s3 + $0x1a0] sm:$0xff] %vm1449_vm1, %v1403_v21  ;;  %v1077_v16 = vadd.f32 %v2436_v49, %v1076_v55  ;;  %v1414_v35 = vadd.f32 %v1758_v22, %v1125_v17 }
 0x1af   :  { %v1078_v25 = vpop.f32.mrf.mxu0  ;;  %v1405_v11 = vpop.f32.mrf.mxu1 }
 0x1b0   :  { %v1366_v8 = vadd.f32 %v2641_v26, %v1077_v16  ;;  %1505 = vst.msk [vmem:[%s2815_s3 + $0x1b8] sm:$0xff] %vm1449_vm1, %v1414_v35  ;;  %v1406_v29 = vadd.f32 %v1405_v11, %v1117_v47 }
 0x1b1   :  { %v1081_v33 = vpop.f32.mrf.mxu0  ;;  %v1761_v3 = vpop.f32.mrf.mxu1 }
 0x1b2   :  { %1493 = vst.msk [vmem:[%s2815_s3 + $0x158] sm:$0xff] %vm1449_vm1, %v1366_v8  ;;  %1503 = vst.msk [vmem:[%s2815_s3 + $0x1a8] sm:$0xff] %vm1449_vm1, %v1406_v29  ;;  %v1082_v28 = vadd.f32 %v2436_v49, %v1081_v33  ;;  %v1427_v26 = vadd.f32 %v1761_v3, %v1138_v39 }
 0x1b3   :  { %v1083_v37 = vpop.f32.mrf.mxu0  ;;  %v1418_v57 = vpop.f32.mrf.mxu1 }
 0x1b4   :  { %v1371_v20 = vadd.f32 %v2655_v38, %v1082_v28  ;;  %1508 = vst.msk [vmem:[%s2815_s3 + $0x1d0] sm:$0xff] %vm1449_vm1, %v1427_v26  ;;  %v1419_v45 = vadd.f32 %v1418_v57, %v1130_v34 }
 0x1b5   :  { %v1084_v30 = vpop.f32.mrf.mxu0  ;;  %v1762_v46 = vpop.f32.mrf.mxu1 }
 0x1b6   :  { %1494 = vst.msk [vmem:[%s2815_s3 + $0x160] sm:$0xff] %vm1449_vm1, %v1371_v20  ;;  %1506 = vst.msk [vmem:[%s2815_s3 + $0x1c0] sm:$0xff] %vm1449_vm1, %v1419_v45  ;;  %v1085_v32 = vadd.f32 %v2436_v49, %v1084_v30  ;;  %v1430_v38 = vadd.f32 %v1762_v46, %v1141_v15 }
 0x1b7   :  { %v1086_v59 = vpop.f32.mrf.mxu0  ;;  %v1421_v53 = vpop.f32.mrf.mxu1 }
 0x1b8   :  { %v1374_v24 = vadd.f32 %v2664_v7, %v1085_v32  ;;  %1509 = vst.msk [vmem:[%s2815_s3 + $0x1d8] sm:$0xff] %vm1449_vm1, %v1430_v38  ;;  %v1422_v54 = vadd.f32 %v1421_v53, %v1133_v50 }
 0x1b9   :  { %v1089_v61 = vpop.f32.mrf.mxu0  ;;  %v1765_v19 = vpop.f32.mrf.mxu1 }
 0x1ba   :  { %1495 = vst.msk [vmem:[%s2815_s3 + $0x168] sm:$0xff] %vm1449_vm1, %v1374_v24  ;;  %1507 = vst.msk [vmem:[%s2815_s3 + $0x1c8] sm:$0xff] %vm1449_vm1, %v1422_v54  ;;  %v1090_v44 = vadd.f32 %v2436_v49, %v1089_v61  ;;  %v1443_v7 = vadd.f32 %v1765_v19, %v1154_v27 }
 0x1bb   :  { %v1091_v1 = vpop.f32.mrf.mxu0  ;;  %v1434_v60 = vpop.f32.mrf.mxu1 }
 0x1bc   :  { %v1379_v36 = vadd.f32 %v2648_v18, %v1090_v44  ;;  %1512 = vst.msk [vmem:[%s2815_s3 + $0x1f0] sm:$0xff] %vm1449_vm1, %v1443_v7  ;;  %v1435_v42 = vadd.f32 %v1434_v60, %v1146_v62 }
 0x1bd   :  { %v1092_v2 = vpop.f32.mrf.mxu0  ;;  %v1766_v31 = vpop.f32.mrf.mxu1 }
 0x1be   :  { %1496 = vst.msk [vmem:[%s2815_s3 + $0x170] sm:$0xff] %vm1449_vm1, %v1379_v36  ;;  %1510 = vst.msk [vmem:[%s2815_s3 + $0x1e0] sm:$0xff] %vm1449_vm1, %v1435_v42  ;;  %v1093_v48 = vadd.f32 %v2436_v49, %v1092_v2  ;;  %v1446_v18 = vadd.f32 %v1766_v31, %v1157_v52 }
 0x1bf   :  { %v1094_v5 = vpop.f32.mrf.mxu0  ;;  %v1437_v6 = vpop.f32.mrf.mxu1 }
 0x1c0   :  { %v1382_v9 = vadd.f32 %v2657_v41, %v1093_v48  ;;  %1513 = vst.msk [vmem:[%s2815_s3 + $0x1f8] sm:$0xff] %vm1449_vm1, %v1446_v18  ;;  %v1438_v40 = vadd.f32 %v1437_v6, %v1149_v0 }
 0x1c2   :  { %1497 = vst.msk [vmem:[%s2815_s3 + $0x178] sm:$0xff] %vm1449_vm1, %v1382_v9  ;;  %1511 = vst.msk [vmem:[%s2815_s3 + $0x1e8] sm:$0xff] %vm1449_vm1, %v1438_v40 }

// kernel: _lambda_.16
= control target key start
LH: loop header
LB: loop body
LE: loop exit
PB: predicated region body
PF: predicated region fallthrough
CT: control target
= control target key end

     0   :  { %vm158_vm0 = vcmask 1045504   ;;  %vm133_vm1 = vcmask 883712   ;;  %vm259_vm2 = vcmask 261120   ;;  %s520_s1 = inlined_call_operand.vmem [shape: bf16[108,32], index: 1, kind: input, shape index: {}]   ;;  %s521_s0 = inlined_call_operand.vmem [shape: bf16[128,108], index: 0, kind: input, shape index: {}]   ;;  %s522_s2 = inlined_call_operand.vmem [shape: f32[1,32], index: 2, kind: input, shape index: {}]   ;;  %s523_s3 = inlined_call_operand.vmem [shape: f32[128,32], index: 3, kind: output, shape index: {}]  }
   0x1   :  { %v365_v0 = vld [vmem:[%s520_s1 + $0x30] sm:$0x3f]   ;;  %v366_v1 = vld [vmem:[%s520_s1 + $0x28] sm:$0xff]   ;;  %v367_v3 = vld [vmem:[%s520_s1 + $0x20] sm:$0xff]  }
   0x2   :  { %363 = vmatprep.subr.msk.bf16.mxu0 %vm158_vm0, %v365_v0  ;;  %364 = vmatprep.subr.msk.bf16.mxu1 %vm158_vm0, %v365_v0  ;;  %v160_v2 = vsel %vm158_vm0, %v365_v0, 0  ;;  %v368_v4 = vld [vmem:[%s520_s1 + $0x18] sm:$0xff]   ;;  %v372_v5 = vld [vmem:[%s521_s0] sm:$0xff]   ;;  %v369_v7 = vld [vmem:[%s520_s1 + $0x10] sm:$0xff]  }
   0x3   :  { %320 = vmatpush3.bf16.msra.mxu0 %v160_v2  ;;  %356 = vmatpush3.bf16.msra.mxu1 %v160_v2  ;;  %v373_v6 = vld [vmem:[%s521_s0 + $0x20] sm:$0xff]   ;;  %v370_v8 = vld [vmem:[%s520_s1 + $0x8] sm:$0xff]   ;;  %v376_v12 = vld [vmem:[%s521_s0 + $0x10] sm:$0xff]  }
   0x4   :  { %321 = vmatprep.subr.bf16.mxu0 %v366_v1  ;;  %350 = vmatprep.subr.bf16.mxu1 %v366_v1  ;;  %v371_v9 = vld [vmem:[%s520_s1] sm:$0xff]   ;;  %v374_v10 = vld [vmem:[%s521_s0 + $0x8] sm:$0xff]   ;;  %v377_v13 = vld [vmem:[%s521_s0 + $0x30] sm:$0xff]  }
   0x5   :  { %333 = vmatprep.mubr.msk.bf16.mxu0 %vm133_vm1, %v372_v5  ;;  %341 = vmatprep.mubr.msk.bf16.mxu1 %vm133_vm1, %v373_v6  ;;  %v375_v11 = vld [vmem:[%s521_s0 + $0x28] sm:$0xff]   ;;  %v378_v14 = vld [vmem:[%s521_s0 + $0x18] sm:$0xff]   ;;  %v280_v16 = vld [vmem:[%s522_s2] ss:$0 sm:$0xff] }
   0x6   :  { %v379_v15 = vld [vmem:[%s521_s0 + $0x38] sm:$0xff]  }
   0x7   :  { %322 = vmatpush3.bf16.msra.mxu0 %v366_v1  ;;  %357 = vmatpush3.bf16.msra.mxu1 %v366_v1 }
   0x8   :  { %323 = vmatprep.subr.bf16.mxu0 %v367_v3  ;;  %351 = vmatprep.subr.bf16.mxu1 %v367_v3 }
   0xb   :  { %324 = vmatpush3.bf16.msra.mxu0 %v367_v3  ;;  %358 = vmatpush3.bf16.msra.mxu1 %v367_v3 }
   0xc   :  { %325 = vmatprep.subr.bf16.mxu0 %v368_v4  ;;  %352 = vmatprep.subr.bf16.mxu1 %v368_v4 }
   0xf   :  { %326 = vmatpush3.bf16.msra.mxu0 %v368_v4  ;;  %359 = vmatpush3.bf16.msra.mxu1 %v368_v4 }
  0x10   :  { %327 = vmatprep.subr.bf16.mxu0 %v369_v7  ;;  %353 = vmatprep.subr.bf16.mxu1 %v369_v7 }
  0x13   :  { %328 = vmatpush3.bf16.msra.mxu0 %v369_v7  ;;  %360 = vmatpush3.bf16.msra.mxu1 %v369_v7 }
  0x14   :  { %329 = vmatprep.subr.bf16.mxu0 %v370_v8  ;;  %354 = vmatprep.subr.bf16.mxu1 %v370_v8 }
  0x17   :  { %330 = vmatpush3.bf16.msra.mxu0 %v370_v8  ;;  %361 = vmatpush3.bf16.msra.mxu1 %v370_v8 }
  0x18   :  { %331 = vmatprep.subr.bf16.mxu0 %v371_v9  ;;  %355 = vmatprep.subr.bf16.mxu1 %v371_v9 }
  0x1b   :  { %332 = vmatpush3.bf16.msra.mxu0 %v371_v9  ;;  %362 = vmatpush3.bf16.msra.mxu1 %v371_v9 }
  0x1e   :  { %334 = vmatmul.mubr.msk.bf16.vlgmr.msra.gmra.mxu0 %vm133_vm1, %v374_v10  ;;  %342 = vmatmul.mubr.msk.bf16.vlgmr.msra.gmra.mxu1 %vm133_vm1, %v375_v11 }
  0x1f   :  { %337 = vmatprep.mubr.msk.bf16.mxu0 %vm133_vm1, %v376_v12  ;;  %345 = vmatprep.mubr.msk.bf16.mxu1 %vm133_vm1, %v377_v13 }
  0x26   :  { %338 = vmatmul.mubr.msk.bf16.gmra.mxu0 %vm133_vm1, %v378_v14  ;;  %346 = vmatmul.mubr.msk.bf16.gmra.mxu1 %vm133_vm1, %v379_v15 }
  0xde   :  { %v335_v17 = vpop.f32.mrf.mxu0  ;;  %v343_v18 = vpop.f32.mrf.mxu1 }
  0xdf   :  { %v205_v19 = vadd.f32 %v335_v17, %v280_v16  ;;  %v237_v20 = vadd.f32 %v343_v18, %v280_v16 }
  0xe0   :  { %v196_v21 = vpop.f32.mrf.mxu0  ;;  %v228_v22 = vpop.f32.mrf.mxu1 }
  0xe1   :  { %262 = vst.msk [vmem:[%s523_s3 + $0x10] sm:$0xff] %vm259_vm2, %v205_v19  ;;  %270 = vst.msk [vmem:[%s523_s3 + $0x50] sm:$0xff] %vm259_vm2, %v237_v20  ;;  %v197_v23 = vadd.f32 %v280_v16, %v196_v21  ;;  %v229_v24 = vadd.f32 %v280_v16, %v228_v22 }
  0xe2   :  { %v336_v25 = vpop.f32.mrf.mxu0  ;;  %v344_v26 = vpop.f32.mrf.mxu1 }
  0xe3   :  { %260 = vst.msk [vmem:[%s523_s3] sm:$0xff] %vm259_vm2, %v197_v23  ;;  %268 = vst.msk [vmem:[%s523_s3 + $0x40] sm:$0xff] %vm259_vm2, %v229_v24  ;;  %v208_v27 = vadd.f32 %v336_v25, %v280_v16  ;;  %v240_v28 = vadd.f32 %v344_v26, %v280_v16 }
  0xe4   :  { %v199_v29 = vpop.f32.mrf.mxu0  ;;  %v231_v30 = vpop.f32.mrf.mxu1 }
  0xe5   :  { %263 = vst.msk [vmem:[%s523_s3 + $0x18] sm:$0xff] %vm259_vm2, %v208_v27  ;;  %271 = vst.msk [vmem:[%s523_s3 + $0x58] sm:$0xff] %vm259_vm2, %v240_v28  ;;  %v200_v31 = vadd.f32 %v280_v16, %v199_v29  ;;  %v232_v32 = vadd.f32 %v280_v16, %v231_v30 }
  0xe6   :  { %v339_v33 = vpop.f32.mrf.mxu0  ;;  %v347_v34 = vpop.f32.mrf.mxu1 }
  0xe7   :  { %261 = vst.msk [vmem:[%s523_s3 + $0x8] sm:$0xff] %vm259_vm2, %v200_v31  ;;  %269 = vst.msk [vmem:[%s523_s3 + $0x48] sm:$0xff] %vm259_vm2, %v232_v32  ;;  %v221_v35 = vadd.f32 %v339_v33, %v280_v16  ;;  %v253_v36 = vadd.f32 %v347_v34, %v280_v16 }
  0xe8   :  { %v212_v37 = vpop.f32.mrf.mxu0  ;;  %v244_v38 = vpop.f32.mrf.mxu1 }
  0xe9   :  { %266 = vst.msk [vmem:[%s523_s3 + $0x30] sm:$0xff] %vm259_vm2, %v221_v35  ;;  %274 = vst.msk [vmem:[%s523_s3 + $0x70] sm:$0xff] %vm259_vm2, %v253_v36  ;;  %v213_v39 = vadd.f32 %v280_v16, %v212_v37  ;;  %v245_v40 = vadd.f32 %v280_v16, %v244_v38 }
  0xea   :  { %v340_v41 = vpop.f32.mrf.mxu0  ;;  %v348_v42 = vpop.f32.mrf.mxu1 }
  0xeb   :  { %264 = vst.msk [vmem:[%s523_s3 + $0x20] sm:$0xff] %vm259_vm2, %v213_v39  ;;  %272 = vst.msk [vmem:[%s523_s3 + $0x60] sm:$0xff] %vm259_vm2, %v245_v40  ;;  %v224_v43 = vadd.f32 %v340_v41, %v280_v16  ;;  %v256_v44 = vadd.f32 %v348_v42, %v280_v16 }
  0xec   :  { %v215_v45 = vpop.f32.mrf.mxu0  ;;  %v247_v46 = vpop.f32.mrf.mxu1 }
  0xed   :  { %267 = vst.msk [vmem:[%s523_s3 + $0x38] sm:$0xff] %vm259_vm2, %v224_v43  ;;  %275 = vst.msk [vmem:[%s523_s3 + $0x78] sm:$0xff] %vm259_vm2, %v256_v44  ;;  %v216_v47 = vadd.f32 %v280_v16, %v215_v45  ;;  %v248_v48 = vadd.f32 %v280_v16, %v247_v46 }
  0xef   :  { %265 = vst.msk [vmem:[%s523_s3 + $0x28] sm:$0xff] %vm259_vm2, %v216_v47  ;;  %273 = vst.msk [vmem:[%s523_s3 + $0x68] sm:$0xff] %vm259_vm2, %v248_v48 }

// kernel: _lambda_.17
= control target key start
LH: loop header
LB: loop body
LE: loop exit
PB: predicated region body
PF: predicated region fallthrough
CT: control target
= control target key end

     0   :  { %vm204_vm0 = vcmask 261120   ;;  %vm309_vm1 = vcmask 523264   ;;  %s522_s1 = inlined_call_operand.vmem [shape: bf16[288,64], index: 1, kind: input, shape index: {}]   ;;  %s523_s0 = inlined_call_operand.vmem [shape: bf16[32,288], index: 0, kind: input, shape index: {}]   ;;  %s524_s2 = inlined_call_operand.vmem [shape: f32[1,64], index: 2, kind: input, shape index: {}]   ;;  %s525_s3 = inlined_call_operand.vmem [shape: f32[32,64], index: 3, kind: output, shape index: {}]  }
   0x1   :  { %v385_v0 = vld [vmem:[%s522_s1 + $0x78] sm:$0xff]   ;;  %v387_v2 = vld [vmem:[%s522_s1 + $0x70] sm:$0xff]   ;;  %v389_v4 = vld [vmem:[%s522_s1 + $0x68] sm:$0xff]  }
   0x2   :  { %v386_v1 = vld [vmem:[%s522_s1 + $0x38] sm:$0xff]   ;;  %345 = vmatprep.subr.bf16.mxu0 %v385_v0  ;;  %v388_v3 = vld [vmem:[%s522_s1 + $0x30] sm:$0xff]   ;;  %v390_v5 = vld [vmem:[%s522_s1 + $0x28] sm:$0xff]  }
   0x3   :  { %346 = vmatpush3.bf16.msra.mxu0 %v386_v1  ;;  %v391_v6 = vld [vmem:[%s522_s1 + $0x60] sm:$0xff]   ;;  %v393_v8 = vld [vmem:[%s522_s1 + $0x58] sm:$0xff]   ;;  %v400_v10 = vld [vmem:[%s522_s1 + $0x88] sm:$0xff]  }
   0x4   :  { %347 = vmatprep.subr.bf16.mxu0 %v387_v2  ;;  %v392_v7 = vld [vmem:[%s522_s1 + $0x20] sm:$0xff]   ;;  %v394_v9 = vld [vmem:[%s522_s1 + $0x18] sm:$0xff]   ;;  %v395_v11 = vld [vmem:[%s522_s1 + $0x50] sm:$0xff]   ;;  %377 = vmatprep.subr.bf16.mxu1 %v400_v10 }
   0x5   :  { %v396_v12 = vld [vmem:[%s522_s1 + $0x10] sm:$0xff]   ;;  %v397_v13 = vld [vmem:[%s522_s1 + $0x48] sm:$0xff]   ;;  %378 = vmatpush3.bf16.msra.mxu1 %v400_v10  ;;  %v405_v15 = vld [vmem:[%s522_s1 + $0x80] sm:$0xff]  }
   0x6   :  { %v404_v14 = vld [vmem:[%s523_s0 + $0x4] ss:$12 sps:$4 sm:$0xff]   ;;  %v406_v16 = vld [vmem:[%s523_s0 + $0x8] ss:$12 sps:$4 sm:$0xff]   ;;  %379 = vmatprep.subr.bf16.mxu1 %v405_v15  ;;  %v407_v17 = vld [vmem:[%s523_s0 + $0x20] ss:$12 sps:$4 sm:$0xff]  }
   0x7   :  { %348 = vmatpush3.bf16.msra.mxu0 %v388_v3  ;;  %243 = vmatprep.mubr.bf16.mxu0 %v404_v14  ;;  %v398_v18 = vld [vmem:[%s522_s1 + $0x8] sm:$0xff]   ;;  %v399_v19 = vld [vmem:[%s522_s1 + $0x40] sm:$0xff]  }
   0x8   :  { %349 = vmatprep.subr.bf16.mxu0 %v389_v4  ;;  %381 = vmatprep.mubr.msk.bf16.mxu1 %vm204_vm0, %v406_v16  ;;  %v401_v20 = vld [vmem:[%s522_s1] sm:$0xff]   ;;  %v408_v22 = vld [vmem:[%s523_s0 + $0x1c] ss:$12 sps:$4 sm:$0xff]  }
   0x9   :  { %380 = vmatpush3.bf16.msra.mxu1 %v405_v15  ;;  %v402_v21 = vld [vmem:[%s523_s0] ss:$12 sps:$4 sm:$0xff]   ;;  %v410_v23 = vld [vmem:[%s523_s0 + $0x18] ss:$12 sps:$4 sm:$0xff]  }
   0xa   :  { %v318_v28 = vld [vmem:[%s524_s2] ss:$0 sm:$0xff] }
   0xb   :  { %350 = vmatpush3.bf16.msra.mxu0 %v390_v5 }
   0xc   :  { %351 = vmatprep.subr.bf16.mxu0 %v391_v6  ;;  %382 = vmatmul.mubr.msk.bf16.vlgmr.msra.gmra.mxu1 %vm204_vm0, %v407_v17 }
   0xf   :  { %352 = vmatpush3.bf16.msra.mxu0 %v392_v7 }
  0x10   :  { %353 = vmatprep.subr.bf16.mxu0 %v393_v8 }
  0x13   :  { %354 = vmatpush3.bf16.msra.mxu0 %v394_v9 }
  0x14   :  { %355 = vmatprep.subr.bf16.mxu0 %v395_v11 }
  0x17   :  { %356 = vmatpush3.bf16.msra.mxu0 %v396_v12 }
  0x18   :  { %357 = vmatprep.subr.bf16.mxu0 %v397_v13 }
  0x1b   :  { %358 = vmatpush3.bf16.msra.mxu0 %v398_v18 }
  0x1c   :  { %359 = vmatprep.subr.bf16.mxu0 %v399_v19 }
  0x1f   :  { %360 = vmatpush3.bf16.msra.mxu0 %v401_v20 }
  0x22   :  { %244 = vmatmul.mubr.bf16.vlgmr.msra.gmra.mxu0 %v402_v21 }
  0x23   :  { %251 = vmatprep.mubr.bf16.mxu0 %v408_v22 }
  0x2a   :  { %252 = vmatmul.mubr.bf16.gmra.mxu0 %v410_v23 }
  0xcc   :  { %v383_v24 = vpop.f32.mrf.mxu1 }
  0xce   :  { %v294_v26 = vpop.f32.mrf.mxu1 }
  0xd0   :  { %v384_v31 = vpop.f32.mrf.mxu1 }
  0xd2   :  { %v297_v37 = vpop.f32.mrf.mxu1 }
  0xe2   :  { %v361_v25 = vpop.f32.mrf.mxu0 }
  0xe4   :  { %v362_v27 = vpop.f32.mrf.mxu0 }
  0xe5   :  { %v363_v29 = vadd.f32 %v362_v27, %v361_v25 }
  0xe6   :  { %v364_v30 = vpop.f32.mrf.mxu0 }
  0xe7   :  { %v246_v32 = vadd.f32 %v363_v29, %v318_v28 }
  0xe8   :  { %v365_v33 = vpop.f32.mrf.mxu0 }
  0xe9   :  { %v366_v34 = vadd.f32 %v365_v33, %v364_v30  ;;  %v295_v35 = vadd.f32 %v294_v26, %v246_v32 }
  0xea   :  { %v367_v36 = vpop.f32.mrf.mxu0 }
  0xeb   :  { %310 = vst.msk [vmem:[%s525_s3] sm:$0xff] %vm309_vm1, %v295_v35  ;;  %v249_v38 = vadd.f32 %v366_v34, %v318_v28 }
  0xec   :  { %v368_v39 = vpop.f32.mrf.mxu0 }
  0xed   :  { %v369_v40 = vadd.f32 %v368_v39, %v367_v36  ;;  %v298_v41 = vadd.f32 %v297_v37, %v249_v38 }
  0xee   :  { %v370_v42 = vpop.f32.mrf.mxu0 }
  0xef   :  { %v254_v43 = vadd.f32 %v369_v40, %v318_v28  ;;  %311 = vst.msk [vmem:[%s525_s3 + $0x8] sm:$0xff] %vm309_vm1, %v298_v41 }
  0xf0   :  { %v371_v44 = vpop.f32.mrf.mxu0 }
  0xf1   :  { %v303_v45 = vadd.f32 %v383_v24, %v254_v43  ;;  %v372_v46 = vadd.f32 %v371_v44, %v370_v42 }
  0xf3   :  { %312 = vst.msk [vmem:[%s525_s3 + $0x10] sm:$0xff] %vm309_vm1, %v303_v45  ;;  %v257_v47 = vadd.f32 %v372_v46, %v318_v28 }
  0xf5   :  { %v306_v48 = vadd.f32 %v384_v31, %v257_v47 }
  0xf7   :  { %313 = vst.msk [vmem:[%s525_s3 + $0x18] sm:$0xff] %vm309_vm1, %v306_v48 }

// kernel: _lambda_.18
= control target key start
LH: loop header
LB: loop body
LE: loop exit
PB: predicated region body
PF: predicated region fallthrough
CT: control target
= control target key end

     0   :  { %8 = vsyncpa [#allocation3], 0  ;;  %s744_s12 = smov [#allocation2]   ;;  %s922_s0 = inlined_call_operand.vmem [shape: bf16[32,576], index: 0, kind: input, shape index: {}]   ;;  %s923_s1 = inlined_call_operand.vmem [shape: bf16[576,32], index: 1, kind: input, shape index: {}]   ;;  %s924_s2 = inlined_call_operand.hbm [shape: f32[1,32], index: 2, kind: input, shape index: {}]   ;;  %s925_s3 = inlined_call_operand.vmem [shape: f32[32,32], index: 3, kind: output, shape index: {}]  }
   0x1   :  { %s19_s13 = sshll.u32 %s744_s12, 4  ;;  %s20_s13 = int_to_ptr.vmem [resolvable:$true] %s19_s13 }
   0x2   :  { %s730_s14 = scalar_lea.vmem %s20_s13, 16  ;;  %s734_s15 = scalar_lea.vmem %s20_s13, 32 }
   0x3   :  { %p731_p0 = scmp.ne.s32.totalorder %s20_s13, %s730_s14  ;;  %p735_p1 = scmp.lt.s32.totalorder %s20_s13, %s20_s13 }
   0x4   :  { %p736_p2 = scmp.lt.s32.totalorder %s734_s15, %s730_s14 }
   0x6   :  { %p737_p3 = por %p736_p2, %p735_p1 }
   0x8   :  { %p738_p4 = pnand %p737_p3, %p731_p0 }
   0xa   :  { %741 = shalt.err (!%p738_p4)
}
   0xb   :  { %22 = dma.hbm_to_vmem [thread:$0]  %s924_s2, 16, %s20_s13, [#allocation3]  }
   0xc   :  { %742 = dma.done.wait [#allocation3], 16  }
   0xd   :  { %743 = vsyncadd [#allocation3], 4294967280  ;;  %v672_v0 = vld [vmem:[%s923_s1 + $0x78] sm:$0xff]   ;;  %v676_v4 = vld [vmem:[%s923_s1 + $0x70] sm:$0xff]   ;;  %vm384_vm0 = vcmask 523264   ;;  %vm538_vm1 = vcmask 261120  }
   0xe   :  { %v673_v1 = vld [vmem:[%s923_s1 + $0xf8] sm:$0xff]   ;;  %597 = vmatprep.subr.bf16.mxu0 %v672_v0  ;;  %v677_v5 = vld [vmem:[%s923_s1 + $0xf0] sm:$0xff]   ;;  %v680_v8 = vld [vmem:[%s923_s1 + $0x68] sm:$0xff]  }
   0xf   :  { %v674_v2 = vld [vmem:[%s923_s1 + $0x38] sm:$0xff]   ;;  %625 = vmatprep.subr.bf16.mxu1 %v673_v1  ;;  %v678_v6 = vld [vmem:[%s923_s1 + $0x30] sm:$0xff]   ;;  %v681_v9 = vld [vmem:[%s923_s1 + $0xe8] sm:$0xff]  }
  0x10   :  { %v675_v3 = vld [vmem:[%s923_s1 + $0xb8] sm:$0xff]   ;;  %598 = vmatpush3.bf16.msra.mxu0 %v674_v2  ;;  %v679_v7 = vld [vmem:[%s923_s1 + $0xb0] sm:$0xff]   ;;  %v682_v10 = vld [vmem:[%s923_s1 + $0x28] sm:$0xff]  }
  0x11   :  { %626 = vmatpush3.bf16.msra.mxu1 %v675_v3  ;;  %599 = vmatprep.subr.bf16.mxu0 %v676_v4  ;;  %v683_v11 = vld [vmem:[%s923_s1 + $0xa8] sm:$0xff]   ;;  %v684_v12 = vld [vmem:[%s923_s1 + $0x60] sm:$0xff]   ;;  %v688_v16 = vld [vmem:[%s923_s1 + $0x58] sm:$0xff]  }
  0x12   :  { %627 = vmatprep.subr.bf16.mxu1 %v677_v5  ;;  %v685_v13 = vld [vmem:[%s923_s1 + $0xe0] sm:$0xff]   ;;  %v689_v17 = vld [vmem:[%s923_s1 + $0xd8] sm:$0xff]   ;;  %v692_v20 = vld [vmem:[%s923_s1 + $0x50] sm:$0xff]  }
  0x13   :  { %v686_v14 = vld [vmem:[%s923_s1 + $0x20] sm:$0xff]   ;;  %v690_v18 = vld [vmem:[%s923_s1 + $0x18] sm:$0xff]   ;;  %v693_v21 = vld [vmem:[%s923_s1 + $0xd0] sm:$0xff]  }
  0x14   :  { %600 = vmatpush3.bf16.msra.mxu0 %v678_v6  ;;  %v687_v15 = vld [vmem:[%s923_s1 + $0xa0] sm:$0xff]   ;;  %v691_v19 = vld [vmem:[%s923_s1 + $0x98] sm:$0xff]   ;;  %v694_v22 = vld [vmem:[%s923_s1 + $0x10] sm:$0xff]  }
  0x15   :  { %628 = vmatpush3.bf16.msra.mxu1 %v679_v7  ;;  %601 = vmatprep.subr.bf16.mxu0 %v680_v8  ;;  %v695_v23 = vld [vmem:[%s923_s1 + $0x90] sm:$0xff]   ;;  %v696_v24 = vld [vmem:[%s923_s1 + $0x48] sm:$0xff]   ;;  %v700_v28 = vld [vmem:[%s923_s1 + $0x40] sm:$0xff]  }
  0x16   :  { %629 = vmatprep.subr.bf16.mxu1 %v681_v9  ;;  %v697_v25 = vld [vmem:[%s923_s1 + $0xc8] sm:$0xff]   ;;  %v701_v29 = vld [vmem:[%s923_s1 + $0xc0] sm:$0xff]   ;;  %v710_v36 = vld [vmem:[%s923_s1 + $0x118] sm:$0xff]  }
  0x17   :  { %v698_v26 = vld [vmem:[%s923_s1 + $0x8] sm:$0xff]   ;;  %v702_v30 = vld [vmem:[%s923_s1] sm:$0xff]   ;;  %v711_v37 = vld [vmem:[%s923_s1 + $0x110] sm:$0xff]  }
  0x18   :  { %602 = vmatpush3.bf16.msra.mxu0 %v682_v10  ;;  %v699_v27 = vld [vmem:[%s923_s1 + $0x88] sm:$0xff]   ;;  %v703_v31 = vld [vmem:[%s923_s1 + $0x80] sm:$0xff]  }
  0x19   :  { %630 = vmatpush3.bf16.msra.mxu1 %v683_v11  ;;  %603 = vmatprep.subr.bf16.mxu0 %v684_v12  ;;  %v704_v32 = vld [vmem:[%s922_s0] ss:$20 sps:$4 sm:$0xff]   ;;  %v706_v33 = vld [vmem:[%s922_s0 + $0x4] ss:$20 sps:$4 sm:$0xff]   ;;  %v707_v34 = vld [vmem:[%s922_s0 + $0x8] ss:$20 sps:$4 sm:$0xff]  }
  0x1a   :  { %631 = vmatprep.subr.bf16.mxu1 %v685_v13  ;;  %v709_v35 = vld [vmem:[%s922_s0 + $0xc] ss:$20 sps:$4 sm:$0xff]   ;;  %423 = vmatprep.mubr.bf16.mxu0 %v706_v33  ;;  %v714_v39 = vld [vmem:[%s922_s0 + $0x34] ss:$20 sps:$4 sm:$0xff]   ;;  %v717_v42 = vld [vmem:[%s922_s0 + $0x30] ss:$20 sps:$4 sm:$0xff]  }
  0x1b   :  { %472 = vmatprep.mubr.bf16.mxu1 %v709_v35  ;;  %v712_v38 = vld [vmem:[%s922_s0 + $0x2c] ss:$20 sps:$4 sm:$0xff]   ;;  %v716_v40 = vld [vmem:[%s922_s0 + $0x28] ss:$20 sps:$4 sm:$0xff]   ;;  %v720_v43 = vld [vmem:[%s922_s0 + $0x10] ss:$20 sps:$4 sm:$0xff]  }
  0x1c   :  { %604 = vmatpush3.bf16.msra.mxu0 %v686_v14  ;;  %v718_v41 = vld [vmem:[%s923_s1 + $0x108] sm:$0xff]   ;;  %v719_v44 = vld [vmem:[%s923_s1 + $0x100] sm:$0xff]  }
  0x1d   :  { %632 = vmatpush3.bf16.msra.mxu1 %v687_v15  ;;  %605 = vmatprep.subr.bf16.mxu0 %v688_v16  ;;  %v721_v45 = vld [vmem:[%s922_s0 + $0x38] ss:$20 sps:$4 sm:$0xff]   ;;  %v548_v58 = vld [vmem:[#allocation2] ss:$0 sm:$0xff] }
  0x1e   :  { %633 = vmatprep.subr.bf16.mxu1 %v689_v17 }
  0x20   :  { %606 = vmatpush3.bf16.msra.mxu0 %v690_v18 }
  0x21   :  { %634 = vmatpush3.bf16.msra.mxu1 %v691_v19  ;;  %607 = vmatprep.subr.bf16.mxu0 %v692_v20 }
  0x22   :  { %635 = vmatprep.subr.bf16.mxu1 %v693_v21 }
  0x24   :  { %608 = vmatpush3.bf16.msra.mxu0 %v694_v22 }
  0x25   :  { %636 = vmatpush3.bf16.msra.mxu1 %v695_v23  ;;  %609 = vmatprep.subr.bf16.mxu0 %v696_v24 }
  0x26   :  { %637 = vmatprep.subr.bf16.mxu1 %v697_v25 }
  0x28   :  { %610 = vmatpush3.bf16.msra.mxu0 %v698_v26 }
  0x29   :  { %638 = vmatpush3.bf16.msra.mxu1 %v699_v27  ;;  %611 = vmatprep.subr.bf16.mxu0 %v700_v28 }
  0x2a   :  { %639 = vmatprep.subr.bf16.mxu1 %v701_v29 }
  0x2c   :  { %612 = vmatpush3.bf16.msra.mxu0 %v702_v30 }
  0x2d   :  { %640 = vmatpush3.bf16.msra.mxu1 %v703_v31  ;;  %659 = vmatprep.subr.bf16.mxu0 %v710_v36 }
  0x2f   :  { %424 = vmatmul.mubr.bf16.vlgmr.msra.gmra.mxu0 %v704_v32 }
  0x30   :  { %473 = vmatmul.mubr.bf16.vlgmr.msra.gmra.mxu1 %v707_v34  ;;  %660 = vmatpush3.bf16.msra.mxu0 %v710_v36 }
  0x31   :  { %661 = vmatprep.subr.bf16.mxu0 %v711_v37  ;;  %431 = vmatprep.mubr.bf16.mxu0 %v712_v38 }
  0x32   :  { %480 = vmatprep.mubr.bf16.mxu1 %v714_v39 }
  0x34   :  { %662 = vmatpush3.bf16.msra.mxu0 %v711_v37 }
  0x35   :  { %663 = vmatprep.subr.bf16.mxu0 %v718_v41 }
  0x37   :  { %432 = vmatmul.mubr.bf16.gmra.mxu0 %v716_v40 }
  0x38   :  { %481 = vmatmul.mubr.bf16.gmra.mxu1 %v717_v42  ;;  %667 = vmatprep.mubr.msk.bf16.mxu0 %vm384_vm0, %v720_v43 }
  0x39   :  { %664 = vmatpush3.bf16.msra.mxu0 %v718_v41 }
  0x3a   :  { %665 = vmatprep.subr.bf16.mxu0 %v719_v44 }
  0x3d   :  { %666 = vmatpush3.bf16.msra.mxu0 %v719_v44 }
  0x40   :  { %668 = vmatmul.mubr.msk.bf16.vlgmr.msra.gmra.mxu0 %vm384_vm0, %v721_v45 }
  0xef   :  { %v613_v46 = vpop.f32.mrf.mxu0 }
  0xf0   :  { %v641_v47 = vpop.f32.mrf.mxu1 }
  0xf1   :  { %v614_v48 = vpop.f32.mrf.mxu0 }
  0xf2   :  { %v642_v49 = vpop.f32.mrf.mxu1  ;;  %v615_v56 = vadd.f32 %v614_v48, %v613_v46 }
  0xf3   :  { %v616_v50 = vpop.f32.mrf.mxu0  ;;  %v643_v2 = vadd.f32 %v642_v49, %v641_v47 }
  0xf4   :  { %v644_v51 = vpop.f32.mrf.mxu1  ;;  %v426_v1 = vadd.f32 %v615_v56, %v548_v58 }
  0xf5   :  { %v617_v52 = vpop.f32.mrf.mxu0 }
  0xf6   :  { %v645_v53 = vpop.f32.mrf.mxu1  ;;  %v618_v3 = vadd.f32 %v617_v52, %v616_v50  ;;  %v475_v13 = vadd.f32 %v643_v2, %v426_v1 }
  0xf7   :  { %v619_v54 = vpop.f32.mrf.mxu0  ;;  %v646_v16 = vadd.f32 %v645_v53, %v644_v51 }
  0xf8   :  { %v647_v55 = vpop.f32.mrf.mxu1  ;;  %v429_v11 = vadd.f32 %v618_v3, %v548_v58 }
  0xf9   :  { %v620_v57 = vpop.f32.mrf.mxu0 }
  0xfa   :  { %v621_v59 = vadd.f32 %v620_v57, %v619_v54  ;;  %v648_v60 = vpop.f32.mrf.mxu1  ;;  %v478_v20 = vadd.f32 %v646_v16, %v429_v11 }
  0xfb   :  { %v649_v61 = vadd.f32 %v648_v60, %v647_v55  ;;  %v622_v62 = vpop.f32.mrf.mxu0 }
  0xfc   :  { %v434_v63 = vadd.f32 %v621_v59, %v548_v58  ;;  %v650_v0 = vpop.f32.mrf.mxu1 }
  0xfd   :  { %v623_v4 = vpop.f32.mrf.mxu0 }
  0xfe   :  { %v624_v5 = vadd.f32 %v623_v4, %v622_v62  ;;  %v651_v6 = vpop.f32.mrf.mxu1  ;;  %v483_v7 = vadd.f32 %v649_v61, %v434_v63 }
  0xff   :  { %v652_v9 = vadd.f32 %v651_v6, %v650_v0 }
 0x100   :  { %v437_v8 = vadd.f32 %v624_v5, %v548_v58  ;;  %v669_v10 = vpop.f32.mrf.mxu0 }
 0x101   :  { %v532_v12 = vadd.f32 %v669_v10, %v483_v7 }
 0x102   :  { %v523_v14 = vpop.f32.mrf.mxu0  ;;  %v486_v15 = vadd.f32 %v652_v9, %v437_v8 }
 0x103   :  { %541 = vst.msk [vmem:[%s925_s3 + $0x10] sm:$0xff] %vm538_vm1, %v532_v12  ;;  %v524_v17 = vadd.f32 %v523_v14, %v475_v13 }
 0x104   :  { %v670_v18 = vpop.f32.mrf.mxu0 }
 0x105   :  { %539 = vst.msk [vmem:[%s925_s3] sm:$0xff] %vm538_vm1, %v524_v17  ;;  %v535_v19 = vadd.f32 %v670_v18, %v486_v15 }
 0x106   :  { %v526_v21 = vpop.f32.mrf.mxu0 }
 0x107   :  { %542 = vst.msk [vmem:[%s925_s3 + $0x18] sm:$0xff] %vm538_vm1, %v535_v19  ;;  %v527_v22 = vadd.f32 %v526_v21, %v478_v20 }
 0x109   :  { %540 = vst.msk [vmem:[%s925_s3 + $0x8] sm:$0xff] %vm538_vm1, %v527_v22 }
 0x10a   :  { %547 = vsyncpa [#allocation3], 1 }

// kernel: _lambda_.19
= control target key start
LH: loop header
LB: loop body
LE: loop exit
PB: predicated region body
PF: predicated region fallthrough
CT: control target
= control target key end

     0   :  { %8 = vsyncpa [#allocation3], 0  ;;  %s1280_s12 = smov [#allocation2]   ;;  %s1709_s0 = inlined_call_operand.vmem [shape: bf16[128,576], index: 0, kind: input, shape index: {}]   ;;  %s1710_s1 = inlined_call_operand.vmem [shape: bf16[576,16], index: 1, kind: input, shape index: {}]   ;;  %s1711_s2 = inlined_call_operand.hbm [shape: f32[1,16], index: 2, kind: input, shape index: {}]   ;;  %s1712_s3 = inlined_call_operand.vmem [shape: f32[128,16], index: 3, kind: output, shape index: {}]  }
   0x1   :  { %s19_s13 = sshll.u32 %s1280_s12, 4  ;;  %s20_s13 = int_to_ptr.vmem [resolvable:$true] %s19_s13 }
   0x2   :  { %s1266_s14 = scalar_lea.vmem %s20_s13, 16  ;;  %s1270_s15 = scalar_lea.vmem %s20_s13, 32 }
   0x3   :  { %p1267_p0 = scmp.ne.s32.totalorder %s20_s13, %s1266_s14  ;;  %p1271_p1 = scmp.lt.s32.totalorder %s20_s13, %s20_s13 }
   0x4   :  { %p1272_p2 = scmp.lt.s32.totalorder %s1270_s15, %s1266_s14 }
   0x6   :  { %p1273_p3 = por %p1272_p2, %p1271_p1 }
   0x8   :  { %p1274_p4 = pnand %p1273_p3, %p1267_p0 }
   0xa   :  { %1277 = shalt.err (!%p1274_p4)
}
   0xb   :  { %22 = dma.hbm_to_vmem [thread:$0]  %s1711_s2, 16, %s20_s13, [#allocation3]  }
   0xc   :  { %1278 = dma.done.wait [#allocation3], 16  }
   0xd   :  { %1279 = vsyncadd [#allocation3], 4294967280  ;;  %v1166_v0 = vld [vmem:[%s1710_s1 + $0x78] sm:$0xff]   ;;  %v1170_v4 = vld [vmem:[%s1710_s1 + $0x70] sm:$0xff]   ;;  %vm570_vm0 = vcmask 523264   ;;  %vm886_vm1 = vcmask 130048  }
   0xe   :  { %v1167_v1 = vld [vmem:[%s1710_s1 + $0xf8] sm:$0xff]   ;;  %993 = vmatprep.subr.bf16.mxu0 %v1166_v0  ;;  %v1171_v5 = vld [vmem:[%s1710_s1 + $0xf0] sm:$0xff]   ;;  %v1174_v8 = vld [vmem:[%s1710_s1 + $0x68] sm:$0xff]  }
   0xf   :  { %v1168_v2 = vld [vmem:[%s1710_s1 + $0x38] sm:$0xff]   ;;  %1057 = vmatprep.subr.bf16.mxu1 %v1167_v1  ;;  %v1172_v6 = vld [vmem:[%s1710_s1 + $0x30] sm:$0xff]   ;;  %v1175_v9 = vld [vmem:[%s1710_s1 + $0xe8] sm:$0xff]  }
  0x10   :  { %v1169_v3 = vld [vmem:[%s1710_s1 + $0xb8] sm:$0xff]   ;;  %994 = vmatpush3.bf16.msra.mxu0 %v1168_v2  ;;  %v1173_v7 = vld [vmem:[%s1710_s1 + $0xb0] sm:$0xff]   ;;  %v1176_v10 = vld [vmem:[%s1710_s1 + $0x28] sm:$0xff]  }
  0x11   :  { %1058 = vmatpush3.bf16.msra.mxu1 %v1169_v3  ;;  %995 = vmatprep.subr.bf16.mxu0 %v1170_v4  ;;  %v1177_v11 = vld [vmem:[%s1710_s1 + $0xa8] sm:$0xff]   ;;  %v1178_v12 = vld [vmem:[%s1710_s1 + $0x60] sm:$0xff]   ;;  %v1182_v16 = vld [vmem:[%s1710_s1 + $0x58] sm:$0xff]  }
  0x12   :  { %1059 = vmatprep.subr.bf16.mxu1 %v1171_v5  ;;  %v1179_v13 = vld [vmem:[%s1710_s1 + $0xe0] sm:$0xff]   ;;  %v1183_v17 = vld [vmem:[%s1710_s1 + $0xd8] sm:$0xff]   ;;  %v1186_v20 = vld [vmem:[%s1710_s1 + $0x50] sm:$0xff]  }
  0x13   :  { %v1180_v14 = vld [vmem:[%s1710_s1 + $0x20] sm:$0xff]   ;;  %v1184_v18 = vld [vmem:[%s1710_s1 + $0x18] sm:$0xff]   ;;  %v1187_v21 = vld [vmem:[%s1710_s1 + $0xd0] sm:$0xff]  }
  0x14   :  { %996 = vmatpush3.bf16.msra.mxu0 %v1172_v6  ;;  %v1181_v15 = vld [vmem:[%s1710_s1 + $0xa0] sm:$0xff]   ;;  %v1185_v19 = vld [vmem:[%s1710_s1 + $0x98] sm:$0xff]   ;;  %v1188_v22 = vld [vmem:[%s1710_s1 + $0x10] sm:$0xff]  }
  0x15   :  { %1060 = vmatpush3.bf16.msra.mxu1 %v1173_v7  ;;  %997 = vmatprep.subr.bf16.mxu0 %v1174_v8  ;;  %v1189_v23 = vld [vmem:[%s1710_s1 + $0x90] sm:$0xff]   ;;  %v1190_v24 = vld [vmem:[%s1710_s1 + $0x48] sm:$0xff]   ;;  %v1194_v28 = vld [vmem:[%s1710_s1 + $0x40] sm:$0xff]  }
  0x16   :  { %1061 = vmatprep.subr.bf16.mxu1 %v1175_v9  ;;  %v1191_v25 = vld [vmem:[%s1710_s1 + $0xc8] sm:$0xff]   ;;  %v1195_v29 = vld [vmem:[%s1710_s1 + $0xc0] sm:$0xff]   ;;  %v1204_v36 = vld [vmem:[%s1710_s1 + $0x118] sm:$0xff]  }
  0x17   :  { %v1192_v26 = vld [vmem:[%s1710_s1 + $0x8] sm:$0xff]   ;;  %v1196_v30 = vld [vmem:[%s1710_s1] sm:$0xff]   ;;  %v1217_v42 = vld [vmem:[%s1710_s1 + $0x110] sm:$0xff]  }
  0x18   :  { %998 = vmatpush3.bf16.msra.mxu0 %v1176_v10  ;;  %v1193_v27 = vld [vmem:[%s1710_s1 + $0x88] sm:$0xff]   ;;  %v1197_v31 = vld [vmem:[%s1710_s1 + $0x80] sm:$0xff]   ;;  %v1213_v43 = vld [vmem:[%s1709_s0 + $0x5c] ss:$20 sps:$4 sm:$0xff]  }
  0x19   :  { %1062 = vmatpush3.bf16.msra.mxu1 %v1177_v11  ;;  %999 = vmatprep.subr.bf16.mxu0 %v1178_v12  ;;  %v1198_v32 = vld [vmem:[%s1709_s0] ss:$20 sps:$4 sm:$0xff]   ;;  %v1200_v33 = vld [vmem:[%s1709_s0 + $0x4] ss:$20 sps:$4 sm:$0xff]   ;;  %v1201_v34 = vld [vmem:[%s1709_s0 + $0x8] ss:$20 sps:$4 sm:$0xff]  }
  0x1a   :  { %1063 = vmatprep.subr.bf16.mxu1 %v1179_v13  ;;  %v1203_v35 = vld [vmem:[%s1709_s0 + $0xc] ss:$20 sps:$4 sm:$0xff]   ;;  %627 = vmatprep.mubr.bf16.mxu0 %v1200_v33  ;;  %v1207_v38 = vld [vmem:[%s1709_s0 + $0x34] ss:$20 sps:$4 sm:$0xff]   ;;  %v1210_v40 = vld [vmem:[%s1709_s0 + $0x30] ss:$20 sps:$4 sm:$0xff]  }
  0x1b   :  { %724 = vmatprep.mubr.bf16.mxu1 %v1203_v35  ;;  %v1205_v37 = vld [vmem:[%s1709_s0 + $0x2c] ss:$20 sps:$4 sm:$0xff]   ;;  %v1209_v39 = vld [vmem:[%s1709_s0 + $0x28] ss:$20 sps:$4 sm:$0xff]   ;;  %v1215_v44 = vld [vmem:[%s1709_s0 + $0x50] ss:$20 sps:$4 sm:$0xff]  }
  0x1c   :  { %1000 = vmatpush3.bf16.msra.mxu0 %v1180_v14  ;;  %v1211_v41 = vld [vmem:[%s1709_s0 + $0x54] ss:$20 sps:$4 sm:$0xff]   ;;  %v1216_v45 = vld [vmem:[%s1709_s0 + $0x58] ss:$20 sps:$4 sm:$0xff]   ;;  %v1218_v47 = vld [vmem:[%s1709_s0 + $0x7c] ss:$20 sps:$4 sm:$0xff]  }
  0x1d   :  { %1064 = vmatpush3.bf16.msra.mxu1 %v1181_v15  ;;  %1001 = vmatprep.subr.bf16.mxu0 %v1182_v16  ;;  %v1230_v46 = vld [vmem:[%s1710_s1 + $0x108] sm:$0xff]   ;;  %v1220_v48 = vld [vmem:[%s1709_s0 + $0x84] ss:$20 sps:$4 sm:$0xff]   ;;  %v1223_v51 = vld [vmem:[%s1709_s0 + $0x80] ss:$20 sps:$4 sm:$0xff]  }
  0x1e   :  { %1065 = vmatprep.subr.bf16.mxu1 %v1183_v17  ;;  %v1243_v49 = vld [vmem:[%s1710_s1 + $0x100] sm:$0xff]   ;;  %v1222_v50 = vld [vmem:[%s1709_s0 + $0x78] ss:$20 sps:$4 sm:$0xff]   ;;  %v1229_v55 = vld [vmem:[%s1709_s0 + $0xa8] ss:$20 sps:$4 sm:$0xff]  }
  0x1f   :  { %v1224_v52 = vld [vmem:[%s1709_s0 + $0xa4] ss:$20 sps:$4 sm:$0xff]   ;;  %v1226_v53 = vld [vmem:[%s1709_s0 + $0xac] ss:$20 sps:$4 sm:$0xff]   ;;  %v1233_v57 = vld [vmem:[%s1709_s0 + $0xd4] ss:$20 sps:$4 sm:$0xff]  }
  0x20   :  { %1002 = vmatpush3.bf16.msra.mxu0 %v1184_v18  ;;  %v1228_v54 = vld [vmem:[%s1709_s0 + $0xa0] ss:$20 sps:$4 sm:$0xff]   ;;  %v1235_v58 = vld [vmem:[%s1709_s0 + $0xc8] ss:$20 sps:$4 sm:$0xff]   ;;  %v1236_v59 = vld [vmem:[%s1709_s0 + $0xd0] ss:$20 sps:$4 sm:$0xff]  }
  0x21   :  { %1066 = vmatpush3.bf16.msra.mxu1 %v1185_v19  ;;  %1003 = vmatprep.subr.bf16.mxu0 %v1186_v20  ;;  %v1231_v56 = vld [vmem:[%s1709_s0 + $0xcc] ss:$20 sps:$4 sm:$0xff]   ;;  %v1237_v60 = vld [vmem:[%s1709_s0 + $0xf4] ss:$20 sps:$4 sm:$0xff]   ;;  %v1239_v61 = vld [vmem:[%s1709_s0 + $0xfc] ss:$20 sps:$4 sm:$0xff]  }
  0x22   :  { %1067 = vmatprep.subr.bf16.mxu1 %v1187_v21  ;;  %v1241_v62 = vld [vmem:[%s1709_s0 + $0xf0] ss:$20 sps:$4 sm:$0xff]   ;;  %v1242_v63 = vld [vmem:[%s1709_s0 + $0xf8] ss:$20 sps:$4 sm:$0xff]   ;;  %v1249_v3 = vld [vmem:[%s1709_s0 + $0x120] ss:$20 sps:$4 sm:$0xff]  }
  0x23   :  { %v1244_v0 = vld [vmem:[%s1709_s0 + $0x11c] ss:$20 sps:$4 sm:$0xff]   ;;  %v1246_v1 = vld [vmem:[%s1709_s0 + $0x124] ss:$20 sps:$4 sm:$0xff]   ;;  %v1254_v8 = vld [vmem:[%s1709_s0 + $0x60] ss:$20 sps:$4 sm:$0xff]  }
  0x24   :  { %1004 = vmatpush3.bf16.msra.mxu0 %v1188_v22  ;;  %v1248_v2 = vld [vmem:[%s1709_s0 + $0x118] ss:$20 sps:$4 sm:$0xff]   ;;  %v1250_v4 = vld [vmem:[%s1709_s0 + $0x10] ss:$20 sps:$4 sm:$0xff]   ;;  %v1255_v9 = vld [vmem:[%s1709_s0 + $0x100] ss:$20 sps:$4 sm:$0xff]  }
  0x25   :  { %1068 = vmatpush3.bf16.msra.mxu1 %v1189_v23  ;;  %1005 = vmatprep.subr.bf16.mxu0 %v1190_v24  ;;  %v1251_v5 = vld [vmem:[%s1709_s0 + $0xb0] ss:$20 sps:$4 sm:$0xff]   ;;  %v1252_v6 = vld [vmem:[%s1709_s0 + $0x38] ss:$20 sps:$4 sm:$0xff]   ;;  %v1256_v10 = vld [vmem:[%s1709_s0 + $0x88] ss:$20 sps:$4 sm:$0xff]  }
  0x26   :  { %1069 = vmatprep.subr.bf16.mxu1 %v1191_v25  ;;  %v1253_v7 = vld [vmem:[%s1709_s0 + $0xd8] ss:$20 sps:$4 sm:$0xff]   ;;  %v1257_v11 = vld [vmem:[%s1709_s0 + $0x128] ss:$20 sps:$4 sm:$0xff]  }
  0x28   :  { %1006 = vmatpush3.bf16.msra.mxu0 %v1192_v26 }
  0x29   :  { %1070 = vmatpush3.bf16.msra.mxu1 %v1193_v27  ;;  %1007 = vmatprep.subr.bf16.mxu0 %v1194_v28 }
  0x2a   :  { %1071 = vmatprep.subr.bf16.mxu1 %v1195_v29 }
  0x2c   :  { %1008 = vmatpush3.bf16.msra.mxu0 %v1196_v30 }
  0x2d   :  { %1072 = vmatpush3.bf16.msra.mxu1 %v1197_v31  ;;  %1133 = vmatprep.subr.bf16.mxu0 %v1204_v36 }
  0x2e   :  { %1157 = vmatprep.subr.bf16.mxu1 %v1204_v36 }
  0x2f   :  { %628 = vmatmul.mubr.bf16.vlgmr.msra.gmra.mxu0 %v1198_v32 }
  0x30   :  { %725 = vmatmul.mubr.bf16.vlgmr.msra.gmra.mxu1 %v1201_v34  ;;  %1134 = vmatpush3.bf16.msra.mxu0 %v1204_v36 }
  0x31   :  { %1161 = vmatpush3.bf16.msra.mxu1 %v1204_v36  ;;  %635 = vmatprep.mubr.bf16.mxu0 %v1205_v37 }
  0x32   :  { %732 = vmatprep.mubr.bf16.mxu1 %v1207_v38  ;;  %1135 = vmatprep.subr.bf16.mxu0 %v1217_v42 }
  0x33   :  { %1158 = vmatprep.subr.bf16.mxu1 %v1217_v42 }
  0x34   :  { %1136 = vmatpush3.bf16.msra.mxu0 %v1217_v42 }
  0x35   :  { %1162 = vmatpush3.bf16.msra.mxu1 %v1217_v42  ;;  %1137 = vmatprep.subr.bf16.mxu0 %v1230_v46 }
  0x36   :  { %1159 = vmatprep.subr.bf16.mxu1 %v1230_v46 }
  0x37   :  { %636 = vmatmul.mubr.bf16.gmra.mxu0 %v1209_v39 }
  0x38   :  { %733 = vmatmul.mubr.bf16.gmra.mxu1 %v1210_v40  ;;  %643 = vmatprep.mubr.bf16.mxu0 %v1211_v41 }
  0x39   :  { %740 = vmatprep.mubr.bf16.mxu1 %v1213_v43  ;;  %1138 = vmatpush3.bf16.msra.mxu0 %v1230_v46 }
  0x3a   :  { %1163 = vmatpush3.bf16.msra.mxu1 %v1230_v46  ;;  %1139 = vmatprep.subr.bf16.mxu0 %v1243_v49 }
  0x3b   :  { %1160 = vmatprep.subr.bf16.mxu1 %v1243_v49 }
  0x3d   :  { %1140 = vmatpush3.bf16.msra.mxu0 %v1243_v49 }
  0x3e   :  { %1164 = vmatpush3.bf16.msra.mxu1 %v1243_v49 }
  0x3f   :  { %644 = vmatmul.mubr.bf16.gmra.mxu0 %v1215_v44 }
  0x40   :  { %741 = vmatmul.mubr.bf16.gmra.mxu1 %v1216_v45  ;;  %651 = vmatprep.mubr.bf16.mxu0 %v1218_v47 }
  0x41   :  { %748 = vmatprep.mubr.bf16.mxu1 %v1220_v48 }
  0x47   :  { %652 = vmatmul.mubr.bf16.gmra.mxu0 %v1222_v50 }
  0x48   :  { %749 = vmatmul.mubr.bf16.gmra.mxu1 %v1223_v51  ;;  %659 = vmatprep.mubr.bf16.mxu0 %v1224_v52 }
  0x49   :  { %756 = vmatprep.mubr.bf16.mxu1 %v1226_v53 }
  0x4f   :  { %660 = vmatmul.mubr.bf16.gmra.mxu0 %v1228_v54 }
  0x50   :  { %757 = vmatmul.mubr.bf16.gmra.mxu1 %v1229_v55  ;;  %667 = vmatprep.mubr.bf16.mxu0 %v1231_v56 }
  0x51   :  { %764 = vmatprep.mubr.bf16.mxu1 %v1233_v57 }
  0x57   :  { %668 = vmatmul.mubr.bf16.gmra.mxu0 %v1235_v58 }
  0x58   :  { %765 = vmatmul.mubr.bf16.gmra.mxu1 %v1236_v59  ;;  %675 = vmatprep.mubr.bf16.mxu0 %v1237_v60 }
  0x59   :  { %772 = vmatprep.mubr.bf16.mxu1 %v1239_v61 }
  0x5f   :  { %676 = vmatmul.mubr.bf16.gmra.mxu0 %v1241_v62 }
  0x60   :  { %773 = vmatmul.mubr.bf16.gmra.mxu1 %v1242_v63  ;;  %683 = vmatprep.mubr.bf16.mxu0 %v1244_v0 }
  0x61   :  { %780 = vmatprep.mubr.bf16.mxu1 %v1246_v1 }
  0x67   :  { %684 = vmatmul.mubr.bf16.gmra.mxu0 %v1248_v2 }
  0x68   :  { %781 = vmatmul.mubr.bf16.gmra.mxu1 %v1249_v3  ;;  %1141 = vmatprep.mubr.msk.bf16.mxu0 %vm570_vm0, %v1250_v4  ;;  %v1594_v4 = vld [vmem:[#allocation2] ss:$0 sm:$0xff] }
  0x69   :  { %1149 = vmatprep.mubr.msk.bf16.mxu1 %vm570_vm0, %v1251_v5 }
  0x6f   :  { %1142 = vmatmul.mubr.msk.bf16.vlgmr.msra.gmra.mxu0 %vm570_vm0, %v1252_v6 }
  0x70   :  { %1150 = vmatmul.mubr.msk.bf16.vlgmr.msra.gmra.mxu1 %vm570_vm0, %v1253_v7  ;;  %1145 = vmatprep.mubr.msk.bf16.mxu0 %vm570_vm0, %v1254_v8 }
  0x71   :  { %1153 = vmatprep.mubr.msk.bf16.mxu1 %vm570_vm0, %v1255_v9 }
  0x77   :  { %1146 = vmatmul.mubr.msk.bf16.gmra.mxu0 %vm570_vm0, %v1256_v10 }
  0x78   :  { %1154 = vmatmul.mubr.msk.bf16.gmra.mxu1 %vm570_vm0, %v1257_v11 }
  0xef   :  { %v1009_v12 = vpop.f32.mrf.mxu0 }
  0xf0   :  { %v1540_v13 = vpop.f32.mrf.mxu1 }
  0xf1   :  { %v1010_v14 = vpop.f32.mrf.mxu0 }
  0xf2   :  { %v1542_v15 = vpop.f32.mrf.mxu1  ;;  %v1011_v2 = vadd.f32 %v1010_v14, %v1009_v12 }
  0xf3   :  { %v1012_v16 = vpop.f32.mrf.mxu0 }
  0xf4   :  { %v1544_v17 = vpop.f32.mrf.mxu1 }
  0xf5   :  { %v1013_v18 = vpop.f32.mrf.mxu0 }
  0xf6   :  { %v1546_v19 = vpop.f32.mrf.mxu1  ;;  %v1014_v5 = vadd.f32 %v1013_v18, %v1012_v16 }
  0xf7   :  { %v1015_v20 = vpop.f32.mrf.mxu0  ;;  %v1078_v16 = vadd.f32 %v1546_v19, %v1544_v17 }
  0xf8   :  { %v1548_v21 = vpop.f32.mrf.mxu1 }
  0xf9   :  { %v1016_v22 = vpop.f32.mrf.mxu0 }
  0xfa   :  { %v1550_v23 = vpop.f32.mrf.mxu1  ;;  %v1017_v6 = vadd.f32 %v1016_v22, %v1015_v20 }
  0xfb   :  { %v1018_v24 = vpop.f32.mrf.mxu0 }
  0xfc   :  { %v1552_v25 = vpop.f32.mrf.mxu1  ;;  %v638_v12 = vadd.f32 %v1017_v6, %v1594_v4 }
  0xfd   :  { %v1019_v26 = vpop.f32.mrf.mxu0 }
  0xfe   :  { %v1554_v27 = vpop.f32.mrf.mxu1  ;;  %v1020_v10 = vadd.f32 %v1019_v26, %v1018_v24  ;;  %v1081_v24 = vadd.f32 %v1550_v23, %v1548_v21 }
  0xff   :  { %v1021_v28 = vpop.f32.mrf.mxu0  ;;  %v1084_v17 = vadd.f32 %v1554_v27, %v1552_v25 }
 0x100   :  { %v1556_v29 = vpop.f32.mrf.mxu1  ;;  %v641_v26 = vadd.f32 %v1020_v10, %v1594_v4 }
 0x101   :  { %v1022_v30 = vpop.f32.mrf.mxu0 }
 0x102   :  { %v1558_v31 = vpop.f32.mrf.mxu1 }
 0x103   :  { %v1560_v32 = vpop.f32.mrf.mxu0 }
 0x104   :  { %v1562_v33 = vpop.f32.mrf.mxu1 }
 0x105   :  { %1713 = vst [vmem:[#allocation5_spill] sm:$0xff] %v1562_v33  ;;  %v1564_v34 = vpop.f32.mrf.mxu0 }
 0x106   :  { %v1566_v35 = vpop.f32.mrf.mxu1 }
 0x107   :  { %1714 = vst [vmem:[#allocation6_spill] sm:$0xff] %v1566_v35  ;;  %v1027_v36 = vpop.f32.mrf.mxu0  ;;  %v630_v35 = vadd.f32 %v1011_v2, %v1594_v4 }
 0x108   :  { %v1568_v37 = vpop.f32.mrf.mxu1 }
 0x109   :  { %v1028_v38 = vpop.f32.mrf.mxu0 }
 0x10a   :  { %v1570_v39 = vpop.f32.mrf.mxu1  ;;  %v1029_v19 = vadd.f32 %v1028_v38, %v1027_v36 }
 0x10b   :  { %v1572_v40 = vpop.f32.mrf.mxu0 }
 0x10c   :  { %v1574_v41 = vpop.f32.mrf.mxu1  ;;  %v654_v38 = vadd.f32 %v1029_v19, %v1594_v4  ;;  %v1720_v19 = vld [vmem:[#allocation5_spill] sm:$0xff] }
 0x10d   :  { %1715 = vst [vmem:[#allocation7_spill] sm:$0xff] %v1574_v41  ;;  %v1576_v42 = vpop.f32.mrf.mxu0  ;;  %v633_v41 = vadd.f32 %v1014_v5, %v1594_v4 }
 0x10e   :  { %v1578_v43 = vpop.f32.mrf.mxu1 }
 0x10f   :  { %1716 = vst [vmem:[#allocation8_spill] sm:$0xff] %v1578_v43  ;;  %v1033_v44 = vpop.f32.mrf.mxu0  ;;  %v730_v5 = vadd.f32 %v1078_v16, %v633_v41  ;;  %v1032_v41 = vadd.f32 %v1576_v42, %v1572_v40 }
 0x110   :  { %v1097_v45 = vpop.f32.mrf.mxu1 }
 0x111   :  { %v1034_v46 = vpop.f32.mrf.mxu0 }
 0x112   :  { %v1098_v47 = vpop.f32.mrf.mxu1  ;;  %v1035_v33 = vadd.f32 %v1034_v46, %v1033_v44  ;;  %v1023_v44 = vadd.f32 %v1022_v30, %v1021_v28 }
 0x113   :  { %v1036_v48 = vpop.f32.mrf.mxu0  ;;  %v1099_v21 = vadd.f32 %v1098_v47, %v1097_v45 }
 0x114   :  { %v1580_v49 = vpop.f32.mrf.mxu1 }
 0x115   :  { %v1037_v50 = vpop.f32.mrf.mxu0 }
 0x116   :  { %v1582_v51 = vpop.f32.mrf.mxu1  ;;  %v1038_v46 = vadd.f32 %v1037_v50, %v1036_v48  ;;  %v646_v50 = vadd.f32 %v1023_v44, %v1594_v4 }
 0x117   :  { %v1039_v52 = vpop.f32.mrf.mxu0 }
 0x118   :  { %v1103_v53 = vpop.f32.mrf.mxu1 }
 0x119   :  { %v1040_v54 = vpop.f32.mrf.mxu0 }
 0x11a   :  { %v1104_v55 = vpop.f32.mrf.mxu1  ;;  %v1041_v8 = vadd.f32 %v1040_v54, %v1039_v52  ;;  %v662_v54 = vadd.f32 %v1035_v33, %v1594_v4  ;;  %v665_v33 = vadd.f32 %v1038_v46, %v1594_v4 }
 0x11b   :  { %v1042_v56 = vpop.f32.mrf.mxu0  ;;  %v1105_v2 = vadd.f32 %v1104_v55, %v1103_v53 }
 0x11c   :  { %v1106_v57 = vpop.f32.mrf.mxu1  ;;  %v670_v18 = vadd.f32 %v1041_v8, %v1594_v4  ;;  %v759_v36 = vadd.f32 %v1099_v21, %v662_v54 }
 0x11d   :  { %v1043_v58 = vpop.f32.mrf.mxu0 }
 0x11e   :  { %v1107_v59 = vpop.f32.mrf.mxu1  ;;  %v1044_v20 = vadd.f32 %v1043_v58, %v1042_v56  ;;  %v735_v58 = vadd.f32 %v1081_v24, %v638_v12  ;;  %v767_v48 = vadd.f32 %v1105_v2, %v670_v18  ;;  %v1718_v24 = vld [vmem:[#allocation7_spill] sm:$0xff] }
 0x11f   :  { %v1045_v60 = vpop.f32.mrf.mxu0 }
 0x120   :  { %v1584_v61 = vpop.f32.mrf.mxu1  ;;  %v673_v23 = vadd.f32 %v1044_v20, %v1594_v4 }
 0x121   :  { %v1046_v62 = vpop.f32.mrf.mxu0 }
 0x122   :  { %v1586_v63 = vpop.f32.mrf.mxu1  ;;  %v1047_v6 = vadd.f32 %v1046_v62, %v1045_v60 }
 0x123   :  { %v1588_v0 = vpop.f32.mrf.mxu0 }
 0x124   :  { %v1590_v1 = vpop.f32.mrf.mxu1  ;;  %v678_v10 = vadd.f32 %v1047_v6, %v1594_v4 }
 0x125   :  { %1717 = vst [vmem:[#allocation9_spill] sm:$0xff] %v1590_v1  ;;  %v1592_v3 = vpop.f32.mrf.mxu0  ;;  %v1075_v1 = vadd.f32 %v1542_v15, %v1540_v13 }
 0x126   :  { %v1596_v7 = vpop.f32.mrf.mxu1  ;;  %v1050_v12 = vadd.f32 %v1592_v3, %v1588_v0 }
 0x127   :  { %v1051_v9 = vpop.f32.mrf.mxu0  ;;  %v727_v15 = vadd.f32 %v1075_v1, %v630_v35  ;;  %v738_v35 = vadd.f32 %v1084_v17, %v641_v26  ;;  %v1108_v1 = vadd.f32 %v1107_v59, %v1106_v57  ;;  %v1719_v26 = vld [vmem:[#allocation8_spill] sm:$0xff] }
 0x128   :  { %v1115_v11 = vpop.f32.mrf.mxu1  ;;  %v1096_v44 = vadd.f32 %v1719_v26, %v1718_v24  ;;  %v681_v54 = vadd.f32 %v1050_v12, %v1594_v4 }
 0x129   :  { %v1052_v43 = vpop.f32.mrf.mxu0  ;;  %v770_v42 = vadd.f32 %v1108_v1, %v673_v23 }
 0x12a   :  { %v1116_v14 = vpop.f32.mrf.mxu1  ;;  %v1053_v28 = vadd.f32 %v1052_v43, %v1051_v9  ;;  %v1102_v43 = vadd.f32 %v1582_v51, %v1580_v49  ;;  %v1026_v49 = vadd.f32 %v1564_v34, %v1560_v32  ;;  %v1093_v51 = vadd.f32 %v1570_v39, %v1568_v37 }
 0x12b   :  { %v1054_v22 = vpop.f32.mrf.mxu0  ;;  %v1117_v16 = vadd.f32 %v1116_v14, %v1115_v11  ;;  %v1087_v37 = vadd.f32 %v1558_v31, %v1556_v29  ;;  %v657_v39 = vadd.f32 %v1032_v41, %v1594_v4  ;;  %v1111_v11 = vadd.f32 %v1586_v63, %v1584_v61 }
 0x12c   :  { %v1609_v52 = vpop.f32.mrf.mxu1  ;;  %v686_v57 = vadd.f32 %v1053_v28, %v1594_v4  ;;  %v762_v9 = vadd.f32 %v1102_v43, %v665_v33  ;;  %v751_v3 = vadd.f32 %v1093_v51, %v654_v38 }
 0x12d   :  { %v1055_v13 = vpop.f32.mrf.mxu0  ;;  %v743_v46 = vadd.f32 %v1087_v37, %v646_v50  ;;  %v775_v17 = vadd.f32 %v1111_v11, %v678_v10  ;;  %v754_v23 = vadd.f32 %v1096_v44, %v657_v39 }
 0x12e   :  { %v1119_v56 = vpop.f32.mrf.mxu1  ;;  %v1056_v59 = vadd.f32 %v1055_v13, %v1054_v22  ;;  %v783_v20 = vadd.f32 %v1117_v16, %v686_v57  ;;  %v649_v22 = vadd.f32 %v1026_v49, %v1594_v4 }
 0x12f   :  { %v1143_v30 = vpop.f32.mrf.mxu0  ;;  %v1120_v2 = vadd.f32 %v1119_v56, %v1609_v52  ;;  %v1722_v52 = vld [vmem:[#allocation9_spill] sm:$0xff] }
 0x130   :  { %v832_v53 = vadd.f32 %v1143_v30, %v735_v58  ;;  %v1151_v55 = vpop.f32.mrf.mxu1  ;;  %v689_v14 = vadd.f32 %v1056_v59, %v1594_v4  ;;  %v1721_v58 = vld [vmem:[#allocation6_spill] sm:$0xff]  ;;  %v1114_v56 = vadd.f32 %v1596_v7, %v1722_v52 }
 0x131   :  { %v864_v25 = vadd.f32 %v1151_v55, %v767_v48  ;;  %v823_v27 = vpop.f32.mrf.mxu0 }
 0x132   :  { %889 = vst.msk [vmem:[%s1712_s3 + $0x10] sm:$0xff] %vm886_vm1, %v832_v53  ;;  %v824_v45 = vadd.f32 %v823_v27, %v727_v15  ;;  %v855_v47 = vpop.f32.mrf.mxu1  ;;  %v786_v48 = vadd.f32 %v1120_v2, %v689_v14 }
 0x133   :  { %897 = vst.msk [vmem:[%s1712_s3 + $0x50] sm:$0xff] %vm886_vm1, %v864_v25  ;;  %v856_v60 = vadd.f32 %v855_v47, %v759_v36  ;;  %v1144_v40 = vpop.f32.mrf.mxu0 }
 0x134   :  { %887 = vst.msk [vmem:[%s1712_s3] sm:$0xff] %vm886_vm1, %v824_v45  ;;  %v835_v62 = vadd.f32 %v1144_v40, %v738_v35  ;;  %v1152_v8 = vpop.f32.mrf.mxu1  ;;  %v778_v35 = vadd.f32 %v1114_v56, %v681_v54 }
 0x135   :  { %895 = vst.msk [vmem:[%s1712_s3 + $0x40] sm:$0xff] %vm886_vm1, %v856_v60  ;;  %v867_v32 = vadd.f32 %v1152_v8, %v770_v42  ;;  %v826_v34 = vpop.f32.mrf.mxu0 }
 0x136   :  { %890 = vst.msk [vmem:[%s1712_s3 + $0x18] sm:$0xff] %vm886_vm1, %v835_v62  ;;  %v827_v18 = vadd.f32 %v826_v34, %v730_v5  ;;  %v858_v0 = vpop.f32.mrf.mxu1  ;;  %v1090_v5 = vadd.f32 %v1721_v58, %v1720_v19 }
 0x137   :  { %898 = vst.msk [vmem:[%s1712_s3 + $0x58] sm:$0xff] %vm886_vm1, %v867_v32  ;;  %v859_v29 = vadd.f32 %v858_v0, %v762_v9  ;;  %v1147_v31 = vpop.f32.mrf.mxu0 }
 0x138   :  { %888 = vst.msk [vmem:[%s1712_s3 + $0x8] sm:$0xff] %vm886_vm1, %v827_v18  ;;  %v848_v61 = vadd.f32 %v1147_v31, %v751_v3  ;;  %v1155_v63 = vpop.f32.mrf.mxu1  ;;  %v746_v53 = vadd.f32 %v1090_v5, %v649_v22 }
 0x139   :  { %896 = vst.msk [vmem:[%s1712_s3 + $0x48] sm:$0xff] %vm886_vm1, %v859_v29  ;;  %v880_v13 = vadd.f32 %v1155_v63, %v783_v20  ;;  %v839_v15 = vpop.f32.mrf.mxu0 }
 0x13a   :  { %893 = vst.msk [vmem:[%s1712_s3 + $0x30] sm:$0xff] %vm886_vm1, %v848_v61  ;;  %v840_v21 = vadd.f32 %v839_v15, %v743_v46  ;;  %v871_v4 = vpop.f32.mrf.mxu1 }
 0x13b   :  { %901 = vst.msk [vmem:[%s1712_s3 + $0x70] sm:$0xff] %vm886_vm1, %v880_v13  ;;  %v872_v28 = vadd.f32 %v871_v4, %v775_v17  ;;  %v1148_v30 = vpop.f32.mrf.mxu0 }
 0x13c   :  { %891 = vst.msk [vmem:[%s1712_s3 + $0x20] sm:$0xff] %vm886_vm1, %v840_v21  ;;  %v851_v50 = vadd.f32 %v1148_v30, %v754_v23  ;;  %v1156_v33 = vpop.f32.mrf.mxu1 }
 0x13d   :  { %899 = vst.msk [vmem:[%s1712_s3 + $0x60] sm:$0xff] %vm886_vm1, %v872_v28  ;;  %v883_v7 = vadd.f32 %v1156_v33, %v786_v48  ;;  %v842_v55 = vpop.f32.mrf.mxu0 }
 0x13e   :  { %894 = vst.msk [vmem:[%s1712_s3 + $0x38] sm:$0xff] %vm886_vm1, %v851_v50  ;;  %v843_v1 = vadd.f32 %v842_v55, %v746_v53  ;;  %v874_v6 = vpop.f32.mrf.mxu1 }
 0x13f   :  { %902 = vst.msk [vmem:[%s1712_s3 + $0x78] sm:$0xff] %vm886_vm1, %v883_v7  ;;  %v875_v25 = vadd.f32 %v874_v6, %v778_v35 }
 0x140   :  { %892 = vst.msk [vmem:[%s1712_s3 + $0x28] sm:$0xff] %vm886_vm1, %v843_v1 }
 0x141   :  { %900 = vst.msk [vmem:[%s1712_s3 + $0x68] sm:$0xff] %vm886_vm1, %v875_v25 }
 0x142   :  { %907 = vsyncpa [#allocation3], 1 }

// kernel: _lambda_.20
= control target key start
LH: loop header
LB: loop body
LE: loop exit
PB: predicated region body
PF: predicated region fallthrough
CT: control target
= control target key end

     0   :  { %vm558_vm0 = vcmask 523264   ;;  %s1671_s1 = inlined_call_operand.vmem [shape: bf16[576,64], index: 1, kind: input, shape index: {}]   ;;  %s1672_s0 = inlined_call_operand.vmem [shape: bf16[128,576], index: 0, kind: input, shape index: {}]   ;;  %s1673_s2 = inlined_call_operand.vmem [shape: f32[1,64], index: 2, kind: input, shape index: {}]   ;;  %s1674_s3 = inlined_call_operand.vmem [shape: f32[128,64], index: 3, kind: output, shape index: {}]  }
   0x1   :  { %v1151_v0 = vld [vmem:[%s1671_s1 + $0x78] sm:$0xff]   ;;  %v1155_v4 = vld [vmem:[%s1671_s1 + $0x70] sm:$0xff]   ;;  %v1159_v8 = vld [vmem:[%s1671_s1 + $0x68] sm:$0xff]  }
   0x2   :  { %v1152_v1 = vld [vmem:[%s1671_s1 + $0xf8] sm:$0xff]   ;;  %979 = vmatprep.subr.bf16.mxu0 %v1151_v0  ;;  %v1156_v5 = vld [vmem:[%s1671_s1 + $0xf0] sm:$0xff]   ;;  %v1160_v9 = vld [vmem:[%s1671_s1 + $0xe8] sm:$0xff]  }
   0x3   :  { %v1153_v2 = vld [vmem:[%s1671_s1 + $0x38] sm:$0xff]   ;;  %1043 = vmatprep.subr.bf16.mxu1 %v1152_v1  ;;  %v1157_v6 = vld [vmem:[%s1671_s1 + $0x30] sm:$0xff]   ;;  %v1161_v10 = vld [vmem:[%s1671_s1 + $0x28] sm:$0xff]  }
   0x4   :  { %v1154_v3 = vld [vmem:[%s1671_s1 + $0xb8] sm:$0xff]   ;;  %980 = vmatpush3.bf16.msra.mxu0 %v1153_v2  ;;  %v1158_v7 = vld [vmem:[%s1671_s1 + $0xb0] sm:$0xff]   ;;  %v1162_v11 = vld [vmem:[%s1671_s1 + $0xa8] sm:$0xff]  }
   0x5   :  { %1044 = vmatpush3.bf16.msra.mxu1 %v1154_v3  ;;  %981 = vmatprep.subr.bf16.mxu0 %v1155_v4  ;;  %v1163_v12 = vld [vmem:[%s1671_s1 + $0x60] sm:$0xff]   ;;  %v1167_v16 = vld [vmem:[%s1671_s1 + $0x58] sm:$0xff]   ;;  %v1171_v20 = vld [vmem:[%s1671_s1 + $0x50] sm:$0xff]  }
   0x6   :  { %1045 = vmatprep.subr.bf16.mxu1 %v1156_v5  ;;  %v1164_v13 = vld [vmem:[%s1671_s1 + $0xe0] sm:$0xff]   ;;  %v1168_v17 = vld [vmem:[%s1671_s1 + $0xd8] sm:$0xff]   ;;  %v1172_v21 = vld [vmem:[%s1671_s1 + $0xd0] sm:$0xff]  }
   0x7   :  { %v1165_v14 = vld [vmem:[%s1671_s1 + $0x20] sm:$0xff]   ;;  %v1169_v18 = vld [vmem:[%s1671_s1 + $0x18] sm:$0xff]   ;;  %v1173_v22 = vld [vmem:[%s1671_s1 + $0x10] sm:$0xff]  }
   0x8   :  { %982 = vmatpush3.bf16.msra.mxu0 %v1157_v6  ;;  %v1166_v15 = vld [vmem:[%s1671_s1 + $0xa0] sm:$0xff]   ;;  %v1170_v19 = vld [vmem:[%s1671_s1 + $0x98] sm:$0xff]   ;;  %v1174_v23 = vld [vmem:[%s1671_s1 + $0x90] sm:$0xff]  }
   0x9   :  { %1046 = vmatpush3.bf16.msra.mxu1 %v1158_v7  ;;  %983 = vmatprep.subr.bf16.mxu0 %v1159_v8  ;;  %v1175_v24 = vld [vmem:[%s1671_s1 + $0x48] sm:$0xff]   ;;  %v1179_v28 = vld [vmem:[%s1671_s1 + $0x40] sm:$0xff]   ;;  %v1189_v36 = vld [vmem:[%s1671_s1 + $0x118] sm:$0xff]  }
   0xa   :  { %1047 = vmatprep.subr.bf16.mxu1 %v1160_v9  ;;  %v1176_v25 = vld [vmem:[%s1671_s1 + $0xc8] sm:$0xff]   ;;  %v1180_v29 = vld [vmem:[%s1671_s1 + $0xc0] sm:$0xff]   ;;  %v1202_v42 = vld [vmem:[%s1671_s1 + $0x110] sm:$0xff]  }
   0xb   :  { %v1177_v26 = vld [vmem:[%s1671_s1 + $0x8] sm:$0xff]   ;;  %v1181_v30 = vld [vmem:[%s1671_s1] sm:$0xff]   ;;  %v1198_v43 = vld [vmem:[%s1672_s0 + $0x5c] ss:$20 sps:$4 sm:$0xff]  }
   0xc   :  { %984 = vmatpush3.bf16.msra.mxu0 %v1161_v10  ;;  %v1178_v27 = vld [vmem:[%s1671_s1 + $0x88] sm:$0xff]   ;;  %v1182_v31 = vld [vmem:[%s1671_s1 + $0x80] sm:$0xff]   ;;  %v1203_v47 = vld [vmem:[%s1672_s0 + $0x7c] ss:$20 sps:$4 sm:$0xff]  }
   0xd   :  { %1048 = vmatpush3.bf16.msra.mxu1 %v1162_v11  ;;  %985 = vmatprep.subr.bf16.mxu0 %v1163_v12  ;;  %v1183_v32 = vld [vmem:[%s1672_s0] ss:$20 sps:$4 sm:$0xff]   ;;  %v1185_v33 = vld [vmem:[%s1672_s0 + $0x4] ss:$20 sps:$4 sm:$0xff]   ;;  %v1186_v34 = vld [vmem:[%s1672_s0 + $0x8] ss:$20 sps:$4 sm:$0xff]  }
   0xe   :  { %1049 = vmatprep.subr.bf16.mxu1 %v1164_v13  ;;  %v1188_v35 = vld [vmem:[%s1672_s0 + $0xc] ss:$20 sps:$4 sm:$0xff]   ;;  %615 = vmatprep.mubr.bf16.mxu0 %v1185_v33  ;;  %v1192_v38 = vld [vmem:[%s1672_s0 + $0x34] ss:$20 sps:$4 sm:$0xff]   ;;  %v1195_v40 = vld [vmem:[%s1672_s0 + $0x30] ss:$20 sps:$4 sm:$0xff]  }
   0xf   :  { %712 = vmatprep.mubr.bf16.mxu1 %v1188_v35  ;;  %v1190_v37 = vld [vmem:[%s1672_s0 + $0x2c] ss:$20 sps:$4 sm:$0xff]   ;;  %v1194_v39 = vld [vmem:[%s1672_s0 + $0x28] ss:$20 sps:$4 sm:$0xff]   ;;  %v1200_v44 = vld [vmem:[%s1672_s0 + $0x50] ss:$20 sps:$4 sm:$0xff]  }
  0x10   :  { %986 = vmatpush3.bf16.msra.mxu0 %v1165_v14  ;;  %v1196_v41 = vld [vmem:[%s1672_s0 + $0x54] ss:$20 sps:$4 sm:$0xff]   ;;  %v1201_v45 = vld [vmem:[%s1672_s0 + $0x58] ss:$20 sps:$4 sm:$0xff]   ;;  %v1228_v49 = vld [vmem:[%s1671_s1 + $0x100] sm:$0xff]  }
  0x11   :  { %1050 = vmatpush3.bf16.msra.mxu1 %v1166_v15  ;;  %987 = vmatprep.subr.bf16.mxu0 %v1167_v16  ;;  %v1215_v46 = vld [vmem:[%s1671_s1 + $0x108] sm:$0xff]   ;;  %v1205_v48 = vld [vmem:[%s1672_s0 + $0x84] ss:$20 sps:$4 sm:$0xff]   ;;  %v1208_v51 = vld [vmem:[%s1672_s0 + $0x80] ss:$20 sps:$4 sm:$0xff]  }
  0x12   :  { %1051 = vmatprep.subr.bf16.mxu1 %v1168_v17  ;;  %v1207_v50 = vld [vmem:[%s1672_s0 + $0x78] ss:$20 sps:$4 sm:$0xff]   ;;  %v1213_v54 = vld [vmem:[%s1672_s0 + $0xa0] ss:$20 sps:$4 sm:$0xff]   ;;  %v1214_v55 = vld [vmem:[%s1672_s0 + $0xa8] ss:$20 sps:$4 sm:$0xff]  }
  0x13   :  { %v1209_v52 = vld [vmem:[%s1672_s0 + $0xa4] ss:$20 sps:$4 sm:$0xff]   ;;  %v1211_v53 = vld [vmem:[%s1672_s0 + $0xac] ss:$20 sps:$4 sm:$0xff]   ;;  %v1218_v57 = vld [vmem:[%s1672_s0 + $0xd4] ss:$20 sps:$4 sm:$0xff]  }
  0x14   :  { %988 = vmatpush3.bf16.msra.mxu0 %v1169_v18  ;;  %v1216_v56 = vld [vmem:[%s1672_s0 + $0xcc] ss:$20 sps:$4 sm:$0xff]   ;;  %v1220_v58 = vld [vmem:[%s1672_s0 + $0xc8] ss:$20 sps:$4 sm:$0xff]   ;;  %v1221_v59 = vld [vmem:[%s1672_s0 + $0xd0] ss:$20 sps:$4 sm:$0xff]  }
  0x15   :  { %1052 = vmatpush3.bf16.msra.mxu1 %v1170_v19  ;;  %989 = vmatprep.subr.bf16.mxu0 %v1171_v20  ;;  %v1222_v60 = vld [vmem:[%s1672_s0 + $0xf4] ss:$20 sps:$4 sm:$0xff]   ;;  %v1224_v61 = vld [vmem:[%s1672_s0 + $0xfc] ss:$20 sps:$4 sm:$0xff]   ;;  %v1227_v63 = vld [vmem:[%s1672_s0 + $0xf8] ss:$20 sps:$4 sm:$0xff]  }
  0x16   :  { %1053 = vmatprep.subr.bf16.mxu1 %v1172_v21  ;;  %v1226_v62 = vld [vmem:[%s1672_s0 + $0xf0] ss:$20 sps:$4 sm:$0xff]   ;;  %v1233_v2 = vld [vmem:[%s1672_s0 + $0x118] ss:$20 sps:$4 sm:$0xff]   ;;  %v1234_v3 = vld [vmem:[%s1672_s0 + $0x120] ss:$20 sps:$4 sm:$0xff]  }
  0x17   :  { %v1229_v0 = vld [vmem:[%s1672_s0 + $0x11c] ss:$20 sps:$4 sm:$0xff]   ;;  %v1231_v1 = vld [vmem:[%s1672_s0 + $0x124] ss:$20 sps:$4 sm:$0xff]   ;;  %v1239_v8 = vld [vmem:[%s1672_s0 + $0x60] ss:$20 sps:$4 sm:$0xff]  }
  0x18   :  { %990 = vmatpush3.bf16.msra.mxu0 %v1173_v22  ;;  %v1235_v4 = vld [vmem:[%s1672_s0 + $0x10] ss:$20 sps:$4 sm:$0xff]   ;;  %v1237_v6 = vld [vmem:[%s1672_s0 + $0x38] ss:$20 sps:$4 sm:$0xff]   ;;  %v1240_v9 = vld [vmem:[%s1672_s0 + $0x100] ss:$20 sps:$4 sm:$0xff]  }
  0x19   :  { %1054 = vmatpush3.bf16.msra.mxu1 %v1174_v23  ;;  %991 = vmatprep.subr.bf16.mxu0 %v1175_v24  ;;  %v1236_v5 = vld [vmem:[%s1672_s0 + $0xb0] ss:$20 sps:$4 sm:$0xff]   ;;  %v1238_v7 = vld [vmem:[%s1672_s0 + $0xd8] ss:$20 sps:$4 sm:$0xff]   ;;  %v1241_v10 = vld [vmem:[%s1672_s0 + $0x88] ss:$20 sps:$4 sm:$0xff]  }
  0x1a   :  { %1055 = vmatprep.subr.bf16.mxu1 %v1176_v25  ;;  %v1242_v11 = vld [vmem:[%s1672_s0 + $0x128] ss:$20 sps:$4 sm:$0xff]  }
  0x1c   :  { %992 = vmatpush3.bf16.msra.mxu0 %v1177_v26 }
  0x1d   :  { %1056 = vmatpush3.bf16.msra.mxu1 %v1178_v27  ;;  %993 = vmatprep.subr.bf16.mxu0 %v1179_v28 }
  0x1e   :  { %1057 = vmatprep.subr.bf16.mxu1 %v1180_v29 }
  0x20   :  { %994 = vmatpush3.bf16.msra.mxu0 %v1181_v30 }
  0x21   :  { %1058 = vmatpush3.bf16.msra.mxu1 %v1182_v31  ;;  %1119 = vmatprep.subr.bf16.mxu0 %v1189_v36 }
  0x22   :  { %1143 = vmatprep.subr.bf16.mxu1 %v1189_v36 }
  0x23   :  { %616 = vmatmul.mubr.bf16.vlgmr.msra.gmra.mxu0 %v1183_v32 }
  0x24   :  { %713 = vmatmul.mubr.bf16.vlgmr.msra.gmra.mxu1 %v1186_v34  ;;  %1120 = vmatpush3.bf16.msra.mxu0 %v1189_v36 }
  0x25   :  { %1147 = vmatpush3.bf16.msra.mxu1 %v1189_v36  ;;  %623 = vmatprep.mubr.bf16.mxu0 %v1190_v37 }
  0x26   :  { %720 = vmatprep.mubr.bf16.mxu1 %v1192_v38  ;;  %1121 = vmatprep.subr.bf16.mxu0 %v1202_v42 }
  0x27   :  { %1144 = vmatprep.subr.bf16.mxu1 %v1202_v42 }
  0x28   :  { %1122 = vmatpush3.bf16.msra.mxu0 %v1202_v42 }
  0x29   :  { %1148 = vmatpush3.bf16.msra.mxu1 %v1202_v42  ;;  %1123 = vmatprep.subr.bf16.mxu0 %v1215_v46 }
  0x2a   :  { %1145 = vmatprep.subr.bf16.mxu1 %v1215_v46 }
  0x2b   :  { %624 = vmatmul.mubr.bf16.gmra.mxu0 %v1194_v39 }
  0x2c   :  { %721 = vmatmul.mubr.bf16.gmra.mxu1 %v1195_v40  ;;  %631 = vmatprep.mubr.bf16.mxu0 %v1196_v41 }
  0x2d   :  { %728 = vmatprep.mubr.bf16.mxu1 %v1198_v43  ;;  %1124 = vmatpush3.bf16.msra.mxu0 %v1215_v46 }
  0x2e   :  { %1149 = vmatpush3.bf16.msra.mxu1 %v1215_v46  ;;  %1125 = vmatprep.subr.bf16.mxu0 %v1228_v49 }
  0x2f   :  { %1146 = vmatprep.subr.bf16.mxu1 %v1228_v49 }
  0x31   :  { %1126 = vmatpush3.bf16.msra.mxu0 %v1228_v49 }
  0x32   :  { %1150 = vmatpush3.bf16.msra.mxu1 %v1228_v49 }
  0x33   :  { %632 = vmatmul.mubr.bf16.gmra.mxu0 %v1200_v44 }
  0x34   :  { %729 = vmatmul.mubr.bf16.gmra.mxu1 %v1201_v45  ;;  %639 = vmatprep.mubr.bf16.mxu0 %v1203_v47 }
  0x35   :  { %736 = vmatprep.mubr.bf16.mxu1 %v1205_v48 }
  0x3b   :  { %640 = vmatmul.mubr.bf16.gmra.mxu0 %v1207_v50 }
  0x3c   :  { %737 = vmatmul.mubr.bf16.gmra.mxu1 %v1208_v51  ;;  %647 = vmatprep.mubr.bf16.mxu0 %v1209_v52 }
  0x3d   :  { %744 = vmatprep.mubr.bf16.mxu1 %v1211_v53 }
  0x43   :  { %648 = vmatmul.mubr.bf16.gmra.mxu0 %v1213_v54 }
  0x44   :  { %745 = vmatmul.mubr.bf16.gmra.mxu1 %v1214_v55  ;;  %655 = vmatprep.mubr.bf16.mxu0 %v1216_v56 }
  0x45   :  { %752 = vmatprep.mubr.bf16.mxu1 %v1218_v57 }
  0x4b   :  { %656 = vmatmul.mubr.bf16.gmra.mxu0 %v1220_v58 }
  0x4c   :  { %753 = vmatmul.mubr.bf16.gmra.mxu1 %v1221_v59  ;;  %663 = vmatprep.mubr.bf16.mxu0 %v1222_v60 }
  0x4d   :  { %760 = vmatprep.mubr.bf16.mxu1 %v1224_v61 }
  0x53   :  { %664 = vmatmul.mubr.bf16.gmra.mxu0 %v1226_v62 }
  0x54   :  { %761 = vmatmul.mubr.bf16.gmra.mxu1 %v1227_v63  ;;  %671 = vmatprep.mubr.bf16.mxu0 %v1229_v0 }
  0x55   :  { %768 = vmatprep.mubr.bf16.mxu1 %v1231_v1 }
  0x5b   :  { %672 = vmatmul.mubr.bf16.gmra.mxu0 %v1233_v2 }
  0x5c   :  { %769 = vmatmul.mubr.bf16.gmra.mxu1 %v1234_v3  ;;  %1127 = vmatprep.mubr.msk.bf16.mxu0 %vm558_vm0, %v1235_v4  ;;  %v1556_v4 = vld [vmem:[%s1673_s2] ss:$0 sm:$0xff] }
  0x5d   :  { %1135 = vmatprep.mubr.msk.bf16.mxu1 %vm558_vm0, %v1236_v5 }
  0x63   :  { %1128 = vmatmul.mubr.msk.bf16.vlgmr.msra.gmra.mxu0 %vm558_vm0, %v1237_v6 }
  0x64   :  { %1136 = vmatmul.mubr.msk.bf16.vlgmr.msra.gmra.mxu1 %vm558_vm0, %v1238_v7  ;;  %1131 = vmatprep.mubr.msk.bf16.mxu0 %vm558_vm0, %v1239_v8 }
  0x65   :  { %1139 = vmatprep.mubr.msk.bf16.mxu1 %vm558_vm0, %v1240_v9 }
  0x6b   :  { %1132 = vmatmul.mubr.msk.bf16.gmra.mxu0 %vm558_vm0, %v1241_v10 }
  0x6c   :  { %1140 = vmatmul.mubr.msk.bf16.gmra.mxu1 %vm558_vm0, %v1242_v11 }
  0xe3   :  { %v995_v12 = vpop.f32.mrf.mxu0 }
  0xe4   :  { %v1499_v13 = vpop.f32.mrf.mxu1 }
  0xe5   :  { %v996_v14 = vpop.f32.mrf.mxu0 }
  0xe6   :  { %v1501_v15 = vpop.f32.mrf.mxu1  ;;  %v997_v2 = vadd.f32 %v996_v14, %v995_v12 }
  0xe7   :  { %v998_v16 = vpop.f32.mrf.mxu0 }
  0xe8   :  { %v1503_v17 = vpop.f32.mrf.mxu1 }
  0xe9   :  { %v999_v18 = vpop.f32.mrf.mxu0 }
  0xea   :  { %v1505_v19 = vpop.f32.mrf.mxu1  ;;  %v1000_v5 = vadd.f32 %v999_v18, %v998_v16 }
  0xeb   :  { %v1001_v20 = vpop.f32.mrf.mxu0  ;;  %v1064_v16 = vadd.f32 %v1505_v19, %v1503_v17 }
  0xec   :  { %v1507_v21 = vpop.f32.mrf.mxu1  ;;  %v621_v12 = vadd.f32 %v1000_v5, %v1556_v4 }
  0xed   :  { %v1002_v22 = vpop.f32.mrf.mxu0 }
  0xee   :  { %v1509_v23 = vpop.f32.mrf.mxu1  ;;  %v1003_v6 = vadd.f32 %v1002_v22, %v1001_v20  ;;  %v718_v5 = vadd.f32 %v1064_v16, %v621_v12 }
  0xef   :  { %v1004_v24 = vpop.f32.mrf.mxu0 }
  0xf0   :  { %v1511_v25 = vpop.f32.mrf.mxu1  ;;  %v626_v14 = vadd.f32 %v1003_v6, %v1556_v4 }
  0xf1   :  { %v1005_v26 = vpop.f32.mrf.mxu0 }
  0xf2   :  { %v1513_v27 = vpop.f32.mrf.mxu1  ;;  %v1006_v10 = vadd.f32 %v1005_v26, %v1004_v24  ;;  %v1067_v24 = vadd.f32 %v1509_v23, %v1507_v21 }
  0xf3   :  { %v1007_v28 = vpop.f32.mrf.mxu0  ;;  %v1070_v17 = vadd.f32 %v1513_v27, %v1511_v25 }
  0xf4   :  { %v1515_v29 = vpop.f32.mrf.mxu1  ;;  %v629_v26 = vadd.f32 %v1006_v10, %v1556_v4 }
  0xf5   :  { %v1008_v30 = vpop.f32.mrf.mxu0 }
  0xf6   :  { %v1517_v31 = vpop.f32.mrf.mxu1 }
  0xf7   :  { %v1519_v32 = vpop.f32.mrf.mxu0 }
  0xf8   :  { %v1521_v33 = vpop.f32.mrf.mxu1 }
  0xf9   :  { %1675 = vst [vmem:[#allocation2_spill] sm:$0xff] %v1521_v33  ;;  %v1523_v34 = vpop.f32.mrf.mxu0 }
  0xfa   :  { %v1525_v35 = vpop.f32.mrf.mxu1 }
  0xfb   :  { %1676 = vst [vmem:[#allocation3_spill] sm:$0xff] %v1525_v35  ;;  %v1013_v36 = vpop.f32.mrf.mxu0  ;;  %v618_v35 = vadd.f32 %v997_v2, %v1556_v4 }
  0xfc   :  { %v1527_v37 = vpop.f32.mrf.mxu1 }
  0xfd   :  { %v1014_v38 = vpop.f32.mrf.mxu0 }
  0xfe   :  { %v1529_v39 = vpop.f32.mrf.mxu1  ;;  %v1015_v19 = vadd.f32 %v1014_v38, %v1013_v36 }
  0xff   :  { %v1531_v40 = vpop.f32.mrf.mxu0 }
 0x100   :  { %v1533_v41 = vpop.f32.mrf.mxu1  ;;  %v642_v38 = vadd.f32 %v1015_v19, %v1556_v4  ;;  %v1682_v19 = vld [vmem:[#allocation2_spill] sm:$0xff] }
 0x101   :  { %1677 = vst [vmem:[#allocation4_spill] sm:$0xff] %v1533_v41  ;;  %v1535_v42 = vpop.f32.mrf.mxu0  ;;  %v1061_v41 = vadd.f32 %v1501_v15, %v1499_v13 }
 0x102   :  { %v1537_v43 = vpop.f32.mrf.mxu1 }
 0x103   :  { %1678 = vst [vmem:[#allocation5_spill] sm:$0xff] %v1537_v43  ;;  %v1019_v44 = vpop.f32.mrf.mxu0  ;;  %v715_v15 = vadd.f32 %v1061_v41, %v618_v35  ;;  %v726_v35 = vadd.f32 %v1070_v17, %v629_v26 }
 0x104   :  { %v1083_v45 = vpop.f32.mrf.mxu1 }
 0x105   :  { %v1020_v46 = vpop.f32.mrf.mxu0 }
 0x106   :  { %v1084_v47 = vpop.f32.mrf.mxu1  ;;  %v1021_v33 = vadd.f32 %v1020_v46, %v1019_v44  ;;  %v1009_v44 = vadd.f32 %v1008_v30, %v1007_v28 }
 0x107   :  { %v1022_v48 = vpop.f32.mrf.mxu0  ;;  %v1085_v6 = vadd.f32 %v1084_v47, %v1083_v45  ;;  %v1018_v45 = vadd.f32 %v1535_v42, %v1531_v40 }
 0x108   :  { %v1539_v49 = vpop.f32.mrf.mxu1 }
 0x109   :  { %v1023_v50 = vpop.f32.mrf.mxu0 }
 0x10a   :  { %v1541_v51 = vpop.f32.mrf.mxu1  ;;  %v1024_v46 = vadd.f32 %v1023_v50, %v1022_v48  ;;  %v634_v48 = vadd.f32 %v1009_v44, %v1556_v4  ;;  %v1681_v26 = vld [vmem:[#allocation5_spill] sm:$0xff] }
 0x10b   :  { %v1025_v52 = vpop.f32.mrf.mxu0  ;;  %v1088_v47 = vadd.f32 %v1541_v51, %v1539_v49  ;;  %v1012_v49 = vadd.f32 %v1523_v34, %v1519_v32  ;;  %v1079_v51 = vadd.f32 %v1529_v39, %v1527_v37  ;;  %v1073_v37 = vadd.f32 %v1517_v31, %v1515_v29 }
 0x10c   :  { %v1089_v53 = vpop.f32.mrf.mxu1  ;;  %v645_v39 = vadd.f32 %v1018_v45, %v1556_v4 }
 0x10d   :  { %v1026_v54 = vpop.f32.mrf.mxu0 }
 0x10e   :  { %v1090_v55 = vpop.f32.mrf.mxu1  ;;  %v1027_v8 = vadd.f32 %v1026_v54, %v1025_v52  ;;  %v650_v54 = vadd.f32 %v1021_v33, %v1556_v4  ;;  %v653_v33 = vadd.f32 %v1024_v46, %v1556_v4  ;;  %v731_v46 = vadd.f32 %v1073_v37, %v634_v48 }
 0x10f   :  { %v1028_v56 = vpop.f32.mrf.mxu0  ;;  %v1091_v2 = vadd.f32 %v1090_v55, %v1089_v53 }
 0x110   :  { %v1092_v57 = vpop.f32.mrf.mxu1  ;;  %v658_v18 = vadd.f32 %v1027_v8, %v1556_v4  ;;  %v747_v36 = vadd.f32 %v1085_v6, %v650_v54  ;;  %v750_v10 = vadd.f32 %v1088_v47, %v653_v33 }
 0x111   :  { %v1029_v58 = vpop.f32.mrf.mxu0 }
 0x112   :  { %v1093_v59 = vpop.f32.mrf.mxu1  ;;  %v1030_v20 = vadd.f32 %v1029_v58, %v1028_v56  ;;  %v723_v58 = vadd.f32 %v1067_v24, %v626_v14  ;;  %v755_v30 = vadd.f32 %v1091_v2, %v658_v18  ;;  %v1680_v24 = vld [vmem:[#allocation4_spill] sm:$0xff] }
 0x113   :  { %v1031_v60 = vpop.f32.mrf.mxu0  ;;  %v1094_v41 = vadd.f32 %v1093_v59, %v1092_v57  ;;  %v1082_v44 = vadd.f32 %v1681_v26, %v1680_v24 }
 0x114   :  { %v1543_v61 = vpop.f32.mrf.mxu1  ;;  %v661_v21 = vadd.f32 %v1030_v20, %v1556_v4 }
 0x115   :  { %v1032_v62 = vpop.f32.mrf.mxu0 }
 0x116   :  { %v1545_v63 = vpop.f32.mrf.mxu1  ;;  %v1033_v55 = vadd.f32 %v1032_v62, %v1031_v60  ;;  %v758_v42 = vadd.f32 %v1094_v41, %v661_v21  ;;  %v742_v21 = vadd.f32 %v1082_v44, %v645_v39 }
 0x117   :  { %v1547_v0 = vpop.f32.mrf.mxu0 }
 0x118   :  { %v1549_v1 = vpop.f32.mrf.mxu1  ;;  %v666_v12 = vadd.f32 %v1033_v55, %v1556_v4 }
 0x119   :  { %1679 = vst [vmem:[#allocation6_spill] sm:$0xff] %v1549_v1  ;;  %v1551_v3 = vpop.f32.mrf.mxu0 }
 0x11a   :  { %v1558_v7 = vpop.f32.mrf.mxu1  ;;  %v1036_v14 = vadd.f32 %v1551_v3, %v1547_v0  ;;  %v1097_v3 = vadd.f32 %v1545_v63, %v1543_v61 }
 0x11b   :  { %v1037_v9 = vpop.f32.mrf.mxu0 }
 0x11c   :  { %v1101_v11 = vpop.f32.mrf.mxu1  ;;  %v669_v54 = vadd.f32 %v1036_v14, %v1556_v4  ;;  %v763_v17 = vadd.f32 %v1097_v3, %v666_v12 }
 0x11d   :  { %v1038_v1 = vpop.f32.mrf.mxu0 }
 0x11e   :  { %v1102_v43 = vpop.f32.mrf.mxu1  ;;  %v1039_v23 = vadd.f32 %v1038_v1, %v1037_v9 }
 0x11f   :  { %v1040_v22 = vpop.f32.mrf.mxu0  ;;  %v1103_v16 = vadd.f32 %v1102_v43, %v1101_v11  ;;  %v739_v43 = vadd.f32 %v1079_v51, %v642_v38 }
 0x120   :  { %v1571_v52 = vpop.f32.mrf.mxu1  ;;  %v674_v57 = vadd.f32 %v1039_v23, %v1556_v4 }
 0x121   :  { %v1041_v13 = vpop.f32.mrf.mxu0 }
 0x122   :  { %v1105_v56 = vpop.f32.mrf.mxu1  ;;  %v1042_v59 = vadd.f32 %v1041_v13, %v1040_v22  ;;  %v771_v20 = vadd.f32 %v1103_v16, %v674_v57  ;;  %v637_v22 = vadd.f32 %v1012_v49, %v1556_v4 }
 0x123   :  { %v1129_v28 = vpop.f32.mrf.mxu0  ;;  %v1106_v2 = vadd.f32 %v1105_v56, %v1571_v52  ;;  %v1684_v52 = vld [vmem:[#allocation6_spill] sm:$0xff] }
 0x124   :  { %v820_v50 = vadd.f32 %v1129_v28, %v723_v58  ;;  %v1137_v53 = vpop.f32.mrf.mxu1  ;;  %v677_v11 = vadd.f32 %v1042_v59, %v1556_v4  ;;  %v1683_v58 = vld [vmem:[#allocation3_spill] sm:$0xff]  ;;  %v1100_v56 = vadd.f32 %v1558_v7, %v1684_v52 }
 0x125   :  { %v852_v25 = vadd.f32 %v1137_v53, %v755_v30  ;;  %v811_v27 = vpop.f32.mrf.mxu0 }
 0x126   :  { %876 = vst.msk [vmem:[%s1674_s3 + $0x10] sm:$0xff] %vm558_vm0, %v820_v50  ;;  %v812_v1 = vadd.f32 %v811_v27, %v715_v15  ;;  %v843_v8 = vpop.f32.mrf.mxu1  ;;  %v774_v30 = vadd.f32 %v1106_v2, %v677_v11 }
 0x127   :  { %884 = vst.msk [vmem:[%s1674_s3 + $0x50] sm:$0xff] %vm558_vm0, %v852_v25  ;;  %v844_v60 = vadd.f32 %v843_v8, %v747_v36  ;;  %v1130_v40 = vpop.f32.mrf.mxu0 }
 0x128   :  { %874 = vst.msk [vmem:[%s1674_s3] sm:$0xff] %vm558_vm0, %v812_v1  ;;  %v823_v62 = vadd.f32 %v1130_v40, %v726_v35  ;;  %v1138_v9 = vpop.f32.mrf.mxu1  ;;  %v766_v35 = vadd.f32 %v1100_v56, %v669_v54 }
 0x129   :  { %882 = vst.msk [vmem:[%s1674_s3 + $0x40] sm:$0xff] %vm558_vm0, %v844_v60  ;;  %v855_v32 = vadd.f32 %v1138_v9, %v758_v42  ;;  %v814_v34 = vpop.f32.mrf.mxu0 }
 0x12a   :  { %877 = vst.msk [vmem:[%s1674_s3 + $0x18] sm:$0xff] %vm558_vm0, %v823_v62  ;;  %v815_v18 = vadd.f32 %v814_v34, %v718_v5  ;;  %v846_v0 = vpop.f32.mrf.mxu1  ;;  %v1076_v5 = vadd.f32 %v1683_v58, %v1682_v19 }
 0x12b   :  { %885 = vst.msk [vmem:[%s1674_s3 + $0x58] sm:$0xff] %vm558_vm0, %v855_v32  ;;  %v847_v29 = vadd.f32 %v846_v0, %v750_v10  ;;  %v1133_v31 = vpop.f32.mrf.mxu0 }
 0x12c   :  { %875 = vst.msk [vmem:[%s1674_s3 + $0x8] sm:$0xff] %vm558_vm0, %v815_v18  ;;  %v836_v61 = vadd.f32 %v1133_v31, %v739_v43  ;;  %v1141_v63 = vpop.f32.mrf.mxu1  ;;  %v734_v50 = vadd.f32 %v1076_v5, %v637_v22 }
 0x12d   :  { %883 = vst.msk [vmem:[%s1674_s3 + $0x48] sm:$0xff] %vm558_vm0, %v847_v29  ;;  %v868_v13 = vadd.f32 %v1141_v63, %v771_v20  ;;  %v827_v15 = vpop.f32.mrf.mxu0 }
 0x12e   :  { %880 = vst.msk [vmem:[%s1674_s3 + $0x30] sm:$0xff] %vm558_vm0, %v836_v61  ;;  %v828_v6 = vadd.f32 %v827_v15, %v731_v46  ;;  %v859_v4 = vpop.f32.mrf.mxu1 }
 0x12f   :  { %888 = vst.msk [vmem:[%s1674_s3 + $0x70] sm:$0xff] %vm558_vm0, %v868_v13  ;;  %v860_v23 = vadd.f32 %v859_v4, %v763_v17  ;;  %v1134_v28 = vpop.f32.mrf.mxu0 }
 0x130   :  { %878 = vst.msk [vmem:[%s1674_s3 + $0x20] sm:$0xff] %vm558_vm0, %v828_v6  ;;  %v839_v48 = vadd.f32 %v1134_v28, %v742_v21  ;;  %v1142_v33 = vpop.f32.mrf.mxu1 }
 0x131   :  { %886 = vst.msk [vmem:[%s1674_s3 + $0x60] sm:$0xff] %vm558_vm0, %v860_v23  ;;  %v871_v7 = vadd.f32 %v1142_v33, %v774_v30  ;;  %v830_v53 = vpop.f32.mrf.mxu0 }
 0x132   :  { %881 = vst.msk [vmem:[%s1674_s3 + $0x38] sm:$0xff] %vm558_vm0, %v839_v48  ;;  %v831_v41 = vadd.f32 %v830_v53, %v734_v50  ;;  %v862_v55 = vpop.f32.mrf.mxu1 }
 0x133   :  { %889 = vst.msk [vmem:[%s1674_s3 + $0x78] sm:$0xff] %vm558_vm0, %v871_v7  ;;  %v863_v25 = vadd.f32 %v862_v55, %v766_v35 }
 0x134   :  { %879 = vst.msk [vmem:[%s1674_s3 + $0x28] sm:$0xff] %vm558_vm0, %v831_v41 }
 0x135   :  { %887 = vst.msk [vmem:[%s1674_s3 + $0x68] sm:$0xff] %vm558_vm0, %v863_v25 }

// kernel: _lambda_.24
= control target key start
LH: loop header
LB: loop body
LE: loop exit
PB: predicated region body
PF: predicated region fallthrough
CT: control target
= control target key end

     0   :  { %v2966_v0 = vmov 0   ;;  %vm1302_vm0 = vcmask 523264   ;;  %vm2266_vm1 = vcmask 261120   ;;  %s4328_s1 = inlined_call_operand.vmem [shape: bf16[576,32], index: 1, kind: input, shape index: {}]   ;;  %s4329_s0 = inlined_call_operand.vmem [shape: bf16[512,576], index: 0, kind: input, shape index: {}]   ;;  %s4330_s2 = inlined_call_operand.vmem [shape: f32[1,32], index: 2, kind: input, shape index: {}]   ;;  %s4331_s3 = inlined_call_operand.vmem [shape: f32[512,32], index: 3, kind: output, shape index: {}]  }
   0x1   :  { %1399 = vmatprep.subr.bf16.mxu0 %v2966_v0  ;;  %2672 = vmatprep.subr.bf16.mxu1 %v2966_v0  ;;  %v2705_v1 = vld [vmem:[%s4328_s1 + $0x38] sm:$0xff]   ;;  %v2706_v2 = vld [vmem:[%s4328_s1 + $0x30] sm:$0xff]   ;;  %v2707_v3 = vld [vmem:[%s4328_s1 + $0x28] sm:$0xff]  }
   0x2   :  { %1400 = vmatpush1.bf16.msra.mxu0 %v2705_v1  ;;  %2688 = vmatpush1.bf16.msra.mxu1 %v2705_v1  ;;  %v2708_v4 = vld [vmem:[%s4328_s1 + $0x20] sm:$0xff]   ;;  %v2709_v5 = vld [vmem:[%s4328_s1 + $0x18] sm:$0xff]   ;;  %v2710_v7 = vld [vmem:[%s4328_s1 + $0x10] sm:$0xff]  }
   0x3   :  { %1401 = vmatprep.subr.bf16.mxu0 %v2966_v0  ;;  %2673 = vmatprep.subr.bf16.mxu1 %v2966_v0  ;;  %v2723_v6 = vld [vmem:[%s4329_s0 + $0x4] ss:$20 sps:$4 sm:$0xff]   ;;  %v2711_v9 = vld [vmem:[%s4328_s1 + $0x8] sm:$0xff]   ;;  %v2714_v12 = vld [vmem:[%s4328_s1 + $0x70] sm:$0xff]  }
   0x4   :  { %v2726_v8 = vld [vmem:[%s4329_s0 + $0x3c4] ss:$20 sps:$4 sm:$0xff]   ;;  %1431 = vmatprep.mubr.bf16.mxu0 %v2723_v6  ;;  %v2715_v13 = vld [vmem:[%s4328_s1 + $0x68] sm:$0xff]   ;;  %v2718_v16 = vld [vmem:[%s4328_s1 + $0x50] sm:$0xff]  }
   0x5   :  { %1623 = vmatprep.mubr.bf16.mxu1 %v2726_v8  ;;  %v2712_v10 = vld [vmem:[%s4328_s1] sm:$0xff]   ;;  %v2713_v11 = vld [vmem:[%s4328_s1 + $0x78] sm:$0xff]   ;;  %v2719_v17 = vld [vmem:[%s4328_s1 + $0x48] sm:$0xff]  }
   0x6   :  { %1402 = vmatpush1.bf16.msra.mxu0 %v2706_v2  ;;  %2689 = vmatpush1.bf16.msra.mxu1 %v2706_v2  ;;  %v2716_v14 = vld [vmem:[%s4328_s1 + $0x60] sm:$0xff]   ;;  %v2717_v15 = vld [vmem:[%s4328_s1 + $0x58] sm:$0xff]   ;;  %v2776_v25 = vld [vmem:[%s4328_s1 + $0x110] sm:$0xff]  }
   0x7   :  { %1403 = vmatprep.subr.bf16.mxu0 %v2966_v0  ;;  %2674 = vmatprep.subr.bf16.mxu1 %v2966_v0  ;;  %v2720_v18 = vld [vmem:[%s4328_s1 + $0x40] sm:$0xff]   ;;  %v2727_v19 = vld [vmem:[%s4328_s1 + $0x118] sm:$0xff]   ;;  %v2729_v26 = vld [vmem:[%s4328_s1 + $0xb0] sm:$0xff]  }
   0x8   :  { %v2721_v20 = vld [vmem:[%s4329_s0] ss:$20 sps:$4 sm:$0xff]   ;;  %v2728_v22 = vld [vmem:[%s4328_s1 + $0xb8] sm:$0xff]   ;;  %v2736_v29 = vld [vmem:[%s4328_s1 + $0xa8] sm:$0xff]  }
   0x9   :  { %v2724_v21 = vld [vmem:[%s4329_s0 + $0x3c0] ss:$20 sps:$4 sm:$0xff]   ;;  %v2734_v27 = vld [vmem:[%s4329_s0 + $0x28] ss:$20 sps:$4 sm:$0xff]   ;;  %v2742_v34 = vld [vmem:[%s4329_s0 + $0x50] ss:$20 sps:$4 sm:$0xff]  }
   0xa   :  { %1404 = vmatpush1.bf16.msra.mxu0 %v2707_v3  ;;  %2690 = vmatpush1.bf16.msra.mxu1 %v2707_v3  ;;  %v2730_v23 = vld [vmem:[%s4329_s0 + $0x2c] ss:$20 sps:$4 sm:$0xff]   ;;  %v2735_v28 = vld [vmem:[%s4329_s0 + $0x3e8] ss:$20 sps:$4 sm:$0xff]   ;;  %v2743_v35 = vld [vmem:[%s4329_s0 + $0x410] ss:$20 sps:$4 sm:$0xff]  }
   0xb   :  { %1405 = vmatprep.subr.bf16.mxu0 %v2966_v0  ;;  %2675 = vmatprep.subr.bf16.mxu1 %v2966_v0  ;;  %v2732_v24 = vld [vmem:[%s4329_s0 + $0x3ec] ss:$20 sps:$4 sm:$0xff]   ;;  %v2738_v31 = vld [vmem:[%s4329_s0 + $0x54] ss:$20 sps:$4 sm:$0xff]   ;;  %v2744_v36 = vld [vmem:[%s4328_s1 + $0x98] sm:$0xff]  }
   0xc   :  { %v2817_v30 = vld [vmem:[%s4328_s1 + $0x108] sm:$0xff]   ;;  %v2737_v33 = vld [vmem:[%s4328_s1 + $0xa0] sm:$0xff]   ;;  %v2746_v37 = vld [vmem:[%s4329_s0 + $0x7c] ss:$20 sps:$4 sm:$0xff]  }
   0xd   :  { %v2740_v32 = vld [vmem:[%s4329_s0 + $0x414] ss:$20 sps:$4 sm:$0xff]   ;;  %v2748_v38 = vld [vmem:[%s4329_s0 + $0x43c] ss:$20 sps:$4 sm:$0xff]   ;;  %v2750_v40 = vld [vmem:[%s4329_s0 + $0x78] ss:$20 sps:$4 sm:$0xff]  }
   0xe   :  { %1406 = vmatpush1.bf16.msra.mxu0 %v2708_v4  ;;  %2691 = vmatpush1.bf16.msra.mxu1 %v2708_v4  ;;  %v2745_v39 = vld [vmem:[%s4328_s1 + $0x90] sm:$0xff]   ;;  %v2751_v41 = vld [vmem:[%s4329_s0 + $0x438] ss:$20 sps:$4 sm:$0xff]   ;;  %v2854_v44 = vld [vmem:[%s4328_s1 + $0x100] sm:$0xff]  }
   0xf   :  { %1407 = vmatprep.subr.bf16.mxu0 %v2966_v0  ;;  %2676 = vmatprep.subr.bf16.mxu1 %v2966_v0  ;;  %v2752_v42 = vld [vmem:[%s4328_s1 + $0x88] sm:$0xff]   ;;  %v2754_v43 = vld [vmem:[%s4329_s0 + $0xa4] ss:$20 sps:$4 sm:$0xff]   ;;  %v2758_v47 = vld [vmem:[%s4329_s0 + $0xa0] ss:$20 sps:$4 sm:$0xff]  }
  0x10   :  { %v2756_v45 = vld [vmem:[%s4329_s0 + $0x464] ss:$20 sps:$4 sm:$0xff]   ;;  %v2759_v48 = vld [vmem:[%s4329_s0 + $0x460] ss:$20 sps:$4 sm:$0xff]   ;;  %v2766_v53 = vld [vmem:[%s4329_s0 + $0xc8] ss:$20 sps:$4 sm:$0xff]  }
  0x11   :  { %v2753_v46 = vld [vmem:[%s4328_s1 + $0x80] sm:$0xff]   ;;  %v2760_v49 = vld [vmem:[%s4328_s1 + $0xf8] sm:$0xff]   ;;  %v2761_v52 = vld [vmem:[%s4328_s1 + $0xf0] sm:$0xff]  }
  0x12   :  { %1408 = vmatpush1.bf16.msra.mxu0 %v2709_v5  ;;  %2692 = vmatpush1.bf16.msra.mxu1 %v2709_v5  ;;  %v2762_v50 = vld [vmem:[%s4329_s0 + $0xcc] ss:$20 sps:$4 sm:$0xff]   ;;  %v2767_v54 = vld [vmem:[%s4329_s0 + $0x488] ss:$20 sps:$4 sm:$0xff]   ;;  %v2774_v59 = vld [vmem:[%s4329_s0 + $0xf0] ss:$20 sps:$4 sm:$0xff]  }
  0x13   :  { %1409 = vmatprep.subr.bf16.mxu0 %v2966_v0  ;;  %2677 = vmatprep.subr.bf16.mxu1 %v2966_v0  ;;  %v2764_v51 = vld [vmem:[%s4329_s0 + $0x48c] ss:$20 sps:$4 sm:$0xff]   ;;  %v2770_v56 = vld [vmem:[%s4329_s0 + $0xf4] ss:$20 sps:$4 sm:$0xff]   ;;  %v2775_v60 = vld [vmem:[%s4329_s0 + $0x4b0] ss:$20 sps:$4 sm:$0xff]  }
  0x14   :  { %v2768_v55 = vld [vmem:[%s4328_s1 + $0xe8] sm:$0xff]   ;;  %v2769_v58 = vld [vmem:[%s4328_s1 + $0xe0] sm:$0xff]   ;;  %v2777_v61 = vld [vmem:[%s4328_s1 + $0xd8] sm:$0xff]  }
  0x15   :  { %v2772_v57 = vld [vmem:[%s4329_s0 + $0x4b4] ss:$20 sps:$4 sm:$0xff]   ;;  %v2779_v62 = vld [vmem:[%s4329_s0 + $0x11c] ss:$20 sps:$4 sm:$0xff]   ;;  %v2783_v2 = vld [vmem:[%s4329_s0 + $0x118] ss:$20 sps:$4 sm:$0xff]  }
  0x16   :  { %1410 = vmatpush1.bf16.msra.mxu0 %v2710_v7  ;;  %2693 = vmatpush1.bf16.msra.mxu1 %v2710_v7  ;;  %v2781_v63 = vld [vmem:[%s4329_s0 + $0x4dc] ss:$20 sps:$4 sm:$0xff]   ;;  %v2784_v3 = vld [vmem:[%s4329_s0 + $0x4d8] ss:$20 sps:$4 sm:$0xff]   ;;  %v2786_v7 = vld [vmem:[%s4328_s1 + $0xc0] sm:$0xff]  }
  0x17   :  { %1411 = vmatprep.subr.bf16.mxu0 %v2966_v0  ;;  %2678 = vmatprep.subr.bf16.mxu1 %v2966_v0  ;;  %v2778_v1 = vld [vmem:[%s4328_s1 + $0xd0] sm:$0xff]   ;;  %v2785_v4 = vld [vmem:[%s4328_s1 + $0xc8] sm:$0xff]   ;;  %v2787_v5 = vld [vmem:[%s4329_s0 + $0x144] ss:$20 sps:$4 sm:$0xff]  }
  0x18   :  { %v2791_v6 = vld [vmem:[%s4329_s0 + $0xc] ss:$20 sps:$4 sm:$0xff]   ;;  %v2789_v8 = vld [vmem:[%s4329_s0 + $0x8] ss:$20 sps:$4 sm:$0xff]  }
  0x1a   :  { %1412 = vmatpush1.bf16.msra.mxu0 %v2711_v9  ;;  %2694 = vmatpush1.bf16.msra.mxu1 %v2711_v9  ;;  %v2792_v9 = vld [vmem:[%s4329_s0 + $0x140] ss:$20 sps:$4 sm:$0xff]  }
  0x1b   :  { %1413 = vmatprep.subr.bf16.mxu0 %v2966_v0  ;;  %2679 = vmatprep.subr.bf16.mxu1 %v2966_v0 }
  0x1e   :  { %1414 = vmatpush1.bf16.msra.mxu0 %v2712_v10  ;;  %2695 = vmatpush1.bf16.msra.mxu1 %v2712_v10  ;;  %v2793_v10 = vld [vmem:[%s4329_s0 + $0x16c] ss:$20 sps:$4 sm:$0xff]  }
  0x1f   :  { %1415 = vmatprep.subr.bf16.mxu0 %v2966_v0  ;;  %2680 = vmatprep.subr.bf16.mxu1 %v2966_v0 }
  0x22   :  { %1416 = vmatpush2.bf16.msra.mxu0 %v2713_v11  ;;  %2696 = vmatpush2.bf16.msra.mxu1 %v2713_v11  ;;  %v2795_v11 = vld [vmem:[%s4329_s0 + $0x34] ss:$20 sps:$4 sm:$0xff]  }
  0x23   :  { %1417 = vmatprep.subr.bf16.mxu0 %v2966_v0  ;;  %2681 = vmatprep.subr.bf16.mxu1 %v2966_v0 }
  0x26   :  { %1418 = vmatpush2.bf16.msra.mxu0 %v2714_v12  ;;  %2697 = vmatpush2.bf16.msra.mxu1 %v2714_v12  ;;  %v2798_v12 = vld [vmem:[%s4329_s0 + $0x30] ss:$20 sps:$4 sm:$0xff]  }
  0x27   :  { %1419 = vmatprep.subr.bf16.mxu0 %v2966_v0  ;;  %2682 = vmatprep.subr.bf16.mxu1 %v2966_v0 }
  0x2a   :  { %1420 = vmatpush2.bf16.msra.mxu0 %v2715_v13  ;;  %2698 = vmatpush2.bf16.msra.mxu1 %v2715_v13  ;;  %v2799_v13 = vld [vmem:[%s4329_s0 + $0x194] ss:$20 sps:$4 sm:$0xff]  }
  0x2b   :  { %1421 = vmatprep.subr.bf16.mxu0 %v2966_v0  ;;  %2683 = vmatprep.subr.bf16.mxu1 %v2966_v0 }
  0x2e   :  { %1422 = vmatpush2.bf16.msra.mxu0 %v2716_v14  ;;  %2699 = vmatpush2.bf16.msra.mxu1 %v2716_v14  ;;  %v2801_v14 = vld [vmem:[%s4329_s0 + $0x5c] ss:$20 sps:$4 sm:$0xff]  }
  0x2f   :  { %1423 = vmatprep.subr.bf16.mxu0 %v2966_v0  ;;  %2684 = vmatprep.subr.bf16.mxu1 %v2966_v0 }
  0x32   :  { %1424 = vmatpush2.bf16.msra.mxu0 %v2717_v15  ;;  %2700 = vmatpush2.bf16.msra.mxu1 %v2717_v15  ;;  %v2803_v15 = vld [vmem:[%s4329_s0 + $0x190] ss:$20 sps:$4 sm:$0xff]  }
  0x33   :  { %1425 = vmatprep.subr.bf16.mxu0 %v2966_v0  ;;  %2685 = vmatprep.subr.bf16.mxu1 %v2966_v0 }
  0x36   :  { %1426 = vmatpush2.bf16.msra.mxu0 %v2718_v16  ;;  %2701 = vmatpush2.bf16.msra.mxu1 %v2718_v16  ;;  %v2804_v16 = vld [vmem:[%s4329_s0 + $0x58] ss:$20 sps:$4 sm:$0xff]  }
  0x37   :  { %1427 = vmatprep.subr.bf16.mxu0 %v2966_v0  ;;  %2686 = vmatprep.subr.bf16.mxu1 %v2966_v0 }
  0x3a   :  { %1428 = vmatpush2.bf16.msra.mxu0 %v2719_v17  ;;  %2702 = vmatpush2.bf16.msra.mxu1 %v2719_v17  ;;  %v2805_v17 = vld [vmem:[%s4329_s0 + $0x1bc] ss:$20 sps:$4 sm:$0xff]  }
  0x3b   :  { %1429 = vmatprep.subr.bf16.mxu0 %v2966_v0  ;;  %2687 = vmatprep.subr.bf16.mxu1 %v2966_v0 }
  0x3e   :  { %1430 = vmatpush2.bf16.msra.mxu0 %v2720_v18  ;;  %2703 = vmatpush2.bf16.msra.mxu1 %v2720_v18  ;;  %v2807_v18 = vld [vmem:[%s4329_s0 + $0x84] ss:$20 sps:$4 sm:$0xff]  }
  0x3f   :  { %1688 = vmatprep.subr.bf16.mxu1 %v2966_v0  ;;  %2600 = vmatprep.subr.bf16.mxu0 %v2727_v19 }
  0x41   :  { %1432 = vmatmul.mubr.bf16.vlgmr.msra.gmra.mxu0 %v2721_v20  ;;  %1624 = vmatmul.mubr.bf16.vlgmr.msra.gmra.mxu1 %v2724_v21  ;;  %v2810_v20 = vld [vmem:[%s4329_s0 + $0x80] ss:$20 sps:$4 sm:$0xff]   ;;  %v2811_v21 = vld [vmem:[%s4329_s0 + $0x1e4] ss:$20 sps:$4 sm:$0xff]  }
  0x42   :  { %1689 = vmatpush1.bf16.msra.mxu1 %v2728_v22  ;;  %2601 = vmatpush3.bf16.msra.mxu0 %v2727_v19  ;;  %v2809_v19 = vld [vmem:[%s4329_s0 + $0x1b8] ss:$20 sps:$4 sm:$0xff]  }
  0x43   :  { %1690 = vmatprep.subr.bf16.mxu1 %v2966_v0  ;;  %1439 = vmatprep.mubr.bf16.mxu0 %v2730_v23  ;;  %v2813_v22 = vld [vmem:[%s4329_s0 + $0xac] ss:$20 sps:$4 sm:$0xff]  }
  0x44   :  { %1631 = vmatprep.mubr.bf16.mxu1 %v2732_v24  ;;  %2602 = vmatprep.subr.bf16.mxu0 %v2776_v25  ;;  %v2815_v23 = vld [vmem:[%s4329_s0 + $0x1e0] ss:$20 sps:$4 sm:$0xff]   ;;  %v2816_v24 = vld [vmem:[%s4329_s0 + $0xa8] ss:$20 sps:$4 sm:$0xff]  }
  0x46   :  { %1691 = vmatpush1.bf16.msra.mxu1 %v2729_v26  ;;  %2603 = vmatpush3.bf16.msra.mxu0 %v2776_v25  ;;  %v2818_v25 = vld [vmem:[%s4329_s0 + $0x20c] ss:$20 sps:$4 sm:$0xff]   ;;  %v2820_v26 = vld [vmem:[%s4329_s0 + $0xd4] ss:$20 sps:$4 sm:$0xff]  }
  0x47   :  { %1692 = vmatprep.subr.bf16.mxu1 %v2966_v0  ;;  %2604 = vmatprep.subr.bf16.mxu0 %v2817_v30 }
  0x49   :  { %1440 = vmatmul.mubr.bf16.gmra.mxu0 %v2734_v27  ;;  %1632 = vmatmul.mubr.bf16.gmra.mxu1 %v2735_v28  ;;  %v2822_v27 = vld [vmem:[%s4329_s0 + $0x208] ss:$20 sps:$4 sm:$0xff]   ;;  %v2823_v28 = vld [vmem:[%s4329_s0 + $0xd0] ss:$20 sps:$4 sm:$0xff]  }
  0x4a   :  { %1693 = vmatpush1.bf16.msra.mxu1 %v2736_v29  ;;  %1447 = vmatprep.mubr.bf16.mxu0 %v2738_v31  ;;  %v2824_v29 = vld [vmem:[%s4329_s0 + $0x234] ss:$20 sps:$4 sm:$0xff]   ;;  %v2828_v31 = vld [vmem:[%s4329_s0 + $0x230] ss:$20 sps:$4 sm:$0xff]  }
  0x4b   :  { %1694 = vmatprep.subr.bf16.mxu1 %v2966_v0  ;;  %1639 = vmatprep.mubr.bf16.mxu1 %v2740_v32  ;;  %v2829_v32 = vld [vmem:[%s4329_s0 + $0xf8] ss:$20 sps:$4 sm:$0xff]  }
  0x4c   :  { %2605 = vmatpush3.bf16.msra.mxu0 %v2817_v30  ;;  %v2826_v30 = vld [vmem:[%s4329_s0 + $0xfc] ss:$20 sps:$4 sm:$0xff]  }
  0x4d   :  { %2606 = vmatprep.subr.bf16.mxu0 %v2854_v44 }
  0x4e   :  { %1695 = vmatpush1.bf16.msra.mxu1 %v2737_v33  ;;  %v2830_v33 = vld [vmem:[%s4329_s0 + $0x25c] ss:$20 sps:$4 sm:$0xff]  }
  0x4f   :  { %1696 = vmatprep.subr.bf16.mxu1 %v2966_v0 }
  0x50   :  { %2607 = vmatpush3.bf16.msra.mxu0 %v2854_v44  ;;  %v2847_v44 = vld [vmem:[%s4329_s0 + $0x170] ss:$20 sps:$4 sm:$0xff]  }
  0x51   :  { %1448 = vmatmul.mubr.bf16.gmra.mxu0 %v2742_v34  ;;  %1640 = vmatmul.mubr.bf16.gmra.mxu1 %v2743_v35  ;;  %v2832_v34 = vld [vmem:[%s4329_s0 + $0x124] ss:$20 sps:$4 sm:$0xff]  }
  0x52   :  { %1697 = vmatpush1.bf16.msra.mxu1 %v2744_v36  ;;  %1455 = vmatprep.mubr.bf16.mxu0 %v2746_v37  ;;  %v2834_v35 = vld [vmem:[%s4329_s0 + $0x258] ss:$20 sps:$4 sm:$0xff]   ;;  %v2835_v36 = vld [vmem:[%s4329_s0 + $0x120] ss:$20 sps:$4 sm:$0xff]  }
  0x53   :  { %1698 = vmatprep.subr.bf16.mxu1 %v2966_v0  ;;  %1647 = vmatprep.mubr.bf16.mxu1 %v2748_v38  ;;  %v2836_v37 = vld [vmem:[%s4329_s0 + $0x284] ss:$20 sps:$4 sm:$0xff]   ;;  %v2838_v38 = vld [vmem:[%s4329_s0 + $0x14c] ss:$20 sps:$4 sm:$0xff]  }
  0x56   :  { %1699 = vmatpush1.bf16.msra.mxu1 %v2745_v39  ;;  %v2840_v39 = vld [vmem:[%s4329_s0 + $0x280] ss:$20 sps:$4 sm:$0xff]  }
  0x57   :  { %1700 = vmatprep.subr.bf16.mxu1 %v2966_v0 }
  0x59   :  { %1456 = vmatmul.mubr.bf16.gmra.mxu0 %v2750_v40  ;;  %1648 = vmatmul.mubr.bf16.gmra.mxu1 %v2751_v41  ;;  %v2841_v40 = vld [vmem:[%s4329_s0 + $0x148] ss:$20 sps:$4 sm:$0xff]   ;;  %v2842_v41 = vld [vmem:[%s4329_s0 + $0x2ac] ss:$20 sps:$4 sm:$0xff]  }
  0x5a   :  { %1701 = vmatpush1.bf16.msra.mxu1 %v2752_v42  ;;  %1463 = vmatprep.mubr.bf16.mxu0 %v2754_v43  ;;  %v2844_v42 = vld [vmem:[%s4329_s0 + $0x174] ss:$20 sps:$4 sm:$0xff]  }
  0x5b   :  { %1702 = vmatprep.subr.bf16.mxu1 %v2966_v0  ;;  %1655 = vmatprep.mubr.bf16.mxu1 %v2756_v45  ;;  %v2846_v43 = vld [vmem:[%s4329_s0 + $0x2a8] ss:$20 sps:$4 sm:$0xff]  }
  0x5c   :  { %v2848_v45 = vld [vmem:[%s4329_s0 + $0x2d4] ss:$20 sps:$4 sm:$0xff]  }
  0x5e   :  { %1703 = vmatpush1.bf16.msra.mxu1 %v2753_v46  ;;  %v2850_v46 = vld [vmem:[%s4329_s0 + $0x19c] ss:$20 sps:$4 sm:$0xff]  }
  0x5f   :  { %1704 = vmatprep.subr.bf16.mxu1 %v2966_v0 }
  0x61   :  { %1464 = vmatmul.mubr.bf16.gmra.mxu0 %v2758_v47  ;;  %1656 = vmatmul.mubr.bf16.gmra.mxu1 %v2759_v48  ;;  %v2852_v47 = vld [vmem:[%s4329_s0 + $0x2d0] ss:$20 sps:$4 sm:$0xff]   ;;  %v2853_v48 = vld [vmem:[%s4329_s0 + $0x198] ss:$20 sps:$4 sm:$0xff]  }
  0x62   :  { %1705 = vmatpush2.bf16.msra.mxu1 %v2760_v49  ;;  %1471 = vmatprep.mubr.bf16.mxu0 %v2762_v50  ;;  %v2855_v49 = vld [vmem:[%s4329_s0 + $0x2fc] ss:$20 sps:$4 sm:$0xff]   ;;  %v2857_v50 = vld [vmem:[%s4329_s0 + $0x1c4] ss:$20 sps:$4 sm:$0xff]  }
  0x63   :  { %1706 = vmatprep.subr.bf16.mxu1 %v2966_v0  ;;  %1663 = vmatprep.mubr.bf16.mxu1 %v2764_v51  ;;  %v2859_v51 = vld [vmem:[%s4329_s0 + $0x2f8] ss:$20 sps:$4 sm:$0xff]  }
  0x66   :  { %1707 = vmatpush2.bf16.msra.mxu1 %v2761_v52  ;;  %v2860_v52 = vld [vmem:[%s4329_s0 + $0x1c0] ss:$20 sps:$4 sm:$0xff]  }
  0x67   :  { %1708 = vmatprep.subr.bf16.mxu1 %v2966_v0 }
  0x69   :  { %1472 = vmatmul.mubr.bf16.gmra.mxu0 %v2766_v53  ;;  %1664 = vmatmul.mubr.bf16.gmra.mxu1 %v2767_v54  ;;  %v2861_v53 = vld [vmem:[%s4329_s0 + $0x324] ss:$20 sps:$4 sm:$0xff]   ;;  %v2863_v54 = vld [vmem:[%s4329_s0 + $0x1ec] ss:$20 sps:$4 sm:$0xff]  }
  0x6a   :  { %1709 = vmatpush2.bf16.msra.mxu1 %v2768_v55  ;;  %1479 = vmatprep.mubr.bf16.mxu0 %v2770_v56  ;;  %v2865_v55 = vld [vmem:[%s4329_s0 + $0x320] ss:$20 sps:$4 sm:$0xff]   ;;  %v2866_v56 = vld [vmem:[%s4329_s0 + $0x1e8] ss:$20 sps:$4 sm:$0xff]  }
  0x6b   :  { %1710 = vmatprep.subr.bf16.mxu1 %v2966_v0  ;;  %1671 = vmatprep.mubr.bf16.mxu1 %v2772_v57  ;;  %v2867_v57 = vld [vmem:[%s4329_s0 + $0x34c] ss:$20 sps:$4 sm:$0xff]  }
  0x6e   :  { %1711 = vmatpush2.bf16.msra.mxu1 %v2769_v58  ;;  %v2869_v58 = vld [vmem:[%s4329_s0 + $0x214] ss:$20 sps:$4 sm:$0xff]  }
  0x6f   :  { %1712 = vmatprep.subr.bf16.mxu1 %v2966_v0 }
  0x71   :  { %1480 = vmatmul.mubr.bf16.gmra.mxu0 %v2774_v59  ;;  %1672 = vmatmul.mubr.bf16.gmra.mxu1 %v2775_v60  ;;  %v2871_v59 = vld [vmem:[%s4329_s0 + $0x348] ss:$20 sps:$4 sm:$0xff]   ;;  %v2872_v60 = vld [vmem:[%s4329_s0 + $0x210] ss:$20 sps:$4 sm:$0xff]  }
  0x72   :  { %1713 = vmatpush2.bf16.msra.mxu1 %v2777_v61  ;;  %1487 = vmatprep.mubr.bf16.mxu0 %v2779_v62  ;;  %v2873_v61 = vld [vmem:[%s4329_s0 + $0x374] ss:$20 sps:$4 sm:$0xff]   ;;  %v2875_v62 = vld [vmem:[%s4329_s0 + $0x23c] ss:$20 sps:$4 sm:$0xff]  }
  0x73   :  { %1714 = vmatprep.subr.bf16.mxu1 %v2966_v0  ;;  %1679 = vmatprep.mubr.bf16.mxu1 %v2781_v63  ;;  %v2877_v63 = vld [vmem:[%s4329_s0 + $0x370] ss:$20 sps:$4 sm:$0xff]  }
  0x76   :  { %1715 = vmatpush2.bf16.msra.mxu1 %v2778_v1  ;;  %v2878_v1 = vld [vmem:[%s4329_s0 + $0x238] ss:$20 sps:$4 sm:$0xff]  }
  0x77   :  { %1716 = vmatprep.subr.bf16.mxu1 %v2966_v0 }
  0x79   :  { %1488 = vmatmul.mubr.bf16.gmra.mxu0 %v2783_v2  ;;  %1680 = vmatmul.mubr.bf16.gmra.mxu1 %v2784_v3  ;;  %v2879_v2 = vld [vmem:[%s4329_s0 + $0x39c] ss:$20 sps:$4 sm:$0xff]   ;;  %v2881_v3 = vld [vmem:[%s4329_s0 + $0x264] ss:$20 sps:$4 sm:$0xff]  }
  0x7a   :  { %1717 = vmatpush2.bf16.msra.mxu1 %v2785_v4  ;;  %1495 = vmatprep.mubr.bf16.mxu0 %v2787_v5  ;;  %v2883_v4 = vld [vmem:[%s4329_s0 + $0x398] ss:$20 sps:$4 sm:$0xff]   ;;  %v2884_v5 = vld [vmem:[%s4329_s0 + $0x260] ss:$20 sps:$4 sm:$0xff]  }
  0x7b   :  { %1718 = vmatprep.subr.bf16.mxu1 %v2966_v0  ;;  %1720 = vmatprep.mubr.bf16.mxu1 %v2791_v6  ;;  %v2797_v0 = vld [vmem:[%s4329_s0 + $0x168] ss:$20 sps:$4 sm:$0xff]   ;;  %v2885_v6 = vld [vmem:[%s4329_s0 + $0x28c] ss:$20 sps:$4 sm:$0xff]  }
  0x7e   :  { %1719 = vmatpush2.bf16.msra.mxu1 %v2786_v7  ;;  %v2887_v7 = vld [vmem:[%s4329_s0 + $0x10] ss:$20 sps:$4 sm:$0xff]  }
  0x81   :  { %1496 = vmatmul.mubr.bf16.gmra.mxu0 %v2792_v9  ;;  %1721 = vmatmul.mubr.bf16.vlgmr.msra.gmra.mxu1 %v2789_v8  ;;  %v2888_v8 = vld [vmem:[%s4329_s0 + $0x288] ss:$20 sps:$4 sm:$0xff]   ;;  %v2889_v9 = vld [vmem:[%s4329_s0 + $0x38] ss:$20 sps:$4 sm:$0xff]  }
  0x82   :  { %1503 = vmatprep.mubr.bf16.mxu0 %v2793_v10  ;;  %1728 = vmatprep.mubr.bf16.mxu1 %v2795_v11  ;;  %v2890_v10 = vld [vmem:[%s4329_s0 + $0x2b4] ss:$20 sps:$4 sm:$0xff]  }
  0x83   :  { %v2892_v11 = vld [vmem:[%s4329_s0 + $0x60] ss:$20 sps:$4 sm:$0xff]  }
  0x89   :  { %1504 = vmatmul.mubr.bf16.gmra.mxu0 %v2797_v0  ;;  %1729 = vmatmul.mubr.bf16.gmra.mxu1 %v2798_v12 }
  0x8a   :  { %1511 = vmatprep.mubr.bf16.mxu0 %v2799_v13  ;;  %1736 = vmatprep.mubr.bf16.mxu1 %v2801_v14 }
  0x91   :  { %1512 = vmatmul.mubr.bf16.gmra.mxu0 %v2803_v15  ;;  %1737 = vmatmul.mubr.bf16.gmra.mxu1 %v2804_v16 }
  0x92   :  { %1519 = vmatprep.mubr.bf16.mxu0 %v2805_v17  ;;  %1744 = vmatprep.mubr.bf16.mxu1 %v2807_v18  ;;  %v2893_v17 = vld [vmem:[%s4329_s0 + $0x2b0] ss:$20 sps:$4 sm:$0xff]   ;;  %v2894_v18 = vld [vmem:[%s4329_s0 + $0x88] ss:$20 sps:$4 sm:$0xff]  }
  0x99   :  { %1520 = vmatmul.mubr.bf16.gmra.mxu0 %v2809_v19  ;;  %1745 = vmatmul.mubr.bf16.gmra.mxu1 %v2810_v20  ;;  %v2895_v19 = vld [vmem:[%s4329_s0 + $0x2dc] ss:$20 sps:$4 sm:$0xff]  }
  0x9a   :  { %1527 = vmatprep.mubr.bf16.mxu0 %v2811_v21  ;;  %1752 = vmatprep.mubr.bf16.mxu1 %v2813_v22  ;;  %v2897_v20 = vld [vmem:[%s4329_s0 + $0xb0] ss:$20 sps:$4 sm:$0xff]  }
  0xa1   :  { %1528 = vmatmul.mubr.bf16.gmra.mxu0 %v2815_v23  ;;  %1753 = vmatmul.mubr.bf16.gmra.mxu1 %v2816_v24 }
  0xa2   :  { %1535 = vmatprep.mubr.bf16.mxu0 %v2818_v25  ;;  %1760 = vmatprep.mubr.bf16.mxu1 %v2820_v26 }
  0xa9   :  { %1536 = vmatmul.mubr.bf16.gmra.mxu0 %v2822_v27  ;;  %1761 = vmatmul.mubr.bf16.gmra.mxu1 %v2823_v28 }
  0xaa   :  { %1543 = vmatprep.mubr.bf16.mxu0 %v2824_v29  ;;  %1768 = vmatprep.mubr.bf16.mxu1 %v2826_v30  ;;  %v2898_v29 = vld [vmem:[%s4329_s0 + $0x2d8] ss:$20 sps:$4 sm:$0xff]  }
  0xab   :  { %v2899_v30 = vld [vmem:[%s4329_s0 + $0xd8] ss:$20 sps:$4 sm:$0xff]  }
  0xb1   :  { %1544 = vmatmul.mubr.bf16.gmra.mxu0 %v2828_v31  ;;  %1769 = vmatmul.mubr.bf16.gmra.mxu1 %v2829_v32  ;;  %v2900_v31 = vld [vmem:[%s4329_s0 + $0x304] ss:$20 sps:$4 sm:$0xff]   ;;  %v2902_v32 = vld [vmem:[%s4329_s0 + $0x100] ss:$20 sps:$4 sm:$0xff]  }
  0xb2   :  { %1551 = vmatprep.mubr.bf16.mxu0 %v2830_v33  ;;  %1776 = vmatprep.mubr.bf16.mxu1 %v2832_v34 }
  0xb9   :  { %1552 = vmatmul.mubr.bf16.gmra.mxu0 %v2834_v35  ;;  %1777 = vmatmul.mubr.bf16.gmra.mxu1 %v2835_v36 }
  0xba   :  { %1559 = vmatprep.mubr.bf16.mxu0 %v2836_v37  ;;  %1784 = vmatprep.mubr.bf16.mxu1 %v2838_v38 }
  0xc1   :  { %1560 = vmatmul.mubr.bf16.gmra.mxu0 %v2840_v39  ;;  %1785 = vmatmul.mubr.bf16.gmra.mxu1 %v2841_v40 }
  0xc2   :  { %1567 = vmatprep.mubr.bf16.mxu0 %v2842_v41  ;;  %1792 = vmatprep.mubr.bf16.mxu1 %v2844_v42  ;;  %v2903_v41 = vld [vmem:[%s4329_s0 + $0x300] ss:$20 sps:$4 sm:$0xff]   ;;  %v2904_v42 = vld [vmem:[%s4329_s0 + $0x128] ss:$20 sps:$4 sm:$0xff]  }
  0xc9   :  { %1568 = vmatmul.mubr.bf16.gmra.mxu0 %v2846_v43  ;;  %1793 = vmatmul.mubr.bf16.gmra.mxu1 %v2847_v44  ;;  %v2907_v43 = vld [vmem:[%s4329_s0 + $0x32c] ss:$20 sps:$4 sm:$0xff]   ;;  %v2908_v44 = vld [vmem:[%s4329_s0 + $0x150] ss:$20 sps:$4 sm:$0xff]  }
  0xca   :  { %1575 = vmatprep.mubr.bf16.mxu0 %v2848_v45  ;;  %1800 = vmatprep.mubr.bf16.mxu1 %v2850_v46 }
  0xd1   :  { %1576 = vmatmul.mubr.bf16.gmra.mxu0 %v2852_v47  ;;  %1801 = vmatmul.mubr.bf16.gmra.mxu1 %v2853_v48 }
  0xd2   :  { %1583 = vmatprep.mubr.bf16.mxu0 %v2855_v49  ;;  %1808 = vmatprep.mubr.bf16.mxu1 %v2857_v50 }
  0xd9   :  { %1584 = vmatmul.mubr.bf16.gmra.mxu0 %v2859_v51  ;;  %1809 = vmatmul.mubr.bf16.gmra.mxu1 %v2860_v52 }
  0xda   :  { %1591 = vmatprep.mubr.bf16.mxu0 %v2861_v53  ;;  %1816 = vmatprep.mubr.bf16.mxu1 %v2863_v54  ;;  %v2905_v53 = vld [vmem:[%s4329_s0 + $0x328] ss:$20 sps:$4 sm:$0xff]   ;;  %v2909_v54 = vld [vmem:[%s4329_s0 + $0x178] ss:$20 sps:$4 sm:$0xff]  }
  0xe1   :  { %1592 = vmatmul.mubr.bf16.gmra.mxu0 %v2865_v55  ;;  %1817 = vmatmul.mubr.bf16.gmra.mxu1 %v2866_v56  ;;  %v2912_v55 = vld [vmem:[%s4329_s0 + $0x354] ss:$20 sps:$4 sm:$0xff]  }
  0xe2   :  { %1599 = vmatprep.mubr.bf16.mxu0 %v2867_v57  ;;  %1824 = vmatprep.mubr.bf16.mxu1 %v2869_v58  ;;  %v2913_v56 = vld [vmem:[%s4329_s0 + $0x1a0] ss:$20 sps:$4 sm:$0xff]  }
  0xe9   :  { %1600 = vmatmul.mubr.bf16.gmra.mxu0 %v2871_v59  ;;  %1825 = vmatmul.mubr.bf16.gmra.mxu1 %v2872_v60 }
  0xea   :  { %1607 = vmatprep.mubr.bf16.mxu0 %v2873_v61  ;;  %1832 = vmatprep.mubr.bf16.mxu1 %v2875_v62 }
  0xf1   :  { %1608 = vmatmul.mubr.bf16.gmra.mxu0 %v2877_v63  ;;  %1833 = vmatmul.mubr.bf16.gmra.mxu1 %v2878_v1 }
  0xf2   :  { %1615 = vmatprep.mubr.bf16.mxu0 %v2879_v2  ;;  %1840 = vmatprep.mubr.bf16.mxu1 %v2881_v3  ;;  %v2910_v2 = vld [vmem:[%s4329_s0 + $0x350] ss:$20 sps:$4 sm:$0xff]   ;;  %v2914_v3 = vld [vmem:[%s4329_s0 + $0x1c8] ss:$20 sps:$4 sm:$0xff]  }
  0xf9   :  { %1616 = vmatmul.mubr.bf16.gmra.mxu0 %v2883_v4  ;;  %1841 = vmatmul.mubr.bf16.gmra.mxu1 %v2884_v5  ;;  %v2917_v4 = vld [vmem:[%s4329_s0 + $0x37c] ss:$20 sps:$4 sm:$0xff]  }
  0xfa   :  { %1848 = vmatprep.mubr.bf16.mxu1 %v2885_v6  ;;  %2608 = vmatprep.mubr.msk.bf16.mxu0 %vm1302_vm0, %v2887_v7  ;;  %v2918_v5 = vld [vmem:[%s4329_s0 + $0x1f0] ss:$20 sps:$4 sm:$0xff]  }
 0x101   :  { %v3450_v0 = vpop.f32.mrf.mxu0  ;;  %v3452_v12 = vpop.f32.mrf.mxu1  ;;  %1849 = vmatmul.mubr.bf16.gmra.mxu1 %v2888_v8  ;;  %2609 = vmatmul.mubr.msk.bf16.vlgmr.msra.gmra.mxu0 %vm1302_vm0, %v2889_v9 }
 0x102   :  { %1856 = vmatprep.mubr.bf16.mxu1 %v2890_v10  ;;  %2612 = vmatprep.mubr.msk.bf16.mxu0 %vm1302_vm0, %v2892_v11 }
 0x103   :  { %v1435_v13 = vpop.f32.mrf.mxu0  ;;  %v1627_v14 = vpop.f32.mrf.mxu1 }
 0x105   :  { %v3456_v15 = vpop.f32.mrf.mxu0  ;;  %v3458_v16 = vpop.f32.mrf.mxu1 }
 0x106   :  { %4332 = vst [vmem:[#allocation2_spill] sm:$0xff] %v3458_v16 }
 0x107   :  { %v1438_v21 = vpop.f32.mrf.mxu0  ;;  %v1630_v22 = vpop.f32.mrf.mxu1 }
 0x109   :  { %v3472_v23 = vpop.f32.mrf.mxu0  ;;  %v3474_v24 = vpop.f32.mrf.mxu1  ;;  %1857 = vmatmul.mubr.bf16.gmra.mxu1 %v2893_v17  ;;  %2613 = vmatmul.mubr.msk.bf16.gmra.mxu0 %vm1302_vm0, %v2894_v18  ;;  %v2915_v17 = vld [vmem:[%s4329_s0 + $0x378] ss:$20 sps:$4 sm:$0xff]  }
 0x10a   :  { %1864 = vmatprep.mubr.bf16.mxu1 %v2895_v19  ;;  %2616 = vmatprep.mubr.msk.bf16.mxu0 %vm1302_vm0, %v2897_v20  ;;  %v2919_v18 = vld [vmem:[%s4329_s0 + $0x218] ss:$20 sps:$4 sm:$0xff]   ;;  %v2923_v20 = vld [vmem:[%s4329_s0 + $0x240] ss:$20 sps:$4 sm:$0xff]  }
 0x10b   :  { %v1443_v25 = vpop.f32.mrf.mxu0  ;;  %v1635_v26 = vpop.f32.mrf.mxu1  ;;  %v2922_v19 = vld [vmem:[%s4329_s0 + $0x3a4] ss:$20 sps:$4 sm:$0xff]  }
 0x10d   :  { %v3478_v27 = vpop.f32.mrf.mxu0  ;;  %v3480_v28 = vpop.f32.mrf.mxu1 }
 0x10e   :  { %4333 = vst [vmem:[#allocation3_spill] sm:$0xff] %v3480_v28 }
 0x10f   :  { %v1446_v33 = vpop.f32.mrf.mxu0  ;;  %v1638_v34 = vpop.f32.mrf.mxu1 }
 0x110   :  { %v2920_v33 = vld [vmem:[%s4329_s0 + $0x3a0] ss:$20 sps:$4 sm:$0xff]   ;;  %v2924_v34 = vld [vmem:[%s4329_s0 + $0x268] ss:$20 sps:$4 sm:$0xff]  }
 0x111   :  { %v3494_v35 = vpop.f32.mrf.mxu0  ;;  %v3496_v36 = vpop.f32.mrf.mxu1  ;;  %1865 = vmatmul.mubr.bf16.gmra.mxu1 %v2898_v29  ;;  %2617 = vmatmul.mubr.msk.bf16.gmra.mxu0 %vm1302_vm0, %v2899_v30 }
 0x112   :  { %4334 = vst [vmem:[#allocation4_spill] sm:$0xff] %v3496_v36  ;;  %1872 = vmatprep.mubr.bf16.mxu1 %v2900_v31  ;;  %2620 = vmatprep.mubr.msk.bf16.mxu0 %vm1302_vm0, %v2902_v32 }
 0x113   :  { %v1451_v37 = vpop.f32.mrf.mxu0  ;;  %v1643_v38 = vpop.f32.mrf.mxu1 }
 0x114   :  { %v2927_v37 = vld [vmem:[%s4329_s0 + $0x3cc] ss:$20 sps:$4 sm:$0xff]   ;;  %v2928_v38 = vld [vmem:[%s4329_s0 + $0x290] ss:$20 sps:$4 sm:$0xff]  }
 0x115   :  { %v3500_v39 = vpop.f32.mrf.mxu0  ;;  %v3502_v40 = vpop.f32.mrf.mxu1 }
 0x116   :  { %4335 = vst [vmem:[#allocation5_spill] sm:$0xff] %v3502_v40 }
 0x117   :  { %v1454_v45 = vpop.f32.mrf.mxu0  ;;  %v1646_v46 = vpop.f32.mrf.mxu1 }
 0x119   :  { %v3516_v47 = vpop.f32.mrf.mxu0  ;;  %v3518_v48 = vpop.f32.mrf.mxu1  ;;  %1873 = vmatmul.mubr.bf16.gmra.mxu1 %v2903_v41  ;;  %2621 = vmatmul.mubr.msk.bf16.gmra.mxu0 %vm1302_vm0, %v2904_v42 }
 0x11a   :  { %4336 = vst [vmem:[#allocation6_spill] sm:$0xff] %v3518_v48  ;;  %1880 = vmatprep.mubr.bf16.mxu1 %v2907_v43  ;;  %2624 = vmatprep.mubr.msk.bf16.mxu0 %vm1302_vm0, %v2908_v44 }
 0x11b   :  { %v1459_v49 = vpop.f32.mrf.mxu0  ;;  %v1651_v50 = vpop.f32.mrf.mxu1 }
 0x11c   :  { %v3613_v49 = vld [vmem:[%s4330_s2] ss:$0 sm:$0xff] }
 0x11d   :  { %v3522_v51 = vpop.f32.mrf.mxu0  ;;  %v3524_v52 = vpop.f32.mrf.mxu1 }
 0x11e   :  { %4337 = vst [vmem:[#allocation7_spill] sm:$0xff] %v3524_v52 }
 0x11f   :  { %v1462_v57 = vpop.f32.mrf.mxu0  ;;  %v1654_v58 = vpop.f32.mrf.mxu1 }
 0x120   :  { %v2933_v57 = vld [vmem:[%s4329_s0 + $0x2e0] ss:$20 sps:$4 sm:$0xff]  }
 0x121   :  { %v3538_v59 = vpop.f32.mrf.mxu0  ;;  %v3540_v60 = vpop.f32.mrf.mxu1  ;;  %1881 = vmatmul.mubr.bf16.gmra.mxu1 %v2905_v53  ;;  %2625 = vmatmul.mubr.msk.bf16.gmra.mxu0 %vm1302_vm0, %v2909_v54  ;;  %v2925_v54 = vld [vmem:[%s4329_s0 + $0x3c8] ss:$20 sps:$4 sm:$0xff]  }
 0x122   :  { %4338 = vst [vmem:[#allocation8_spill] sm:$0xff] %v3540_v60  ;;  %1888 = vmatprep.mubr.bf16.mxu1 %v2912_v55  ;;  %2628 = vmatprep.mubr.msk.bf16.mxu0 %vm1302_vm0, %v2913_v56  ;;  %v2929_v55 = vld [vmem:[%s4329_s0 + $0x2b8] ss:$20 sps:$4 sm:$0xff]   ;;  %v2932_v56 = vld [vmem:[%s4329_s0 + $0x3f4] ss:$20 sps:$4 sm:$0xff]  }
 0x123   :  { %v1467_v61 = vpop.f32.mrf.mxu0  ;;  %v1659_v62 = vpop.f32.mrf.mxu1 }
 0x124   :  { %v1434_v62 = vadd.f32 %v3613_v49, %v3450_v0  ;;  %v2930_v0 = vld [vmem:[%s4329_s0 + $0x3f0] ss:$20 sps:$4 sm:$0xff]  }
 0x125   :  { %v3544_v63 = vpop.f32.mrf.mxu0  ;;  %v3546_v1 = vpop.f32.mrf.mxu1 }
 0x126   :  { %4339 = vst [vmem:[#allocation9_spill] sm:$0xff] %v3546_v1 }
 0x127   :  { %v1470_v6 = vpop.f32.mrf.mxu0  ;;  %v1662_v7 = vpop.f32.mrf.mxu1 }
 0x128   :  { %v1437_v7 = vadd.f32 %v3613_v49, %v3456_v15  ;;  %v2938_v15 = vld [vmem:[%s4329_s0 + $0x330] ss:$20 sps:$4 sm:$0xff]  }
 0x129   :  { %v3560_v8 = vpop.f32.mrf.mxu0  ;;  %v3562_v9 = vpop.f32.mrf.mxu1  ;;  %1889 = vmatmul.mubr.bf16.gmra.mxu1 %v2910_v2  ;;  %2629 = vmatmul.mubr.msk.bf16.gmra.mxu0 %vm1302_vm0, %v2914_v3 }
 0x12a   :  { %4340 = vst [vmem:[#allocation10_spill] sm:$0xff] %v3562_v9  ;;  %1896 = vmatprep.mubr.bf16.mxu1 %v2917_v4  ;;  %2632 = vmatprep.mubr.msk.bf16.mxu0 %vm1302_vm0, %v2918_v5 }
 0x12b   :  { %v1475_v10 = vpop.f32.mrf.mxu0  ;;  %v1667_v11 = vpop.f32.mrf.mxu1 }
 0x12d   :  { %v3566_v13 = vpop.f32.mrf.mxu0  ;;  %v3568_v14 = vpop.f32.mrf.mxu1 }
 0x12e   :  { %4341 = vst [vmem:[#allocation11_spill] sm:$0xff] %v3568_v14 }
 0x12f   :  { %v1478_v21 = vpop.f32.mrf.mxu0  ;;  %v1670_v22 = vpop.f32.mrf.mxu1 }
 0x130   :  { %v1442_v22 = vadd.f32 %v3613_v49, %v3472_v23  ;;  %v2935_v23 = vld [vmem:[%s4329_s0 + $0x418] ss:$20 sps:$4 sm:$0xff]  }
 0x131   :  { %v3582_v25 = vpop.f32.mrf.mxu0  ;;  %v3584_v26 = vpop.f32.mrf.mxu1  ;;  %1897 = vmatmul.mubr.bf16.gmra.mxu1 %v2915_v17  ;;  %2633 = vmatmul.mubr.msk.bf16.gmra.mxu0 %vm1302_vm0, %v2919_v18  ;;  %v2934_v17 = vld [vmem:[%s4329_s0 + $0x308] ss:$20 sps:$4 sm:$0xff]  }
 0x132   :  { %4342 = vst [vmem:[#allocation12_spill] sm:$0xff] %v3584_v26  ;;  %1904 = vmatprep.mubr.bf16.mxu1 %v2922_v19  ;;  %2636 = vmatprep.mubr.msk.bf16.mxu0 %vm1302_vm0, %v2923_v20  ;;  %v2937_v19 = vld [vmem:[%s4329_s0 + $0x41c] ss:$20 sps:$4 sm:$0xff]  }
 0x133   :  { %v1483_v29 = vpop.f32.mrf.mxu0  ;;  %v1675_v30 = vpop.f32.mrf.mxu1 }
 0x135   :  { %v3588_v31 = vpop.f32.mrf.mxu0  ;;  %v3590_v32 = vpop.f32.mrf.mxu1 }
 0x136   :  { %4343 = vst [vmem:[#allocation13_spill] sm:$0xff] %v3590_v32 }
 0x137   :  { %v1486_v41 = vpop.f32.mrf.mxu0  ;;  %v1678_v42 = vpop.f32.mrf.mxu1 }
 0x139   :  { %v3604_v43 = vpop.f32.mrf.mxu0  ;;  %v3606_v44 = vpop.f32.mrf.mxu1  ;;  %1905 = vmatmul.mubr.bf16.gmra.mxu1 %v2920_v33  ;;  %2637 = vmatmul.mubr.msk.bf16.gmra.mxu0 %vm1302_vm0, %v2924_v34 }
 0x13a   :  { %4344 = vst [vmem:[#allocation14_spill] sm:$0xff] %v3606_v44  ;;  %1912 = vmatprep.mubr.bf16.mxu1 %v2927_v37  ;;  %2640 = vmatprep.mubr.msk.bf16.mxu0 %vm1302_vm0, %v2928_v38  ;;  %v1445_v38 = vadd.f32 %v3613_v49, %v3478_v27  ;;  %v2943_v27 = vld [vmem:[%s4329_s0 + $0x380] ss:$20 sps:$4 sm:$0xff]  }
 0x13b   :  { %v1491_v45 = vpop.f32.mrf.mxu0  ;;  %v1683_v46 = vpop.f32.mrf.mxu1 }
 0x13c   :  { %v2939_v45 = vld [vmem:[%s4329_s0 + $0x358] ss:$20 sps:$4 sm:$0xff]  }
 0x13d   :  { %v3615_v50 = vpop.f32.mrf.mxu0  ;;  %v3617_v53 = vpop.f32.mrf.mxu1 }
 0x13e   :  { %4345 = vst [vmem:[#allocation15_spill] sm:$0xff] %v3617_v53 }
 0x13f   :  { %v1494_v58 = vpop.f32.mrf.mxu0  ;;  %v1686_v61 = vpop.f32.mrf.mxu1 }
 0x141   :  { %v3633_v2 = vpop.f32.mrf.mxu0  ;;  %v1722_v3 = vpop.f32.mrf.mxu1  ;;  %1913 = vmatmul.mubr.bf16.gmra.mxu1 %v2925_v54  ;;  %2641 = vmatmul.mubr.msk.bf16.gmra.mxu0 %vm1302_vm0, %v2929_v55  ;;  %v2942_v54 = vld [vmem:[%s4329_s0 + $0x444] ss:$20 sps:$4 sm:$0xff]  }
 0x142   :  { %v3636_v4 = vadd.f32 %v1722_v3, %v1434_v62  ;;  %1920 = vmatprep.mubr.bf16.mxu1 %v2932_v56  ;;  %2644 = vmatprep.mubr.msk.bf16.mxu0 %vm1302_vm0, %v2933_v57  ;;  %v1450_v57 = vadd.f32 %v3613_v49, %v3494_v35  ;;  %v2940_v35 = vld [vmem:[%s4329_s0 + $0x440] ss:$20 sps:$4 sm:$0xff]  }
 0x143   :  { %v1499_v5 = vpop.f32.mrf.mxu0  ;;  %v1724_v6 = vpop.f32.mrf.mxu1 }
 0x144   :  { %v1453_v6 = vadd.f32 %v3613_v49, %v3500_v39  ;;  %v2948_v39 = vld [vmem:[%s4329_s0 + $0x3d0] ss:$20 sps:$4 sm:$0xff]  }
 0x145   :  { %v3641_v10 = vpop.f32.mrf.mxu0  ;;  %v1725_v11 = vpop.f32.mrf.mxu1 }
 0x146   :  { %v3649_v18 = vadd.f32 %v1725_v11, %v1437_v7 }
 0x147   :  { %v1502_v20 = vpop.f32.mrf.mxu0  ;;  %v1727_v21 = vpop.f32.mrf.mxu1 }
 0x148   :  { %v1458_v21 = vadd.f32 %v3613_v49, %v3516_v47  ;;  %v2945_v47 = vld [vmem:[%s4329_s0 + $0x468] ss:$20 sps:$4 sm:$0xff]  }
 0x149   :  { %v3659_v29 = vpop.f32.mrf.mxu0  ;;  %v1730_v30 = vpop.f32.mrf.mxu1  ;;  %1921 = vmatmul.mubr.bf16.gmra.mxu1 %v2930_v0  ;;  %2645 = vmatmul.mubr.msk.bf16.gmra.mxu0 %vm1302_vm0, %v2934_v17  ;;  %v2944_v0 = vld [vmem:[%s4329_s0 + $0x3a8] ss:$20 sps:$4 sm:$0xff]  }
 0x14a   :  { %v3662_v33 = vadd.f32 %v1730_v30, %v1442_v22  ;;  %1928 = vmatprep.mubr.bf16.mxu1 %v2937_v19  ;;  %2648 = vmatprep.mubr.msk.bf16.mxu0 %vm1302_vm0, %v2938_v15  ;;  %v2947_v19 = vld [vmem:[%s4329_s0 + $0x46c] ss:$20 sps:$4 sm:$0xff]  }
 0x14b   :  { %v1507_v34 = vpop.f32.mrf.mxu0  ;;  %v1732_v37 = vpop.f32.mrf.mxu1 }
 0x14d   :  { %v3667_v41 = vpop.f32.mrf.mxu0  ;;  %v1733_v42 = vpop.f32.mrf.mxu1 }
 0x14e   :  { %v3675_v46 = vadd.f32 %v1733_v42, %v1445_v38  ;;  %v1461_v42 = vadd.f32 %v3613_v49, %v3522_v51  ;;  %v2953_v51 = vld [vmem:[%s4329_s0 + $0x420] ss:$20 sps:$4 sm:$0xff]  }
 0x14f   :  { %v1510_v55 = vpop.f32.mrf.mxu0  ;;  %v1735_v56 = vpop.f32.mrf.mxu1 }
 0x150   :  { %v2952_v55 = vld [vmem:[%s4329_s0 + $0x494] ss:$20 sps:$4 sm:$0xff]  }
 0x151   :  { %v3685_v58 = vpop.f32.mrf.mxu0  ;;  %v1738_v61 = vpop.f32.mrf.mxu1  ;;  %1929 = vmatmul.mubr.bf16.gmra.mxu1 %v2935_v23  ;;  %2649 = vmatmul.mubr.msk.bf16.gmra.mxu0 %vm1302_vm0, %v2939_v45 }
 0x152   :  { %v3688_v62 = vadd.f32 %v1738_v61, %v1450_v57  ;;  %1936 = vmatprep.mubr.bf16.mxu1 %v2942_v54  ;;  %2652 = vmatprep.mubr.msk.bf16.mxu0 %vm1302_vm0, %v2943_v27  ;;  %v2949_v54 = vld [vmem:[%s4329_s0 + $0x3f8] ss:$20 sps:$4 sm:$0xff]   ;;  %v1466_v61 = vadd.f32 %v3613_v49, %v3538_v59  ;;  %v2950_v59 = vld [vmem:[%s4329_s0 + $0x490] ss:$20 sps:$4 sm:$0xff]  }
 0x153   :  { %v1515_v3 = vpop.f32.mrf.mxu0  ;;  %v1740_v5 = vpop.f32.mrf.mxu1 }
 0x155   :  { %v3693_v7 = vpop.f32.mrf.mxu0  ;;  %v1741_v11 = vpop.f32.mrf.mxu1 }
 0x156   :  { %v3701_v17 = vadd.f32 %v1741_v11, %v1453_v6 }
 0x157   :  { %v1518_v15 = vpop.f32.mrf.mxu0  ;;  %v1743_v20 = vpop.f32.mrf.mxu1 }
 0x158   :  { %v2954_v15 = vld [vmem:[%s4329_s0 + $0x448] ss:$20 sps:$4 sm:$0xff]  }
 0x159   :  { %v3711_v22 = vpop.f32.mrf.mxu0  ;;  %v1746_v30 = vpop.f32.mrf.mxu1  ;;  %1937 = vmatmul.mubr.bf16.gmra.mxu1 %v2940_v35  ;;  %2653 = vmatmul.mubr.msk.bf16.gmra.mxu0 %vm1302_vm0, %v2944_v0  ;;  %v1469_v0 = vadd.f32 %v3613_v49, %v3544_v63  ;;  %v2958_v63 = vld [vmem:[%s4329_s0 + $0x470] ss:$20 sps:$4 sm:$0xff]  }
 0x15a   :  { %v3714_v34 = vadd.f32 %v1746_v30, %v1458_v21  ;;  %1944 = vmatprep.mubr.bf16.mxu1 %v2947_v19  ;;  %2656 = vmatprep.mubr.msk.bf16.mxu0 %vm1302_vm0, %v2948_v39  ;;  %v2957_v21 = vld [vmem:[%s4329_s0 + $0x4bc] ss:$20 sps:$4 sm:$0xff]  }
 0x15b   :  { %v1523_v37 = vpop.f32.mrf.mxu0  ;;  %v1748_v38 = vpop.f32.mrf.mxu1 }
 0x15c   :  { %v1474_v38 = vadd.f32 %v3613_v49, %v3560_v8  ;;  %v2955_v8 = vld [vmem:[%s4329_s0 + $0x4b8] ss:$20 sps:$4 sm:$0xff]  }
 0x15d   :  { %v3719_v23 = vpop.f32.mrf.mxu0  ;;  %v1749_v45 = vpop.f32.mrf.mxu1 }
 0x15e   :  { %v3727_v27 = vadd.f32 %v1749_v45, %v1461_v42 }
 0x15f   :  { %v1526_v56 = vpop.f32.mrf.mxu0  ;;  %v1751_v57 = vpop.f32.mrf.mxu1 }
 0x161   :  { %v3737_v3 = vpop.f32.mrf.mxu0  ;;  %v1754_v5 = vpop.f32.mrf.mxu1  ;;  %1945 = vmatmul.mubr.bf16.gmra.mxu1 %v2945_v47  ;;  %2657 = vmatmul.mubr.msk.bf16.gmra.mxu0 %vm1302_vm0, %v2949_v54 }
 0x162   :  { %v3740_v6 = vadd.f32 %v1754_v5, %v1466_v61  ;;  %1952 = vmatprep.mubr.bf16.mxu1 %v2952_v55  ;;  %2660 = vmatprep.mubr.msk.bf16.mxu0 %vm1302_vm0, %v2953_v51  ;;  %v1477_v51 = vadd.f32 %v3613_v49, %v3566_v13  ;;  %v2959_v61 = vld [vmem:[%s4329_s0 + $0x498] ss:$20 sps:$4 sm:$0xff]   ;;  %v2963_v13 = vld [vmem:[%s4329_s0 + $0x4c0] ss:$20 sps:$4 sm:$0xff]  }
 0x163   :  { %v1531_v11 = vpop.f32.mrf.mxu0  ;;  %v1756_v35 = vpop.f32.mrf.mxu1 }
 0x164   :  { %v2962_v11 = vld [vmem:[%s4329_s0 + $0x4e4] ss:$20 sps:$4 sm:$0xff]  }
 0x165   :  { %v3745_v19 = vpop.f32.mrf.mxu0  ;;  %v1757_v39 = vpop.f32.mrf.mxu1 }
 0x166   :  { %v3753_v20 = vadd.f32 %v1757_v39, %v1469_v0  ;;  %v1482_v39 = vadd.f32 %v3613_v49, %v3582_v25  ;;  %v2960_v25 = vld [vmem:[%s4329_s0 + $0x4e0] ss:$20 sps:$4 sm:$0xff]  }
 0x167   :  { %v1534_v30 = vpop.f32.mrf.mxu0  ;;  %v1759_v37 = vpop.f32.mrf.mxu1 }
 0x168   :  { %v1485_v37 = vadd.f32 %v3613_v49, %v3588_v31 }
 0x169   :  { %v3763_v42 = vpop.f32.mrf.mxu0  ;;  %v1762_v45 = vpop.f32.mrf.mxu1  ;;  %1953 = vmatmul.mubr.bf16.gmra.mxu1 %v2950_v59  ;;  %2661 = vmatmul.mubr.msk.bf16.gmra.mxu0 %vm1302_vm0, %v2954_v15 }
 0x16a   :  { %v3766_v47 = vadd.f32 %v1762_v45, %v1474_v38  ;;  %1960 = vmatprep.mubr.bf16.mxu1 %v2957_v21  ;;  %2664 = vmatprep.mubr.msk.bf16.mxu0 %vm1302_vm0, %v2958_v63 }
 0x16b   :  { %v1539_v54 = vpop.f32.mrf.mxu0  ;;  %v1764_v55 = vpop.f32.mrf.mxu1 }
 0x16c   :  { %v2964_v54 = vld [vmem:[%s4329_s0 + $0x4e8] ss:$20 sps:$4 sm:$0xff]  }
 0x16d   :  { %v3771_v56 = vpop.f32.mrf.mxu0  ;;  %v1765_v57 = vpop.f32.mrf.mxu1 }
 0x16e   :  { %v3779_v5 = vadd.f32 %v1765_v57, %v1477_v51 }
 0x16f   :  { %v1542_v35 = vpop.f32.mrf.mxu0  ;;  %v1767_v0 = vpop.f32.mrf.mxu1 }
 0x170   :  { %v1493_v0 = vadd.f32 %v3613_v49, %v3615_v50  ;;  %v1501_v50 = vadd.f32 %v3613_v49, %v3641_v10  ;;  %v1509_v10 = vadd.f32 %v3613_v49, %v3667_v41  ;;  %v1517_v41 = vadd.f32 %v3613_v49, %v3693_v7 }
 0x171   :  { %v3789_v59 = vpop.f32.mrf.mxu0  ;;  %v1770_v15 = vpop.f32.mrf.mxu1  ;;  %1961 = vmatmul.mubr.bf16.gmra.mxu1 %v2955_v8  ;;  %2665 = vmatmul.mubr.msk.bf16.gmra.mxu0 %vm1302_vm0, %v2959_v61  ;;  %v1490_v8 = vadd.f32 %v3613_v49, %v3604_v43  ;;  %v1525_v7 = vadd.f32 %v3613_v49, %v3719_v23  ;;  %v1533_v23 = vadd.f32 %v3613_v49, %v3745_v19 }
 0x172   :  { %v3792_v21 = vadd.f32 %v1770_v15, %v1482_v39  ;;  %1968 = vmatprep.mubr.bf16.mxu1 %v2962_v11  ;;  %2668 = vmatprep.mubr.msk.bf16.mxu0 %vm1302_vm0, %v2963_v13  ;;  %v1541_v19 = vadd.f32 %v3613_v49, %v3771_v56 }
 0x173   :  { %v1547_v63 = vpop.f32.mrf.mxu0  ;;  %v1772_v30 = vpop.f32.mrf.mxu1 }
 0x175   :  { %v3797_v38 = vpop.f32.mrf.mxu0  ;;  %v1773_v45 = vpop.f32.mrf.mxu1 }
 0x176   :  { %v3805_v55 = vadd.f32 %v1773_v45, %v1485_v37  ;;  %v1498_v37 = vadd.f32 %v3613_v49, %v3633_v2  ;;  %v1506_v2 = vadd.f32 %v3613_v49, %v3659_v29  ;;  %v1514_v29 = vadd.f32 %v3613_v49, %v3685_v58 }
 0x177   :  { %v1550_v51 = vpop.f32.mrf.mxu0  ;;  %v1775_v57 = vpop.f32.mrf.mxu1  ;;  %v1522_v58 = vadd.f32 %v3613_v49, %v3711_v22  ;;  %v1530_v22 = vadd.f32 %v3613_v49, %v3737_v3  ;;  %v1538_v3 = vadd.f32 %v3613_v49, %v3763_v42  ;;  %v1546_v42 = vadd.f32 %v3613_v49, %v3789_v59 }
 0x178   :  { %v1549_v56 = vadd.f32 %v3613_v49, %v3797_v38 }
 0x179   :  { %v3809_v61 = vpop.f32.mrf.mxu0  ;;  %v1778_v31 = vpop.f32.mrf.mxu1  ;;  %1969 = vmatmul.mubr.bf16.gmra.mxu1 %v2960_v25  ;;  %2669 = vmatmul.mubr.msk.bf16.gmra.mxu0 %vm1302_vm0, %v2964_v54 }
 0x17a   :  { %v3812_v11 = vadd.f32 %v1778_v31, %v1490_v8 }
 0x17b   :  { %v1555_v13 = vpop.f32.mrf.mxu0  ;;  %v1780_v35 = vpop.f32.mrf.mxu1 }
 0x17d   :  { %v3816_v39 = vpop.f32.mrf.mxu0  ;;  %v1781_v15 = vpop.f32.mrf.mxu1 }
 0x17e   :  { %v3818_v63 = vadd.f32 %v1781_v15, %v1493_v0 }
 0x17f   :  { %v1558_v30 = vpop.f32.mrf.mxu0  ;;  %v1783_v43 = vpop.f32.mrf.mxu1 }
 0x181   :  { %v3822_v45 = vpop.f32.mrf.mxu0  ;;  %v1786_v25 = vpop.f32.mrf.mxu1 }
 0x182   :  { %v3824_v54 = vadd.f32 %v1786_v25, %v1498_v37  ;;  %v1562_v38 = vadd.f32 %v3613_v49, %v3822_v45 }
 0x183   :  { %v1563_v51 = vpop.f32.mrf.mxu0  ;;  %v1788_v57 = vpop.f32.mrf.mxu1 }
 0x185   :  { %v3828_v8 = vpop.f32.mrf.mxu0  ;;  %v1789_v31 = vpop.f32.mrf.mxu1 }
 0x186   :  { %v3830_v13 = vadd.f32 %v1789_v31, %v1501_v50 }
 0x187   :  { %v1566_v35 = vpop.f32.mrf.mxu0  ;;  %v1791_v0 = vpop.f32.mrf.mxu1 }
 0x189   :  { %v3834_v15 = vpop.f32.mrf.mxu0  ;;  %v1794_v30 = vpop.f32.mrf.mxu1 }
 0x18a   :  { %v3836_v43 = vadd.f32 %v1794_v30, %v1506_v2 }
 0x18b   :  { %v1571_v37 = vpop.f32.mrf.mxu0  ;;  %v1796_v25 = vpop.f32.mrf.mxu1 }
 0x18d   :  { %v3840_v51 = vpop.f32.mrf.mxu0  ;;  %v1797_v57 = vpop.f32.mrf.mxu1 }
 0x18e   :  { %v3842_v50 = vadd.f32 %v1797_v57, %v1509_v10 }
 0x18f   :  { %v1574_v31 = vpop.f32.mrf.mxu0  ;;  %v1799_v35 = vpop.f32.mrf.mxu1 }
 0x191   :  { %v3846_v0 = vpop.f32.mrf.mxu0  ;;  %v1802_v53 = vpop.f32.mrf.mxu1 }
 0x192   :  { %v3848_v2 = vadd.f32 %v1802_v53, %v1514_v29 }
 0x193   :  { %v1579_v30 = vpop.f32.mrf.mxu0  ;;  %v1804_v37 = vpop.f32.mrf.mxu1 }
 0x195   :  { %v3852_v25 = vpop.f32.mrf.mxu0  ;;  %v1805_v32 = vpop.f32.mrf.mxu1 }
 0x196   :  { %v3854_v10 = vadd.f32 %v1805_v32, %v1517_v41 }
 0x197   :  { %v1582_v57 = vpop.f32.mrf.mxu0  ;;  %v1807_v31 = vpop.f32.mrf.mxu1 }
 0x199   :  { %v3858_v35 = vpop.f32.mrf.mxu0  ;;  %v1810_v44 = vpop.f32.mrf.mxu1 }
 0x19a   :  { %v3860_v53 = vadd.f32 %v1810_v44, %v1522_v58 }
 0x19b   :  { %v1587_v29 = vpop.f32.mrf.mxu0  ;;  %v1812_v30 = vpop.f32.mrf.mxu1 }
 0x19d   :  { %v3864_v37 = vpop.f32.mrf.mxu0  ;;  %v1813_v26 = vpop.f32.mrf.mxu1 }
 0x19e   :  { %v3866_v32 = vadd.f32 %v1813_v26, %v1525_v7 }
 0x19f   :  { %v1590_v41 = vpop.f32.mrf.mxu0  ;;  %v1815_v57 = vpop.f32.mrf.mxu1 }
 0x1a1   :  { %v3870_v31 = vpop.f32.mrf.mxu0  ;;  %v1818_v1 = vpop.f32.mrf.mxu1 }
 0x1a2   :  { %v3872_v44 = vadd.f32 %v1818_v1, %v1530_v22 }
 0x1a3   :  { %v1595_v58 = vpop.f32.mrf.mxu0  ;;  %v1820_v29 = vpop.f32.mrf.mxu1 }
 0x1a5   :  { %v3876_v30 = vpop.f32.mrf.mxu0  ;;  %v1821_v14 = vpop.f32.mrf.mxu1 }
 0x1a6   :  { %v3878_v26 = vadd.f32 %v1821_v14, %v1533_v23 }
 0x1a7   :  { %v1598_v7 = vpop.f32.mrf.mxu0  ;;  %v1823_v41 = vpop.f32.mrf.mxu1 }
 0x1a9   :  { %v3882_v57 = vpop.f32.mrf.mxu0  ;;  %v1826_v60 = vpop.f32.mrf.mxu1 }
 0x1aa   :  { %v3884_v1 = vadd.f32 %v1826_v60, %v1538_v3 }
 0x1ab   :  { %v1603_v22 = vpop.f32.mrf.mxu0  ;;  %v1828_v58 = vpop.f32.mrf.mxu1 }
 0x1ad   :  { %v3888_v29 = vpop.f32.mrf.mxu0  ;;  %v1829_v9 = vpop.f32.mrf.mxu1 }
 0x1ae   :  { %v3890_v14 = vadd.f32 %v1829_v9, %v1541_v19 }
 0x1af   :  { %v1606_v23 = vpop.f32.mrf.mxu0  ;;  %v1831_v7 = vpop.f32.mrf.mxu1 }
 0x1b1   :  { %v3894_v41 = vpop.f32.mrf.mxu0  ;;  %v1834_v40 = vpop.f32.mrf.mxu1 }
 0x1b2   :  { %v3896_v60 = vadd.f32 %v1834_v40, %v1546_v42 }
 0x1b3   :  { %v1611_v3 = vpop.f32.mrf.mxu0  ;;  %v1836_v22 = vpop.f32.mrf.mxu1 }
 0x1b5   :  { %v3900_v58 = vpop.f32.mrf.mxu0  ;;  %v1837_v52 = vpop.f32.mrf.mxu1 }
 0x1b6   :  { %v3902_v9 = vadd.f32 %v1837_v52, %v1549_v56 }
 0x1b7   :  { %v1614_v19 = vpop.f32.mrf.mxu0  ;;  %v1839_v23 = vpop.f32.mrf.mxu1 }
 0x1b9   :  { %v3904_v7 = vpop.f32.mrf.mxu0  ;;  %v3906_v59 = vpop.f32.mrf.mxu1 }
 0x1bb   :  { %v1619_v36 = vpop.f32.mrf.mxu0  ;;  %v1844_v48 = vpop.f32.mrf.mxu1 }
 0x1bc   :  { %v1565_v36 = vadd.f32 %v3613_v49, %v3828_v8 }
 0x1bd   :  { %v3908_v40 = vpop.f32.mrf.mxu0  ;;  %v3910_v42 = vpop.f32.mrf.mxu1 }
 0x1bf   :  { %v1622_v3 = vpop.f32.mrf.mxu0  ;;  %v1847_v22 = vpop.f32.mrf.mxu1 }
 0x1c1   :  { %v1850_v16 = vpop.f32.mrf.mxu1  ;;  %v2610_v52 = vpop.f32.mrf.mxu0 }
 0x1c2   :  { %v3914_v56 = vadd.f32 %v1850_v16, %v1562_v38  ;;  %v2020_v19 = vadd.f32 %v2610_v52, %v3662_v33 }
 0x1c3   :  { %v1852_v23 = vpop.f32.mrf.mxu1  ;;  %v2011_v28 = vpop.f32.mrf.mxu0 }
 0x1c4   :  { %2269 = vst.msk [vmem:[%s4331_s3 + $0x10] sm:$0xff] %vm2266_vm1, %v2020_v19  ;;  %v2012_v48 = vadd.f32 %v2011_v28, %v3636_v4 }
 0x1c5   :  { %v1853_v45 = vpop.f32.mrf.mxu1  ;;  %v2611_v3 = vpop.f32.mrf.mxu0 }
 0x1c6   :  { %2267 = vst.msk [vmem:[%s4331_s3] sm:$0xff] %vm2266_vm1, %v2012_v48  ;;  %v3928_v16 = vadd.f32 %v1853_v45, %v1565_v36  ;;  %v2023_v33 = vadd.f32 %v2611_v3, %v3675_v46 }
 0x1c7   :  { %v1855_v22 = vpop.f32.mrf.mxu1  ;;  %v2014_v8 = vpop.f32.mrf.mxu0 }
 0x1c8   :  { %2270 = vst.msk [vmem:[%s4331_s3 + $0x18] sm:$0xff] %vm2266_vm1, %v2023_v33  ;;  %v2015_v28 = vadd.f32 %v2014_v8, %v3649_v18 }
 0x1c9   :  { %v3936_v4 = vpop.f32.mrf.mxu1  ;;  %v2614_v38 = vpop.f32.mrf.mxu0 }
 0x1ca   :  { %2268 = vst.msk [vmem:[%s4331_s3 + $0x8] sm:$0xff] %vm2266_vm1, %v2015_v28  ;;  %v2036_v52 = vadd.f32 %v2614_v38, %v3714_v34 }
 0x1cb   :  { %v1860_v46 = vpop.f32.mrf.mxu1  ;;  %v2027_v19 = vpop.f32.mrf.mxu0 }
 0x1cc   :  { %2273 = vst.msk [vmem:[%s4331_s3 + $0x30] sm:$0xff] %vm2266_vm1, %v2036_v52  ;;  %v2028_v23 = vadd.f32 %v2027_v19, %v3688_v62 }
 0x1cd   :  { %v3948_v18 = vpop.f32.mrf.mxu1  ;;  %v2615_v36 = vpop.f32.mrf.mxu0 }
 0x1ce   :  { %2271 = vst.msk [vmem:[%s4331_s3 + $0x20] sm:$0xff] %vm2266_vm1, %v2028_v23  ;;  %v2039_v48 = vadd.f32 %v2615_v36, %v3727_v27 }
 0x1cf   :  { %v1863_v34 = vpop.f32.mrf.mxu1  ;;  %v2030_v45 = vpop.f32.mrf.mxu0 }
 0x1d0   :  { %2274 = vst.msk [vmem:[%s4331_s3 + $0x38] sm:$0xff] %vm2266_vm1, %v2039_v48  ;;  %v2031_v3 = vadd.f32 %v2030_v45, %v3701_v17 }
 0x1d1   :  { %v3960_v62 = vpop.f32.mrf.mxu1  ;;  %v2618_v33 = vpop.f32.mrf.mxu0 }
 0x1d2   :  { %2272 = vst.msk [vmem:[%s4331_s3 + $0x28] sm:$0xff] %vm2266_vm1, %v2031_v3  ;;  %v2052_v22 = vadd.f32 %v2618_v33, %v3766_v47 }
 0x1d3   :  { %v1868_v27 = vpop.f32.mrf.mxu1  ;;  %v2043_v8 = vpop.f32.mrf.mxu0 }
 0x1d4   :  { %2277 = vst.msk [vmem:[%s4331_s3 + $0x50] sm:$0xff] %vm2266_vm1, %v2052_v22  ;;  %v2044_v28 = vadd.f32 %v2043_v8, %v3740_v6 }
 0x1d5   :  { %v3972_v17 = vpop.f32.mrf.mxu1  ;;  %v2619_v38 = vpop.f32.mrf.mxu0 }
 0x1d6   :  { %2275 = vst.msk [vmem:[%s4331_s3 + $0x40] sm:$0xff] %vm2266_vm1, %v2044_v28  ;;  %v2055_v52 = vadd.f32 %v2619_v38, %v3779_v5 }
 0x1d7   :  { %v1871_v47 = vpop.f32.mrf.mxu1  ;;  %v2046_v46 = vpop.f32.mrf.mxu0 }
 0x1d8   :  { %2278 = vst.msk [vmem:[%s4331_s3 + $0x58] sm:$0xff] %vm2266_vm1, %v2055_v52  ;;  %v2047_v19 = vadd.f32 %v2046_v46, %v3753_v20 }
 0x1d9   :  { %v3984_v6 = vpop.f32.mrf.mxu1  ;;  %v2622_v23 = vpop.f32.mrf.mxu0 }
 0x1da   :  { %2276 = vst.msk [vmem:[%s4331_s3 + $0x48] sm:$0xff] %vm2266_vm1, %v2047_v19  ;;  %v2068_v36 = vadd.f32 %v2622_v23, %v3812_v11 }
 0x1db   :  { %v1876_v5 = vpop.f32.mrf.mxu1  ;;  %v2059_v48 = vpop.f32.mrf.mxu0 }
 0x1dc   :  { %2281 = vst.msk [vmem:[%s4331_s3 + $0x70] sm:$0xff] %vm2266_vm1, %v2068_v36  ;;  %v2060_v34 = vadd.f32 %v2059_v48, %v3792_v21 }
 0x1dd   :  { %v3996_v20 = vpop.f32.mrf.mxu1  ;;  %v2623_v45 = vpop.f32.mrf.mxu0 }
 0x1de   :  { %2279 = vst.msk [vmem:[%s4331_s3 + $0x60] sm:$0xff] %vm2266_vm1, %v2060_v34  ;;  %v2071_v3 = vadd.f32 %v2623_v45, %v3818_v63 }
 0x1df   :  { %v1879_v11 = vpop.f32.mrf.mxu1  ;;  %v2062_v33 = vpop.f32.mrf.mxu0 }
 0x1e0   :  { %2282 = vst.msk [vmem:[%s4331_s3 + $0x78] sm:$0xff] %vm2266_vm1, %v2071_v3  ;;  %v2063_v22 = vadd.f32 %v2062_v33, %v3805_v55 }
 0x1e1   :  { %v4008_v21 = vpop.f32.mrf.mxu1  ;;  %v2626_v27 = vpop.f32.mrf.mxu0 }
 0x1e2   :  { %2280 = vst.msk [vmem:[%s4331_s3 + $0x68] sm:$0xff] %vm2266_vm1, %v2063_v22  ;;  %v2084_v8 = vadd.f32 %v2626_v27, %v3836_v43 }
 0x1e3   :  { %v1884_v63 = vpop.f32.mrf.mxu1  ;;  %v2075_v28 = vpop.f32.mrf.mxu0 }
 0x1e4   :  { %2285 = vst.msk [vmem:[%s4331_s3 + $0x90] sm:$0xff] %vm2266_vm1, %v2084_v8  ;;  %v2076_v38 = vadd.f32 %v2075_v28, %v3824_v54  ;;  %v1554_v28 = vadd.f32 %v3613_v49, %v3809_v61 }
 0x1e5   :  { %v4020_v55 = vpop.f32.mrf.mxu1  ;;  %v2627_v52 = vpop.f32.mrf.mxu0 }
 0x1e6   :  { %2283 = vst.msk [vmem:[%s4331_s3 + $0x80] sm:$0xff] %vm2266_vm1, %v2076_v38  ;;  %v2087_v47 = vadd.f32 %v2627_v52, %v3842_v50 }
 0x1e7   :  { %v1887_v43 = vpop.f32.mrf.mxu1  ;;  %v2078_v46 = vpop.f32.mrf.mxu0 }
 0x1e8   :  { %2286 = vst.msk [vmem:[%s4331_s3 + $0x98] sm:$0xff] %vm2266_vm1, %v2087_v47  ;;  %v2079_v19 = vadd.f32 %v2078_v46, %v3830_v13  ;;  %v1843_v47 = vadd.f32 %v3906_v59, %v1554_v28  ;;  %v1557_v46 = vadd.f32 %v3613_v49, %v3816_v39 }
 0x1e9   :  { %v4032_v54 = vpop.f32.mrf.mxu1  ;;  %v2630_v23 = vpop.f32.mrf.mxu0 }
 0x1ea   :  { %2284 = vst.msk [vmem:[%s4331_s3 + $0x88] sm:$0xff] %vm2266_vm1, %v2079_v19  ;;  %v2100_v36 = vadd.f32 %v2630_v23, %v3860_v53  ;;  %v1846_v23 = vadd.f32 %v3910_v42, %v1557_v46  ;;  %v1602_v46 = vadd.f32 %v3613_v49, %v3882_v57 }
 0x1eb   :  { %v1892_v50 = vpop.f32.mrf.mxu1  ;;  %v2091_v5 = vpop.f32.mrf.mxu0 }
 0x1ec   :  { %2289 = vst.msk [vmem:[%s4331_s3 + $0xb0] sm:$0xff] %vm2266_vm1, %v2100_v36  ;;  %v2092_v48 = vadd.f32 %v2091_v5, %v3848_v2  ;;  %v1570_v50 = vadd.f32 %v3613_v49, %v3834_v15 }
 0x1ed   :  { %v4044_v13 = vpop.f32.mrf.mxu1  ;;  %v2631_v34 = vpop.f32.mrf.mxu0 }
 0x1ee   :  { %2287 = vst.msk [vmem:[%s4331_s3 + $0xa0] sm:$0xff] %vm2266_vm1, %v2092_v48  ;;  %v2103_v45 = vadd.f32 %v2631_v34, %v3866_v32  ;;  %v1859_v34 = vadd.f32 %v3936_v4, %v1570_v50 }
 0x1ef   :  { %v1895_v53 = vpop.f32.mrf.mxu1  ;;  %v2094_v3 = vpop.f32.mrf.mxu0 }
 0x1f0   :  { %2290 = vst.msk [vmem:[%s4331_s3 + $0xb8] sm:$0xff] %vm2266_vm1, %v2103_v45  ;;  %v2095_v11 = vadd.f32 %v2094_v3, %v3854_v10  ;;  %v1573_v53 = vadd.f32 %v3613_v49, %v3840_v51 }
 0x1f1   :  { %v4056_v2 = vpop.f32.mrf.mxu1  ;;  %v2634_v33 = vpop.f32.mrf.mxu0 }
 0x1f2   :  { %2288 = vst.msk [vmem:[%s4331_s3 + $0xa8] sm:$0xff] %vm2266_vm1, %v2095_v11  ;;  %v2116_v22 = vadd.f32 %v2634_v33, %v3884_v1  ;;  %v1862_v33 = vadd.f32 %v3948_v18, %v1573_v53 }
 0x1f3   :  { %v1900_v32 = vpop.f32.mrf.mxu1  ;;  %v2107_v27 = vpop.f32.mrf.mxu0 }
 0x1f4   :  { %2293 = vst.msk [vmem:[%s4331_s3 + $0xd0] sm:$0xff] %vm2266_vm1, %v2116_v22  ;;  %v2108_v8 = vadd.f32 %v2107_v27, %v3872_v44  ;;  %v1586_v32 = vadd.f32 %v3613_v49, %v3858_v35 }
 0x1f5   :  { %v4068_v10 = vpop.f32.mrf.mxu1  ;;  %v2635_v63 = vpop.f32.mrf.mxu0 }
 0x1f6   :  { %2291 = vst.msk [vmem:[%s4331_s3 + $0xc0] sm:$0xff] %vm2266_vm1, %v2108_v8  ;;  %v2119_v1 = vadd.f32 %v2635_v63, %v3890_v14  ;;  %v1578_v63 = vadd.f32 %v3613_v49, %v3846_v0  ;;  %v1875_v28 = vadd.f32 %v3984_v6, %v1586_v32  ;;  %v1613_v32 = vadd.f32 %v3613_v49, %v3900_v58 }
 0x1f7   :  { %v1903_v38 = vpop.f32.mrf.mxu1  ;;  %v2110_v52 = vpop.f32.mrf.mxu0 }
 0x1f8   :  { %2294 = vst.msk [vmem:[%s4331_s3 + $0xd8] sm:$0xff] %vm2266_vm1, %v2119_v1  ;;  %v2111_v44 = vadd.f32 %v2110_v52, %v3878_v26  ;;  %v1589_v38 = vadd.f32 %v3613_v49, %v3864_v37  ;;  %v1867_v52 = vadd.f32 %v3960_v62, %v1578_v63  ;;  %v1902_v63 = vadd.f32 %v4068_v10, %v1613_v32 }
 0x1f9   :  { %v4083_v43 = vpop.f32.mrf.mxu1  ;;  %v2638_v61 = vpop.f32.mrf.mxu0 }
 0x1fa   :  { %2292 = vst.msk [vmem:[%s4331_s3 + $0xc8] sm:$0xff] %vm2266_vm1, %v2111_v44  ;;  %v2132_v14 = vadd.f32 %v2638_v61, %v1843_v47  ;;  %v1581_v44 = vadd.f32 %v3613_v49, %v3852_v25 }
 0x1fb   :  { %v1908_v59 = vpop.f32.mrf.mxu1  ;;  %v2123_v19 = vpop.f32.mrf.mxu0 }
 0x1fc   :  { %2297 = vst.msk [vmem:[%s4331_s3 + $0xf0] sm:$0xff] %vm2266_vm1, %v2132_v14  ;;  %v2124_v26 = vadd.f32 %v2123_v19, %v3896_v60  ;;  %v1870_v14 = vadd.f32 %v3972_v17, %v1581_v44  ;;  %v1594_v19 = vadd.f32 %v3613_v49, %v3870_v31  ;;  %v4347_v44 = vld [vmem:[#allocation2_spill] sm:$0xff] }
 0x1fd   :  { %v4097_v36 = vpop.f32.mrf.mxu1  ;;  %v2639_v39 = vpop.f32.mrf.mxu0 }
 0x1fe   :  { %2295 = vst.msk [vmem:[%s4331_s3 + $0xe0] sm:$0xff] %vm2266_vm1, %v2124_v26  ;;  %v2135_v5 = vadd.f32 %v2639_v39, %v1846_v23  ;;  %v1891_v23 = vadd.f32 %v4032_v54, %v1602_v46  ;;  %v1605_v39 = vadd.f32 %v3613_v49, %v3888_v29  ;;  %v1883_v50 = vadd.f32 %v4008_v21, %v1594_v19 }
 0x1ff   :  { %v1911_v42 = vpop.f32.mrf.mxu1  ;;  %v2126_v48 = vpop.f32.mrf.mxu0 }
 0x200   :  { %2298 = vst.msk [vmem:[%s4331_s3 + $0xf8] sm:$0xff] %vm2266_vm1, %v2135_v5  ;;  %v2127_v60 = vadd.f32 %v2126_v48, %v3902_v9  ;;  %v1597_v42 = vadd.f32 %v3613_v49, %v3876_v30  ;;  %v1894_v48 = vadd.f32 %v4044_v13, %v1605_v39 }
 0x201   :  { %v4111_v45 = vpop.f32.mrf.mxu1  ;;  %v2642_v15 = vpop.f32.mrf.mxu0 }
 0x202   :  { %2296 = vst.msk [vmem:[%s4331_s3 + $0xe8] sm:$0xff] %vm2266_vm1, %v2127_v60  ;;  %v2148_v3 = vadd.f32 %v2642_v15, %v1859_v34  ;;  %v1618_v60 = vadd.f32 %v3613_v49, %v3904_v7  ;;  %v1886_v15 = vadd.f32 %v4020_v55, %v1597_v42 }
 0x203   :  { %v1916_v4 = vpop.f32.mrf.mxu1  ;;  %v2139_v11 = vpop.f32.mrf.mxu0 }
 0x204   :  { %2301 = vst.msk [vmem:[%s4331_s3 + $0x110] sm:$0xff] %vm2266_vm1, %v2148_v3  ;;  %v2140_v9 = vadd.f32 %v2139_v11, %v3914_v56  ;;  %v1610_v3 = vadd.f32 %v3613_v49, %v3894_v41  ;;  %v1907_v4 = vadd.f32 %v4083_v43, %v1618_v60  ;;  %v4351_v60 = vld [vmem:[#allocation5_spill] sm:$0xff] }
 0x205   :  { %v4125_v22 = vpop.f32.mrf.mxu1  ;;  %v2643_v51 = vpop.f32.mrf.mxu0 }
 0x206   :  { %2299 = vst.msk [vmem:[%s4331_s3 + $0x100] sm:$0xff] %vm2266_vm1, %v2140_v9  ;;  %v2151_v27 = vadd.f32 %v2643_v51, %v1862_v33  ;;  %v1621_v33 = vadd.f32 %v3613_v49, %v3908_v40  ;;  %v1899_v9 = vadd.f32 %v4056_v2, %v1610_v3 }
 0x207   :  { %v1919_v18 = vpop.f32.mrf.mxu1  ;;  %v2142_v8 = vpop.f32.mrf.mxu0 }
 0x208   :  { %2302 = vst.msk [vmem:[%s4331_s3 + $0x118] sm:$0xff] %vm2266_vm1, %v2151_v27  ;;  %v2143_v35 = vadd.f32 %v2142_v8, %v3928_v16  ;;  %v1878_v16 = vadd.f32 %v3996_v20, %v1589_v38  ;;  %v1910_v27 = vadd.f32 %v4097_v36, %v1621_v33  ;;  %v1634_v8 = vadd.f32 %v3613_v49, %v3474_v24  ;;  %v4353_v33 = vld [vmem:[#allocation8_spill] sm:$0xff] }
 0x209   :  { %v4141_v56 = vpop.f32.mrf.mxu1  ;;  %v2646_v1 = vpop.f32.mrf.mxu0 }
 0x20a   :  { %2300 = vst.msk [vmem:[%s4331_s3 + $0x108] sm:$0xff] %vm2266_vm1, %v2143_v35  ;;  %v2164_v0 = vadd.f32 %v2646_v1, %v1875_v28  ;;  %v1626_v35 = vadd.f32 %v3613_v49, %v3452_v12  ;;  %v1923_v1 = vadd.f32 %v4141_v56, %v1634_v8 }
 0x20b   :  { %v1924_v6 = vpop.f32.mrf.mxu1  ;;  %v2155_v47 = vpop.f32.mrf.mxu0 }
 0x20c   :  { %2305 = vst.msk [vmem:[%s4331_s3 + $0x130] sm:$0xff] %vm2266_vm1, %v2164_v0  ;;  %v2156_v37 = vadd.f32 %v2155_v47, %v1867_v52  ;;  %v4346_v52 = vld [vmem:[#allocation3_spill] sm:$0xff]  ;;  %v1915_v6 = vadd.f32 %v4111_v45, %v1626_v35 }
 0x20d   :  { %v4157_v62 = vpop.f32.mrf.mxu1  ;;  %v2647_v61 = vpop.f32.mrf.mxu0  ;;  %v1637_v0 = vadd.f32 %v3613_v49, %v4346_v52 }
 0x20e   :  { %2303 = vst.msk [vmem:[%s4331_s3 + $0x120] sm:$0xff] %vm2266_vm1, %v2156_v37  ;;  %v2167_v25 = vadd.f32 %v2647_v61, %v1878_v16  ;;  %v1629_v16 = vadd.f32 %v3613_v49, %v4347_v44 }
 0x20f   :  { %v1927_v20 = vpop.f32.mrf.mxu1  ;;  %v2158_v59 = vpop.f32.mrf.mxu0  ;;  %v1926_v37 = vadd.f32 %v4157_v62, %v1637_v0  ;;  %v4356_v0 = vld [vmem:[#allocation12_spill] sm:$0xff] }
 0x210   :  { %2306 = vst.msk [vmem:[%s4331_s3 + $0x138] sm:$0xff] %vm2266_vm1, %v2167_v25  ;;  %v2159_v57 = vadd.f32 %v2158_v59, %v1870_v14  ;;  %v4348_v14 = vld [vmem:[#allocation6_spill] sm:$0xff]  ;;  %v1918_v20 = vadd.f32 %v4125_v22, %v1629_v16 }
 0x211   :  { %v4173_v17 = vpop.f32.mrf.mxu1  ;;  %v2650_v26 = vpop.f32.mrf.mxu0  ;;  %v1650_v25 = vadd.f32 %v3613_v49, %v4348_v14  ;;  %v4358_v14 = vld [vmem:[#allocation13_spill] sm:$0xff] }
 0x212   :  { %2304 = vst.msk [vmem:[%s4331_s3 + $0x128] sm:$0xff] %vm2266_vm1, %v2159_v57  ;;  %v2180_v31 = vadd.f32 %v2650_v26, %v1891_v23  ;;  %v4349_v23 = vld [vmem:[#allocation4_spill] sm:$0xff] }
 0x213   :  { %v1932_v54 = vpop.f32.mrf.mxu1  ;;  %v2171_v5 = vpop.f32.mrf.mxu0  ;;  %v1642_v57 = vadd.f32 %v3613_v49, %v4349_v23 }
 0x214   :  { %2309 = vst.msk [vmem:[%s4331_s3 + $0x150] sm:$0xff] %vm2266_vm1, %v2180_v31  ;;  %v2172_v29 = vadd.f32 %v2171_v5, %v1883_v50  ;;  %v4350_v31 = vld [vmem:[#allocation7_spill] sm:$0xff] }
 0x215   :  { %v4189_v21 = vpop.f32.mrf.mxu1  ;;  %v2651_v34 = vpop.f32.mrf.mxu0  ;;  %v1653_v54 = vadd.f32 %v3613_v49, %v4350_v31  ;;  %v1931_v5 = vadd.f32 %v4173_v17, %v1642_v57 }
 0x216   :  { %2307 = vst.msk [vmem:[%s4331_s3 + $0x140] sm:$0xff] %vm2266_vm1, %v2172_v29  ;;  %v2183_v30 = vadd.f32 %v2651_v34, %v1894_v48  ;;  %v2965_v34 = vld [vmem:[%s4330_s2] ss:$0 sm:$0xff] }
 0x217   :  { %v1935_v13 = vpop.f32.mrf.mxu1  ;;  %v2174_v53 = vpop.f32.mrf.mxu0 }
 0x218   :  { %2310 = vst.msk [vmem:[%s4331_s3 + $0x158] sm:$0xff] %vm2266_vm1, %v2183_v30  ;;  %v2175_v7 = vadd.f32 %v2174_v53, %v1886_v15  ;;  %v1645_v15 = vadd.f32 %v2965_v34, %v4351_v60  ;;  %v4352_v53 = vld [vmem:[#allocation10_spill] sm:$0xff] }
 0x219   :  { %v1938_v55 = vpop.f32.mrf.mxu1  ;;  %v2654_v11 = vpop.f32.mrf.mxu0  ;;  %v1666_v3 = vadd.f32 %v2965_v34, %v4352_v53 }
 0x21a   :  { %2308 = vst.msk [vmem:[%s4331_s3 + $0x148] sm:$0xff] %vm2266_vm1, %v2175_v7  ;;  %v2196_v41 = vadd.f32 %v2654_v11, %v1907_v4  ;;  %v1939_v26 = vadd.f32 %v1938_v55, %v1650_v25  ;;  %v1934_v4 = vadd.f32 %v4189_v21, %v1645_v15  ;;  %v4354_v21 = vld [vmem:[#allocation11_spill] sm:$0xff]  ;;  %v1677_v25 = vadd.f32 %v2965_v34, %v4358_v14 }
 0x21b   :  { %v1940_v43 = vpop.f32.mrf.mxu1  ;;  %v2187_v51 = vpop.f32.mrf.mxu0 }
 0x21c   :  { %2313 = vst.msk [vmem:[%s4331_s3 + $0x170] sm:$0xff] %vm2266_vm1, %v2196_v41  ;;  %v2188_v40 = vadd.f32 %v2187_v51, %v1899_v9  ;;  %v1658_v9 = vadd.f32 %v2965_v34, %v4353_v33 }
 0x21d   :  { %v1941_v2 = vpop.f32.mrf.mxu1  ;;  %v2655_v18 = vpop.f32.mrf.mxu0 }
 0x21e   :  { %2311 = vst.msk [vmem:[%s4331_s3 + $0x160] sm:$0xff] %vm2266_vm1, %v2188_v40  ;;  %v2199_v58 = vadd.f32 %v2655_v18, %v1910_v27  ;;  %v1942_v30 = vadd.f32 %v1941_v2, %v1653_v54  ;;  %v1669_v27 = vadd.f32 %v2965_v34, %v4354_v21 }
 0x21f   :  { %v1943_v36 = vpop.f32.mrf.mxu1  ;;  %v2190_v28 = vpop.f32.mrf.mxu0 }
 0x220   :  { %2314 = vst.msk [vmem:[%s4331_s3 + $0x178] sm:$0xff] %vm2266_vm1, %v2199_v58  ;;  %v2191_v24 = vadd.f32 %v2190_v28, %v1902_v63  ;;  %v4355_v63 = vld [vmem:[#allocation9_spill] sm:$0xff] }
 0x221   :  { %v1946_v10 = vpop.f32.mrf.mxu1  ;;  %v2658_v38 = vpop.f32.mrf.mxu0  ;;  %v1661_v58 = vadd.f32 %v2965_v34, %v4355_v63 }
 0x222   :  { %2312 = vst.msk [vmem:[%s4331_s3 + $0x168] sm:$0xff] %vm2266_vm1, %v2191_v24  ;;  %v2212_v12 = vadd.f32 %v2658_v38, %v1923_v1  ;;  %v1947_v40 = vadd.f32 %v1946_v10, %v1658_v9 }
 0x223   :  { %v1948_v56 = vpop.f32.mrf.mxu1  ;;  %v2203_v47 = vpop.f32.mrf.mxu0 }
 0x224   :  { %2317 = vst.msk [vmem:[%s4331_s3 + $0x190] sm:$0xff] %vm2266_vm1, %v2212_v12  ;;  %v2204_v61 = vadd.f32 %v2203_v47, %v1915_v6  ;;  %v1674_v6 = vadd.f32 %v2965_v34, %v4356_v0  ;;  %v4357_v12 = vld [vmem:[#allocation14_spill] sm:$0xff] }
 0x225   :  { %v1949_v45 = vpop.f32.mrf.mxu1  ;;  %v2659_v46 = vpop.f32.mrf.mxu0  ;;  %v1682_v56 = vadd.f32 %v2965_v34, %v4357_v12 }
 0x226   :  { %2315 = vst.msk [vmem:[%s4331_s3 + $0x180] sm:$0xff] %vm2266_vm1, %v2204_v61  ;;  %v2215_v59 = vadd.f32 %v2659_v46, %v1926_v37  ;;  %v1950_v24 = vadd.f32 %v1949_v45, %v1661_v58 }
 0x227   :  { %v1951_v62 = vpop.f32.mrf.mxu1  ;;  %v2206_v19 = vpop.f32.mrf.mxu0 }
 0x228   :  { %2318 = vst.msk [vmem:[%s4331_s3 + $0x198] sm:$0xff] %vm2266_vm1, %v2215_v59  ;;  %v2207_v39 = vadd.f32 %v2206_v19, %v1918_v20  ;;  %v4359_v20 = vld [vmem:[#allocation15_spill] sm:$0xff] }
 0x229   :  { %v1954_v50 = vpop.f32.mrf.mxu1  ;;  %v2662_v22 = vpop.f32.mrf.mxu0  ;;  %v1685_v59 = vadd.f32 %v2965_v34, %v4359_v20 }
 0x22a   :  { %2316 = vst.msk [vmem:[%s4331_s3 + $0x188] sm:$0xff] %vm2266_vm1, %v2207_v39  ;;  %v2228_v42 = vadd.f32 %v2662_v22, %v1939_v26  ;;  %v1955_v41 = vadd.f32 %v1954_v50, %v1666_v3 }
 0x22b   :  { %v1956_v48 = vpop.f32.mrf.mxu1  ;;  %v2219_v29 = vpop.f32.mrf.mxu0 }
 0x22c   :  { %2321 = vst.msk [vmem:[%s4331_s3 + $0x1b0] sm:$0xff] %vm2266_vm1, %v2228_v42  ;;  %v2220_v49 = vadd.f32 %v2219_v29, %v1931_v5 }
 0x22d   :  { %v1957_v17 = vpop.f32.mrf.mxu1  ;;  %v2663_v13 = vpop.f32.mrf.mxu0 }
 0x22e   :  { %2319 = vst.msk [vmem:[%s4331_s3 + $0x1a0] sm:$0xff] %vm2266_vm1, %v2220_v49  ;;  %v2231_v7 = vadd.f32 %v2663_v13, %v1942_v30  ;;  %v1958_v36 = vadd.f32 %v1957_v17, %v1669_v27 }
 0x22f   :  { %v1959_v55 = vpop.f32.mrf.mxu1  ;;  %v2222_v11 = vpop.f32.mrf.mxu0 }
 0x230   :  { %2322 = vst.msk [vmem:[%s4331_s3 + $0x1b8] sm:$0xff] %vm2266_vm1, %v2231_v7  ;;  %v2223_v43 = vadd.f32 %v2222_v11, %v1934_v4 }
 0x231   :  { %v1962_v51 = vpop.f32.mrf.mxu1  ;;  %v2666_v32 = vpop.f32.mrf.mxu0 }
 0x232   :  { %2320 = vst.msk [vmem:[%s4331_s3 + $0x1a8] sm:$0xff] %vm2266_vm1, %v2223_v43  ;;  %v2244_v2 = vadd.f32 %v2666_v32, %v1955_v41  ;;  %v1963_v37 = vadd.f32 %v1962_v51, %v1674_v6 }
 0x233   :  { %v1964_v18 = vpop.f32.mrf.mxu1  ;;  %v2235_v8 = vpop.f32.mrf.mxu0 }
 0x234   :  { %2325 = vst.msk [vmem:[%s4331_s3 + $0x1d0] sm:$0xff] %vm2266_vm1, %v2244_v2  ;;  %v2236_v28 = vadd.f32 %v2235_v8, %v1947_v40 }
 0x235   :  { %v1965_v35 = vpop.f32.mrf.mxu1  ;;  %v2667_v1 = vpop.f32.mrf.mxu0 }
 0x236   :  { %2323 = vst.msk [vmem:[%s4331_s3 + $0x1c0] sm:$0xff] %vm2266_vm1, %v2236_v28  ;;  %v2247_v10 = vadd.f32 %v2667_v1, %v1958_v36  ;;  %v1966_v26 = vadd.f32 %v1965_v35, %v1677_v25 }
 0x237   :  { %v1967_v38 = vpop.f32.mrf.mxu1  ;;  %v2238_v52 = vpop.f32.mrf.mxu0 }
 0x238   :  { %2326 = vst.msk [vmem:[%s4331_s3 + $0x1d8] sm:$0xff] %vm2266_vm1, %v2247_v10  ;;  %v2239_v47 = vadd.f32 %v2238_v52, %v1950_v24 }
 0x239   :  { %v1970_v44 = vpop.f32.mrf.mxu1  ;;  %v2670_v16 = vpop.f32.mrf.mxu0 }
 0x23a   :  { %2324 = vst.msk [vmem:[%s4331_s3 + $0x1c8] sm:$0xff] %vm2266_vm1, %v2239_v47  ;;  %v1971_v61 = vadd.f32 %v1970_v44, %v1682_v56 }
 0x23b   :  { %v1972_v45 = vpop.f32.mrf.mxu1  ;;  %v2251_v46 = vpop.f32.mrf.mxu0 }
 0x23c   :  { %v2260_v62 = vadd.f32 %v2670_v16, %v1971_v61  ;;  %v2252_v19 = vadd.f32 %v2251_v46, %v1963_v37 }
 0x23d   :  { %v1973_v23 = vpop.f32.mrf.mxu1  ;;  %v2671_v57 = vpop.f32.mrf.mxu0 }
 0x23e   :  { %2329 = vst.msk [vmem:[%s4331_s3 + $0x1f0] sm:$0xff] %vm2266_vm1, %v2260_v62  ;;  %2327 = vst.msk [vmem:[%s4331_s3 + $0x1e0] sm:$0xff] %vm2266_vm1, %v2252_v19  ;;  %v1974_v39 = vadd.f32 %v1973_v23, %v1685_v59 }
 0x23f   :  { %v1975_v50 = vpop.f32.mrf.mxu1  ;;  %v2254_v22 = vpop.f32.mrf.mxu0 }
 0x240   :  { %v2263_v31 = vadd.f32 %v2671_v57, %v1974_v39  ;;  %v2255_v54 = vadd.f32 %v2254_v22, %v1966_v26 }
 0x242   :  { %2330 = vst.msk [vmem:[%s4331_s3 + $0x1f8] sm:$0xff] %vm2266_vm1, %v2263_v31  ;;  %2328 = vst.msk [vmem:[%s4331_s3 + $0x1e8] sm:$0xff] %vm2266_vm1, %v2255_v54 }

// kernel: _lambda_.25
= control target key start
LH: loop header
LB: loop body
LE: loop exit
PB: predicated region body
PF: predicated region fallthrough
CT: control target
= control target key end

     0   :  { %s2341_s12 = smov 0   ;;  %s2343_s13 = smov 0   ;;  %s2907_s0 = inlined_call_operand.vmem [shape: bf16[2048,288], index: 0, kind: input, shape index: {}]   ;;  %s2908_s1 = inlined_call_operand.vmem [shape: bf16[288,16], index: 1, kind: input, shape index: {}]   ;;  %s2909_s2 = inlined_call_operand.vmem [shape: f32[1,16], index: 2, kind: input, shape index: {}]   ;;  %s2910_s3 = inlined_call_operand.vmem [shape: f32[2048,16], index: 3, kind: output, shape index: {}]  }
   0x1   :  { %s2345_s14 = smov 0  }
   0x2 LB: > { %s25_s15 = sadd.s32 1, %s2314_s13  ;;  %p1836_p0 = scmp.ge.s32.totalorder %s2318_s14, 1  ;;  %s2318_s14 = sphi %s2345_s14, %s13_s14   ;;  %s2314_s13 = sphi %s2343_s13, %s2912_s13   ;;  %s2310_s12 = sphi %s2341_s12, %s2911_s12  }
   0x3   : > { %p27_p1 = scmp.ge.s32.totalorder %s25_s15, 4  ;;  %p170_p2 = scmp.lt.s32.totalorder %s2318_s14, 5 }
   0x5   : > { %s2914_s15 = smov (%p27_p1, %s25_s15), 0  ;;  %p171_p3 = pnand %p1836_p0, %p170_p2 }
   0x6   : > { %s1837_s18 = sshll.u32 (!%p171_p3), %s2310_s12, 6 }
   0x7   : > { %174 = sbr.rel (%p171_p3) target bundleno = 463 (0x1cf), region = 32  ;;  %p206_p4 = scmp.lt.s32.totalorder (!%p171_p3), %s1837_s18, 255 }
   0xc   : > { %v2150_v0 = vld [vmem:[%s2908_s1 + $0x38] sm:$0xff]   ;;  %v2320_v1 = vmov 0   ;;  %v2151_v2 = vld [vmem:[%s2908_s1 + $0x30] sm:$0xff]   ;;  %v2152_v3 = vld [vmem:[%s2908_s1 + $0x28] sm:$0xff]   ;;  %s2916_s18 = smov (!%p206_p4, %s1837_s18), 255  ;;  %vm988_vm0 = vcmask 261120  }
   0xd   : > { %1085 = vmatprep.subr.bf16.mxu0 %v2320_v1  ;;  %2092 = vmatprep.subr.bf16.mxu1 %v2320_v1  ;;  %v2153_v4 = vld [vmem:[%s2908_s1 + $0x20] sm:$0xff]   ;;  %s2124_s25 = smul.u32 12, %s2916_s18  ;;  %v2154_v5 = vld [vmem:[%s2908_s1 + $0x18] sm:$0xff]   ;;  %v2155_v7 = vld [vmem:[%s2908_s1 + $0x10] sm:$0xff]   ;;  %vm1663_vm1 = vcmask 130048  }
   0xe   : > { %1086 = vmatpush1.bf16.msra.mxu0 %v2150_v0  ;;  %2108 = vmatpush1.bf16.msra.mxu1 %v2150_v0  ;;  %v2156_v9 = vld [vmem:[%s2908_s1 + $0x8] sm:$0xff]   ;;  %v2157_v10 = vld [vmem:[%s2908_s1] sm:$0xff]   ;;  %v2158_v11 = vld [vmem:[%s2908_s1 + $0x78] sm:$0xff]  }
   0xf   : > { %1087 = vmatprep.subr.bf16.mxu0 %v2320_v1  ;;  %2093 = vmatprep.subr.bf16.mxu1 %v2320_v1  ;;  %s2388_s30 = scalar_lea.vmem %s2907_s0, %s2124_s25  ;;  %v2159_v12 = vld [vmem:[%s2908_s1 + $0x70] sm:$0xff]   ;;  %v2160_v13 = vld [vmem:[%s2908_s1 + $0x68] sm:$0xff]   ;;  %v2161_v14 = vld [vmem:[%s2908_s1 + $0x60] sm:$0xff]  }
  0x10   : > { %v2168_v6 = vld [vmem:[%s2388_s30 + $0x4] ss:$12 sps:$4 sm:$0xff]   ;;  %v2162_v15 = vld [vmem:[%s2908_s1 + $0x58] sm:$0xff]   ;;  %v2164_v17 = vld [vmem:[%s2908_s1 + $0x48] sm:$0xff]  }
  0x11   : > { %v2171_v8 = vld [vmem:[%s2388_s30 + $0x244] ss:$12 sps:$4 sm:$0xff]   ;;  %1117 = vmatprep.mubr.bf16.mxu0 %v2168_v6  ;;  %v2172_v19 = vld [vmem:[%s2908_s1 + $0x88] sm:$0xff]   ;;  %v2179_v27 = vld [vmem:[%s2388_s30 + $0x34] ss:$12 sps:$4 sm:$0xff]  }
  0x12   : > { %1088 = vmatpush1.bf16.msra.mxu0 %v2151_v2  ;;  %2109 = vmatpush1.bf16.msra.mxu1 %v2151_v2  ;;  %v2163_v16 = vld [vmem:[%s2908_s1 + $0x50] sm:$0xff]   ;;  %v2165_v18 = vld [vmem:[%s2908_s1 + $0x40] sm:$0xff]   ;;  %v2173_v22 = vld [vmem:[%s2388_s30 + $0x1c] ss:$12 sps:$4 sm:$0xff]  }
  0x13   : > { %1089 = vmatprep.subr.bf16.mxu0 %v2320_v1  ;;  %2094 = vmatprep.subr.bf16.mxu1 %v2320_v1  ;;  %v2166_v20 = vld [vmem:[%s2388_s30] ss:$12 sps:$4 sm:$0xff]   ;;  %v2175_v23 = vld [vmem:[%s2388_s30 + $0x25c] ss:$12 sps:$4 sm:$0xff]   ;;  %v2177_v25 = vld [vmem:[%s2388_s30 + $0x18] ss:$12 sps:$4 sm:$0xff]  }
  0x14   : > { %1309 = vmatprep.mubr.bf16.mxu1 %v2171_v8  ;;  %v2169_v21 = vld [vmem:[%s2388_s30 + $0x240] ss:$12 sps:$4 sm:$0xff]   ;;  %v2178_v26 = vld [vmem:[%s2388_s30 + $0x258] ss:$12 sps:$4 sm:$0xff]   ;;  %v2183_v29 = vld [vmem:[%s2388_s30 + $0x30] ss:$12 sps:$4 sm:$0xff]  }
  0x15   : > { %v2197_v24 = vld [vmem:[%s2908_s1 + $0x80] sm:$0xff]   ;;  %v2184_v30 = vld [vmem:[%s2388_s30 + $0x270] ss:$12 sps:$4 sm:$0xff]   ;;  %v2185_v31 = vld [vmem:[%s2388_s30 + $0x4c] ss:$12 sps:$4 sm:$0xff]  }
  0x16   : > { %1090 = vmatpush1.bf16.msra.mxu0 %v2152_v3  ;;  %2110 = vmatpush1.bf16.msra.mxu1 %v2152_v3  ;;  %v2181_v28 = vld [vmem:[%s2388_s30 + $0x274] ss:$12 sps:$4 sm:$0xff]   ;;  %v2187_v32 = vld [vmem:[%s2388_s30 + $0x28c] ss:$12 sps:$4 sm:$0xff]   ;;  %v2191_v35 = vld [vmem:[%s2388_s30 + $0x64] ss:$12 sps:$4 sm:$0xff]  }
  0x17   : > { %1091 = vmatprep.subr.bf16.mxu0 %v2320_v1  ;;  %2095 = vmatprep.subr.bf16.mxu1 %v2320_v1  ;;  %v2189_v33 = vld [vmem:[%s2388_s30 + $0x48] ss:$12 sps:$4 sm:$0xff]   ;;  %v2193_v36 = vld [vmem:[%s2388_s30 + $0x2a4] ss:$12 sps:$4 sm:$0xff]   ;;  %v2195_v37 = vld [vmem:[%s2388_s30 + $0x60] ss:$12 sps:$4 sm:$0xff]  }
  0x18   : > { %v2190_v34 = vld [vmem:[%s2388_s30 + $0x288] ss:$12 sps:$4 sm:$0xff]   ;;  %v2196_v38 = vld [vmem:[%s2388_s30 + $0x2a0] ss:$12 sps:$4 sm:$0xff]   ;;  %v2202_v41 = vld [vmem:[%s2388_s30 + $0x78] ss:$12 sps:$4 sm:$0xff]  }
  0x19   : > { %v2198_v39 = vld [vmem:[%s2388_s30 + $0x7c] ss:$12 sps:$4 sm:$0xff]   ;;  %v2203_v42 = vld [vmem:[%s2388_s30 + $0x2b8] ss:$12 sps:$4 sm:$0xff]   ;;  %v2204_v43 = vld [vmem:[%s2388_s30 + $0x94] ss:$12 sps:$4 sm:$0xff]  }
  0x1a   : > { %1092 = vmatpush1.bf16.msra.mxu0 %v2153_v4  ;;  %2111 = vmatpush1.bf16.msra.mxu1 %v2153_v4  ;;  %v2200_v40 = vld [vmem:[%s2388_s30 + $0x2bc] ss:$12 sps:$4 sm:$0xff]   ;;  %v2206_v44 = vld [vmem:[%s2388_s30 + $0x2d4] ss:$12 sps:$4 sm:$0xff]   ;;  %v2210_v47 = vld [vmem:[%s2388_s30 + $0xac] ss:$12 sps:$4 sm:$0xff]  }
  0x1b   : > { %1093 = vmatprep.subr.bf16.mxu0 %v2320_v1  ;;  %2096 = vmatprep.subr.bf16.mxu1 %v2320_v1  ;;  %v2208_v45 = vld [vmem:[%s2388_s30 + $0x90] ss:$12 sps:$4 sm:$0xff]   ;;  %v2212_v48 = vld [vmem:[%s2388_s30 + $0x2ec] ss:$12 sps:$4 sm:$0xff]   ;;  %v2214_v49 = vld [vmem:[%s2388_s30 + $0xa8] ss:$12 sps:$4 sm:$0xff]  }
  0x1c   : > { %v2209_v46 = vld [vmem:[%s2388_s30 + $0x2d0] ss:$12 sps:$4 sm:$0xff]   ;;  %v2215_v50 = vld [vmem:[%s2388_s30 + $0x2e8] ss:$12 sps:$4 sm:$0xff]   ;;  %v2219_v53 = vld [vmem:[%s2388_s30 + $0xc0] ss:$12 sps:$4 sm:$0xff]  }
  0x1d   : > { %v2216_v51 = vld [vmem:[%s2388_s30 + $0xc4] ss:$12 sps:$4 sm:$0xff]   ;;  %v2218_v52 = vld [vmem:[%s2388_s30 + $0x8] ss:$12 sps:$4 sm:$0xff]   ;;  %v2220_v54 = vld [vmem:[%s2388_s30 + $0x20] ss:$12 sps:$4 sm:$0xff]  }
  0x1e   : > { %1094 = vmatpush1.bf16.msra.mxu0 %v2154_v5  ;;  %2112 = vmatpush1.bf16.msra.mxu1 %v2154_v5  ;;  %v2221_v55 = vld [vmem:[%s2388_s30 + $0xdc] ss:$12 sps:$4 sm:$0xff]   ;;  %v2223_v56 = vld [vmem:[%s2388_s30 + $0x38] ss:$12 sps:$4 sm:$0xff]   ;;  %v2226_v59 = vld [vmem:[%s2388_s30 + $0xf4] ss:$12 sps:$4 sm:$0xff]  }
  0x1f   : > { %1095 = vmatprep.subr.bf16.mxu0 %v2320_v1  ;;  %2097 = vmatprep.subr.bf16.mxu1 %v2320_v1  ;;  %v2224_v57 = vld [vmem:[%s2388_s30 + $0xd8] ss:$12 sps:$4 sm:$0xff]   ;;  %v2225_v58 = vld [vmem:[%s2388_s30 + $0x50] ss:$12 sps:$4 sm:$0xff]   ;;  %v2228_v60 = vld [vmem:[%s2388_s30 + $0x68] ss:$12 sps:$4 sm:$0xff]  }
  0x20   : > { %v2229_v61 = vld [vmem:[%s2388_s30 + $0xf0] ss:$12 sps:$4 sm:$0xff]   ;;  %v2230_v62 = vld [vmem:[%s2388_s30 + $0x80] ss:$12 sps:$4 sm:$0xff]   ;;  %v2233_v0 = vld [vmem:[%s2388_s30 + $0x98] ss:$12 sps:$4 sm:$0xff]  }
  0x21   : > { %v2231_v63 = vld [vmem:[%s2388_s30 + $0x10c] ss:$12 sps:$4 sm:$0xff]   ;;  %v2235_v2 = vld [vmem:[%s2388_s30 + $0xb0] ss:$12 sps:$4 sm:$0xff]   ;;  %v2238_v4 = vld [vmem:[%s2388_s30 + $0xc8] ss:$12 sps:$4 sm:$0xff]  }
  0x22   : > { %1096 = vmatpush1.bf16.msra.mxu0 %v2155_v7  ;;  %2113 = vmatpush1.bf16.msra.mxu1 %v2155_v7  ;;  %v2236_v3 = vld [vmem:[%s2388_s30 + $0x124] ss:$12 sps:$4 sm:$0xff]   ;;  %v2239_v5 = vld [vmem:[%s2388_s30 + $0x120] ss:$12 sps:$4 sm:$0xff]   ;;  %v2241_v7 = vld [vmem:[%s2388_s30 + $0x13c] ss:$12 sps:$4 sm:$0xff]  }
  0x23   : > { %1097 = vmatprep.subr.bf16.mxu0 %v2320_v1  ;;  %2098 = vmatprep.subr.bf16.mxu1 %v2320_v1  ;;  %v2240_v6 = vld [vmem:[%s2388_s30 + $0xe0] ss:$12 sps:$4 sm:$0xff]   ;;  %v2243_v8 = vld [vmem:[%s2388_s30 + $0xf8] ss:$12 sps:$4 sm:$0xff]  }
  0x26   : > { %1098 = vmatpush1.bf16.msra.mxu0 %v2156_v9  ;;  %2114 = vmatpush1.bf16.msra.mxu1 %v2156_v9  ;;  %v2244_v9 = vld [vmem:[%s2388_s30 + $0x138] ss:$12 sps:$4 sm:$0xff]  }
  0x27   : > { %1099 = vmatprep.subr.bf16.mxu0 %v2320_v1  ;;  %2099 = vmatprep.subr.bf16.mxu1 %v2320_v1 }
  0x2a   : > { %1100 = vmatpush1.bf16.msra.mxu0 %v2157_v10  ;;  %2115 = vmatpush1.bf16.msra.mxu1 %v2157_v10  ;;  %v2245_v10 = vld [vmem:[%s2388_s30 + $0x110] ss:$12 sps:$4 sm:$0xff]  }
  0x2b   : > { %1101 = vmatprep.subr.bf16.mxu0 %v2320_v1  ;;  %2100 = vmatprep.subr.bf16.mxu1 %v2320_v1 }
  0x2e   : > { %1102 = vmatpush2.bf16.msra.mxu0 %v2158_v11  ;;  %2116 = vmatpush2.bf16.msra.mxu1 %v2158_v11  ;;  %v2246_v11 = vld [vmem:[%s2388_s30 + $0x154] ss:$12 sps:$4 sm:$0xff]  }
  0x2f   : > { %1103 = vmatprep.subr.bf16.mxu0 %v2320_v1  ;;  %2101 = vmatprep.subr.bf16.mxu1 %v2320_v1 }
  0x32   : > { %1104 = vmatpush2.bf16.msra.mxu0 %v2159_v12  ;;  %2117 = vmatpush2.bf16.msra.mxu1 %v2159_v12  ;;  %v2248_v12 = vld [vmem:[%s2388_s30 + $0x128] ss:$12 sps:$4 sm:$0xff]  }
  0x33   : > { %1105 = vmatprep.subr.bf16.mxu0 %v2320_v1  ;;  %2102 = vmatprep.subr.bf16.mxu1 %v2320_v1 }
  0x36   : > { %1106 = vmatpush2.bf16.msra.mxu0 %v2160_v13  ;;  %2118 = vmatpush2.bf16.msra.mxu1 %v2160_v13  ;;  %v2249_v13 = vld [vmem:[%s2388_s30 + $0x150] ss:$12 sps:$4 sm:$0xff]  }
  0x37   : > { %1107 = vmatprep.subr.bf16.mxu0 %v2320_v1  ;;  %2103 = vmatprep.subr.bf16.mxu1 %v2320_v1 }
  0x3a   : > { %1108 = vmatpush2.bf16.msra.mxu0 %v2161_v14  ;;  %2119 = vmatpush2.bf16.msra.mxu1 %v2161_v14  ;;  %v2250_v14 = vld [vmem:[%s2388_s30 + $0x140] ss:$12 sps:$4 sm:$0xff]  }
  0x3b   : > { %1109 = vmatprep.subr.bf16.mxu0 %v2320_v1  ;;  %2104 = vmatprep.subr.bf16.mxu1 %v2320_v1 }
  0x3e   : > { %1110 = vmatpush2.bf16.msra.mxu0 %v2162_v15  ;;  %2120 = vmatpush2.bf16.msra.mxu1 %v2162_v15  ;;  %v2251_v15 = vld [vmem:[%s2388_s30 + $0x16c] ss:$12 sps:$4 sm:$0xff]  }
  0x3f   : > { %1111 = vmatprep.subr.bf16.mxu0 %v2320_v1  ;;  %2105 = vmatprep.subr.bf16.mxu1 %v2320_v1 }
  0x42   : > { %1112 = vmatpush2.bf16.msra.mxu0 %v2163_v16  ;;  %2121 = vmatpush2.bf16.msra.mxu1 %v2163_v16  ;;  %v2253_v16 = vld [vmem:[%s2388_s30 + $0x158] ss:$12 sps:$4 sm:$0xff]  }
  0x43   : > { %1113 = vmatprep.subr.bf16.mxu0 %v2320_v1  ;;  %2106 = vmatprep.subr.bf16.mxu1 %v2320_v1 }
  0x46   : > { %1114 = vmatpush2.bf16.msra.mxu0 %v2164_v17  ;;  %2122 = vmatpush2.bf16.msra.mxu1 %v2164_v17  ;;  %v2254_v17 = vld [vmem:[%s2388_s30 + $0x168] ss:$12 sps:$4 sm:$0xff]  }
  0x47   : > { %1115 = vmatprep.subr.bf16.mxu0 %v2320_v1  ;;  %2107 = vmatprep.subr.bf16.mxu1 %v2320_v1  ;;  %v2234_v1 = vld [vmem:[%s2388_s30 + $0x108] ss:$12 sps:$4 sm:$0xff]  }
  0x4a   : > { %1116 = vmatpush2.bf16.msra.mxu0 %v2165_v18  ;;  %2123 = vmatpush2.bf16.msra.mxu1 %v2165_v18  ;;  %v2255_v18 = vld [vmem:[%s2388_s30 + $0x170] ss:$12 sps:$4 sm:$0xff]  }
  0x4b   : > { %2024 = vmatprep.subr.bf16.mxu1 %v2172_v19 }
  0x4d   : > { %1118 = vmatmul.mubr.bf16.vlgmr.msra.gmra.mxu0 %v2166_v20  ;;  %1310 = vmatmul.mubr.bf16.vlgmr.msra.gmra.mxu1 %v2169_v21  ;;  %v2258_v20 = vld [vmem:[%s2388_s30 + $0x188] ss:$12 sps:$4 sm:$0xff]   ;;  %v2259_v21 = vld [vmem:[%s2388_s30 + $0x180] ss:$12 sps:$4 sm:$0xff]  }
  0x4e   : > { %2025 = vmatpush3.bf16.msra.mxu1 %v2172_v19  ;;  %1125 = vmatprep.mubr.bf16.mxu0 %v2173_v22  ;;  %v2256_v19 = vld [vmem:[%s2388_s30 + $0x184] ss:$12 sps:$4 sm:$0xff]   ;;  %v2260_v22 = vld [vmem:[%s2388_s30 + $0x1a0] ss:$12 sps:$4 sm:$0xff]  }
  0x4f   : > { %1317 = vmatprep.mubr.bf16.mxu1 %v2175_v23  ;;  %2026 = vmatprep.subr.bf16.mxu1 %v2197_v24  ;;  %v2261_v23 = vld [vmem:[%s2388_s30 + $0x19c] ss:$12 sps:$4 sm:$0xff]  }
  0x52   : > { %2027 = vmatpush3.bf16.msra.mxu1 %v2197_v24  ;;  %v2263_v24 = vld [vmem:[%s2388_s30 + $0x1b8] ss:$12 sps:$4 sm:$0xff]  }
  0x55   : > { %1126 = vmatmul.mubr.bf16.gmra.mxu0 %v2177_v25  ;;  %1318 = vmatmul.mubr.bf16.gmra.mxu1 %v2178_v26  ;;  %v2264_v25 = vld [vmem:[%s2388_s30 + $0x198] ss:$12 sps:$4 sm:$0xff]   ;;  %v2265_v26 = vld [vmem:[%s2388_s30 + $0x1d0] ss:$12 sps:$4 sm:$0xff]  }
  0x56   : > { %1133 = vmatprep.mubr.bf16.mxu0 %v2179_v27  ;;  %1325 = vmatprep.mubr.bf16.mxu1 %v2181_v28  ;;  %v2266_v27 = vld [vmem:[%s2388_s30 + $0x1b4] ss:$12 sps:$4 sm:$0xff]  }
  0x57   : > { %v2268_v28 = vld [vmem:[%s2388_s30 + $0x1e8] ss:$12 sps:$4 sm:$0xff]  }
  0x5d   : > { %1134 = vmatmul.mubr.bf16.gmra.mxu0 %v2183_v29  ;;  %1326 = vmatmul.mubr.bf16.gmra.mxu1 %v2184_v30  ;;  %v2269_v29 = vld [vmem:[%s2388_s30 + $0x1b0] ss:$12 sps:$4 sm:$0xff]   ;;  %v2270_v30 = vld [vmem:[%s2388_s30 + $0x200] ss:$12 sps:$4 sm:$0xff]  }
  0x5e   : > { %1141 = vmatprep.mubr.bf16.mxu0 %v2185_v31  ;;  %1333 = vmatprep.mubr.bf16.mxu1 %v2187_v32  ;;  %v2271_v31 = vld [vmem:[%s2388_s30 + $0x1cc] ss:$12 sps:$4 sm:$0xff]  }
  0x5f   : > { %v2273_v32 = vld [vmem:[%s2388_s30 + $0x218] ss:$12 sps:$4 sm:$0xff]  }
  0x65   : > { %1142 = vmatmul.mubr.bf16.gmra.mxu0 %v2189_v33  ;;  %1334 = vmatmul.mubr.bf16.gmra.mxu1 %v2190_v34  ;;  %v2274_v33 = vld [vmem:[%s2388_s30 + $0x1c8] ss:$12 sps:$4 sm:$0xff]   ;;  %v2275_v34 = vld [vmem:[%s2388_s30 + $0x230] ss:$12 sps:$4 sm:$0xff]  }
  0x66   : > { %1149 = vmatprep.mubr.bf16.mxu0 %v2191_v35  ;;  %1341 = vmatprep.mubr.bf16.mxu1 %v2193_v36  ;;  %v2276_v35 = vld [vmem:[%s2388_s30 + $0x1e4] ss:$12 sps:$4 sm:$0xff]   ;;  %v2278_v36 = vld [vmem:[%s2388_s30 + $0x248] ss:$12 sps:$4 sm:$0xff]  }
  0x6d   : > { %1150 = vmatmul.mubr.bf16.gmra.mxu0 %v2195_v37  ;;  %1342 = vmatmul.mubr.bf16.gmra.mxu1 %v2196_v38  ;;  %v2279_v37 = vld [vmem:[%s2388_s30 + $0x1e0] ss:$12 sps:$4 sm:$0xff]  }
  0x6e   : > { %1157 = vmatprep.mubr.bf16.mxu0 %v2198_v39  ;;  %1349 = vmatprep.mubr.bf16.mxu1 %v2200_v40  ;;  %v2280_v38 = vld [vmem:[%s2388_s30 + $0x260] ss:$12 sps:$4 sm:$0xff]   ;;  %v2281_v39 = vld [vmem:[%s2388_s30 + $0x1fc] ss:$12 sps:$4 sm:$0xff]   ;;  %v2283_v40 = vld [vmem:[%s2388_s30 + $0x278] ss:$12 sps:$4 sm:$0xff]  }
  0x75   : > { %1158 = vmatmul.mubr.bf16.gmra.mxu0 %v2202_v41  ;;  %1350 = vmatmul.mubr.bf16.gmra.mxu1 %v2203_v42  ;;  %v2284_v41 = vld [vmem:[%s2388_s30 + $0x1f8] ss:$12 sps:$4 sm:$0xff]   ;;  %v2285_v42 = vld [vmem:[%s2388_s30 + $0x290] ss:$12 sps:$4 sm:$0xff]  }
  0x76   : > { %1165 = vmatprep.mubr.bf16.mxu0 %v2204_v43  ;;  %1357 = vmatprep.mubr.bf16.mxu1 %v2206_v44  ;;  %v2286_v43 = vld [vmem:[%s2388_s30 + $0x214] ss:$12 sps:$4 sm:$0xff]  }
  0x77   : > { %v2288_v44 = vld [vmem:[%s2388_s30 + $0x2a8] ss:$12 sps:$4 sm:$0xff]  }
  0x7d   : > { %1166 = vmatmul.mubr.bf16.gmra.mxu0 %v2208_v45  ;;  %1358 = vmatmul.mubr.bf16.gmra.mxu1 %v2209_v46  ;;  %v2289_v45 = vld [vmem:[%s2388_s30 + $0x210] ss:$12 sps:$4 sm:$0xff]   ;;  %v2290_v46 = vld [vmem:[%s2388_s30 + $0x2c0] ss:$12 sps:$4 sm:$0xff]  }
  0x7e   : > { %1173 = vmatprep.mubr.bf16.mxu0 %v2210_v47  ;;  %1365 = vmatprep.mubr.bf16.mxu1 %v2212_v48  ;;  %v2291_v47 = vld [vmem:[%s2388_s30 + $0x22c] ss:$12 sps:$4 sm:$0xff]  }
  0x7f   : > { %v2293_v48 = vld [vmem:[%s2388_s30 + $0x2d8] ss:$12 sps:$4 sm:$0xff]  }
  0x85   : > { %1174 = vmatmul.mubr.bf16.gmra.mxu0 %v2214_v49  ;;  %1366 = vmatmul.mubr.bf16.gmra.mxu1 %v2215_v50  ;;  %v2294_v49 = vld [vmem:[%s2388_s30 + $0x228] ss:$12 sps:$4 sm:$0xff]   ;;  %v2295_v50 = vld [vmem:[%s2388_s30 + $0x2f0] ss:$12 sps:$4 sm:$0xff]   ;;  %s1840_s30 = sshll.u32 %s2916_s18, 3 }
  0x86   : > { %1181 = vmatprep.mubr.bf16.mxu0 %v2216_v51  ;;  %2028 = vmatprep.mubr.msk.bf16.mxu1 %vm988_vm0, %v2218_v52  ;;  %s2653_s12 = scalar_lea.vmem %s2910_s3, %s1840_s30 }
  0x8d   : > { %1182 = vmatmul.mubr.bf16.gmra.mxu0 %v2219_v53  ;;  %2029 = vmatmul.mubr.msk.bf16.vlgmr.msra.gmra.mxu1 %vm988_vm0, %v2220_v54 }
  0x8e   : > { %1189 = vmatprep.mubr.bf16.mxu0 %v2221_v55  ;;  %2032 = vmatprep.mubr.msk.bf16.mxu1 %vm988_vm0, %v2223_v56 }
  0x95   : > { %1190 = vmatmul.mubr.bf16.gmra.mxu0 %v2224_v57  ;;  %2033 = vmatmul.mubr.msk.bf16.gmra.mxu1 %vm988_vm0, %v2225_v58 }
  0x96   : > { %1197 = vmatprep.mubr.bf16.mxu0 %v2226_v59  ;;  %2036 = vmatprep.mubr.msk.bf16.mxu1 %vm988_vm0, %v2228_v60 }
  0x9d   : > { %1198 = vmatmul.mubr.bf16.gmra.mxu0 %v2229_v61  ;;  %2037 = vmatmul.mubr.msk.bf16.gmra.mxu1 %vm988_vm0, %v2230_v62 }
  0x9e   : > { %1205 = vmatprep.mubr.bf16.mxu0 %v2231_v63  ;;  %2040 = vmatprep.mubr.msk.bf16.mxu1 %vm988_vm0, %v2233_v0 }
  0xa5   : > { %1206 = vmatmul.mubr.bf16.gmra.mxu0 %v2234_v1  ;;  %2041 = vmatmul.mubr.msk.bf16.gmra.mxu1 %vm988_vm0, %v2235_v2 }
  0xa6   : > { %1213 = vmatprep.mubr.bf16.mxu0 %v2236_v3  ;;  %2044 = vmatprep.mubr.msk.bf16.mxu1 %vm988_vm0, %v2238_v4 }
  0xad   : > { %1214 = vmatmul.mubr.bf16.gmra.mxu0 %v2239_v5  ;;  %2045 = vmatmul.mubr.msk.bf16.gmra.mxu1 %vm988_vm0, %v2240_v6 }
  0xae   : > { %1221 = vmatprep.mubr.bf16.mxu0 %v2241_v7  ;;  %2048 = vmatprep.mubr.msk.bf16.mxu1 %vm988_vm0, %v2243_v8 }
  0xb5   : > { %1222 = vmatmul.mubr.bf16.gmra.mxu0 %v2244_v9  ;;  %2049 = vmatmul.mubr.msk.bf16.gmra.mxu1 %vm988_vm0, %v2245_v10 }
  0xb6   : > { %1229 = vmatprep.mubr.bf16.mxu0 %v2246_v11  ;;  %2052 = vmatprep.mubr.msk.bf16.mxu1 %vm988_vm0, %v2248_v12 }
  0xbd   : > { %1230 = vmatmul.mubr.bf16.gmra.mxu0 %v2249_v13  ;;  %2053 = vmatmul.mubr.msk.bf16.gmra.mxu1 %vm988_vm0, %v2250_v14 }
  0xbe   : > { %1237 = vmatprep.mubr.bf16.mxu0 %v2251_v15  ;;  %2056 = vmatprep.mubr.msk.bf16.mxu1 %vm988_vm0, %v2253_v16 }
  0xc5   : > { %1238 = vmatmul.mubr.bf16.gmra.mxu0 %v2254_v17  ;;  %2057 = vmatmul.mubr.msk.bf16.gmra.mxu1 %vm988_vm0, %v2255_v18 }
  0xc6   : > { %1245 = vmatprep.mubr.bf16.mxu0 %v2256_v19  ;;  %2060 = vmatprep.mubr.msk.bf16.mxu1 %vm988_vm0, %v2258_v20 }
  0xcd   : > { %1246 = vmatmul.mubr.bf16.gmra.mxu0 %v2259_v21  ;;  %2061 = vmatmul.mubr.msk.bf16.gmra.mxu1 %vm988_vm0, %v2260_v22 }
  0xce   : > { %1253 = vmatprep.mubr.bf16.mxu0 %v2261_v23  ;;  %2064 = vmatprep.mubr.msk.bf16.mxu1 %vm988_vm0, %v2263_v24 }
  0xd5   : > { %1254 = vmatmul.mubr.bf16.gmra.mxu0 %v2264_v25  ;;  %2065 = vmatmul.mubr.msk.bf16.gmra.mxu1 %vm988_vm0, %v2265_v26 }
  0xd6   : > { %1261 = vmatprep.mubr.bf16.mxu0 %v2266_v27  ;;  %2068 = vmatprep.mubr.msk.bf16.mxu1 %vm988_vm0, %v2268_v28 }
  0xdd   : > { %1262 = vmatmul.mubr.bf16.gmra.mxu0 %v2269_v29  ;;  %2069 = vmatmul.mubr.msk.bf16.gmra.mxu1 %vm988_vm0, %v2270_v30 }
  0xde   : > { %1269 = vmatprep.mubr.bf16.mxu0 %v2271_v31  ;;  %2072 = vmatprep.mubr.msk.bf16.mxu1 %vm988_vm0, %v2273_v32 }
  0xe5   : > { %1270 = vmatmul.mubr.bf16.gmra.mxu0 %v2274_v33  ;;  %2073 = vmatmul.mubr.msk.bf16.gmra.mxu1 %vm988_vm0, %v2275_v34 }
  0xe6   : > { %1277 = vmatprep.mubr.bf16.mxu0 %v2276_v35  ;;  %2076 = vmatprep.mubr.msk.bf16.mxu1 %vm988_vm0, %v2278_v36 }
  0xed   : > { %1278 = vmatmul.mubr.bf16.gmra.mxu0 %v2279_v37  ;;  %2077 = vmatmul.mubr.msk.bf16.gmra.mxu1 %vm988_vm0, %v2280_v38 }
  0xee   : > { %1285 = vmatprep.mubr.bf16.mxu0 %v2281_v39  ;;  %2080 = vmatprep.mubr.msk.bf16.mxu1 %vm988_vm0, %v2283_v40 }
  0xf5   : > { %1286 = vmatmul.mubr.bf16.gmra.mxu0 %v2284_v41  ;;  %2081 = vmatmul.mubr.msk.bf16.gmra.mxu1 %vm988_vm0, %v2285_v42 }
  0xf6   : > { %1293 = vmatprep.mubr.bf16.mxu0 %v2286_v43  ;;  %2084 = vmatprep.mubr.msk.bf16.mxu1 %vm988_vm0, %v2288_v44 }
  0xfd   : > { %1294 = vmatmul.mubr.bf16.gmra.mxu0 %v2289_v45  ;;  %2085 = vmatmul.mubr.msk.bf16.gmra.mxu1 %vm988_vm0, %v2290_v46 }
  0xfe   : > { %1301 = vmatprep.mubr.bf16.mxu0 %v2291_v47  ;;  %2088 = vmatprep.mubr.msk.bf16.mxu1 %vm988_vm0, %v2293_v48 }
 0x105   : > { %1302 = vmatmul.mubr.bf16.gmra.mxu0 %v2294_v49  ;;  %2089 = vmatmul.mubr.msk.bf16.gmra.mxu1 %vm988_vm0, %v2295_v50  ;;  %v2645_v49 = vld [vmem:[%s2909_s2] ss:$0 sm:$0xff] }
 0x10d   : > { %v2581_v51 = vpop.f32.mrf.mxu0  ;;  %v2583_v52 = vpop.f32.mrf.mxu1 }
 0x10f   : > { %v1121_v53 = vpop.f32.mrf.mxu0  ;;  %v1313_v54 = vpop.f32.mrf.mxu1 }
 0x111   : > { %v2585_v55 = vpop.f32.mrf.mxu0  ;;  %v2587_v56 = vpop.f32.mrf.mxu1 }
 0x113   : > { %v1124_v57 = vpop.f32.mrf.mxu0  ;;  %v1316_v58 = vpop.f32.mrf.mxu1 }
 0x115   : > { %v1127_v59 = vpop.f32.mrf.mxu0  ;;  %v2589_v60 = vpop.f32.mrf.mxu1 }
 0x116   : > { %v1128_v54 = vadd.f32 %v2645_v49, %v1127_v59 }
 0x117   : > { %v1129_v61 = vpop.f32.mrf.mxu0  ;;  %v1321_v62 = vpop.f32.mrf.mxu1 }
 0x118   : > { %v1120_v61 = vadd.f32 %v2645_v49, %v2581_v51 }
 0x119   : > { %v2591_v63 = vpop.f32.mrf.mxu0  ;;  %v2593_v0 = vpop.f32.mrf.mxu1 }
 0x11a   : > { %v1131_v59 = vadd.f32 %v2645_v49, %v2591_v63 }
 0x11b   : > { %v1132_v1 = vpop.f32.mrf.mxu0  ;;  %v1324_v2 = vpop.f32.mrf.mxu1 }
 0x11d   : > { %v2595_v3 = vpop.f32.mrf.mxu0  ;;  %v2597_v4 = vpop.f32.mrf.mxu1 }
 0x11f   : > { %v1137_v5 = vpop.f32.mrf.mxu0  ;;  %v1329_v6 = vpop.f32.mrf.mxu1 }
 0x121   : > { %v2599_v7 = vpop.f32.mrf.mxu0  ;;  %v2601_v8 = vpop.f32.mrf.mxu1 }
 0x123   : > { %v1140_v9 = vpop.f32.mrf.mxu0  ;;  %v1332_v10 = vpop.f32.mrf.mxu1 }
 0x124   : > { %v1123_v10 = vadd.f32 %v2645_v49, %v2585_v55 }
 0x125   : > { %v1143_v11 = vpop.f32.mrf.mxu0  ;;  %v2603_v12 = vpop.f32.mrf.mxu1 }
 0x127   : > { %v1145_v13 = vpop.f32.mrf.mxu0  ;;  %v1337_v14 = vpop.f32.mrf.mxu1 }
 0x129   : > { %v2605_v15 = vpop.f32.mrf.mxu0  ;;  %v2607_v16 = vpop.f32.mrf.mxu1 }
 0x12b   : > { %v1148_v17 = vpop.f32.mrf.mxu0  ;;  %v1340_v18 = vpop.f32.mrf.mxu1 }
 0x12c   : > { %v1144_v17 = vadd.f32 %v2645_v49, %v1143_v11 }
 0x12d   : > { %v2609_v19 = vpop.f32.mrf.mxu0  ;;  %v2611_v20 = vpop.f32.mrf.mxu1 }
 0x12f   : > { %v1153_v21 = vpop.f32.mrf.mxu0  ;;  %v1345_v22 = vpop.f32.mrf.mxu1 }
 0x130   : > { %v1136_v22 = vadd.f32 %v2645_v49, %v2595_v3 }
 0x131   : > { %v2613_v23 = vpop.f32.mrf.mxu0  ;;  %v2615_v24 = vpop.f32.mrf.mxu1 }
 0x133   : > { %v1156_v25 = vpop.f32.mrf.mxu0  ;;  %v1348_v26 = vpop.f32.mrf.mxu1 }
 0x135   : > { %v2617_v27 = vpop.f32.mrf.mxu0  ;;  %v2619_v28 = vpop.f32.mrf.mxu1 }
 0x137   : > { %v1161_v29 = vpop.f32.mrf.mxu0  ;;  %v1353_v30 = vpop.f32.mrf.mxu1 }
 0x138   : > { %v1147_v29 = vadd.f32 %v2645_v49, %v2605_v15 }
 0x139   : > { %v2621_v31 = vpop.f32.mrf.mxu0  ;;  %v2623_v32 = vpop.f32.mrf.mxu1 }
 0x13b   : > { %v1164_v33 = vpop.f32.mrf.mxu0  ;;  %v1356_v34 = vpop.f32.mrf.mxu1 }
 0x13c   : > { %v1139_v34 = vadd.f32 %v2645_v49, %v2599_v7 }
 0x13d   : > { %v2625_v35 = vpop.f32.mrf.mxu0  ;;  %v2627_v36 = vpop.f32.mrf.mxu1 }
 0x13f   : > { %v1169_v37 = vpop.f32.mrf.mxu0  ;;  %v1361_v38 = vpop.f32.mrf.mxu1 }
 0x141   : > { %v2629_v39 = vpop.f32.mrf.mxu0  ;;  %v2631_v40 = vpop.f32.mrf.mxu1 }
 0x143   : > { %v1172_v41 = vpop.f32.mrf.mxu0  ;;  %v1364_v42 = vpop.f32.mrf.mxu1 }
 0x144   : > { %v1160_v41 = vadd.f32 %v2645_v49, %v2617_v27 }
 0x145   : > { %v2633_v43 = vpop.f32.mrf.mxu0  ;;  %v2635_v44 = vpop.f32.mrf.mxu1 }
 0x147   : > { %v1177_v45 = vpop.f32.mrf.mxu0  ;;  %v1369_v46 = vpop.f32.mrf.mxu1 }
 0x148   : > { %v1152_v46 = vadd.f32 %v2645_v49, %v2609_v19 }
 0x149   : > { %v2637_v47 = vpop.f32.mrf.mxu0  ;;  %v2639_v48 = vpop.f32.mrf.mxu1 }
 0x14b   : > { %v1180_v50 = vpop.f32.mrf.mxu0  ;;  %v1372_v53 = vpop.f32.mrf.mxu1 }
 0x14d   : > { %v2648_v57 = vpop.f32.mrf.mxu0  ;;  %v2030_v58 = vpop.f32.mrf.mxu1 }
 0x14e   : > { %v1417_v62 = vadd.f32 %v2030_v58, %v1128_v54  ;;  %v1163_v54 = vadd.f32 %v2645_v49, %v2621_v31 }
 0x14f   : > { %v1185_v1 = vpop.f32.mrf.mxu0  ;;  %v1408_v2 = vpop.f32.mrf.mxu1 }
 0x150   : > { %1666 = vst.msk [vmem:[%s2653_s12 + $0x10] sm:$0xff] %vm1663_vm1, %v1417_v62  ;;  %v1409_v5 = vadd.f32 %v1408_v2, %v1120_v61  ;;  %v1155_v62 = vadd.f32 %v2645_v49, %v2613_v23 }
 0x151   : > { %v2661_v6 = vpop.f32.mrf.mxu0  ;;  %v2031_v9 = vpop.f32.mrf.mxu1 }
 0x152   : > { %1664 = vst.msk [vmem:[%s2653_s12] sm:$0xff] %vm1663_vm1, %v1409_v5  ;;  %v1420_v51 = vadd.f32 %v2031_v9, %v1131_v59  ;;  %v1176_v59 = vadd.f32 %v2645_v49, %v2633_v43 }
 0x153   : > { %v1188_v13 = vpop.f32.mrf.mxu0  ;;  %v1411_v14 = vpop.f32.mrf.mxu1 }
 0x154   : > { %1667 = vst.msk [vmem:[%s2653_s12 + $0x18] sm:$0xff] %vm1663_vm1, %v1420_v51  ;;  %v1412_v63 = vadd.f32 %v1411_v14, %v1123_v10  ;;  %v1168_v10 = vadd.f32 %v2645_v49, %v2625_v35  ;;  %v1179_v14 = vadd.f32 %v2645_v49, %v2637_v47 }
 0x155   : > { %v1191_v18 = vpop.f32.mrf.mxu0  ;;  %v2034_v21 = vpop.f32.mrf.mxu1 }
 0x156   : > { %1665 = vst.msk [vmem:[%s2653_s12 + $0x8] sm:$0xff] %vm1663_vm1, %v1412_v63  ;;  %v1433_v55 = vadd.f32 %v2034_v21, %v1144_v17  ;;  %v1171_v21 = vadd.f32 %v2645_v49, %v2629_v39 }
 0x157   : > { %v1193_v25 = vpop.f32.mrf.mxu0  ;;  %v1424_v26 = vpop.f32.mrf.mxu1 }
 0x158   : > { %1670 = vst.msk [vmem:[%s2653_s12 + $0x30] sm:$0xff] %vm1663_vm1, %v1433_v55  ;;  %v1425_v11 = vadd.f32 %v1424_v26, %v1136_v22  ;;  %v1192_v25 = vadd.f32 %v2645_v49, %v1191_v18 }
 0x159   : > { %v1194_v30 = vpop.f32.mrf.mxu0  ;;  %v2035_v33 = vpop.f32.mrf.mxu1 }
 0x15a   : > { %1668 = vst.msk [vmem:[%s2653_s12 + $0x20] sm:$0xff] %vm1663_vm1, %v1425_v11  ;;  %v1436_v3 = vadd.f32 %v2035_v33, %v1147_v29  ;;  %v1184_v11 = vadd.f32 %v2645_v49, %v2648_v57 }
 0x15b   : > { %v1196_v37 = vpop.f32.mrf.mxu0  ;;  %v1427_v38 = vpop.f32.mrf.mxu1 }
 0x15c   : > { %1671 = vst.msk [vmem:[%s2653_s12 + $0x38] sm:$0xff] %vm1663_vm1, %v1436_v3  ;;  %v1428_v15 = vadd.f32 %v1427_v38, %v1139_v34  ;;  %v1195_v3 = vadd.f32 %v2645_v49, %v1194_v30 }
 0x15d   : > { %v1199_v42 = vpop.f32.mrf.mxu0  ;;  %v2038_v45 = vpop.f32.mrf.mxu1 }
 0x15e   : > { %1669 = vst.msk [vmem:[%s2653_s12 + $0x28] sm:$0xff] %vm1663_vm1, %v1428_v15  ;;  %v1449_v7 = vadd.f32 %v2038_v45, %v1160_v41  ;;  %v1187_v41 = vadd.f32 %v2645_v49, %v2661_v6 }
 0x15f   : > { %v1201_v50 = vpop.f32.mrf.mxu0  ;;  %v1440_v53 = vpop.f32.mrf.mxu1 }
 0x160   : > { %1674 = vst.msk [vmem:[%s2653_s12 + $0x50] sm:$0xff] %vm1663_vm1, %v1449_v7  ;;  %v1441_v27 = vadd.f32 %v1440_v53, %v1152_v46  ;;  %v1200_v53 = vadd.f32 %v2645_v49, %v1199_v42 }
 0x161   : > { %v1202_v58 = vpop.f32.mrf.mxu0  ;;  %v2039_v61 = vpop.f32.mrf.mxu1 }
 0x162   : > { %1672 = vst.msk [vmem:[%s2653_s12 + $0x40] sm:$0xff] %vm1663_vm1, %v1441_v27  ;;  %v1452_v19 = vadd.f32 %v2039_v61, %v1163_v54 }
 0x163   : > { %v1204_v1 = vpop.f32.mrf.mxu0  ;;  %v1443_v2 = vpop.f32.mrf.mxu1 }
 0x164   : > { %1675 = vst.msk [vmem:[%s2653_s12 + $0x58] sm:$0xff] %vm1663_vm1, %v1452_v19  ;;  %v1444_v31 = vadd.f32 %v1443_v2, %v1155_v62  ;;  %v1203_v2 = vadd.f32 %v2645_v49, %v1202_v58 }
 0x165   : > { %v1207_v5 = vpop.f32.mrf.mxu0  ;;  %v2042_v9 = vpop.f32.mrf.mxu1 }
 0x166   : > { %1673 = vst.msk [vmem:[%s2653_s12 + $0x48] sm:$0xff] %vm1663_vm1, %v1444_v31  ;;  %v1465_v23 = vadd.f32 %v2042_v9, %v1176_v59  ;;  %v1208_v46 = vadd.f32 %v2645_v49, %v1207_v5 }
 0x167   : > { %v1209_v51 = vpop.f32.mrf.mxu0  ;;  %v1456_v13 = vpop.f32.mrf.mxu1 }
 0x168   : > { %1678 = vst.msk [vmem:[%s2653_s12 + $0x70] sm:$0xff] %vm1663_vm1, %v1465_v23  ;;  %v1457_v43 = vadd.f32 %v1456_v13, %v1168_v10 }
 0x169   : > { %v1210_v17 = vpop.f32.mrf.mxu0  ;;  %v2043_v63 = vpop.f32.mrf.mxu1 }
 0x16a   : > { %1676 = vst.msk [vmem:[%s2653_s12 + $0x60] sm:$0xff] %vm1663_vm1, %v1457_v43  ;;  %v1468_v35 = vadd.f32 %v2043_v63, %v1179_v14  ;;  %v1211_v61 = vadd.f32 %v2645_v49, %v1210_v17 }
 0x16b   : > { %v1212_v22 = vpop.f32.mrf.mxu0  ;;  %v1459_v55 = vpop.f32.mrf.mxu1 }
 0x16c   : > { %1679 = vst.msk [vmem:[%s2653_s12 + $0x78] sm:$0xff] %vm1663_vm1, %v1468_v35  ;;  %v1460_v47 = vadd.f32 %v1459_v55, %v1171_v21 }
 0x16d   : > { %v1215_v26 = vpop.f32.mrf.mxu0  ;;  %v2046_v29 = vpop.f32.mrf.mxu1 }
 0x16e   : > { %1677 = vst.msk [vmem:[%s2653_s12 + $0x68] sm:$0xff] %vm1663_vm1, %v1460_v47  ;;  %v1481_v39 = vadd.f32 %v2046_v29, %v1192_v25  ;;  %v1216_v51 = vadd.f32 %v2645_v49, %v1215_v26 }
 0x16f   : > { %v1217_v33 = vpop.f32.mrf.mxu0  ;;  %v1472_v34 = vpop.f32.mrf.mxu1 }
 0x170   : > { %1682 = vst.msk [vmem:[%s2653_s12 + $0x90] sm:$0xff] %vm1663_vm1, %v1481_v39  ;;  %v1473_v18 = vadd.f32 %v1472_v34, %v1184_v11 }
 0x171   : > { %v1218_v37 = vpop.f32.mrf.mxu0  ;;  %v2047_v38 = vpop.f32.mrf.mxu1 }
 0x172   : > { %1680 = vst.msk [vmem:[%s2653_s12 + $0x80] sm:$0xff] %vm1663_vm1, %v1473_v18  ;;  %v1484_v57 = vadd.f32 %v2047_v38, %v1195_v3  ;;  %v1219_v35 = vadd.f32 %v2645_v49, %v1218_v37 }
 0x173   : > { %v1220_v15 = vpop.f32.mrf.mxu0  ;;  %v1475_v45 = vpop.f32.mrf.mxu1 }
 0x174   : > { %1683 = vst.msk [vmem:[%s2653_s12 + $0x98] sm:$0xff] %vm1663_vm1, %v1484_v57  ;;  %v1476_v30 = vadd.f32 %v1475_v45, %v1187_v41 }
 0x175   : > { %v1223_v7 = vpop.f32.mrf.mxu0  ;;  %v2050_v50 = vpop.f32.mrf.mxu1 }
 0x176   : > { %1681 = vst.msk [vmem:[%s2653_s12 + $0x88] sm:$0xff] %vm1663_vm1, %v1476_v30  ;;  %v1497_v6 = vadd.f32 %v2050_v50, %v1208_v46  ;;  %v1224_v5 = vadd.f32 %v2645_v49, %v1223_v7 }
 0x177   : > { %v1225_v54 = vpop.f32.mrf.mxu0  ;;  %v1488_v27 = vpop.f32.mrf.mxu1 }
 0x178   : > { %1686 = vst.msk [vmem:[%s2653_s12 + $0xb0] sm:$0xff] %vm1663_vm1, %v1497_v6  ;;  %v1489_v62 = vadd.f32 %v1488_v27, %v1200_v53 }
 0x179   : > { %v1226_v19 = vpop.f32.mrf.mxu0  ;;  %v2051_v1 = vpop.f32.mrf.mxu1 }
 0x17a   : > { %1684 = vst.msk [vmem:[%s2653_s12 + $0xa0] sm:$0xff] %vm1663_vm1, %v1489_v62  ;;  %v1500_v42 = vadd.f32 %v2051_v1, %v1211_v61  ;;  %v1227_v43 = vadd.f32 %v2645_v49, %v1226_v19 }
 0x17b   : > { %v1228_v59 = vpop.f32.mrf.mxu0  ;;  %v1491_v31 = vpop.f32.mrf.mxu1 }
 0x17c   : > { %1687 = vst.msk [vmem:[%s2653_s12 + $0xb8] sm:$0xff] %vm1663_vm1, %v1500_v42  ;;  %v1492_v9 = vadd.f32 %v1491_v31, %v1203_v2 }
 0x17d   : > { %v1231_v10 = vpop.f32.mrf.mxu0  ;;  %v2054_v23 = vpop.f32.mrf.mxu1 }
 0x17e   : > { %1685 = vst.msk [vmem:[%s2653_s12 + $0xa8] sm:$0xff] %vm1663_vm1, %v1492_v9  ;;  %v1513_v58 = vadd.f32 %v2054_v23, %v1224_v5  ;;  %v1232_v11 = vadd.f32 %v2645_v49, %v1231_v10 }
 0x17f   : > { %v1233_v13 = vpop.f32.mrf.mxu0  ;;  %v1504_v14 = vpop.f32.mrf.mxu1 }
 0x180   : > { %1690 = vst.msk [vmem:[%s2653_s12 + $0xd0] sm:$0xff] %vm1663_vm1, %v1513_v58  ;;  %v1505_v17 = vadd.f32 %v1504_v14, %v1216_v51 }
 0x181   : > { %v1234_v63 = vpop.f32.mrf.mxu0  ;;  %v2055_v21 = vpop.f32.mrf.mxu1 }
 0x182   : > { %1688 = vst.msk [vmem:[%s2653_s12 + $0xc0] sm:$0xff] %vm1663_vm1, %v1505_v17  ;;  %v1516_v22 = vadd.f32 %v2055_v21, %v1227_v43  ;;  %v1235_v41 = vadd.f32 %v2645_v49, %v1234_v63 }
 0x183   : > { %v1236_v55 = vpop.f32.mrf.mxu0  ;;  %v1507_v25 = vpop.f32.mrf.mxu1 }
 0x184   : > { %1691 = vst.msk [vmem:[%s2653_s12 + $0xd8] sm:$0xff] %vm1663_vm1, %v1516_v22  ;;  %v1508_v47 = vadd.f32 %v1507_v25, %v1219_v35 }
 0x185   : > { %v1239_v26 = vpop.f32.mrf.mxu0  ;;  %v2058_v29 = vpop.f32.mrf.mxu1 }
 0x186   : > { %1689 = vst.msk [vmem:[%s2653_s12 + $0xc8] sm:$0xff] %vm1663_vm1, %v1508_v47  ;;  %v1240_v39 = vadd.f32 %v2645_v49, %v1239_v26 }
 0x187   : > { %v1241_v33 = vpop.f32.mrf.mxu0  ;;  %v1520_v34 = vpop.f32.mrf.mxu1 }
 0x188   : > { %v1529_v3 = vadd.f32 %v2058_v29, %v1240_v39  ;;  %v1521_v18 = vadd.f32 %v1520_v34, %v1232_v11 }
 0x189   : > { %v1242_v37 = vpop.f32.mrf.mxu0  ;;  %v2059_v38 = vpop.f32.mrf.mxu1 }
 0x18a   : > { %1694 = vst.msk [vmem:[%s2653_s12 + $0xf0] sm:$0xff] %vm1663_vm1, %v1529_v3  ;;  %1692 = vst.msk [vmem:[%s2653_s12 + $0xe0] sm:$0xff] %vm1663_vm1, %v1521_v18  ;;  %v1243_v57 = vadd.f32 %v2645_v49, %v1242_v37 }
 0x18b   : > { %v1244_v15 = vpop.f32.mrf.mxu0  ;;  %v1523_v45 = vpop.f32.mrf.mxu1 }
 0x18c   : > { %v1532_v46 = vadd.f32 %v2059_v38, %v1243_v57  ;;  %v1524_v30 = vadd.f32 %v1523_v45, %v1235_v41 }
 0x18d   : > { %v1247_v7 = vpop.f32.mrf.mxu0  ;;  %v2062_v50 = vpop.f32.mrf.mxu1 }
 0x18e   : > { %1695 = vst.msk [vmem:[%s2653_s12 + $0xf8] sm:$0xff] %vm1663_vm1, %v1532_v46  ;;  %1693 = vst.msk [vmem:[%s2653_s12 + $0xe8] sm:$0xff] %vm1663_vm1, %v1524_v30  ;;  %v1248_v53 = vadd.f32 %v2645_v49, %v1247_v7  ;;  %v1320_v7 = vadd.f32 %v2645_v49, %v2589_v60 }
 0x18f   : > { %v1249_v6 = vpop.f32.mrf.mxu0  ;;  %v1536_v54 = vpop.f32.mrf.mxu1 }
 0x190   : > { %v1537_v27 = vadd.f32 %v1536_v54, %v1248_v53  ;;  %v1312_v54 = vadd.f32 %v2645_v49, %v2583_v52  ;;  %v1315_v52 = vadd.f32 %v2645_v49, %v2587_v56 }
 0x191   : > { %v1250_v61 = vpop.f32.mrf.mxu0  ;;  %v2063_v62 = vpop.f32.mrf.mxu1 }
 0x192   : > { %1696 = vst.msk [vmem:[%s2653_s12 + $0x100] sm:$0xff] %vm1663_vm1, %v1537_v27  ;;  %v1251_v19 = vadd.f32 %v2645_v49, %v1250_v61 }
 0x193   : > { %v1252_v1 = vpop.f32.mrf.mxu0  ;;  %v1539_v2 = vpop.f32.mrf.mxu1 }
 0x194   : > { %v1540_v42 = vadd.f32 %v1539_v2, %v1251_v19  ;;  %v1323_v1 = vadd.f32 %v2645_v49, %v2593_v0 }
 0x195   : > { %v1255_v59 = vpop.f32.mrf.mxu0  ;;  %v2066_v31 = vpop.f32.mrf.mxu1 }
 0x196   : > { %1697 = vst.msk [vmem:[%s2653_s12 + $0x108] sm:$0xff] %vm1663_vm1, %v1540_v42  ;;  %v1256_v5 = vadd.f32 %v2645_v49, %v1255_v59 }
 0x197   : > { %v1257_v9 = vpop.f32.mrf.mxu0  ;;  %v1552_v10 = vpop.f32.mrf.mxu1 }
 0x198   : > { %v1545_v23 = vadd.f32 %v2062_v50, %v1256_v5 }
 0x199   : > { %v1258_v51 = vpop.f32.mrf.mxu0  ;;  %v2067_v58 = vpop.f32.mrf.mxu1 }
 0x19a   : > { %1698 = vst.msk [vmem:[%s2653_s12 + $0x110] sm:$0xff] %vm1663_vm1, %v1545_v23  ;;  %v1259_v13 = vadd.f32 %v2645_v49, %v1258_v51 }
 0x19b   : > { %v1260_v14 = vpop.f32.mrf.mxu0  ;;  %v1555_v43 = vpop.f32.mrf.mxu1 }
 0x19c   : > { %v1548_v17 = vadd.f32 %v2063_v62, %v1259_v13  ;;  %v1328_v13 = vadd.f32 %v2645_v49, %v2597_v4 }
 0x19d   : > { %v1263_v63 = vpop.f32.mrf.mxu0  ;;  %v2778_v21 = vpop.f32.mrf.mxu1 }
 0x19e   : > { %1699 = vst.msk [vmem:[%s2653_s12 + $0x118] sm:$0xff] %vm1663_vm1, %v1548_v17  ;;  %v1264_v35 = vadd.f32 %v2645_v49, %v1263_v63  ;;  %v1339_v63 = vadd.f32 %v2645_v49, %v2607_v16 }
 0x19f   : > { %v1265_v22 = vpop.f32.mrf.mxu0  ;;  %v1568_v55 = vpop.f32.mrf.mxu1 }
 0x1a0   : > { %v1553_v25 = vadd.f32 %v1552_v10, %v1264_v35  ;;  %v1336_v10 = vadd.f32 %v2645_v49, %v2603_v12 }
 0x1a1   : > { %v1266_v47 = vpop.f32.mrf.mxu0  ;;  %v2783_v26 = vpop.f32.mrf.mxu1 }
 0x1a2   : > { %1700 = vst.msk [vmem:[%s2653_s12 + $0x120] sm:$0xff] %vm1663_vm1, %v1553_v25  ;;  %v1267_v29 = vadd.f32 %v2645_v49, %v1266_v47  ;;  %v1331_v25 = vadd.f32 %v2645_v49, %v2601_v8 }
 0x1a3   : > { %v1268_v11 = vpop.f32.mrf.mxu0  ;;  %v1571_v39 = vpop.f32.mrf.mxu1 }
 0x1a4   : > { %v1556_v33 = vadd.f32 %v1555_v43, %v1267_v29 }
 0x1a5   : > { %v1271_v34 = vpop.f32.mrf.mxu0  ;;  %v2788_v3 = vpop.f32.mrf.mxu1 }
 0x1a6   : > { %1701 = vst.msk [vmem:[%s2653_s12 + $0x128] sm:$0xff] %vm1663_vm1, %v1556_v33  ;;  %v1272_v18 = vadd.f32 %v2645_v49, %v1271_v34 }
 0x1a7   : > { %v1273_v37 = vpop.f32.mrf.mxu0  ;;  %v2793_v38 = vpop.f32.mrf.mxu1 }
 0x1a8   : > { %v1561_v41 = vadd.f32 %v2066_v31, %v1272_v18  ;;  %v1344_v18 = vadd.f32 %v2645_v49, %v2611_v20 }
 0x1a9   : > { %v1274_v57 = vpop.f32.mrf.mxu0  ;;  %v2795_v15 = vpop.f32.mrf.mxu1 }
 0x1aa   : > { %1702 = vst.msk [vmem:[%s2653_s12 + $0x130] sm:$0xff] %vm1663_vm1, %v1561_v41  ;;  %v1275_v45 = vadd.f32 %v2645_v49, %v1274_v57 }
 0x1ab   : > { %v1276_v46 = vpop.f32.mrf.mxu0  ;;  %v2800_v30 = vpop.f32.mrf.mxu1 }
 0x1ac   : > { %v1564_v50 = vadd.f32 %v2067_v58, %v1275_v45 }
 0x1ad   : > { %v1279_v53 = vpop.f32.mrf.mxu0  ;;  %v2078_v6 = vpop.f32.mrf.mxu1 }
 0x1ae   : > { %1703 = vst.msk [vmem:[%s2653_s12 + $0x138] sm:$0xff] %vm1663_vm1, %v1564_v50  ;;  %v1280_v27 = vadd.f32 %v2645_v49, %v1279_v53  ;;  %v1609_v61 = vadd.f32 %v2078_v6, %v1320_v7  ;;  %v1347_v50 = vadd.f32 %v2645_v49, %v2615_v24 }
 0x1af   : > { %v1281_v62 = vpop.f32.mrf.mxu0  ;;  %v1600_v19 = vpop.f32.mrf.mxu1 }
 0x1b0   : > { %v1569_v60 = vadd.f32 %v1568_v55, %v1280_v27  ;;  %1714 = vst.msk [vmem:[%s2653_s12 + $0x190] sm:$0xff] %vm1663_vm1, %v1609_v61  ;;  %v1601_v2 = vadd.f32 %v1600_v19, %v1312_v54  ;;  %v1360_v19 = vadd.f32 %v2645_v49, %v2627_v36 }
 0x1b1   : > { %v1282_v42 = vpop.f32.mrf.mxu0  ;;  %v2079_v59 = vpop.f32.mrf.mxu1 }
 0x1b2   : > { %1704 = vst.msk [vmem:[%s2653_s12 + $0x140] sm:$0xff] %vm1663_vm1, %v1569_v60  ;;  %1712 = vst.msk [vmem:[%s2653_s12 + $0x180] sm:$0xff] %vm1663_vm1, %v1601_v2  ;;  %v1283_v31 = vadd.f32 %v2645_v49, %v1282_v42  ;;  %v1612_v5 = vadd.f32 %v2079_v59, %v1323_v1  ;;  %v1371_v2 = vadd.f32 %v2645_v49, %v2639_v48 }
 0x1b3   : > { %v1284_v9 = vpop.f32.mrf.mxu0  ;;  %v1603_v0 = vpop.f32.mrf.mxu1 }
 0x1b4   : > { %v1572_v23 = vadd.f32 %v1571_v39, %v1283_v31  ;;  %1715 = vst.msk [vmem:[%s2653_s12 + $0x198] sm:$0xff] %vm1663_vm1, %v1612_v5  ;;  %v1604_v51 = vadd.f32 %v1603_v0, %v1315_v52  ;;  %v1363_v31 = vadd.f32 %v2645_v49, %v2631_v40 }
 0x1b5   : > { %v1287_v58 = vpop.f32.mrf.mxu0  ;;  %v2082_v56 = vpop.f32.mrf.mxu1 }
 0x1b6   : > { %1705 = vst.msk [vmem:[%s2653_s12 + $0x148] sm:$0xff] %vm1663_vm1, %v1572_v23  ;;  %1713 = vst.msk [vmem:[%s2653_s12 + $0x188] sm:$0xff] %vm1663_vm1, %v1604_v51  ;;  %v1288_v14 = vadd.f32 %v2645_v49, %v1287_v58  ;;  %v1625_v43 = vadd.f32 %v2082_v56, %v1336_v10 }
 0x1b7   : > { %v1289_v17 = vpop.f32.mrf.mxu0  ;;  %v1616_v12 = vpop.f32.mrf.mxu1 }
 0x1b8   : > { %v1577_v35 = vadd.f32 %v2778_v21, %v1288_v14  ;;  %1718 = vst.msk [vmem:[%s2653_s12 + $0x1b0] sm:$0xff] %vm1663_vm1, %v1625_v43  ;;  %v1617_v22 = vadd.f32 %v1616_v12, %v1328_v13  ;;  %v1352_v21 = vadd.f32 %v2645_v49, %v2619_v28 }
 0x1b9   : > { %v1290_v55 = vpop.f32.mrf.mxu0  ;;  %v2083_v4 = vpop.f32.mrf.mxu1 }
 0x1ba   : > { %1706 = vst.msk [vmem:[%s2653_s12 + $0x150] sm:$0xff] %vm1663_vm1, %v1577_v35  ;;  %1716 = vst.msk [vmem:[%s2653_s12 + $0x1a0] sm:$0xff] %vm1663_vm1, %v1617_v22  ;;  %v1291_v47 = vadd.f32 %v2645_v49, %v1290_v55  ;;  %v1628_v29 = vadd.f32 %v2083_v4, %v1339_v63 }
 0x1bb   : > { %v1292_v16 = vpop.f32.mrf.mxu0  ;;  %v1619_v11 = vpop.f32.mrf.mxu1 }
 0x1bc   : > { %v1580_v39 = vadd.f32 %v2783_v26, %v1291_v47  ;;  %1719 = vst.msk [vmem:[%s2653_s12 + $0x1b8] sm:$0xff] %vm1663_vm1, %v1628_v29  ;;  %v1620_v33 = vadd.f32 %v1619_v11, %v1331_v25  ;;  %v1355_v26 = vadd.f32 %v2645_v49, %v2623_v32 }
 0x1bd   : > { %v1295_v34 = vpop.f32.mrf.mxu0  ;;  %v2086_v8 = vpop.f32.mrf.mxu1 }
 0x1be   : > { %1707 = vst.msk [vmem:[%s2653_s12 + $0x158] sm:$0xff] %vm1663_vm1, %v1580_v39  ;;  %1717 = vst.msk [vmem:[%s2653_s12 + $0x1a8] sm:$0xff] %vm1663_vm1, %v1620_v33  ;;  %v1296_v37 = vadd.f32 %v2645_v49, %v1295_v34  ;;  %v1641_v41 = vadd.f32 %v2086_v8, %v1352_v21 }
 0x1bf   : > { %v1297_v28 = vpop.f32.mrf.mxu0  ;;  %v1632_v57 = vpop.f32.mrf.mxu1 }
 0x1c0   : > { %v1585_v45 = vadd.f32 %v2793_v38, %v1296_v37  ;;  %1722 = vst.msk [vmem:[%s2653_s12 + $0x1d0] sm:$0xff] %vm1663_vm1, %v1641_v41  ;;  %v1633_v46 = vadd.f32 %v1632_v57, %v1344_v18  ;;  %v1368_v38 = vadd.f32 %v2645_v49, %v2635_v44 }
 0x1c1   : > { %v1298_v7 = vpop.f32.mrf.mxu0  ;;  %v2087_v20 = vpop.f32.mrf.mxu1 }
 0x1c2   : > { %1708 = vst.msk [vmem:[%s2653_s12 + $0x160] sm:$0xff] %vm1663_vm1, %v1585_v45  ;;  %1720 = vst.msk [vmem:[%s2653_s12 + $0x1c0] sm:$0xff] %vm1663_vm1, %v1633_v46  ;;  %v1299_v53 = vadd.f32 %v2645_v49, %v1298_v7  ;;  %v1644_v6 = vadd.f32 %v2087_v20, %v1355_v26 }
 0x1c3   : > { %v1300_v32 = vpop.f32.mrf.mxu0  ;;  %v1635_v54 = vpop.f32.mrf.mxu1 }
 0x1c4   : > { %v1588_v27 = vadd.f32 %v2800_v30, %v1299_v53  ;;  %1723 = vst.msk [vmem:[%s2653_s12 + $0x1d8] sm:$0xff] %vm1663_vm1, %v1644_v6  ;;  %v1636_v61 = vadd.f32 %v1635_v54, %v1347_v50 }
 0x1c5   : > { %v1303_v62 = vpop.f32.mrf.mxu0  ;;  %v2090_v24 = vpop.f32.mrf.mxu1 }
 0x1c6   : > { %1709 = vst.msk [vmem:[%s2653_s12 + $0x168] sm:$0xff] %vm1663_vm1, %v1588_v27  ;;  %1721 = vst.msk [vmem:[%s2653_s12 + $0x1c8] sm:$0xff] %vm1663_vm1, %v1636_v61  ;;  %v1304_v1 = vadd.f32 %v2645_v49, %v1303_v62  ;;  %v1657_v60 = vadd.f32 %v2090_v24, %v1368_v38 }
 0x1c7   : > { %v1305_v44 = vpop.f32.mrf.mxu0  ;;  %v1648_v30 = vpop.f32.mrf.mxu1 }
 0x1c8   : > { %v1593_v42 = vadd.f32 %v2788_v3, %v1304_v1  ;;  %1726 = vst.msk [vmem:[%s2653_s12 + $0x1f0] sm:$0xff] %vm1663_vm1, %v1657_v60  ;;  %v1649_v36 = vadd.f32 %v1648_v30, %v1360_v19 }
 0x1c9   : > { %v1306_v59 = vpop.f32.mrf.mxu0  ;;  %v2091_v52 = vpop.f32.mrf.mxu1 }
 0x1ca   : > { %1710 = vst.msk [vmem:[%s2653_s12 + $0x170] sm:$0xff] %vm1663_vm1, %v1593_v42  ;;  %1724 = vst.msk [vmem:[%s2653_s12 + $0x1e0] sm:$0xff] %vm1663_vm1, %v1649_v36  ;;  %v1307_v5 = vadd.f32 %v2645_v49, %v1306_v59  ;;  %v1660_v9 = vadd.f32 %v2091_v52, %v1371_v2 }
 0x1cb   : > { %v1308_v48 = vpop.f32.mrf.mxu0  ;;  %v1651_v0 = vpop.f32.mrf.mxu1 }
 0x1cc   : > { %v1596_v3 = vadd.f32 %v2795_v15, %v1307_v5  ;;  %1727 = vst.msk [vmem:[%s2653_s12 + $0x1f8] sm:$0xff] %vm1663_vm1, %v1660_v9  ;;  %v1652_v10 = vadd.f32 %v1651_v0, %v1363_v31 }
 0x1ce   : > { %1711 = vst.msk [vmem:[%s2653_s12 + $0x178] sm:$0xff] %vm1663_vm1, %v1596_v3  ;;  %1725 = vst.msk [vmem:[%s2653_s12 + $0x1e8] sm:$0xff] %vm1663_vm1, %v1652_v10 }
 0x1cf PF: > { %s13_s14 = sadd.s32 1, %s2318_s14   ;;  %s2911_s12 = smov %s2314_s13 }
 0x1d0   : > { %p10_p5 = scmp.ge.s32.totalorder %s13_s14, 6   ;;  %s2912_s13 = smov %s2914_s15 }
 0x1d2   :  { %12 = sbr.rel (!%p10_p5) target bundleno = 2 (0x2), region = 68 }

</bundles_post_ra>
